<compile_context>
chip_gen: v7x
topology: tpu7x:2x2x1
jax: 0.10.0
libtpu: 0.0.40
codegen_flags: <defaults>
</compile_context>

<pallas_src>
import math

import numpy as np
import jax
import jax.numpy as jnp
from jax import lax
from jax.experimental import pallas as pl
from jax.experimental.pallas import tpu as pltpu


# ---------------------------------------------------------------------------
# Fused kernel factory: one grid step == TB batch elements, all on-chip.
# Row layout: samples are stacked along sublanes with a fixed per-sample row
# stride (28 after conv1, 14 after pool1, 5 after pool2); rows that fall outside
# a sample's valid range carry finite "don't care" data and are dropped by the
# block-diagonal row-compaction selectors RS1/RS2/RS3.
# ---------------------------------------------------------------------------
def _make_lenet_kernel(tb):
    n1 = tb * 28      # conv1 output rows per block (all valid)
    n2 = tb * 14      # pool1 rows per block (all valid)
    r2 = n2 - 4       # conv2 rows carried (valid at s*14+q, q in [0,10))
    n3 = tb * 5       # pool2 rows per block (all valid)
    r3 = n3 - 4       # fc1 rows carried (valid at s*5)

    def kernel(x1_ref, m1_ref, b1_ref, rs1_ref, t1e_ref,
               m2_ref, b2_ref, rs2_ref, t2e_ref,
               wf1_ref, rs3_ref, bf1_ref, wf2_ref, bf2_ref, wf3_ref, bf3_ref,
               out_ref):
        def mm(a, b):
            return jnp.dot(a, b, preferred_element_type=jnp.float32)

        # conv1 (1->6, 5x5, pad=2): taps K-stacked host-side -> one matmul
        a1 = mm(x1_ref[...], m1_ref[...]) + b1_ref[...]            # (n1, 168)

        # maxpool1 2x2/s2: pair-max via shifted slices, then compact rows/lanes
        h1 = jnp.maximum(a1[0:n1 - 1, :], a1[1:n1, :])             # row pairs
        c1 = jnp.maximum(h1[:, 0:167], h1[:, 1:168])               # lane pairs
        p1 = jnp.tanh(mm(mm(rs1_ref[...], c1), t1e_ref[...]))      # (n2, 84)

        # conv2 (6->16, 5x5, no pad): taps stacked along K from shifted row views
        lhs2 = jnp.concatenate([p1[k:k + r2, :] for k in range(5)], axis=1)
        a2 = mm(lhs2, m2_ref[...]) + b2_ref[...]                   # (r2, 160)

        # maxpool2 2x2/s2
        h2 = jnp.maximum(a2[0:r2 - 1, :], a2[1:r2, :])
        c2 = jnp.maximum(h2[:, 0:159], h2[:, 1:160])
        p2 = jnp.tanh(mm(mm(rs2_ref[...], c2), t2e_ref[...]))      # (n3, 80)

        # fc1 (NCHW flatten folded into weight layout, taps K-stacked)
        lhs3 = jnp.concatenate([p2[u:u + r3, :] for u in range(5)], axis=1)
        f1 = mm(lhs3, wf1_ref[...])                                # (r3, 120)
        h = jnp.tanh(mm(rs3_ref[...], f1) + bf1_ref[...])          # (tb, 120)

        # fc2 + tanh, fc3
        h = jnp.tanh(mm(h, wf2_ref[...]) + bf2_ref[...])           # (tb, 84)
        out_ref[...] = mm(h, wf3_ref[...]) + bf3_ref[...]          # (tb, 10)

    return kernel


# ---------------------------------------------------------------------------
# Host-side constant / parameter re-layout helpers (tiny, fused by XLA)
# ---------------------------------------------------------------------------
def _band_placement(w_in, w_out, k):
    # P[kw, w, j] = 1 iff w == j + kw
    kj = np.arange(k)[:, None, None]
    wi = np.arange(w_in)[None, :, None]
    jo = np.arange(w_out)[None, None, :]
    return jnp.asarray((wi == jo + kj).astype(np.float32))


def _lane_even_selector(c, w):
    # (c*w - 1, c*(w//2)): picks the even in-channel lanes after the lane pair-max
    m = w // 2
    e = np.zeros((c * w - 1, c * m), np.float32)
    for ci in range(c):
        e[ci * w + 2 * np.arange(m), ci * m + np.arange(m)] = 1.0
    return jnp.asarray(e)


def _row_even_selector(tb, per_out, stride_in, pick_stride, ncols):
    # block-diagonal over TB samples: picks row s*stride_in + pick_stride*r
    sel = np.zeros((tb * per_out, ncols), np.float32)
    for s in range(tb):
        for r in range(per_out):
            sel[s * per_out + r, s * stride_in + pick_stride * r] = 1.0
    return jnp.asarray(sel)


# ---------------------------------------------------------------------------
# Forward pass == Masked_model.forward
# ---------------------------------------------------------------------------
def masked_model_forward(params, x, tb=None):
    f32 = jnp.float32
    B = x.shape[0]
    if tb is None:
        # keep >= 2 grid steps (use both v7x TensorCores); cap per-step block size
        tb = max(1, min(16, (B + 1) // 2))
    G = -(-B // tb)
    Bp = G * tb

    w1, b1 = params["conv1_w"], params["conv1_b"]        # (6,1,5,5), (6,)
    w2, b2 = params["conv2_w"], params["conv2_b"]        # (16,6,5,5), (16,)

    # banded conv RHS, K-stacked over the 5 kernel rows
    P1 = _band_placement(32, 28, 5)                                   # (5,32,28)
    M1s = jnp.einsum('cab,bwj->awcj', w1[:, 0], P1).reshape(5 * 32, 6 * 28)
    Q2 = _band_placement(14, 10, 5)                                   # (5,14,10)
    M2s = jnp.einsum('dcab,buv->acudv', w2, Q2).reshape(5 * 6 * 14, 16 * 10)
    b1row = jnp.repeat(b1, 28).reshape(1, 6 * 28)
    b2row = jnp.repeat(b2, 10).reshape(1, 16 * 10)

    # pooling compaction selectors (compile-time constants)
    T1e = _lane_even_selector(6, 28)                                  # (167, 84)
    T2e = _lane_even_selector(16, 10)                                 # (159, 80)
    RS1 = _row_even_selector(tb, 14, 28, 2, tb * 28 - 1)
    RS2 = _row_even_selector(tb, 5, 14, 2, tb * 14 - 5)
    RS3 = _row_even_selector(tb, 1, 5, 0, tb * 5 - 4)

    # masked FC weights (CLinear: w * c_mask), pre-transposed so RHS is (K, N);
    # fc1 also folds the NCHW flatten + tap stacking into its row layout
    Wf1s = (params["fc1_w"] * params["fc1_m"]).reshape(120, 16, 5, 5) \
        .transpose(2, 1, 3, 0).reshape(400, 120)
    Wf2 = (params["fc2_w"] * params["fc2_m"]).T                       # (120, 84)
    Wf3 = (params["fc3_w"] * params["fc3_m"]).T                       # (84, 10)
    bf1 = params["fc1_b"].reshape(1, 120)
    bf2 = params["fc2_b"].reshape(1, 84)
    bf3 = params["fc3_b"].reshape(1, 10)

    # input: spatial zero-pad for conv1's padding=2, pad batch to G*tb, then
    # im2col over the 5 kernel rows (conv1 K-stacking done host-side)
    xp = jnp.pad(x[:, 0].astype(f32), ((0, Bp - B), (2, 2), (2, 2)))  # (Bp,32,32)
    X1 = jnp.concatenate([xp[:, k:k + 28, :] for k in range(5)], axis=2)
    X1 = X1.reshape(G, tb * 28, 5 * 32)                               # (G, tb*28, 160)

    def rep_spec(a):
        z = (0,) * a.ndim
        return pl.BlockSpec(a.shape, lambda b, _z=z: _z)

    weights = (M1s, b1row, RS1, T1e, M2s, b2row, RS2, T2e,
               Wf1s, RS3, bf1, Wf2, bf2, Wf3, bf3)
    in_specs = [pl.BlockSpec((None, tb * 28, 5 * 32), lambda b: (b, 0, 0))]
    in_specs += [rep_spec(a) for a in weights]

    out = pl.pallas_call(
        _make_lenet_kernel(tb),
        out_shape=jax.ShapeDtypeStruct((G, tb, 10), f32),
        grid=(G,),
        in_specs=in_specs,
        out_specs=pl.BlockSpec((None, tb, 10), lambda b: (b, 0, 0)),
        compiler_params=pltpu.CompilerParams(
            dimension_semantics=("parallel",)),
    )(X1, *weights)
    return out.reshape(Bp, 10)[:B]


# ---------------------------------------------------------------------------
# Pure-JAX reference (for self-check)
# ---------------------------------------------------------------------------
def reference_forward(params, x):
    y = lax.conv_general_dilated(
        x, params["conv1_w"], window_strides=(1, 1), padding=((2, 2), (2, 2)),
        dimension_numbers=("NCHW", "OIHW", "NCHW"))
    y = jnp.tanh(y + params["conv1_b"][None, :, None, None])
    y = lax.reduce_window(y, -jnp.inf, lax.max, (1, 1, 2, 2), (1, 1, 2, 2), "VALID")
    y = lax.conv_general_dilated(
        y, params["conv2_w"], window_strides=(1, 1), padding=((0, 0), (0, 0)),
        dimension_numbers=("NCHW", "OIHW", "NCHW"))
    y = jnp.tanh(y + params["conv2_b"][None, :, None, None])
    y = lax.reduce_window(y, -jnp.inf, lax.max, (1, 1, 2, 2), (1, 1, 2, 2), "VALID")
    y = y.reshape(x.shape[0], -1)
    y = jnp.tanh(y @ (params["fc1_w"] * params["fc1_m"]).T + params["fc1_b"])
    y = jnp.tanh(y @ (params["fc2_w"] * params["fc2_m"]).T + params["fc2_b"])
    return y @ (params["fc3_w"] * params["fc3_m"]).T + params["fc3_b"]


# ---------------------------------------------------------------------------
# Deterministic synthetic parameters mirroring the torch module's shapes/init
# ---------------------------------------------------------------------------
def init_params(key):
    ks = jax.random.split(key, 10)

    def conv_uniform(k, shape):
        fan_in = shape[1] * shape[2] * shape[3]
        bound = 1.0 / math.sqrt(fan_in)
        return jax.random.uniform(k, shape, jnp.float32, -bound, bound)

    def xavier_uniform(k, shape):  # (out, in)
        fan_out, fan_in = shape
        bound = math.sqrt(6.0 / (fan_in + fan_out))
        return jax.random.uniform(k, shape, jnp.float32, -bound, bound)

    return {
        "conv1_w": conv_uniform(ks[0], (6, 1, 5, 5)),
        "conv1_b": jax.random.uniform(ks[1], (6,), jnp.float32,
                                      -1.0 / math.sqrt(25.0), 1.0 / math.sqrt(25.0)),
        "conv2_w": conv_uniform(ks[2], (16, 6, 5, 5)),
        "conv2_b": jax.random.uniform(ks[3], (16,), jnp.float32,
                                      -1.0 / math.sqrt(150.0), 1.0 / math.sqrt(150.0)),
        "fc1_w": xavier_uniform(ks[4], (120, 400)),
        "fc1_b": jax.random.uniform(ks[5], (120,), jnp.float32, 0.0, 1.0),
        "fc1_m": jnp.ones((120, 400), jnp.float32),
        "fc2_w": xavier_uniform(ks[6], (84, 120)),
        "fc2_b": jax.random.uniform(ks[7], (84,), jnp.float32, 0.0, 1.0),
        "fc2_m": jnp.ones((84, 120), jnp.float32),
        "fc3_w": xavier_uniform(ks[8], (10, 84)),
        "fc3_b": jax.random.uniform(ks[9], (10,), jnp.float32, 0.0, 1.0),
        "fc3_m": jnp.ones((10, 84), jnp.float32),
    }


if __name__ == "__main__":
    jax.config.update("jax_default_matmul_precision", "highest")

    key = jax.random.PRNGKey(0)
    pkey, xkey = jax.random.split(key)
    params = init_params(pkey)
    # Input geometry is fixed by the module: 1x28x28 (fc1 expects 400 = 16*5*5).
    # batch=8 -> TB=4 samples per grid step, 2 grid steps.
    x = jax.random.normal(xkey, (8, 1, 28, 28), jnp.float32)

    fwd = jax.jit(masked_model_forward)
    out = fwd(params, x)
    jax.block_until_ready(out)

    assert out.shape == (8, 10) and out.dtype == jnp.float32
    assert bool(jnp.all(jnp.isfinite(out)))

    ref = jax.jit(reference_forward)(params, x)
    max_err = float(jnp.max(jnp.abs(out - ref)))
    assert max_err < 5e-3, f"mismatch vs reference: {max_err}"

    print("KERNEL_OK")
</pallas_src>

<mosaic_0001>
module attributes {stable_mosaic.version = 11 : i64} {
  func.func @kernel(%arg0: i32, %arg1: memref<1x112x160xf32, #tpu.memory_space<vmem>>, %arg2: memref<160x168xf32, #tpu.memory_space<vmem>>, %arg3: memref<1x168xf32, #tpu.memory_space<vmem>>, %arg4: memref<56x111xf32, #tpu.memory_space<vmem>>, %arg5: memref<167x84xf32, #tpu.memory_space<vmem>>, %arg6: memref<420x160xf32, #tpu.memory_space<vmem>>, %arg7: memref<1x160xf32, #tpu.memory_space<vmem>>, %arg8: memref<20x51xf32, #tpu.memory_space<vmem>>, %arg9: memref<159x80xf32, #tpu.memory_space<vmem>>, %arg10: memref<400x120xf32, #tpu.memory_space<vmem>>, %arg11: memref<4x16xf32, #tpu.memory_space<vmem>>, %arg12: memref<1x120xf32, #tpu.memory_space<vmem>>, %arg13: memref<120x84xf32, #tpu.memory_space<vmem>>, %arg14: memref<1x84xf32, #tpu.memory_space<vmem>>, %arg15: memref<84x10xf32, #tpu.memory_space<vmem>>, %arg16: memref<1x10xf32, #tpu.memory_space<vmem>>, %arg17: memref<1x4x10xf32, #tpu.memory_space<vmem>>) attributes {dimension_semantics = [#tpu.dimension_semantics<parallel>], iteration_bounds = array<i64: 2>, scalar_prefetch = 0 : i64, scratch_operands = 0 : i64, tpu.core_type = #tpu.core_type<tc>, window_params = [{transform_indices = @transform_0, window_bounds = array<i64: 1, 112, 160>}, {pipeline_mode = #tpu.pipeline_mode<synchronous>, transform_indices = @transform_1, window_bounds = array<i64: 160, 168>}, {pipeline_mode = #tpu.pipeline_mode<synchronous>, transform_indices = @transform_2, window_bounds = array<i64: 1, 168>}, {pipeline_mode = #tpu.pipeline_mode<synchronous>, transform_indices = @transform_3, window_bounds = array<i64: 56, 111>}, {pipeline_mode = #tpu.pipeline_mode<synchronous>, transform_indices = @transform_4, window_bounds = array<i64: 167, 84>}, {pipeline_mode = #tpu.pipeline_mode<synchronous>, transform_indices = @transform_5, window_bounds = array<i64: 420, 160>}, {pipeline_mode = #tpu.pipeline_mode<synchronous>, transform_indices = @transform_6, window_bounds = array<i64: 1, 160>}, {pipeline_mode = #tpu.pipeline_mode<synchronous>, transform_indices = @transform_7, window_bounds = array<i64: 20, 51>}, {pipeline_mode = #tpu.pipeline_mode<synchronous>, transform_indices = @transform_8, window_bounds = array<i64: 159, 80>}, {pipeline_mode = #tpu.pipeline_mode<synchronous>, transform_indices = @transform_9, window_bounds = array<i64: 400, 120>}, {pipeline_mode = #tpu.pipeline_mode<synchronous>, transform_indices = @transform_10, window_bounds = array<i64: 4, 16>}, {pipeline_mode = #tpu.pipeline_mode<synchronous>, transform_indices = @transform_11, window_bounds = array<i64: 1, 120>}, {pipeline_mode = #tpu.pipeline_mode<synchronous>, transform_indices = @transform_12, window_bounds = array<i64: 120, 84>}, {pipeline_mode = #tpu.pipeline_mode<synchronous>, transform_indices = @transform_13, window_bounds = array<i64: 1, 84>}, {pipeline_mode = #tpu.pipeline_mode<synchronous>, transform_indices = @transform_14, window_bounds = array<i64: 84, 10>}, {pipeline_mode = #tpu.pipeline_mode<synchronous>, transform_indices = @transform_15, window_bounds = array<i64: 1, 10>}, {transform_indices = @transform_16, window_bounds = array<i64: 1, 4, 10>}]} {
    %c0 = arith.constant 0 : index
    %c0_0 = arith.constant 0 : index
    %c0_1 = arith.constant 0 : index
    %0 = vector.load %arg1[%c0, %c0_0, %c0_1] : memref<1x112x160xf32, #tpu.memory_space<vmem>>, vector<1x112x160xf32>
    %1 = vector.shape_cast %0 : vector<1x112x160xf32> to vector<112x160xf32>
    %c0_2 = arith.constant 0 : index
    %c0_3 = arith.constant 0 : index
    %2 = vector.load %arg2[%c0_2, %c0_3] : memref<160x168xf32, #tpu.memory_space<vmem>>, vector<160x168xf32>
    %cst = arith.constant dense<0.000000e+00> : vector<112x168xf32>
    %3 = tpu.matmul %1, %2, %cst {dimension_numbers = #tpu.dot_dimension_numbers<[1], [0], [0], [1], [0, 0, 1, 1], [], []>, precision = #tpu.contract_precision<fp32>} : vector<112x160xf32>, vector<160x168xf32>, vector<112x168xf32> -> vector<112x168xf32>
    %c0_4 = arith.constant 0 : index
    %c0_5 = arith.constant 0 : index
    %4 = vector.load %arg3[%c0_4, %c0_5] : memref<1x168xf32, #tpu.memory_space<vmem>>, vector<1x168xf32>
    %5 = vector.broadcast %4 : vector<1x168xf32> to vector<112x168xf32>
    %6 = arith.addf %3, %5 : vector<112x168xf32>
    %7 = vector.extract_strided_slice %6 {offsets = [0, 0], sizes = [111, 168], strides = [1, 1]} : vector<112x168xf32> to vector<111x168xf32>
    %8 = vector.extract_strided_slice %6 {offsets = [1, 0], sizes = [111, 168], strides = [1, 1]} : vector<112x168xf32> to vector<111x168xf32>
    %9 = arith.maximumf %7, %8 : vector<111x168xf32>
    %10 = vector.extract_strided_slice %9 {offsets = [0, 0], sizes = [111, 167], strides = [1, 1]} : vector<111x168xf32> to vector<111x167xf32>
    %11 = vector.extract_strided_slice %9 {offsets = [0, 1], sizes = [111, 167], strides = [1, 1]} : vector<111x168xf32> to vector<111x167xf32>
    %12 = arith.maximumf %10, %11 : vector<111x167xf32>
    %c0_6 = arith.constant 0 : index
    %c0_7 = arith.constant 0 : index
    %13 = vector.load %arg4[%c0_6, %c0_7] : memref<56x111xf32, #tpu.memory_space<vmem>>, vector<56x111xf32>
    %cst_8 = arith.constant dense<0.000000e+00> : vector<56x167xf32>
    %14 = tpu.matmul %13, %12, %cst_8 {dimension_numbers = #tpu.dot_dimension_numbers<[1], [0], [0], [1], [0, 0, 1, 1], [], []>, precision = #tpu.contract_precision<fp32>} : vector<56x111xf32>, vector<111x167xf32>, vector<56x167xf32> -> vector<56x167xf32>
    %c0_9 = arith.constant 0 : index
    %c0_10 = arith.constant 0 : index
    %15 = vector.load %arg5[%c0_9, %c0_10] : memref<167x84xf32, #tpu.memory_space<vmem>>, vector<167x84xf32>
    %cst_11 = arith.constant dense<0.000000e+00> : vector<56x84xf32>
    %16 = tpu.matmul %14, %15, %cst_11 {dimension_numbers = #tpu.dot_dimension_numbers<[1], [0], [0], [1], [0, 0, 1, 1], [], []>, precision = #tpu.contract_precision<fp32>} : vector<56x167xf32>, vector<167x84xf32>, vector<56x84xf32> -> vector<56x84xf32>
    %17 = math.tanh %16 : vector<56x84xf32>
    %18 = vector.extract_strided_slice %17 {offsets = [0, 0], sizes = [52, 84], strides = [1, 1]} : vector<56x84xf32> to vector<52x84xf32>
    %19 = vector.extract_strided_slice %17 {offsets = [1, 0], sizes = [52, 84], strides = [1, 1]} : vector<56x84xf32> to vector<52x84xf32>
    %20 = vector.extract_strided_slice %17 {offsets = [2, 0], sizes = [52, 84], strides = [1, 1]} : vector<56x84xf32> to vector<52x84xf32>
    %21 = vector.extract_strided_slice %17 {offsets = [3, 0], sizes = [52, 84], strides = [1, 1]} : vector<56x84xf32> to vector<52x84xf32>
    %22 = vector.extract_strided_slice %17 {offsets = [4, 0], sizes = [52, 84], strides = [1, 1]} : vector<56x84xf32> to vector<52x84xf32>
    %23 = tpu.concatenate %18, %19, %20, %21, %22 in 1 : vector<52x84xf32>, vector<52x84xf32>, vector<52x84xf32>, vector<52x84xf32>, vector<52x84xf32> -> vector<52x420xf32>
    %c0_12 = arith.constant 0 : index
    %c0_13 = arith.constant 0 : index
    %24 = vector.load %arg6[%c0_12, %c0_13] : memref<420x160xf32, #tpu.memory_space<vmem>>, vector<420x160xf32>
    %cst_14 = arith.constant dense<0.000000e+00> : vector<52x160xf32>
    %25 = tpu.matmul %23, %24, %cst_14 {dimension_numbers = #tpu.dot_dimension_numbers<[1], [0], [0], [1], [0, 0, 1, 1], [], []>, precision = #tpu.contract_precision<fp32>} : vector<52x420xf32>, vector<420x160xf32>, vector<52x160xf32> -> vector<52x160xf32>
    %c0_15 = arith.constant 0 : index
    %c0_16 = arith.constant 0 : index
    %26 = vector.load %arg7[%c0_15, %c0_16] : memref<1x160xf32, #tpu.memory_space<vmem>>, vector<1x160xf32>
    %27 = vector.broadcast %26 : vector<1x160xf32> to vector<52x160xf32>
    %28 = arith.addf %25, %27 : vector<52x160xf32>
    %29 = vector.extract_strided_slice %28 {offsets = [0, 0], sizes = [51, 160], strides = [1, 1]} : vector<52x160xf32> to vector<51x160xf32>
    %30 = vector.extract_strided_slice %28 {offsets = [1, 0], sizes = [51, 160], strides = [1, 1]} : vector<52x160xf32> to vector<51x160xf32>
    %31 = arith.maximumf %29, %30 : vector<51x160xf32>
    %32 = vector.extract_strided_slice %31 {offsets = [0, 0], sizes = [51, 159], strides = [1, 1]} : vector<51x160xf32> to vector<51x159xf32>
    %33 = vector.extract_strided_slice %31 {offsets = [0, 1], sizes = [51, 159], strides = [1, 1]} : vector<51x160xf32> to vector<51x159xf32>
    %34 = arith.maximumf %32, %33 : vector<51x159xf32>
    %c0_17 = arith.constant 0 : index
    %c0_18 = arith.constant 0 : index
    %35 = vector.load %arg8[%c0_17, %c0_18] : memref<20x51xf32, #tpu.memory_space<vmem>>, vector<20x51xf32>
    %cst_19 = arith.constant dense<0.000000e+00> : vector<20x159xf32>
    %36 = tpu.matmul %35, %34, %cst_19 {dimension_numbers = #tpu.dot_dimension_numbers<[1], [0], [0], [1], [0, 0, 1, 1], [], []>, precision = #tpu.contract_precision<fp32>} : vector<20x51xf32>, vector<51x159xf32>, vector<20x159xf32> -> vector<20x159xf32>
    %c0_20 = arith.constant 0 : index
    %c0_21 = arith.constant 0 : index
    %37 = vector.load %arg9[%c0_20, %c0_21] : memref<159x80xf32, #tpu.memory_space<vmem>>, vector<159x80xf32>
    %cst_22 = arith.constant dense<0.000000e+00> : vector<20x80xf32>
    %38 = tpu.matmul %36, %37, %cst_22 {dimension_numbers = #tpu.dot_dimension_numbers<[1], [0], [0], [1], [0, 0, 1, 1], [], []>, precision = #tpu.contract_precision<fp32>} : vector<20x159xf32>, vector<159x80xf32>, vector<20x80xf32> -> vector<20x80xf32>
    %39 = math.tanh %38 : vector<20x80xf32>
    %40 = vector.extract_strided_slice %39 {offsets = [0, 0], sizes = [16, 80], strides = [1, 1]} : vector<20x80xf32> to vector<16x80xf32>
    %41 = vector.extract_strided_slice %39 {offsets = [1, 0], sizes = [16, 80], strides = [1, 1]} : vector<20x80xf32> to vector<16x80xf32>
    %42 = vector.extract_strided_slice %39 {offsets = [2, 0], sizes = [16, 80], strides = [1, 1]} : vector<20x80xf32> to vector<16x80xf32>
    %43 = vector.extract_strided_slice %39 {offsets = [3, 0], sizes = [16, 80], strides = [1, 1]} : vector<20x80xf32> to vector<16x80xf32>
    %44 = vector.extract_strided_slice %39 {offsets = [4, 0], sizes = [16, 80], strides = [1, 1]} : vector<20x80xf32> to vector<16x80xf32>
    %45 = tpu.concatenate %40, %41, %42, %43, %44 in 1 : vector<16x80xf32>, vector<16x80xf32>, vector<16x80xf32>, vector<16x80xf32>, vector<16x80xf32> -> vector<16x400xf32>
    %c0_23 = arith.constant 0 : index
    %c0_24 = arith.constant 0 : index
    %46 = vector.load %arg10[%c0_23, %c0_24] : memref<400x120xf32, #tpu.memory_space<vmem>>, vector<400x120xf32>
    %cst_25 = arith.constant dense<0.000000e+00> : vector<16x120xf32>
    %47 = tpu.matmul %45, %46, %cst_25 {dimension_numbers = #tpu.dot_dimension_numbers<[1], [0], [0], [1], [0, 0, 1, 1], [], []>, precision = #tpu.contract_precision<fp32>} : vector<16x400xf32>, vector<400x120xf32>, vector<16x120xf32> -> vector<16x120xf32>
    %c0_26 = arith.constant 0 : index
    %c0_27 = arith.constant 0 : index
    %48 = vector.load %arg11[%c0_26, %c0_27] : memref<4x16xf32, #tpu.memory_space<vmem>>, vector<4x16xf32>
    %cst_28 = arith.constant dense<0.000000e+00> : vector<4x120xf32>
    %49 = tpu.matmul %48, %47, %cst_28 {dimension_numbers = #tpu.dot_dimension_numbers<[1], [0], [0], [1], [0, 0, 1, 1], [], []>, precision = #tpu.contract_precision<fp32>} : vector<4x16xf32>, vector<16x120xf32>, vector<4x120xf32> -> vector<4x120xf32>
    %c0_29 = arith.constant 0 : index
    %c0_30 = arith.constant 0 : index
    %50 = vector.load %arg12[%c0_29, %c0_30] : memref<1x120xf32, #tpu.memory_space<vmem>>, vector<1x120xf32>
    %51 = vector.broadcast %50 : vector<1x120xf32> to vector<4x120xf32>
    %52 = arith.addf %49, %51 : vector<4x120xf32>
    %53 = math.tanh %52 : vector<4x120xf32>
    %c0_31 = arith.constant 0 : index
    %c0_32 = arith.constant 0 : index
    %54 = vector.load %arg13[%c0_31, %c0_32] : memref<120x84xf32, #tpu.memory_space<vmem>>, vector<120x84xf32>
    %cst_33 = arith.constant dense<0.000000e+00> : vector<4x84xf32>
    %55 = tpu.matmul %53, %54, %cst_33 {dimension_numbers = #tpu.dot_dimension_numbers<[1], [0], [0], [1], [0, 0, 1, 1], [], []>, precision = #tpu.contract_precision<fp32>} : vector<4x120xf32>, vector<120x84xf32>, vector<4x84xf32> -> vector<4x84xf32>
    %c0_34 = arith.constant 0 : index
    %c0_35 = arith.constant 0 : index
    %56 = vector.load %arg14[%c0_34, %c0_35] : memref<1x84xf32, #tpu.memory_space<vmem>>, vector<1x84xf32>
    %57 = vector.broadcast %56 : vector<1x84xf32> to vector<4x84xf32>
    %58 = arith.addf %55, %57 : vector<4x84xf32>
    %59 = math.tanh %58 : vector<4x84xf32>
    %c0_36 = arith.constant 0 : index
    %c0_37 = arith.constant 0 : index
    %60 = vector.load %arg15[%c0_36, %c0_37] : memref<84x10xf32, #tpu.memory_space<vmem>>, vector<84x10xf32>
    %cst_38 = arith.constant dense<0.000000e+00> : vector<4x10xf32>
    %61 = tpu.matmul %59, %60, %cst_38 {dimension_numbers = #tpu.dot_dimension_numbers<[1], [0], [0], [1], [0, 0, 1, 1], [], []>, precision = #tpu.contract_precision<fp32>} : vector<4x84xf32>, vector<84x10xf32>, vector<4x10xf32> -> vector<4x10xf32>
    %c0_39 = arith.constant 0 : index
    %c0_40 = arith.constant 0 : index
    %62 = vector.load %arg16[%c0_39, %c0_40] : memref<1x10xf32, #tpu.memory_space<vmem>>, vector<1x10xf32>
    %63 = vector.broadcast %62 : vector<1x10xf32> to vector<4x10xf32>
    %64 = arith.addf %61, %63 : vector<4x10xf32>
    %c0_41 = arith.constant 0 : index
    %c0_42 = arith.constant 0 : index
    %c0_43 = arith.constant 0 : index
    %65 = vector.load %arg17[%c0_41, %c0_42, %c0_43] : memref<1x4x10xf32, #tpu.memory_space<vmem>>, vector<1x4x10xf32>
    %66 = vector.shape_cast %65 : vector<1x4x10xf32> to vector<4x10xf32>
    %67 = vector.shape_cast %64 : vector<4x10xf32> to vector<1x4x10xf32>
    tpu.vector_store %arg17[%c0_41, %c0_42, %c0_43], %67 {strides = array<i32>} : memref<1x4x10xf32, #tpu.memory_space<vmem>>, vector<1x4x10xf32>,
    return
  }
  func.func @transform_0(%arg0: i32) -> (i32, i32, i32) {
    %c0_i32 = arith.constant 0 : i32
    %c0_i32_0 = arith.constant 0 : i32
    %c0_i32_1 = arith.constant 0 : i32
    return %arg0, %c0_i32, %c0_i32_0 : i32, i32, i32
  }
  func.func @transform_1(%arg0: i32) -> (i32, i32) {
    %c0_i32 = arith.constant 0 : i32
    %c0_i32_0 = arith.constant 0 : i32
    %c0_i32_1 = arith.constant 0 : i32
    return %c0_i32, %c0_i32_0 : i32, i32
  }
  func.func @transform_2(%arg0: i32) -> (i32, i32) {
    %c0_i32 = arith.constant 0 : i32
    %c0_i32_0 = arith.constant 0 : i32
    %c0_i32_1 = arith.constant 0 : i32
    return %c0_i32, %c0_i32_0 : i32, i32
  }
  func.func @transform_3(%arg0: i32) -> (i32, i32) {
    %c0_i32 = arith.constant 0 : i32
    %c0_i32_0 = arith.constant 0 : i32
    %c0_i32_1 = arith.constant 0 : i32
    return %c0_i32, %c0_i32_0 : i32, i32
  }
  func.func @transform_4(%arg0: i32) -> (i32, i32) {
    %c0_i32 = arith.constant 0 : i32
    %c0_i32_0 = arith.constant 0 : i32
    %c0_i32_1 = arith.constant 0 : i32
    return %c0_i32, %c0_i32_0 : i32, i32
  }
  func.func @transform_5(%arg0: i32) -> (i32, i32) {
    %c0_i32 = arith.constant 0 : i32
    %c0_i32_0 = arith.constant 0 : i32
    %c0_i32_1 = arith.constant 0 : i32
    return %c0_i32, %c0_i32_0 : i32, i32
  }
  func.func @transform_6(%arg0: i32) -> (i32, i32) {
    %c0_i32 = arith.constant 0 : i32
    %c0_i32_0 = arith.constant 0 : i32
    %c0_i32_1 = arith.constant 0 : i32
    return %c0_i32, %c0_i32_0 : i32, i32
  }
  func.func @transform_7(%arg0: i32) -> (i32, i32) {
    %c0_i32 = arith.constant 0 : i32
    %c0_i32_0 = arith.constant 0 : i32
    %c0_i32_1 = arith.constant 0 : i32
    return %c0_i32, %c0_i32_0 : i32, i32
  }
  func.func @transform_8(%arg0: i32) -> (i32, i32) {
    %c0_i32 = arith.constant 0 : i32
    %c0_i32_0 = arith.constant 0 : i32
    %c0_i32_1 = arith.constant 0 : i32
    return %c0_i32, %c0_i32_0 : i32, i32
  }
  func.func @transform_9(%arg0: i32) -> (i32, i32) {
    %c0_i32 = arith.constant 0 : i32
    %c0_i32_0 = arith.constant 0 : i32
    %c0_i32_1 = arith.constant 0 : i32
    return %c0_i32, %c0_i32_0 : i32, i32
  }
  func.func @transform_10(%arg0: i32) -> (i32, i32) {
    %c0_i32 = arith.constant 0 : i32
    %c0_i32_0 = arith.constant 0 : i32
    %c0_i32_1 = arith.constant 0 : i32
    return %c0_i32, %c0_i32_0 : i32, i32
  }
  func.func @transform_11(%arg0: i32) -> (i32, i32) {
    %c0_i32 = arith.constant 0 : i32
    %c0_i32_0 = arith.constant 0 : i32
    %c0_i32_1 = arith.constant 0 : i32
    return %c0_i32, %c0_i32_0 : i32, i32
  }
  func.func @transform_12(%arg0: i32) -> (i32, i32) {
    %c0_i32 = arith.constant 0 : i32
    %c0_i32_0 = arith.constant 0 : i32
    %c0_i32_1 = arith.constant 0 : i32
    return %c0_i32, %c0_i32_0 : i32, i32
  }
  func.func @transform_13(%arg0: i32) -> (i32, i32) {
    %c0_i32 = arith.constant 0 : i32
    %c0_i32_0 = arith.constant 0 : i32
    %c0_i32_1 = arith.constant 0 : i32
    return %c0_i32, %c0_i32_0 : i32, i32
  }
  func.func @transform_14(%arg0: i32) -> (i32, i32) {
    %c0_i32 = arith.constant 0 : i32
    %c0_i32_0 = arith.constant 0 : i32
    %c0_i32_1 = arith.constant 0 : i32
    return %c0_i32, %c0_i32_0 : i32, i32
  }
  func.func @transform_15(%arg0: i32) -> (i32, i32) {
    %c0_i32 = arith.constant 0 : i32
    %c0_i32_0 = arith.constant 0 : i32
    %c0_i32_1 = arith.constant 0 : i32
    return %c0_i32, %c0_i32_0 : i32, i32
  }
  func.func @transform_16(%arg0: i32) -> (i32, i32, i32) {
    %c0_i32 = arith.constant 0 : i32
    %c0_i32_0 = arith.constant 0 : i32
    %c0_i32_1 = arith.constant 0 : i32
    return %arg0, %c0_i32, %c0_i32_0 : i32, i32, i32
  }
}

</mosaic_0001>

<bundles_post_ra>
// kernel: mul.3
= control target key start
LH: loop header
LB: loop body
LE: loop exit
PB: predicated region body
PF: predicated region fallthrough
CT: control target
= control target key end

     0   :  { %s1112_s0 = inlined_call_operand.vmem [shape: f32[120,400], index: 0, kind: input, shape index: {}]   ;;  %s1113_s1 = inlined_call_operand.vmem [shape: f32[120,400], index: 1, kind: input, shape index: {}]   ;;  %s1114_s2 = inlined_call_operand.vmem [shape: f32[120,400], index: 2, kind: output, shape index: {}]  }
   0x1   :  { %v3_v0 = vld [vmem:[%s1112_s0] sm:$0xff]  ;;  %v500_v2 = vld [vmem:[%s1112_s0 + $0x8] sm:$0xff]  ;;  %v503_v5 = vld [vmem:[%s1112_s0 + $0x10] sm:$0xff] }
   0x2   :  { %v4_v1 = vld [vmem:[%s1113_s1] sm:$0xff]  ;;  %v501_v4 = vld [vmem:[%s1113_s1 + $0x8] sm:$0xff]  ;;  %v504_v6 = vld [vmem:[%s1113_s1 + $0x10] sm:$0xff] }
   0x3   :  { %v7_v3 = vmul.f32 %v4_v1, %v3_v0  ;;  %v16_v7 = vmul.f32 %v501_v4, %v500_v2  ;;  %v26_v8 = vmul.f32 %v504_v6, %v503_v5  ;;  %v506_v9 = vld [vmem:[%s1112_s0 + $0x18] sm:$0xff]  ;;  %v509_v11 = vld [vmem:[%s1112_s0 + $0x20] sm:$0xff]  ;;  %v512_v14 = vld [vmem:[%s1112_s0 + $0x28] sm:$0xff] }
   0x4   :  { %v507_v10 = vld [vmem:[%s1113_s1 + $0x18] sm:$0xff]  ;;  %v510_v13 = vld [vmem:[%s1113_s1 + $0x20] sm:$0xff]  ;;  %v513_v15 = vld [vmem:[%s1113_s1 + $0x28] sm:$0xff] }
   0x5   :  { %9 = vst [vmem:[%s1114_s2] sm:$0xff] %v7_v3  ;;  %v36_v12 = vmul.f32 %v507_v10, %v506_v9  ;;  %502 = vst [vmem:[%s1114_s2 + $0x8] sm:$0xff] %v16_v7  ;;  %v46_v16 = vmul.f32 %v510_v13, %v509_v11  ;;  %v56_v17 = vmul.f32 %v513_v15, %v512_v14  ;;  %v515_v18 = vld [vmem:[%s1112_s0 + $0x30] sm:$0xff]  ;;  %v518_v20 = vld [vmem:[%s1112_s0 + $0x38] sm:$0xff] }
   0x6   :  { %505 = vst [vmem:[%s1114_s2 + $0x10] sm:$0xff] %v26_v8  ;;  %v516_v19 = vld [vmem:[%s1113_s1 + $0x30] sm:$0xff]  ;;  %v519_v22 = vld [vmem:[%s1113_s1 + $0x38] sm:$0xff]  ;;  %v521_v23 = vld [vmem:[%s1112_s0 + $0x40] sm:$0xff] }
   0x7   :  { %508 = vst [vmem:[%s1114_s2 + $0x18] sm:$0xff] %v36_v12  ;;  %v66_v21 = vmul.f32 %v516_v19, %v515_v18  ;;  %v522_v24 = vld [vmem:[%s1113_s1 + $0x40] sm:$0xff]  ;;  %511 = vst [vmem:[%s1114_s2 + $0x20] sm:$0xff] %v46_v16  ;;  %v76_v25 = vmul.f32 %v519_v22, %v518_v20  ;;  %v524_v27 = vld [vmem:[%s1112_s0 + $0x48] sm:$0xff] }
   0x8   :  { %514 = vst [vmem:[%s1114_s2 + $0x28] sm:$0xff] %v56_v17  ;;  %v86_v26 = vmul.f32 %v522_v24, %v521_v23  ;;  %v525_v28 = vld [vmem:[%s1113_s1 + $0x48] sm:$0xff]  ;;  %v527_v29 = vld [vmem:[%s1112_s0 + $0x50] sm:$0xff]  ;;  %v530_v32 = vld [vmem:[%s1112_s0 + $0x58] sm:$0xff] }
   0x9   :  { %517 = vst [vmem:[%s1114_s2 + $0x30] sm:$0xff] %v66_v21  ;;  %v96_v30 = vmul.f32 %v525_v28, %v524_v27  ;;  %v528_v31 = vld [vmem:[%s1113_s1 + $0x50] sm:$0xff]  ;;  %v531_v33 = vld [vmem:[%s1113_s1 + $0x58] sm:$0xff]  ;;  %520 = vst [vmem:[%s1114_s2 + $0x38] sm:$0xff] %v76_v25 }
   0xa   :  { %523 = vst [vmem:[%s1114_s2 + $0x40] sm:$0xff] %v86_v26  ;;  %v106_v34 = vmul.f32 %v528_v31, %v527_v29  ;;  %v116_v35 = vmul.f32 %v531_v33, %v530_v32  ;;  %v533_v36 = vld [vmem:[%s1112_s0 + $0x60] sm:$0xff]  ;;  %v536_v38 = vld [vmem:[%s1112_s0 + $0x68] sm:$0xff]  ;;  %v539_v41 = vld [vmem:[%s1112_s0 + $0x70] sm:$0xff] }
   0xb   :  { %v534_v37 = vld [vmem:[%s1113_s1 + $0x60] sm:$0xff]  ;;  %526 = vst [vmem:[%s1114_s2 + $0x48] sm:$0xff] %v96_v30  ;;  %v537_v40 = vld [vmem:[%s1113_s1 + $0x68] sm:$0xff]  ;;  %v540_v42 = vld [vmem:[%s1113_s1 + $0x70] sm:$0xff] }
   0xc   :  { %v126_v39 = vmul.f32 %v534_v37, %v533_v36  ;;  %529 = vst [vmem:[%s1114_s2 + $0x50] sm:$0xff] %v106_v34  ;;  %532 = vst [vmem:[%s1114_s2 + $0x58] sm:$0xff] %v116_v35  ;;  %v136_v43 = vmul.f32 %v537_v40, %v536_v38  ;;  %v146_v44 = vmul.f32 %v540_v42, %v539_v41  ;;  %v542_v45 = vld [vmem:[%s1112_s0 + $0x78] sm:$0xff]  ;;  %v545_v47 = vld [vmem:[%s1112_s0 + $0x80] sm:$0xff] }
   0xd   :  { %v543_v46 = vld [vmem:[%s1113_s1 + $0x78] sm:$0xff]  ;;  %v546_v49 = vld [vmem:[%s1113_s1 + $0x80] sm:$0xff]  ;;  %v548_v50 = vld [vmem:[%s1112_s0 + $0x88] sm:$0xff] }
   0xe   :  { %535 = vst [vmem:[%s1114_s2 + $0x60] sm:$0xff] %v126_v39  ;;  %v156_v48 = vmul.f32 %v543_v46, %v542_v45  ;;  %v549_v51 = vld [vmem:[%s1113_s1 + $0x88] sm:$0xff]  ;;  %538 = vst [vmem:[%s1114_s2 + $0x68] sm:$0xff] %v136_v43  ;;  %v166_v52 = vmul.f32 %v546_v49, %v545_v47  ;;  %v551_v54 = vld [vmem:[%s1112_s0 + $0x90] sm:$0xff] }
   0xf   :  { %541 = vst [vmem:[%s1114_s2 + $0x70] sm:$0xff] %v146_v44  ;;  %v176_v53 = vmul.f32 %v549_v51, %v548_v50  ;;  %v552_v55 = vld [vmem:[%s1113_s1 + $0x90] sm:$0xff]  ;;  %v554_v56 = vld [vmem:[%s1112_s0 + $0x98] sm:$0xff]  ;;  %v557_v59 = vld [vmem:[%s1112_s0 + $0xa0] sm:$0xff] }
  0x10   :  { %544 = vst [vmem:[%s1114_s2 + $0x78] sm:$0xff] %v156_v48  ;;  %v186_v57 = vmul.f32 %v552_v55, %v551_v54  ;;  %v555_v58 = vld [vmem:[%s1113_s1 + $0x98] sm:$0xff]  ;;  %v558_v60 = vld [vmem:[%s1113_s1 + $0xa0] sm:$0xff]  ;;  %547 = vst [vmem:[%s1114_s2 + $0x80] sm:$0xff] %v166_v52 }
  0x11   :  { %550 = vst [vmem:[%s1114_s2 + $0x88] sm:$0xff] %v176_v53  ;;  %v196_v61 = vmul.f32 %v555_v58, %v554_v56  ;;  %v206_v62 = vmul.f32 %v558_v60, %v557_v59  ;;  %v560_v63 = vld [vmem:[%s1112_s0 + $0xa8] sm:$0xff]  ;;  %v563_v1 = vld [vmem:[%s1112_s0 + $0xb0] sm:$0xff]  ;;  %v566_v4 = vld [vmem:[%s1112_s0 + $0xb8] sm:$0xff] }
  0x12   :  { %v561_v0 = vld [vmem:[%s1113_s1 + $0xa8] sm:$0xff]  ;;  %553 = vst [vmem:[%s1114_s2 + $0x90] sm:$0xff] %v186_v57  ;;  %v564_v3 = vld [vmem:[%s1113_s1 + $0xb0] sm:$0xff]  ;;  %v567_v5 = vld [vmem:[%s1113_s1 + $0xb8] sm:$0xff] }
  0x13   :  { %v216_v2 = vmul.f32 %v561_v0, %v560_v63  ;;  %556 = vst [vmem:[%s1114_s2 + $0x98] sm:$0xff] %v196_v61  ;;  %559 = vst [vmem:[%s1114_s2 + $0xa0] sm:$0xff] %v206_v62  ;;  %v226_v6 = vmul.f32 %v564_v3, %v563_v1  ;;  %v236_v7 = vmul.f32 %v567_v5, %v566_v4  ;;  %v569_v8 = vld [vmem:[%s1112_s0 + $0xc0] sm:$0xff]  ;;  %v572_v10 = vld [vmem:[%s1112_s0 + $0xc8] sm:$0xff] }
  0x14   :  { %v570_v9 = vld [vmem:[%s1113_s1 + $0xc0] sm:$0xff]  ;;  %v573_v12 = vld [vmem:[%s1113_s1 + $0xc8] sm:$0xff]  ;;  %v575_v13 = vld [vmem:[%s1112_s0 + $0xd0] sm:$0xff] }
  0x15   :  { %562 = vst [vmem:[%s1114_s2 + $0xa8] sm:$0xff] %v216_v2  ;;  %v246_v11 = vmul.f32 %v570_v9, %v569_v8  ;;  %v576_v14 = vld [vmem:[%s1113_s1 + $0xd0] sm:$0xff]  ;;  %565 = vst [vmem:[%s1114_s2 + $0xb0] sm:$0xff] %v226_v6  ;;  %v256_v15 = vmul.f32 %v573_v12, %v572_v10  ;;  %v578_v17 = vld [vmem:[%s1112_s0 + $0xd8] sm:$0xff] }
  0x16   :  { %568 = vst [vmem:[%s1114_s2 + $0xb8] sm:$0xff] %v236_v7  ;;  %v266_v16 = vmul.f32 %v576_v14, %v575_v13  ;;  %v579_v18 = vld [vmem:[%s1113_s1 + $0xd8] sm:$0xff]  ;;  %v581_v19 = vld [vmem:[%s1112_s0 + $0xe0] sm:$0xff]  ;;  %v584_v22 = vld [vmem:[%s1112_s0 + $0xe8] sm:$0xff] }
  0x17   :  { %571 = vst [vmem:[%s1114_s2 + $0xc0] sm:$0xff] %v246_v11  ;;  %v276_v20 = vmul.f32 %v579_v18, %v578_v17  ;;  %v582_v21 = vld [vmem:[%s1113_s1 + $0xe0] sm:$0xff]  ;;  %v585_v23 = vld [vmem:[%s1113_s1 + $0xe8] sm:$0xff]  ;;  %574 = vst [vmem:[%s1114_s2 + $0xc8] sm:$0xff] %v256_v15 }
  0x18   :  { %577 = vst [vmem:[%s1114_s2 + $0xd0] sm:$0xff] %v266_v16  ;;  %v286_v24 = vmul.f32 %v582_v21, %v581_v19  ;;  %v296_v25 = vmul.f32 %v585_v23, %v584_v22  ;;  %v587_v26 = vld [vmem:[%s1112_s0 + $0xf0] sm:$0xff]  ;;  %v590_v28 = vld [vmem:[%s1112_s0 + $0xf8] sm:$0xff]  ;;  %v593_v31 = vld [vmem:[%s1112_s0 + $0x100] sm:$0xff] }
  0x19   :  { %v588_v27 = vld [vmem:[%s1113_s1 + $0xf0] sm:$0xff]  ;;  %580 = vst [vmem:[%s1114_s2 + $0xd8] sm:$0xff] %v276_v20  ;;  %v591_v30 = vld [vmem:[%s1113_s1 + $0xf8] sm:$0xff]  ;;  %v594_v32 = vld [vmem:[%s1113_s1 + $0x100] sm:$0xff] }
  0x1a   :  { %v306_v29 = vmul.f32 %v588_v27, %v587_v26  ;;  %583 = vst [vmem:[%s1114_s2 + $0xe0] sm:$0xff] %v286_v24  ;;  %586 = vst [vmem:[%s1114_s2 + $0xe8] sm:$0xff] %v296_v25  ;;  %v316_v33 = vmul.f32 %v591_v30, %v590_v28  ;;  %v326_v34 = vmul.f32 %v594_v32, %v593_v31  ;;  %v596_v35 = vld [vmem:[%s1112_s0 + $0x108] sm:$0xff]  ;;  %v599_v37 = vld [vmem:[%s1112_s0 + $0x110] sm:$0xff] }
  0x1b   :  { %v597_v36 = vld [vmem:[%s1113_s1 + $0x108] sm:$0xff]  ;;  %v600_v39 = vld [vmem:[%s1113_s1 + $0x110] sm:$0xff]  ;;  %v602_v40 = vld [vmem:[%s1112_s0 + $0x118] sm:$0xff] }
  0x1c   :  { %589 = vst [vmem:[%s1114_s2 + $0xf0] sm:$0xff] %v306_v29  ;;  %v336_v38 = vmul.f32 %v597_v36, %v596_v35  ;;  %v603_v41 = vld [vmem:[%s1113_s1 + $0x118] sm:$0xff]  ;;  %592 = vst [vmem:[%s1114_s2 + $0xf8] sm:$0xff] %v316_v33  ;;  %v346_v42 = vmul.f32 %v600_v39, %v599_v37  ;;  %v605_v44 = vld [vmem:[%s1112_s0 + $0x120] sm:$0xff] }
  0x1d   :  { %595 = vst [vmem:[%s1114_s2 + $0x100] sm:$0xff] %v326_v34  ;;  %v356_v43 = vmul.f32 %v603_v41, %v602_v40  ;;  %v606_v45 = vld [vmem:[%s1113_s1 + $0x120] sm:$0xff]  ;;  %v608_v46 = vld [vmem:[%s1112_s0 + $0x128] sm:$0xff]  ;;  %v611_v49 = vld [vmem:[%s1112_s0 + $0x130] sm:$0xff] }
  0x1e   :  { %598 = vst [vmem:[%s1114_s2 + $0x108] sm:$0xff] %v336_v38  ;;  %v366_v47 = vmul.f32 %v606_v45, %v605_v44  ;;  %v609_v48 = vld [vmem:[%s1113_s1 + $0x128] sm:$0xff]  ;;  %v612_v50 = vld [vmem:[%s1113_s1 + $0x130] sm:$0xff]  ;;  %601 = vst [vmem:[%s1114_s2 + $0x110] sm:$0xff] %v346_v42 }
  0x1f   :  { %604 = vst [vmem:[%s1114_s2 + $0x118] sm:$0xff] %v356_v43  ;;  %v376_v51 = vmul.f32 %v609_v48, %v608_v46  ;;  %v386_v52 = vmul.f32 %v612_v50, %v611_v49  ;;  %v614_v53 = vld [vmem:[%s1112_s0 + $0x138] sm:$0xff]  ;;  %v617_v55 = vld [vmem:[%s1112_s0 + $0x140] sm:$0xff]  ;;  %v620_v58 = vld [vmem:[%s1112_s0 + $0x148] sm:$0xff] }
  0x20   :  { %v615_v54 = vld [vmem:[%s1113_s1 + $0x138] sm:$0xff]  ;;  %607 = vst [vmem:[%s1114_s2 + $0x120] sm:$0xff] %v366_v47  ;;  %v618_v57 = vld [vmem:[%s1113_s1 + $0x140] sm:$0xff]  ;;  %v621_v59 = vld [vmem:[%s1113_s1 + $0x148] sm:$0xff] }
  0x21   :  { %v396_v56 = vmul.f32 %v615_v54, %v614_v53  ;;  %610 = vst [vmem:[%s1114_s2 + $0x128] sm:$0xff] %v376_v51  ;;  %613 = vst [vmem:[%s1114_s2 + $0x130] sm:$0xff] %v386_v52  ;;  %v406_v60 = vmul.f32 %v618_v57, %v617_v55  ;;  %v416_v61 = vmul.f32 %v621_v59, %v620_v58  ;;  %v623_v62 = vld [vmem:[%s1112_s0 + $0x150] sm:$0xff]  ;;  %v626_v0 = vld [vmem:[%s1112_s0 + $0x158] sm:$0xff] }
  0x22   :  { %v624_v63 = vld [vmem:[%s1113_s1 + $0x150] sm:$0xff]  ;;  %v627_v2 = vld [vmem:[%s1113_s1 + $0x158] sm:$0xff]  ;;  %v629_v3 = vld [vmem:[%s1112_s0 + $0x160] sm:$0xff] }
  0x23   :  { %616 = vst [vmem:[%s1114_s2 + $0x138] sm:$0xff] %v396_v56  ;;  %v426_v1 = vmul.f32 %v624_v63, %v623_v62  ;;  %v630_v4 = vld [vmem:[%s1113_s1 + $0x160] sm:$0xff]  ;;  %619 = vst [vmem:[%s1114_s2 + $0x140] sm:$0xff] %v406_v60  ;;  %v436_v5 = vmul.f32 %v627_v2, %v626_v0  ;;  %v632_v7 = vld [vmem:[%s1112_s0 + $0x168] sm:$0xff] }
  0x24   :  { %622 = vst [vmem:[%s1114_s2 + $0x148] sm:$0xff] %v416_v61  ;;  %v446_v6 = vmul.f32 %v630_v4, %v629_v3  ;;  %v633_v8 = vld [vmem:[%s1113_s1 + $0x168] sm:$0xff]  ;;  %v635_v9 = vld [vmem:[%s1112_s0 + $0x170] sm:$0xff]  ;;  %v638_v12 = vld [vmem:[%s1112_s0 + $0x178] sm:$0xff] }
  0x25   :  { %625 = vst [vmem:[%s1114_s2 + $0x150] sm:$0xff] %v426_v1  ;;  %v456_v10 = vmul.f32 %v633_v8, %v632_v7  ;;  %v636_v11 = vld [vmem:[%s1113_s1 + $0x170] sm:$0xff]  ;;  %v639_v13 = vld [vmem:[%s1113_s1 + $0x178] sm:$0xff]  ;;  %628 = vst [vmem:[%s1114_s2 + $0x158] sm:$0xff] %v436_v5 }
  0x26   :  { %631 = vst [vmem:[%s1114_s2 + $0x160] sm:$0xff] %v446_v6  ;;  %v466_v14 = vmul.f32 %v636_v11, %v635_v9  ;;  %v476_v15 = vmul.f32 %v639_v13, %v638_v12  ;;  %v641_v16 = vld [vmem:[%s1112_s0 + $0x180] sm:$0xff]  ;;  %v644_v18 = vld [vmem:[%s1112_s0 + $0x188] sm:$0xff] }
  0x27   :  { %v642_v17 = vld [vmem:[%s1113_s1 + $0x180] sm:$0xff]  ;;  %634 = vst [vmem:[%s1114_s2 + $0x168] sm:$0xff] %v456_v10  ;;  %v645_v20 = vld [vmem:[%s1113_s1 + $0x188] sm:$0xff] }
  0x28   :  { %v486_v19 = vmul.f32 %v642_v17, %v641_v16  ;;  %637 = vst [vmem:[%s1114_s2 + $0x170] sm:$0xff] %v466_v14  ;;  %640 = vst [vmem:[%s1114_s2 + $0x178] sm:$0xff] %v476_v15  ;;  %v496_v21 = vmul.f32 %v645_v20, %v644_v18 }
  0x2a   :  { %643 = vst [vmem:[%s1114_s2 + $0x180] sm:$0xff] %v486_v19  ;;  %646 = vst [vmem:[%s1114_s2 + $0x188] sm:$0xff] %v496_v21 }

// kernel: mul.4
= control target key start
LH: loop header
LB: loop body
LE: loop exit
PB: predicated region body
PF: predicated region fallthrough
CT: control target
= control target key end

     0   :  { %s254_s0 = inlined_call_operand.vmem [shape: f32[84,120], index: 0, kind: input, shape index: {}]   ;;  %s255_s1 = inlined_call_operand.vmem [shape: f32[84,120], index: 1, kind: input, shape index: {}]   ;;  %s256_s2 = inlined_call_operand.vmem [shape: f32[84,120], index: 2, kind: output, shape index: {}]  }
   0x1   :  { %v3_v0 = vld [vmem:[%s254_s0] sm:$0xff]  ;;  %v110_v2 = vld [vmem:[%s254_s0 + $0x8] sm:$0xff]  ;;  %v113_v5 = vld [vmem:[%s254_s0 + $0x10] sm:$0xff] }
   0x2   :  { %v4_v1 = vld [vmem:[%s255_s1] sm:$0xff]  ;;  %v111_v4 = vld [vmem:[%s255_s1 + $0x8] sm:$0xff]  ;;  %v114_v6 = vld [vmem:[%s255_s1 + $0x10] sm:$0xff] }
   0x3   :  { %v7_v3 = vmul.f32 %v4_v1, %v3_v0  ;;  %v16_v7 = vmul.f32 %v111_v4, %v110_v2  ;;  %v26_v8 = vmul.f32 %v114_v6, %v113_v5  ;;  %v116_v9 = vld [vmem:[%s254_s0 + $0x18] sm:$0xff]  ;;  %v119_v11 = vld [vmem:[%s254_s0 + $0x20] sm:$0xff]  ;;  %v122_v14 = vld [vmem:[%s254_s0 + $0x28] sm:$0xff] }
   0x4   :  { %v117_v10 = vld [vmem:[%s255_s1 + $0x18] sm:$0xff]  ;;  %v120_v13 = vld [vmem:[%s255_s1 + $0x20] sm:$0xff]  ;;  %v123_v15 = vld [vmem:[%s255_s1 + $0x28] sm:$0xff] }
   0x5   :  { %9 = vst [vmem:[%s256_s2] sm:$0xff] %v7_v3  ;;  %v36_v12 = vmul.f32 %v117_v10, %v116_v9  ;;  %112 = vst [vmem:[%s256_s2 + $0x8] sm:$0xff] %v16_v7  ;;  %v46_v16 = vmul.f32 %v120_v13, %v119_v11  ;;  %v56_v17 = vmul.f32 %v123_v15, %v122_v14  ;;  %v125_v18 = vld [vmem:[%s254_s0 + $0x30] sm:$0xff]  ;;  %v128_v20 = vld [vmem:[%s254_s0 + $0x38] sm:$0xff] }
   0x6   :  { %115 = vst [vmem:[%s256_s2 + $0x10] sm:$0xff] %v26_v8  ;;  %v126_v19 = vld [vmem:[%s255_s1 + $0x30] sm:$0xff]  ;;  %v129_v22 = vld [vmem:[%s255_s1 + $0x38] sm:$0xff]  ;;  %v131_v23 = vld [vmem:[%s254_s0 + $0x40] sm:$0xff] }
   0x7   :  { %118 = vst [vmem:[%s256_s2 + $0x18] sm:$0xff] %v36_v12  ;;  %v66_v21 = vmul.f32 %v126_v19, %v125_v18  ;;  %v132_v24 = vld [vmem:[%s255_s1 + $0x40] sm:$0xff]  ;;  %121 = vst [vmem:[%s256_s2 + $0x20] sm:$0xff] %v46_v16  ;;  %v76_v25 = vmul.f32 %v129_v22, %v128_v20  ;;  %v134_v27 = vld [vmem:[%s254_s0 + $0x48] sm:$0xff] }
   0x8   :  { %124 = vst [vmem:[%s256_s2 + $0x28] sm:$0xff] %v56_v17  ;;  %v86_v26 = vmul.f32 %v132_v24, %v131_v23  ;;  %v135_v28 = vld [vmem:[%s255_s1 + $0x48] sm:$0xff]  ;;  %v137_v29 = vld [vmem:[%s254_s0 + $0x50] sm:$0xff] }
   0x9   :  { %127 = vst [vmem:[%s256_s2 + $0x30] sm:$0xff] %v66_v21  ;;  %v96_v30 = vmul.f32 %v135_v28, %v134_v27  ;;  %v138_v31 = vld [vmem:[%s255_s1 + $0x50] sm:$0xff]  ;;  %130 = vst [vmem:[%s256_s2 + $0x38] sm:$0xff] %v76_v25 }
   0xa   :  { %133 = vst [vmem:[%s256_s2 + $0x40] sm:$0xff] %v86_v26  ;;  %v106_v32 = vmul.f32 %v138_v31, %v137_v29 }
   0xb   :  { %136 = vst [vmem:[%s256_s2 + $0x48] sm:$0xff] %v96_v30 }
   0xc   :  { %139 = vst [vmem:[%s256_s2 + $0x50] sm:$0xff] %v106_v32 }

// kernel: mul.5
= control target key start
LH: loop header
LB: loop body
LE: loop exit
PB: predicated region body
PF: predicated region fallthrough
CT: control target
= control target key end

     0   :  { %s56_s0 = inlined_call_operand.vmem [shape: f32[10,84], index: 0, kind: input, shape index: {}]   ;;  %s57_s1 = inlined_call_operand.vmem [shape: f32[10,84], index: 1, kind: input, shape index: {}]   ;;  %s58_s2 = inlined_call_operand.vmem [shape: f32[10,84], index: 2, kind: output, shape index: {}]  }
   0x1   :  { %v3_v0 = vld [vmem:[%s56_s0] sm:$0xff]  ;;  %v20_v2 = vld [vmem:[%s56_s0 + $0x8] sm:$0xff] }
   0x2   :  { %v4_v1 = vld [vmem:[%s57_s1] sm:$0xff]  ;;  %v21_v4 = vld [vmem:[%s57_s1 + $0x8] sm:$0xff] }
   0x3   :  { %v7_v3 = vmul.f32 %v4_v1, %v3_v0  ;;  %v16_v5 = vmul.f32 %v21_v4, %v20_v2 }
   0x5   :  { %9 = vst [vmem:[%s58_s2] sm:$0xff] %v7_v3  ;;  %22 = vst [vmem:[%s58_s2 + $0x8] sm:$0xff] %v16_v5 }

// kernel: masked_model_forward.1
= control target key start
LH: loop header
LB: loop body
LE: loop exit
PB: predicated region body
PF: predicated region fallthrough
CT: control target
= control target key end

     0   :  { %s25471_s0 = inlined_call_operand.vmem [shape: f32[2,112,160], index: 0, kind: input, shape index: {}]   ;;  %s25472_s1 = inlined_call_operand.vmem [shape: f32[160,168], index: 1, kind: input, shape index: {}]   ;;  %s25473_s2 = inlined_call_operand.vmem [shape: f32[1,168], index: 2, kind: input, shape index: {}]   ;;  %s25474_s3 = inlined_call_operand.vmem [shape: f32[56,111], index: 3, kind: input, shape index: {}]   ;;  %s25475_s4 = inlined_call_operand.vmem [shape: f32[167,84], index: 4, kind: input, shape index: {}]   ;;  %s25476_s5 = inlined_call_operand.vmem [shape: f32[420,160], index: 5, kind: input, shape index: {}]   ;;  %s25477_s6 = inlined_call_operand.vmem [shape: f32[1,160], index: 6, kind: input, shape index: {}]   ;;  %s25478_s7 = inlined_call_operand.vmem [shape: f32[20,51], index: 7, kind: input, shape index: {}]   ;;  %s25479_s8 = inlined_call_operand.vmem [shape: f32[159,80], index: 8, kind: input, shape index: {}]   ;;  %s25480_s9 = inlined_call_operand.vmem [shape: f32[400,120], index: 9, kind: input, shape index: {}]   ;;  %s25481_s10 = inlined_call_operand.vmem [shape: f32[4,16], index: 10, kind: input, shape index: {}]   ;;  %s25482_s11 = inlined_call_operand.vmem [shape: f32[1,120], index: 11, kind: input, shape index: {}]   ;;  %s25483_s12 = inlined_call_operand.vmem [shape: f32[120,84], index: 12, kind: input, shape index: {}]   ;;  %s25484_s13 = inlined_call_operand.vmem [shape: f32[1,84], index: 13, kind: input, shape index: {}]   ;;  %s25485_s14 = inlined_call_operand.vmem [shape: f32[84,10], index: 14, kind: input, shape index: {}]   ;;  %s25486_s15 = inlined_call_operand.vmem [shape: f32[1,10], index: 15, kind: input, shape index: {}]   ;;  %s25487_s16 = inlined_call_operand.hbm [shape: f32[2,4,10], index: 16, kind: output, shape index: {}]  }
   0x1   :  { %26404 = sst [smem:[#allocation122_spill]] %s25471_s0 }
   0x2   :  { %26405 = sst [smem:[#allocation123_spill]] %s25472_s1 }
   0x3   :  { %21 = vsyncpa [#allocation3], 0 }
   0x4   :  { %23 = vsyncpa [#allocation3 + $0x1], 0  ;;  %s17291_s21 = smov 0   ;;  %s17293_s22 = smov 0  }
   0x5   :  { %s17295_s23 = smov 0   ;;  %s17297_s24 = smov 0  }
   0x6 LB: > { %26406 = sst [smem:[#allocation5_spill]] %s17188_s23  ;;  %s17312_s25 = sadd.s32 4294967295, %s17192_s24   ;;  %s17192_s24 = sphi %s17297_s24, %s27915_s24   ;;  %s17188_s23 = sphi %s17295_s23, %s27917_s23   ;;  %s17184_s22 = sphi %s17293_s22, %s27919_s22   ;;  %s17180_s21 = sphi %s17291_s21, %s27918_s21  }
   0x7   : > { %s13603_s26 = sadd.s32 4294967294, %s17192_s24   ;;  %s17316_s27 = sadd.s32 1, %s17192_s24  }
   0x8   : > { %26407 = sst [smem:[#allocation6_spill]] %s17316_s27  ;;  %s377_s28 = sadd.s32 1, %s17188_s23 }
   0x9   : > { %s374_s29 = ssub.s32 %s17192_s24, %s17316_s27  ;;  %p387_p0 = scmp.ne.s32.totalorder %s17188_s23, %s17184_s22 }
   0xa   : > { %p375_p1 = scmp.eq.s32.totalorder %s374_s29, 0  ;;  %p388_p2 = scmp.eq.s32.totalorder %s17312_s25, 1 }
   0xb   : > { %p393_p3 = scmp.ne.s32.totalorder %s17184_s22, %s17180_s21  ;;  %p394_p4 = scmp.eq.s32.totalorder %s13603_s26, 1 }
   0xc   : > { %s17327_s30 = scalar_select %p375_p1, %s17188_s23, %s377_s28  }
   0xd   : > { %p17329_p5 = por %p388_p2, %p387_p0  ;;  %p17333_p6 = por %p394_p4, %p393_p3 }
   0xe   : > { %26408 = sst [smem:[#allocation7_spill]] %s17327_s30  ;;  %p13606_p7 = scmp.ge.s32.totalorder %s17192_s24, 1 }
   0xf   : > { %s26410_s17 = scalar_select %p17333_p6, 1, 0 }
  0x10   : > { %p465_p8 = scmp.lt.s32.totalorder %s17192_s24, 3 }
  0x11   : > { %26411 = sst [smem:[#allocation8_spill]] %s26410_s17 }
  0x12   : > { %p466_p9 = pnand %p13606_p7, %p465_p8 }
  0x14   : > { %469 = sbr.rel (%p466_p9) target bundleno = 5071 (0x13cf), region = 84 }
  0x1b   : > { %s26412_s1 = sld [smem:[#allocation123_spill]]  ;;  %p515_p10 = scmp.lt.s32.totalorder %s17312_s25, 1  ;;  %vm600_vm0 = vcmask 261120   ;;  %vm2449_vm1 = vcmask 1046528   ;;  %vm2644_vm2 = vcmask 1039360   ;;  %vm2722_vm3 = vcmask 908288  }
  0x1c   : > { %s26429_s17 = sld [smem:[#allocation122_spill]]  ;;  %s25813_s20 = smov 127   ;;  %vm3868_vm4 = vcmask 318464   ;;  %vm4996_vm5 = vcmask 1045504   ;;  %vm5031_vm6 = vcmask 1044480   ;;  %vm5066_vm7 = vcmask 1043456  }
  0x1d   : > { %s17444_s18 = scalar_select %p515_p10, %s17312_s25, 1  ;;  %vm5101_vm8 = vcmask 687104   ;;  %vm5109_vm9 = vcmask 326656   ;;  %vm5117_vm10 = vcmask 1014784   ;;  %vm5125_vm11 = vcmask 654336  }
  0x1e   : > { %s17199_s30 = smov 124   ;;  %vm5251_vm12 = vcmask 293888   ;;  %s27727_s29 = smov 127   ;;  %vm8446_vm13 = vcmask 416768   ;;  %vm8456_vm14 = vcmask 1042432   ;;  %vm9202_vm15 = vcmask 252928  }
  0x1f   : > { %s17055_s27 = smul.u32 224, %s17444_s18  ;;  %s17198_s18 = smov 84  }
  0x20   : > { %s27814_s28 = smov 80  }
  0x21   : > { %v549_v0 = vld [vmem:[%s26412_s1 + $0x8] sm:$0xff]  ;;  %v551_v1 = vld [vmem:[%s26412_s1 + $0x18] sm:$0xff]  ;;  %v548_v2 = vld [vmem:[%s26412_s1] sm:$0xff] }
  0x22   : > { %v643_v3 = vand.u32 4294901760, %v549_v0  ;;  %v647_v4 = vand.u32 4294901760, %v551_v1  ;;  %v550_v5 = vld [vmem:[%s26412_s1 + $0x10] sm:$0xff]  ;;  %v645_v6 = vand.u32 4294901760, %v548_v2  ;;  %v553_v7 = vld [vmem:[%s26412_s1 + $0x28] sm:$0xff]  ;;  %v555_v8 = vld [vmem:[%s26412_s1 + $0x38] sm:$0xff]  ;;  %s17549_s19 = scalar_lea.vmem %s26429_s17, %s17055_s27 }
  0x23   : > { %v649_v9 = vand.u32 4294901760, %v550_v5  ;;  %v651_v10 = vand.u32 4294901760, %v553_v7  ;;  %v655_v11 = vand.u32 4294901760, %v555_v8  ;;  %v552_v12 = vld [vmem:[%s26412_s1 + $0x20] sm:$0xff]  ;;  %v554_v13 = vld [vmem:[%s26412_s1 + $0x30] sm:$0xff]  ;;  %v557_v14 = vld [vmem:[%s26412_s1 + $0x48] sm:$0xff] }
  0x24   : > { %v17366_v15 = vpack.c.bf16 %v647_v4, %v643_v3  ;;  %v17368_v16 = vsub.f32 %v549_v0, %v643_v3  ;;  %v17370_v17 = vsub.f32 %v551_v1, %v647_v4  ;;  %v17372_v18 = vsub.f32 %v548_v2, %v645_v6  ;;  %v559_v19 = vld [vmem:[%s26412_s1 + $0x58] sm:$0xff]  ;;  %v556_v20 = vld [vmem:[%s26412_s1 + $0x40] sm:$0xff]  ;;  %v558_v21 = vld [vmem:[%s26412_s1 + $0x50] sm:$0xff]  ;;  %s13613_s27 = sshll.u32 %s17312_s25, 6  ;;  %s17205_s25 = smov [#allocation2]  }
  0x25   : > { %v17383_v22 = vpack.c.bf16 %v649_v9, %v645_v6  ;;  %v17385_v23 = vsub.f32 %v550_v5, %v649_v9  ;;  %v17387_v24 = vpack.c.bf16 %v655_v11, %v651_v10  ;;  %v17389_v25 = vsub.f32 %v553_v7, %v651_v10  ;;  %v561_v26 = vld [vmem:[%s26412_s1 + $0x68] sm:$0xff]  ;;  %v563_v31 = vld [vmem:[%s26412_s1 + $0x78] sm:$0xff]  ;;  %v560_v36 = vld [vmem:[%s26412_s1 + $0x60] sm:$0xff] }
  0x26   : > { %26413 = vst [vmem:[#allocation9_spill] sm:$0xff] %v17366_v15  ;;  %14421 = vmatprep.subr.bf16.mxu0 %v17366_v15  ;;  %v17395_v27 = vsub.f32 %v555_v8, %v655_v11  ;;  %v653_v28 = vand.u32 4294901760, %v552_v12  ;;  %v657_v29 = vand.u32 4294901760, %v554_v13  ;;  %v659_v30 = vand.u32 4294901760, %v557_v14  ;;  %v562_v37 = vld [vmem:[%s26412_s1 + $0x70] sm:$0xff]  ;;  %v565_v42 = vld [vmem:[%s26412_s1 + $0x88] sm:$0xff] }
  0x27   : > { %26414 = vst [vmem:[#allocation10_spill] sm:$0xff] %v17383_v22  ;;  %26415 = vst [vmem:[#allocation11_spill] sm:$0xff] %v17385_v23  ;;  %14423 = vmatpush1.bf16.msra.mxu0 %v17383_v22  ;;  %v663_v32 = vand.u32 4294901760, %v559_v19  ;;  %v661_v33 = vand.u32 4294901760, %v556_v20  ;;  %v665_v34 = vand.u32 4294901760, %v558_v21  ;;  %v667_v35 = vand.u32 4294901760, %v561_v26 }
  0x28   : > { %26416 = vst [vmem:[#allocation12_spill] sm:$0xff] %v17387_v24  ;;  %26417 = vst [vmem:[#allocation13_spill] sm:$0xff] %v17395_v27  ;;  %14425 = vmatprep.subr.bf16.mxu0 %v17387_v24  ;;  %v17409_v38 = vpack.c.bf16 %v657_v29, %v653_v28  ;;  %v17411_v39 = vsub.f32 %v552_v12, %v653_v28  ;;  %v17413_v40 = vsub.f32 %v554_v13, %v657_v29  ;;  %v567_v43 = vld [vmem:[%s26412_s1 + $0x98] sm:$0xff]  ;;  %v564_v44 = vld [vmem:[%s26412_s1 + $0x80] sm:$0xff] }
  0x29   : > { %v17415_v41 = vsub.f32 %v557_v14, %v659_v30  ;;  %v17426_v45 = vpack.c.bf16 %v663_v32, %v659_v30  ;;  %v17428_v46 = vsub.f32 %v559_v19, %v663_v32  ;;  %v17430_v47 = vpack.c.bf16 %v665_v34, %v661_v33  ;;  %v566_v49 = vld [vmem:[%s26412_s1 + $0x90] sm:$0xff]  ;;  %v569_v58 = vld [vmem:[%s26412_s1 + $0xa8] sm:$0xff]  ;;  %v571_v59 = vld [vmem:[%s26412_s1 + $0xb8] sm:$0xff] }
  0x2a   : > { %26418 = vst [vmem:[#allocation14_spill] sm:$0xff] %v17409_v38  ;;  %v17432_v48 = vsub.f32 %v556_v20, %v661_v33  ;;  %v17437_v50 = vsub.f32 %v558_v21, %v665_v34  ;;  %v671_v51 = vand.u32 4294901760, %v563_v31  ;;  %v17439_v52 = vsub.f32 %v561_v26, %v667_v35  ;;  %v568_v0 = vld [vmem:[%s26412_s1 + $0xa0] sm:$0xff]  ;;  %v570_v1 = vld [vmem:[%s26412_s1 + $0xb0] sm:$0xff]  ;;  %v573_v2 = vld [vmem:[%s26412_s1 + $0xc8] sm:$0xff] }
  0x2b   : > { %26419 = vst [vmem:[#allocation15_spill] sm:$0xff] %v17426_v45  ;;  %26420 = vst [vmem:[#allocation16_spill] sm:$0xff] %v17430_v47  ;;  %v669_v53 = vand.u32 4294901760, %v560_v36  ;;  %14427 = vmatpush1.bf16.msra.mxu0 %v17409_v38  ;;  %v673_v54 = vand.u32 4294901760, %v562_v37  ;;  %v675_v55 = vand.u32 4294901760, %v565_v42  ;;  %v679_v56 = vand.u32 4294901760, %v567_v43 }
  0x2c   : > { %v677_v57 = vand.u32 4294901760, %v564_v44  ;;  %14429 = vmatprep.subr.bf16.mxu0 %v17426_v45  ;;  %v17454_v60 = vpack.c.bf16 %v671_v51, %v667_v35  ;;  %v17456_v61 = vsub.f32 %v563_v31, %v671_v51  ;;  %v681_v63 = vand.u32 4294901760, %v566_v49  ;;  %v575_v7 = vld [vmem:[%s26412_s1 + $0xd8] sm:$0xff]  ;;  %v572_v8 = vld [vmem:[%s26412_s1 + $0xc0] sm:$0xff]  ;;  %v574_v9 = vld [vmem:[%s26412_s1 + $0xd0] sm:$0xff] }
  0x2d   : > { %v17458_v62 = vsub.f32 %v560_v36, %v669_v53  ;;  %v17469_v3 = vpack.c.bf16 %v673_v54, %v669_v53  ;;  %v17471_v4 = vsub.f32 %v562_v37, %v673_v54  ;;  %v17473_v5 = vpack.c.bf16 %v679_v56, %v675_v55  ;;  %v577_v31 = vld [vmem:[%s26412_s1 + $0xe8] sm:$0xff]  ;;  %v579_v32 = vld [vmem:[%s26412_s1 + $0xf8] sm:$0xff]  ;;  %v576_v37 = vld [vmem:[%s26412_s1 + $0xe0] sm:$0xff] }
  0x2e   : > { %26421 = vst [vmem:[#allocation17_spill] sm:$0xff] %v17454_v60  ;;  %v17475_v6 = vsub.f32 %v565_v42, %v675_v55  ;;  %v17486_v10 = vsub.f32 %v567_v43, %v679_v56  ;;  %v17488_v11 = vpack.c.bf16 %v681_v63, %v677_v57  ;;  %v17490_v12 = vsub.f32 %v564_v44, %v677_v57  ;;  %v578_v42 = vld [vmem:[%s26412_s1 + $0xf0] sm:$0xff]  ;;  %v581_v43 = vld [vmem:[%s26412_s1 + $0x108] sm:$0xff]  ;;  %v583_v54 = vld [vmem:[%s26412_s1 + $0x118] sm:$0xff] }
  0x2f   : > { %26422 = vst [vmem:[#allocation18_spill] sm:$0xff] %v17469_v3  ;;  %26423 = vst [vmem:[#allocation19_spill] sm:$0xff] %v17473_v5  ;;  %v17492_v13 = vsub.f32 %v566_v49, %v681_v63  ;;  %14431 = vmatpush1.bf16.msra.mxu0 %v17430_v47  ;;  %v683_v14 = vand.u32 4294901760, %v569_v58  ;;  %v687_v19 = vand.u32 4294901760, %v571_v59  ;;  %v685_v20 = vand.u32 4294901760, %v568_v0  ;;  %v580_v55 = vld [vmem:[%s26412_s1 + $0x100] sm:$0xff] }
  0x30   : > { %26424 = vst [vmem:[#allocation20_spill] sm:$0xff] %v17488_v11  ;;  %v689_v21 = vand.u32 4294901760, %v570_v1  ;;  %14433 = vmatprep.subr.bf16.mxu0 %v17454_v60  ;;  %v691_v26 = vand.u32 4294901760, %v573_v2  ;;  %v695_v28 = vand.u32 4294901760, %v575_v7  ;;  %v693_v29 = vand.u32 4294901760, %v572_v8  ;;  %v582_v56 = vld [vmem:[%s26412_s1 + $0x110] sm:$0xff] }
  0x31   : > { %v697_v30 = vand.u32 4294901760, %v574_v9  ;;  %v17503_v33 = vpack.c.bf16 %v687_v19, %v683_v14  ;;  %v17505_v34 = vsub.f32 %v569_v58, %v683_v14  ;;  %v17507_v35 = vsub.f32 %v571_v59, %v687_v19  ;;  %v521_v60 = vld [vmem:[%s17549_s19 + $0x8] sm:$0xff]  ;;  %v522_v38 = vld [vmem:[%s17549_s19 + $0x10] sm:$0xff] }
  0x32   : > { %v17509_v36 = vpack.c.bf16 %v689_v21, %v685_v20  ;;  %v17520_v44 = vsub.f32 %v568_v0, %v685_v20  ;;  %v17522_v49 = vsub.f32 %v570_v1, %v689_v21  ;;  %v17524_v51 = vpack.c.bf16 %v695_v28, %v691_v26  ;;  %v587_v21 = vld [vmem:[%s26412_s1 + $0x138] sm:$0xff] }
  0x33   : > { %26425 = vst [vmem:[#allocation21_spill] sm:$0xff] %v17503_v33  ;;  %v17526_v53 = vsub.f32 %v573_v2, %v691_v26  ;;  %14435 = vmatpush1.bf16.msra.mxu0 %v17469_v3  ;;  %v17538_v57 = vsub.f32 %v575_v7, %v695_v28  ;;  %v17540_v58 = vpack.c.bf16 %v697_v30, %v693_v29  ;;  %v699_v0 = vand.u32 4294901760, %v577_v31  ;;  %v586_v3 = vld [vmem:[%s26412_s1 + $0x130] sm:$0xff] }
  0x34   : > { %26426 = vst [vmem:[#allocation22_spill] sm:$0xff] %v17509_v36  ;;  %26427 = vst [vmem:[#allocation23_spill] sm:$0xff] %v17524_v51  ;;  %v17542_v59 = vsub.f32 %v572_v8, %v693_v29  ;;  %v17544_v63 = vsub.f32 %v574_v9, %v697_v30  ;;  %14437 = vmatprep.subr.bf16.mxu0 %v17473_v5  ;;  %v703_v1 = vand.u32 4294901760, %v579_v32  ;;  %v701_v2 = vand.u32 4294901760, %v576_v37  ;;  %v585_v9 = vld [vmem:[%s26412_s1 + $0x128] sm:$0xff]  ;;  %v584_v5 = vld [vmem:[%s26412_s1 + $0x120] sm:$0xff] }
  0x35   : > { %26428 = vst [vmem:[#allocation24_spill] sm:$0xff] %v17540_v58  ;;  %v705_v14 = vand.u32 4294901760, %v578_v42  ;;  %v707_v7 = vand.u32 4294901760, %v581_v43  ;;  %v711_v19 = vand.u32 4294901760, %v583_v54  ;;  %v709_v20 = vand.u32 4294901760, %v580_v55 }
  0x36   : > { %v713_v8 = vand.u32 4294901760, %v582_v56  ;;  %v17558_v26 = vpack.c.bf16 %v703_v1, %v699_v0  ;;  %v17560_v28 = vsub.f32 %v577_v31, %v699_v0  ;;  %v17562_v29 = vsub.f32 %v579_v32, %v703_v1  ;;  %v520_v0 = vld [vmem:[%s17549_s19] sm:$0xff]  ;;  %v523_v1 = vld [vmem:[%s17549_s19 + $0x18] sm:$0xff] }
  0x37   : > { %v17564_v30 = vpack.c.bf16 %v705_v14, %v701_v2  ;;  %14439 = vmatpush1.bf16.msra.mxu0 %v17488_v11  ;;  %v17574_v47 = vsub.f32 %v576_v37, %v701_v2  ;;  %v17576_v45 = vsub.f32 %v578_v42, %v705_v14  ;;  %v17578_v31 = vpack.c.bf16 %v711_v19, %v707_v7 }
  0x38   : > { %26430 = vst [vmem:[#allocation25_spill] sm:$0xff] %v17558_v26  ;;  %v17580_v32 = vsub.f32 %v581_v43, %v707_v7  ;;  %14441 = vmatprep.subr.bf16.mxu0 %v17503_v33  ;;  %v17586_v24 = vsub.f32 %v583_v54, %v711_v19  ;;  %v17588_v22 = vpack.c.bf16 %v713_v8, %v709_v20  ;;  %v715_v42 = vand.u32 4294901760, %v585_v9  ;;  %v525_v54 = vld [vmem:[%s17549_s19 + $0x28] sm:$0xff]  ;;  %v524_v19 = vld [vmem:[%s17549_s19 + $0x20] sm:$0xff] }
  0x39   : > { %26431 = vst [vmem:[#allocation26_spill] sm:$0xff] %v17564_v30  ;;  %26432 = vst [vmem:[#allocation27_spill] sm:$0xff] %v17576_v45  ;;  %v17590_v11 = vsub.f32 %v580_v55, %v709_v20  ;;  %v17592_v37 = vsub.f32 %v582_v56, %v713_v8  ;;  %v719_v2 = vand.u32 4294901760, %v587_v21  ;;  %v717_v14 = vand.u32 4294901760, %v584_v5 }
  0x3a   : > { %26433 = vst [vmem:[#allocation28_spill] sm:$0xff] %v17578_v31  ;;  %26434 = vst [vmem:[#allocation29_spill] sm:$0xff] %v17580_v32  ;;  %v721_v43 = vand.u32 4294901760, %v586_v3  ;;  %v602_v7 = vsel %vm600_vm0, %v521_v60, 0  ;;  %v17595_v15 = vand.u32 4294901760, %v520_v0  ;;  %v605_v32 = vsel %vm600_vm0, %v523_v1, 0 }
  0x3b   : > { %26435 = vst [vmem:[#allocation30_spill] sm:$0xff] %v17588_v22  ;;  %26436 = vst [vmem:[#allocation31_spill] sm:$0xff] %v17592_v37  ;;  %v17598_v45 = vand.u32 4294901760, %v522_v38  ;;  %14443 = vmatpush1.bf16.msra.mxu0 %v17509_v36  ;;  %v17603_v55 = vpack.c.bf16 %v719_v2, %v715_v42  ;;  %v17605_v56 = vsub.f32 %v585_v9, %v715_v42  ;;  %v17616_v1 = vand.u32 4294901760, %v602_v7 }
  0x3c   : > { %26437 = vst [vmem:[#allocation32_spill] sm:$0xff] %v17595_v15  ;;  %v17607_v20 = vsub.f32 %v587_v21, %v719_v2  ;;  %v17609_v8 = vpack.c.bf16 %v721_v43, %v717_v14  ;;  %14445 = vmatprep.subr.bf16.mxu0 %v17524_v51  ;;  %v17612_v60 = vsub.f32 %v584_v5, %v717_v14  ;;  %v17621_v36 = vand.u32 4294901760, %v605_v32 }
  0x3d   : > { %26438 = vst [vmem:[#allocation33_spill] sm:$0xff] %v17598_v45  ;;  %26439 = vst [vmem:[#allocation34_spill] sm:$0xff] %v17603_v55  ;;  %v17614_v33 = vsub.f32 %v586_v3, %v721_v43  ;;  %v17619_v37 = vsub.f32 %v520_v0, %v17595_v15  ;;  %v17624_v9 = vsub.f32 %v522_v38, %v17598_v45  ;;  %v608_v21 = vsel %vm600_vm0, %v525_v54, 0 }
  0x3e   : > { %26440 = vst [vmem:[#allocation35_spill] sm:$0xff] %v17609_v8  ;;  %26441 = vst [vmem:[#allocation36_spill] sm:$0xff] %v17616_v1  ;;  %v17627_v42 = vand.u32 4294901760, %v524_v19  ;;  %v17630_v2 = vsub.f32 %v602_v7, %v17616_v1  ;;  %v17633_v5 = vand.u32 4294901760, %v608_v21  ;;  %v17638_v0 = vsub.f32 %v605_v32, %v17621_v36 }
  0x3f   : > { %26442 = vst [vmem:[#allocation37_spill] sm:$0xff] %v17619_v37  ;;  %26443 = vst [vmem:[#allocation38_spill] sm:$0xff] %v17621_v36  ;;  %v25525_v3 = vand.u32 4294901760, %v17619_v37  ;;  %14447 = vmatpush1.bf16.msra.mxu0 %v17540_v58  ;;  %v26451_v38 = vand.u32 4294901760, %v17368_v16  ;;  %v26452_v7 = vand.u32 4294901760, %v17624_v9  ;;  %v26453_v51 = vand.u32 4294901760, %v17370_v17 }
  0x40   : > { %26444 = vst [vmem:[#allocation39_spill] sm:$0xff] %v17624_v9  ;;  %26445 = vst [vmem:[#allocation40_spill] sm:$0xff] %v17627_v42  ;;  %v17642_v43 = vsub.f32 %v524_v19, %v17627_v42  ;;  %14449 = vmatprep.subr.bf16.mxu0 %v17558_v26  ;;  %v17653_v32 = vsub.f32 %v608_v21, %v17633_v5  ;;  %v26454_v21 = vand.u32 4294901760, %v17630_v2 }
  0x41   : > { %26446 = vst [vmem:[#allocation41_spill] sm:$0xff] %v17630_v2  ;;  %26447 = vst [vmem:[#allocation42_spill] sm:$0xff] %v17633_v5  ;;  %v17650_v14 = vsub.f32 %v17619_v37, %v25525_v3  ;;  %v975_v58 = vsub.f32 %v17368_v16, %v26451_v38  ;;  %v17662_v26 = vsub.f32 %v17624_v9, %v26452_v7  ;;  %v527_v5 = vld [vmem:[%s17549_s19 + $0x38] sm:$0xff]  ;;  %v26455_v7 = vand.u32 4294901760, %v17638_v0 }
  0x42   : > { %26448 = vst [vmem:[#allocation43_spill] sm:$0xff] %v17638_v0  ;;  %26449 = vst [vmem:[#allocation44_spill] sm:$0xff] %v17642_v43  ;;  %v987_v3 = vsub.f32 %v17370_v17, %v26453_v51  ;;  %v750_v37 = vsub.f32 %v17630_v2, %v26454_v21  ;;  %v25544_v19 = vand.u32 4294901760, %v17653_v32  ;;  %v26456_v9 = vand.u32 4294901760, %v17642_v43  ;;  %v529_v51 = vld [vmem:[%s17549_s19 + $0x48] sm:$0xff] }
  0x43   : > { %26450 = vst [vmem:[#allocation45_spill] sm:$0xff] %v17653_v32  ;;  %v757_v38 = vand.u32 4294901760, %v17650_v14  ;;  %v976_v42 = vand.u32 4294901760, %v975_v58  ;;  %14451 = vmatpush1.bf16.msra.mxu0 %v17564_v30  ;;  %v766_v54 = vsub.f32 %v17638_v0, %v26455_v7  ;;  %v25549_v30 = vand.u32 4294901760, %v17372_v18  ;;  %v526_v0 = vld [vmem:[%s17549_s19 + $0x30] sm:$0xff] }
  0x44   : > { %v17682_v45 = vsub.f32 %v17642_v43, %v26456_v9  ;;  %v988_v21 = vand.u32 4294901760, %v987_v3  ;;  %14453 = vmatprep.subr.bf16.mxu0 %v17578_v31  ;;  %v751_v14 = vand.u32 4294901760, %v750_v37  ;;  %v17688_v58 = vsub.f32 %v17653_v32, %v25544_v19 }
  0x45   : > { %v25550_v7 = vand.u32 4294901760, %v17385_v23  ;;  %v767_v2 = vand.u32 4294901760, %v766_v54  ;;  %v611_v3 = vsel %vm600_vm0, %v527_v5, 0  ;;  %v981_v19 = vsub.f32 %v17372_v18, %v25549_v30 }
  0x46   : > { %v14460_v9 = vpack.c.bf16 %v988_v21, %v976_v42  ;;  %752 = vmatprep.mubr.f32.mxu0 %v751_v14  ;;  %v17703_v43 = vand.u32 4294901760, %v611_v3  ;;  %v17706_v54 = vand.u32 4294901760, %v526_v0  ;;  %v25559_v42 = vand.u32 4294901760, %v17389_v25 }
  0x47   : > { %v993_v31 = vsub.f32 %v17385_v23, %v25550_v7  ;;  %14455 = vmatpush1.bf16.msra.mxu0 %v17588_v22  ;;  %v25564_v5 = vand.u32 4294901760, %v17395_v27  ;;  %v614_v21 = vsel %vm600_vm0, %v529_v51, 0  ;;  %v982_v14 = vand.u32 4294901760, %v981_v19  ;;  %v528_v19 = vld [vmem:[%s17549_s19 + $0x40] sm:$0xff] }
  0x48   : > { %26457 = vst [vmem:[#allocation46_spill] sm:$0xff] %v17703_v43  ;;  %26458 = vst [vmem:[#allocation47_spill] sm:$0xff] %v17706_v54  ;;  %14457 = vmatprep.subr.bf16.mxu0 %v17603_v55  ;;  %v17713_v7 = vsub.f32 %v611_v3, %v17703_v43  ;;  %v17715_v36 = vand.u32 4294901760, %v614_v21  ;;  %v17718_v37 = vsub.f32 %v526_v0, %v17706_v54  ;;  %v25567_v55 = vand.u32 4294901760, %v17411_v39  ;;  %v531_v54 = vld [vmem:[%s17549_s19 + $0x58] sm:$0xff] }
  0x49   : > { %v994_v30 = vand.u32 4294901760, %v993_v31  ;;  %v999_v22 = vsub.f32 %v17389_v25, %v25559_v42  ;;  %v1011_v51 = vsub.f32 %v17395_v27, %v25564_v5  ;;  %v25573_v0 = vand.u32 4294901760, %v17413_v40  ;;  %v530_v42 = vld [vmem:[%s17549_s19 + $0x50] sm:$0xff] }
  0x4a   : > { %26459 = vst [vmem:[#allocation48_spill] sm:$0xff] %v17713_v7  ;;  %26460 = vst [vmem:[#allocation49_spill] sm:$0xff] %v17715_v36  ;;  %v25570_v3 = vand.u32 4294901760, %v17713_v7  ;;  %v17730_v32 = vsub.f32 %v614_v21, %v17715_v36  ;;  %v1005_v5 = vsub.f32 %v17411_v39, %v25567_v55  ;;  %v617_v36 = vsel %vm600_vm0, %v531_v54, 0 }
  0x4b   : > { %26461 = vst [vmem:[#allocation50_spill] sm:$0xff] %v17718_v37  ;;  %v14462_v31 = vpack.c.bf16 %v994_v30, %v982_v14  ;;  %14459 = vmatpush1.bf16.msra.mxu0 %v17609_v8  ;;  %v1000_v43 = vand.u32 4294901760, %v999_v22  ;;  %v1012_v15 = vand.u32 4294901760, %v1011_v51  ;;  %v1017_v14 = vsub.f32 %v17413_v40, %v25573_v0 }
  0x4c   : > { %26462 = vst [vmem:[#allocation51_spill] sm:$0xff] %v17730_v32  ;;  %14461 = vmatprep.subr.bf16.mxu0 %v14460_v9  ;;  %v798_v30 = vsub.f32 %v17713_v7, %v25570_v3  ;;  %v25578_v21 = vand.u32 4294901760, %v17730_v32  ;;  %v17746_v8 = vand.u32 4294901760, %v528_v19  ;;  %v26464_v22 = vand.u32 4294901760, %v17718_v37 }
  0x4d   : > { %v14464_v9 = vpack.c.bf16 %v1012_v15, %v1000_v43  ;;  %v1006_v55 = vand.u32 4294901760, %v1005_v5  ;;  %v1018_v0 = vand.u32 4294901760, %v1017_v14  ;;  %v17766_v15 = vand.u32 4294901760, %v530_v42 }
  0x4e   : > { %26463 = vst [vmem:[#allocation52_spill] sm:$0xff] %v17746_v8  ;;  %v17752_v51 = vsub.f32 %v17718_v37, %v26464_v22  ;;  %758 = vmatmul.mubr.f32.vlgmr.msra.gmra.mrb[0].mxu0 %v757_v38  ;;  %v799_v3 = vand.u32 4294901760, %v798_v30  ;;  %v17758_v7 = vsub.f32 %v17730_v32, %v25578_v21  ;;  %v17761_v1 = vsub.f32 %v528_v19, %v17746_v8  ;;  %v533_v38 = vld [vmem:[%s17549_s19 + $0x68] sm:$0xff] }
  0x4f   : > { %768 = vmatprep.mubr.f32.mxu0 %v767_v2  ;;  %14463 = vmatpush1.bf16.msra.mxu0 %v14462_v31  ;;  %v17764_v37 = vand.u32 4294901760, %v617_v36  ;;  %26467 = vst [vmem:[#allocation55_spill] sm:$0xff] %v17766_v15  ;;  %v25579_v43 = vand.u32 4294901760, %v17415_v41  ;;  %v14466_v5 = vpack.c.bf16 %v1018_v0, %v1006_v55  ;;  %v25581_v19 = vand.u32 4294901760, %v17428_v46  ;;  %v532_v0 = vld [vmem:[%s17549_s19 + $0x60] sm:$0xff] }
  0x50   : > { %26465 = vst [vmem:[#allocation53_spill] sm:$0xff] %v17761_v1  ;;  %v805_v22 = vand.u32 4294901760, %v17752_v51  ;;  %14465 = vmatprep.subr.bf16.mxu0 %v14464_v9  ;;  %v815_v54 = vand.u32 4294901760, %v17758_v7  ;;  %v25580_v30 = vand.u32 4294901760, %v17761_v1  ;;  %v17777_v31 = vsub.f32 %v530_v42, %v17766_v15 }
  0x51   : > { %26466 = vst [vmem:[#allocation54_spill] sm:$0xff] %v17764_v37  ;;  %v17774_v2 = vsub.f32 %v617_v36, %v17764_v37  ;;  %v1023_v14 = vsub.f32 %v17415_v41, %v25579_v43  ;;  %v25587_v51 = vand.u32 4294901760, %v17432_v48  ;;  %v26470_v9 = vand.u32 4294901760, %v17662_v26 }
  0x52   : > { %26469 = vst [vmem:[#allocation57_spill] sm:$0xff] %v17777_v31  ;;  %v820_v55 = vsub.f32 %v17761_v1, %v25580_v30  ;;  %v1035_v36 = vsub.f32 %v17428_v46, %v25581_v19  ;;  %v25586_v7 = vand.u32 4294901760, %v17437_v50  ;;  %v620_v42 = vsel %vm600_vm0, %v533_v38, 0 }
  0x53   : > { %26468 = vst [vmem:[#allocation56_spill] sm:$0xff] %v17774_v2  ;;  %774 = vmatmul.mubr.f32.gmra.mrb[2].mxu0 %v26470_v9  ;;  %v26471_v21 = vand.u32 4294901760, %v17688_v58  ;;  %v25590_v26 = vand.u32 4294901760, %v17774_v2  ;;  %v25593_v9 = vand.u32 4294901760, %v17777_v31  ;;  %v1024_v43 = vand.u32 4294901760, %v1023_v14 }
  0x54   : > { %14467 = vmatpush1.bf16.msra.mxu0 %v14466_v5  ;;  %v1029_v30 = vsub.f32 %v17432_v48, %v25587_v51  ;;  %v821_v19 = vand.u32 4294901760, %v820_v55  ;;  %v1036_v1 = vand.u32 4294901760, %v1035_v36  ;;  %v1041_v38 = vsub.f32 %v17437_v50, %v25586_v7 }
  0x55   : > { %784 = vmatprep.mubr.f32.mxu0 %v26471_v21  ;;  %v17804_v32 = vand.u32 4294901760, %v620_v42  ;;  %v830_v58 = vsub.f32 %v17774_v2, %v25590_v26  ;;  %v17812_v21 = vsub.f32 %v17777_v31, %v25593_v9  ;;  %v17814_v14 = vand.u32 4294901760, %v532_v0  ;;  %v535_v26 = vld [vmem:[%s17549_s19 + $0x78] sm:$0xff] }
  0x56   : > { %v1030_v5 = vand.u32 4294901760, %v1029_v30  ;;  %v26474_v55 = vand.u32 4294901760, %v17682_v45  ;;  %v14468_v36 = vpack.c.bf16 %v1036_v1, %v1024_v43  ;;  %v1042_v7 = vand.u32 4294901760, %v1041_v38  ;;  %v534_v38 = vld [vmem:[%s17549_s19 + $0x70] sm:$0xff] }
  0x57   : > { %26472 = vst [vmem:[#allocation58_spill] sm:$0xff] %v17804_v32  ;;  %26473 = vst [vmem:[#allocation59_spill] sm:$0xff] %v17814_v14  ;;  %v17819_v51 = vsub.f32 %v620_v42, %v17804_v32  ;;  %v25594_v15 = vand.u32 4294901760, %v17439_v52  ;;  %v831_v2 = vand.u32 4294901760, %v830_v58  ;;  %v837_v9 = vand.u32 4294901760, %v17812_v21 }
  0x58   : > { %790 = vmatmul.mubr.f32.gmra.mrb[4].mxu0 %v26474_v55  ;;  %v17825_v30 = vsub.f32 %v532_v0, %v17814_v14  ;;  %v25595_v45 = vand.u32 4294901760, %v17456_v61  ;;  %14469 = vmatprep.subr.bf16.mxu0 %v14468_v36  ;;  %v14470_v55 = vpack.c.bf16 %v1042_v7, %v1030_v5  ;;  %v25603_v42 = vand.u32 4294901760, %v17458_v62  ;;  %v537_v7 = vld [vmem:[%s17549_s19 + $0x88] sm:$0xff] }
  0x59   : > { %26475 = vst [vmem:[#allocation60_spill] sm:$0xff] %v17819_v51  ;;  %800 = vmatprep.mubr.f32.mxu0 %v799_v3  ;;  %v25600_v1 = vand.u32 4294901760, %v17819_v51  ;;  %v1047_v43 = vsub.f32 %v17439_v52, %v25594_v15  ;;  %v623_v21 = vsel %vm600_vm0, %v535_v26, 0  ;;  %v17855_v14 = vand.u32 4294901760, %v534_v38 }
  0x5a   : > { %26476 = vst [vmem:[#allocation61_spill] sm:$0xff] %v17825_v30  ;;  %v1059_v0 = vsub.f32 %v17456_v61, %v25595_v45  ;;  %v1053_v15 = vsub.f32 %v17458_v62, %v25603_v42  ;;  %v17847_v3 = vand.u32 4294901760, %v623_v21  ;;  %14471 = vmatpush1.bf16.msra.mxu0 %v14470_v55  ;;  %v26478_v45 = vand.u32 4294901760, %v17825_v30 }
  0x5b   : > { %v846_v5 = vsub.f32 %v17819_v51, %v25600_v1  ;;  %v1048_v36 = vand.u32 4294901760, %v1047_v43  ;;  %26480 = vst [vmem:[#allocation63_spill] sm:$0xff] %v17855_v14  ;;  %v626_v42 = vsel %vm600_vm0, %v537_v7, 0 }
  0x5c   : > { %806 = vmatmul.mubr.f32.gmra.mrb[6].mxu0 %v805_v22  ;;  %26477 = vst [vmem:[#allocation62_spill] sm:$0xff] %v17847_v3  ;;  %v852_v26 = vsub.f32 %v17825_v30, %v26478_v45  ;;  %v1060_v58 = vand.u32 4294901760, %v1059_v0  ;;  %v26479_v22 = vand.u32 4294901760, %v17471_v4  ;;  %v1054_v1 = vand.u32 4294901760, %v1053_v15 }
  0x5d   : > { %816 = vmatprep.mubr.f32.mxu0 %v815_v54  ;;  %v847_v43 = vand.u32 4294901760, %v846_v5  ;;  %v17858_v51 = vsub.f32 %v623_v21, %v17847_v3  ;;  %v536_v54 = vld [vmem:[%s17549_s19 + $0x80] sm:$0xff]  ;;  %v17863_v45 = vsub.f32 %v534_v38, %v17855_v14  ;;  %v25609_v5 = vand.u32 4294901760, %v17475_v6 }
  0x5e   : > { %v1065_v31 = vsub.f32 %v17471_v4, %v26479_v22  ;;  %v853_v55 = vand.u32 4294901760, %v852_v26  ;;  %v14472_v32 = vpack.c.bf16 %v1060_v58, %v1048_v36  ;;  %v17866_v22 = vand.u32 4294901760, %v626_v42  ;;  %v539_v26 = vld [vmem:[%s17549_s19 + $0x98] sm:$0xff] }
  0x5f   : > { %26481 = vst [vmem:[#allocation64_spill] sm:$0xff] %v17858_v51  ;;  %26482 = vst [vmem:[#allocation65_spill] sm:$0xff] %v17863_v45  ;;  %v25608_v0 = vand.u32 4294901760, %v17858_v51  ;;  %v25610_v15 = vand.u32 4294901760, %v17486_v10  ;;  %v25615_v58 = vand.u32 4294901760, %v17863_v45  ;;  %v25616_v38 = vand.u32 4294901760, %v17490_v12 }
  0x60   : > { %v1066_v37 = vand.u32 4294901760, %v1065_v31  ;;  %822 = vmatmul.mubr.f32.gmra.mrb[8].mxu0 %v821_v19  ;;  %26483 = vst [vmem:[#allocation66_spill] sm:$0xff] %v17866_v22  ;;  %14473 = vmatprep.subr.bf16.mxu0 %v14472_v32  ;;  %v17871_v31 = vand.u32 4294901760, %v536_v54  ;;  %v17878_v7 = vsub.f32 %v626_v42, %v17866_v22  ;;  %v25619_v36 = vand.u32 4294901760, %v17492_v13 }
  0x61   : > { %832 = vmatprep.mubr.f32.mxu0 %v831_v2  ;;  %v862_v19 = vsub.f32 %v17858_v51, %v25608_v0  ;;  %v1071_v2 = vsub.f32 %v17475_v6, %v25609_v5  ;;  %v1083_v32 = vsub.f32 %v17486_v10, %v25610_v15  ;;  %v1077_v42 = vsub.f32 %v17490_v12, %v25616_v38  ;;  %v538_v0 = vld [vmem:[%s17549_s19 + $0x90] sm:$0xff] }
  0x62   : > { %v14474_v21 = vpack.c.bf16 %v1066_v37, %v1054_v1  ;;  %26484 = vst [vmem:[#allocation67_spill] sm:$0xff] %v17871_v31  ;;  %26485 = vst [vmem:[#allocation68_spill] sm:$0xff] %v17878_v7  ;;  %v868_v37 = vsub.f32 %v17863_v45, %v25615_v58  ;;  %v17890_v1 = vsub.f32 %v536_v54, %v17871_v31  ;;  %v25622_v15 = vand.u32 4294901760, %v17878_v7 }
  0x63   : > { %v863_v5 = vand.u32 4294901760, %v862_v19  ;;  %v1084_v51 = vand.u32 4294901760, %v1083_v32  ;;  %v1078_v54 = vand.u32 4294901760, %v1077_v42  ;;  %v1089_v38 = vsub.f32 %v17492_v13, %v25619_v36 }
  0x64   : > { %14475 = vmatpush1.bf16.msra.mxu0 %v14474_v21  ;;  %26486 = vst [vmem:[#allocation69_spill] sm:$0xff] %v17890_v1  ;;  %v1072_v21 = vand.u32 4294901760, %v1071_v2  ;;  %v869_v30 = vand.u32 4294901760, %v868_v37  ;;  %v25625_v58 = vand.u32 4294901760, %v17890_v1  ;;  %v629_v45 = vsel %vm600_vm0, %v539_v26, 0 }
  0x65   : > { %838 = vmatmul.mubr.f32.gmra.mrb[10].mxu0 %v837_v9  ;;  %v878_v9 = vsub.f32 %v17878_v7, %v25622_v15  ;;  %v17907_v2 = vand.u32 4294901760, %v538_v0  ;;  %v1090_v32 = vand.u32 4294901760, %v1089_v38  ;;  %v17912_v37 = vand.u32 4294901760, %v629_v45  ;;  %v540_v15 = vld [vmem:[%s17549_s19 + $0xa0] sm:$0xff] }
  0x66   : > { %848 = vmatprep.mubr.f32.mxu0 %v847_v43  ;;  %v14476_v19 = vpack.c.bf16 %v1084_v51, %v1072_v21  ;;  %v884_v43 = vsub.f32 %v17890_v1, %v25625_v58  ;;  %v25627_v42 = vand.u32 4294901760, %v17505_v34  ;;  %v25626_v51 = vand.u32 4294901760, %v17507_v35  ;;  %v541_v21 = vld [vmem:[%s17549_s19 + $0xa8] sm:$0xff] }
  0x67   : > { %26487 = vst [vmem:[#allocation70_spill] sm:$0xff] %v17907_v2  ;;  %26488 = vst [vmem:[#allocation71_spill] sm:$0xff] %v17912_v37  ;;  %v879_v36 = vand.u32 4294901760, %v878_v9  ;;  %v17916_v31 = vsub.f32 %v538_v0, %v17907_v2  ;;  %v25630_v26 = vand.u32 4294901760, %v17520_v44  ;;  %v14478_v58 = vpack.c.bf16 %v1090_v32, %v1078_v54  ;;  %v543_v2 = vld [vmem:[%s17549_s19 + $0xb8] sm:$0xff] }
  0x68   : > { %14477 = vmatprep.subr.bf16.mxu0 %v14476_v19  ;;  %v885_v7 = vand.u32 4294901760, %v884_v43  ;;  %v17923_v38 = vsub.f32 %v629_v45, %v17912_v37  ;;  %v1107_v0 = vsub.f32 %v17507_v35, %v25626_v51  ;;  %v632_v43 = vsel %vm600_vm0, %v541_v21, 0 }
  0x69   : > { %854 = vmatmul.mubr.f32.gmra.mrb[12].mxu0 %v853_v55  ;;  %26489 = vst [vmem:[#allocation72_spill] sm:$0xff] %v17916_v31  ;;  %v1095_v55 = vsub.f32 %v17505_v34, %v25627_v42  ;;  %v25631_v9 = vand.u32 4294901760, %v17916_v31  ;;  %v1101_v19 = vsub.f32 %v17520_v44, %v25630_v26  ;;  %v17938_v32 = vand.u32 4294901760, %v540_v15 }
  0x6a   : > { %864 = vmatprep.mubr.f32.mxu0 %v863_v5  ;;  %26490 = vst [vmem:[#allocation73_spill] sm:$0xff] %v17923_v38  ;;  %v25636_v5 = vand.u32 4294901760, %v17522_v49  ;;  %14479 = vmatpush1.bf16.msra.mxu0 %v14478_v58  ;;  %v25637_v45 = vand.u32 4294901760, %v17923_v38  ;;  %v1108_v42 = vand.u32 4294901760, %v1107_v0  ;;  %v17949_v21 = vand.u32 4294901760, %v632_v43 }
  0x6b   : > { %v1096_v54 = vand.u32 4294901760, %v1095_v55  ;;  %26491 = vst [vmem:[#allocation74_spill] sm:$0xff] %v17938_v32  ;;  %v900_v51 = vsub.f32 %v17916_v31, %v25631_v9  ;;  %v1102_v1 = vand.u32 4294901760, %v1101_v19  ;;  %v17952_v55 = vsub.f32 %v540_v15, %v17938_v32 }
  0x6c   : > { %v1113_v26 = vsub.f32 %v17522_v49, %v25636_v5  ;;  %v894_v58 = vsub.f32 %v17923_v38, %v25637_v45  ;;  %26492 = vst [vmem:[#allocation75_spill] sm:$0xff] %v17949_v21  ;;  %v25642_v31 = vand.u32 4294901760, %v17538_v57 }
  0x6d   : > { %870 = vmatmul.mubr.f32.gmra.mrb[14].mxu0 %v869_v30  ;;  %26493 = vst [vmem:[#allocation76_spill] sm:$0xff] %v17952_v55  ;;  %v25640_v30 = vand.u32 4294901760, %v17526_v53  ;;  %v901_v9 = vand.u32 4294901760, %v900_v51  ;;  %v14480_v0 = vpack.c.bf16 %v1108_v42, %v1096_v54  ;;  %v25641_v45 = vand.u32 4294901760, %v17952_v55  ;;  %v542_v54 = vld [vmem:[%s17549_s19 + $0xb0] sm:$0xff] }
  0x6e   : > { %880 = vmatprep.mubr.f32.mxu0 %v879_v36  ;;  %v1114_v19 = vand.u32 4294901760, %v1113_v26  ;;  %v895_v5 = vand.u32 4294901760, %v894_v58  ;;  %v17958_v36 = vsub.f32 %v632_v43, %v17949_v21  ;;  %v1131_v42 = vsub.f32 %v17538_v57, %v25642_v31 }
  0x6f   : > { %v1119_v15 = vsub.f32 %v17526_v53, %v25640_v30  ;;  %14481 = vmatprep.subr.bf16.mxu0 %v14480_v0  ;;  %v25643_v51 = vand.u32 4294901760, %v17542_v59  ;;  %v25646_v26 = vand.u32 4294901760, %v17544_v63  ;;  %v916_v58 = vsub.f32 %v17952_v55, %v25641_v45 }
  0x70   : > { %26494 = vst [vmem:[#allocation77_spill] sm:$0xff] %v17958_v36  ;;  %v14482_v38 = vpack.c.bf16 %v1114_v19, %v1102_v1  ;;  %v25651_v43 = vand.u32 4294901760, %v17958_v36  ;;  %v1132_v1 = vand.u32 4294901760, %v1131_v42  ;;  %v17986_v31 = vand.u32 4294901760, %v542_v54 }
  0x71   : > { %886 = vmatmul.mubr.f32.gmra.mrb[16].mxu0 %v885_v7  ;;  %v1120_v30 = vand.u32 4294901760, %v1119_v15  ;;  %v635_v7 = vsel %vm600_vm0, %v543_v2, 0  ;;  %v1125_v0 = vsub.f32 %v17542_v59, %v25643_v51  ;;  %v917_v15 = vand.u32 4294901760, %v916_v58 }
  0x72   : > { %896 = vmatprep.mubr.f32.mxu0 %v895_v5  ;;  %14483 = vmatpush1.bf16.msra.mxu0 %v14482_v38  ;;  %v1137_v5 = vsub.f32 %v17544_v63, %v25646_v26  ;;  %v17981_v19 = vand.u32 4294901760, %v635_v7  ;;  %v910_v45 = vsub.f32 %v17958_v36, %v25651_v43  ;;  %26496 = vst [vmem:[#allocation79_spill] sm:$0xff] %v17986_v31  ;;  %v25654_v2 = vand.u32 4294901760, %v17560_v28  ;;  %v545_v26 = vld [vmem:[%s17549_s19 + $0xc8] sm:$0xff] }
  0x73   : > { %v14484_v38 = vpack.c.bf16 %v1132_v1, %v1120_v30  ;;  %v1126_v42 = vand.u32 4294901760, %v1125_v0  ;;  %v17994_v21 = vsub.f32 %v542_v54, %v17986_v31  ;;  %v25655_v43 = vand.u32 4294901760, %v17562_v29  ;;  %v26499_v1 = vld [vmem:[#allocation27_spill] sm:$0xff]  ;;  %v544_v0 = vld [vmem:[%s17549_s19 + $0xc0] sm:$0xff] }
  0x74   : > { %26495 = vst [vmem:[#allocation78_spill] sm:$0xff] %v17981_v19  ;;  %v1138_v51 = vand.u32 4294901760, %v1137_v5  ;;  %v17990_v55 = vsub.f32 %v635_v7, %v17981_v19  ;;  %v911_v32 = vand.u32 4294901760, %v910_v45  ;;  %v1143_v58 = vsub.f32 %v17560_v28, %v25654_v2 }
  0x75   : > { %902 = vmatmul.mubr.f32.gmra.mrb[18].mxu0 %v901_v9  ;;  %26498 = vst [vmem:[#allocation81_spill] sm:$0xff] %v17994_v21  ;;  %14485 = vmatprep.subr.bf16.mxu0 %v14484_v38  ;;  %v25661_v30 = vand.u32 4294901760, %v17574_v47  ;;  %v25664_v7 = vand.u32 4294901760, %v26499_v1  ;;  %v25669_v45 = vand.u32 4294901760, %v17994_v21  ;;  %v1155_v5 = vsub.f32 %v17562_v29, %v25655_v43  ;;  %v26502_v43 = vld [vmem:[#allocation29_spill] sm:$0xff] }
  0x76   : > { %26497 = vst [vmem:[#allocation80_spill] sm:$0xff] %v17990_v55  ;;  %v14486_v36 = vpack.c.bf16 %v1138_v51, %v1126_v42  ;;  %v25656_v9 = vand.u32 4294901760, %v17990_v55  ;;  %912 = vmatprep.mubr.f32.mxu0 %v911_v32  ;;  %v1144_v54 = vand.u32 4294901760, %v1143_v58  ;;  %v638_v2 = vsel %vm600_vm0, %v545_v26, 0 }
  0x77   : > { %v1149_v38 = vsub.f32 %v17574_v47, %v25661_v30  ;;  %v1161_v32 = vsub.f32 %v26499_v1, %v25664_v7  ;;  %v18018_v42 = vand.u32 4294901760, %v638_v2  ;;  %v932_v26 = vsub.f32 %v17994_v21, %v25669_v45  ;;  %v547_v7 = vld [vmem:[%s17549_s19 + $0xd8] sm:$0xff] }
  0x78   : > { %v926_v51 = vsub.f32 %v17990_v55, %v25656_v9  ;;  %14487 = vmatpush1.bf16.msra.mxu0 %v14486_v36  ;;  %v18023_v58 = vand.u32 4294901760, %v544_v0  ;;  %v25674_v9 = vand.u32 4294901760, %v26502_v43 }
  0x79   : > { %918 = vmatmul.mubr.f32.gmra.mrb[20].mxu0 %v917_v15  ;;  %26500 = vst [vmem:[#allocation27_spill] sm:$0xff] %v18018_v42  ;;  %v1156_v15 = vand.u32 4294901760, %v1155_v5  ;;  %v1150_v31 = vand.u32 4294901760, %v1149_v38  ;;  %v1162_v30 = vand.u32 4294901760, %v1161_v32  ;;  %v18027_v19 = vsub.f32 %v638_v2, %v18018_v42  ;;  %v546_v2 = vld [vmem:[%s17549_s19 + $0xd0] sm:$0xff]  ;;  %s25429_s19 = scalar_lea.hbm %s25487_s16, %s13613_s27 }
  0x7a   : > { %26501 = vst [vmem:[#allocation82_spill] sm:$0xff] %v18023_v58  ;;  %v927_v55 = vand.u32 4294901760, %v926_v51  ;;  %v933_v37 = vand.u32 4294901760, %v932_v26  ;;  %v18031_v36 = vsub.f32 %v544_v0, %v18023_v58  ;;  %v1167_v5 = vsub.f32 %v26502_v43, %v25674_v9  ;;  %v26505_v0 = vld [vmem:[#allocation31_spill] sm:$0xff] }
  0x7b   : > { %26503 = vst [vmem:[#allocation29_spill] sm:$0xff] %v18027_v19  ;;  %v14488_v22 = vpack.c.bf16 %v1156_v15, %v1144_v54  ;;  %v14490_v45 = vpack.c.bf16 %v1162_v30, %v1150_v31  ;;  %v25672_v21 = vand.u32 4294901760, %v18027_v19  ;;  %v25673_v51 = vand.u32 4294901760, %v17586_v24 }
  0x7c   : > { %26504 = vst [vmem:[#allocation83_spill] sm:$0xff] %v18031_v36  ;;  %928 = vmatprep.mubr.f32.mxu0 %v927_v55  ;;  %v25677_v38 = vand.u32 4294901760, %v17590_v11  ;;  %v25682_v54 = vand.u32 4294901760, %v18031_v36  ;;  %v1168_v32 = vand.u32 4294901760, %v1167_v5  ;;  %v25683_v26 = vand.u32 4294901760, %v26505_v0 }
  0x7d   : > { %934 = vmatmul.mubr.f32.gmra.mrb[22].mxu0 %v933_v37  ;;  %14489 = vmatprep.subr.bf16.mxu0 %v14488_v22  ;;  %v641_v15 = vsel %vm600_vm0, %v547_v7, 0  ;;  %v942_v31 = vsub.f32 %v18027_v19, %v25672_v21  ;;  %v1179_v55 = vsub.f32 %v17586_v24, %v25673_v51  ;;  %v25691_v5 = vand.u32 4294901760, %v17605_v56 }
  0x7e   : > { %14491 = vmatpush1.bf16.msra.mxu0 %v14490_v45  ;;  %v1173_v22 = vsub.f32 %v17590_v11, %v25677_v38  ;;  %v18052_v37 = vand.u32 4294901760, %v641_v15  ;;  %v948_v30 = vsub.f32 %v18031_v36, %v25682_v54  ;;  %v1185_v7 = vsub.f32 %v26505_v0, %v25683_v26 }
  0x7f   : > { %v18060_v45 = vand.u32 4294901760, %v546_v2  ;;  %v943_v21 = vand.u32 4294901760, %v942_v31  ;;  %v1180_v51 = vand.u32 4294901760, %v1179_v55  ;;  %v1191_v54 = vsub.f32 %v17605_v56, %v25691_v5 }
  0x80   : > { %26506 = vst [vmem:[#allocation31_spill] sm:$0xff] %v18052_v37  ;;  %v1174_v9 = vand.u32 4294901760, %v1173_v22  ;;  %v18064_v19 = vsub.f32 %v641_v15, %v18052_v37  ;;  %v949_v38 = vand.u32 4294901760, %v948_v30  ;;  %v1186_v58 = vand.u32 4294901760, %v1185_v7 }
  0x81   : > { %26507 = vst [vmem:[#allocation84_spill] sm:$0xff] %v18060_v45  ;;  %v18067_v42 = vsub.f32 %v546_v2, %v18060_v45  ;;  %944 = vmatprep.mubr.f32.mxu0 %v943_v21  ;;  %v14492_v26 = vpack.c.bf16 %v1180_v51, %v1168_v32  ;;  %v25688_v31 = vand.u32 4294901760, %v17607_v20  ;;  %v25687_v55 = vand.u32 4294901760, %v17612_v60 }
  0x82   : > { %v25686_v36 = vand.u32 4294901760, %v18064_v19  ;;  %950 = vmatmul.mubr.f32.gmra.mrb[24].mxu0 %v949_v38  ;;  %v14494_v15 = vpack.c.bf16 %v1186_v58, %v1174_v9  ;;  %v25690_v30 = vand.u32 4294901760, %v17614_v33  ;;  %v1192_v7 = vand.u32 4294901760, %v1191_v54 }
  0x83   : > { %v25689_v22 = vand.u32 4294901760, %v18067_v42  ;;  %14493 = vmatprep.subr.bf16.mxu0 %v14492_v26  ;;  %v1203_v21 = vsub.f32 %v17607_v20, %v25688_v31  ;;  %v1197_v51 = vsub.f32 %v17612_v60, %v25687_v55  ;;  %v14502_v38 = vpack.c.bf16 %v17385_v23, %v17372_v18 }
  0x84   : > { %v958_v2 = vsub.f32 %v18064_v19, %v25686_v36  ;;  %14495 = vmatpush1.bf16.msra.mxu0 %v14494_v15  ;;  %v1209_v58 = vsub.f32 %v17614_v33, %v25690_v30  ;;  %v14504_v54 = vpack.c.bf16 %v17395_v27, %v17389_v25  ;;  %v14506_v15 = vpack.c.bf16 %v17413_v40, %v17411_v39  ;;  %v26511_v27 = vld [vmem:[#allocation32_spill] sm:$0xff] }
  0x85   : > { %v964_v9 = vsub.f32 %v18067_v42, %v25689_v22  ;;  %v1204_v26 = vand.u32 4294901760, %v1203_v21  ;;  %v1198_v36 = vand.u32 4294901760, %v1197_v51  ;;  %v14508_v22 = vpack.c.bf16 %v17428_v46, %v17415_v41  ;;  %v26508_v21 = vld [vmem:[#allocation36_spill] sm:$0xff] }
  0x86   : > { %v959_v32 = vand.u32 4294901760, %v958_v2  ;;  %v1210_v31 = vand.u32 4294901760, %v1209_v58  ;;  %v14510_v30 = vpack.c.bf16 %v17437_v50, %v17432_v48  ;;  %v14500_v23 = vpack.c.bf16 %v17370_v17, %v17368_v16 }
  0x87   : > { %v965_v55 = vand.u32 4294901760, %v964_v9  ;;  %v14496_v5 = vpack.c.bf16 %v1204_v26, %v1192_v7  ;;  %v26509_v51 = vand.u32 4294901760, %v17411_v39  ;;  %v26510_v9 = vand.u32 4294901760, %v17413_v40  ;;  %v26513_v7 = vld [vmem:[#allocation33_spill] sm:$0xff] }
  0x88   : > { %960 = vmatprep.mubr.f32.mxu0 %v959_v32  ;;  %v14498_v2 = vpack.c.bf16 %v1210_v31, %v1198_v36  ;;  %v26512_v32 = vld [vmem:[#allocation38_spill] sm:$0xff]  ;;  %v26514_v36 = vand.u32 4294901760, %v17415_v41  ;;  %v26517_v39 = vand.u32 4294901760, %v17437_v50  ;;  %v26520_v41 = vand.u32 4294901760, %v17439_v52 }
  0x89   : > { %966 = vmatmul.mubr.f32.gmra.mrb[26].mxu0 %v965_v55  ;;  %14497 = vmatprep.subr.bf16.mxu0 %v14496_v5  ;;  %v18109_v58 = vpack.c.bf16 %v26510_v9, %v26509_v51  ;;  %v26515_v5 = vand.u32 4294901760, %v17428_v46  ;;  %v26518_v55 = vld [vmem:[#allocation42_spill] sm:$0xff]  ;;  %v26521_v46 = vand.u32 4294901760, %v17456_v61  ;;  %v26523_v50 = vand.u32 4294901760, %v17471_v4 }
  0x8a   : > { %1237 = vmatprep.mubr.f32.mxu0 %v26508_v21  ;;  %14499 = vmatpush1.bf16.msra.mxu0 %v14498_v2  ;;  %v26524_v51 = vld [vmem:[#allocation46_spill] sm:$0xff]  ;;  %v14518_v9 = vpack.c.bf16 %v17492_v13, %v17490_v12 }
  0x8b   : > { %14501 = vmatprep.subr.bf16.mxu0 %v14500_v23  ;;  %v18118_v31 = vpack.c.bf16 %v26515_v5, %v26514_v36  ;;  %v26516_v23 = vand.u32 4294901760, %v17432_v48  ;;  %v18134_v26 = vpack.c.bf16 %v26521_v46, %v26520_v41  ;;  %v26522_v48 = vand.u32 4294901760, %v17458_v62 }
  0x8c   : > { %v26527_v36 = vand.u32 4294901760, %v17475_v6  ;;  %v26528_v5 = vand.u32 4294901760, %v17486_v10  ;;  %v26532_v41 = vand.u32 4294901760, %v17505_v34 }
  0x8d   : > { %1239 = vmatmul.mubr.f32.vlgmr.msra.gmra.mrb[0].mxu0 %v26511_v27  ;;  %v18124_v40 = vpack.c.bf16 %v26517_v39, %v26516_v23  ;;  %v18140_v2 = vpack.c.bf16 %v26523_v50, %v26522_v48  ;;  %v26530_v23 = vand.u32 4294901760, %v17492_v13  ;;  %v26534_v13 = vand.u32 4294901760, %v17520_v44 }
  0x8e   : > { %1245 = vmatprep.mubr.f32.mxu0 %v26512_v32  ;;  %14503 = vmatpush1.bf16.msra.mxu0 %v14502_v38  ;;  %v14512_v38 = vpack.c.bf16 %v17456_v61, %v17439_v52  ;;  %v14516_v52 = vpack.c.bf16 %v17486_v10, %v17475_v6  ;;  %v26526_v61 = vld [vmem:[#allocation49_spill] sm:$0xff]  ;;  %v14522_v6 = vpack.c.bf16 %v17522_v49, %v17520_v44  ;;  %v26535_v48 = vand.u32 4294901760, %v17522_v49 }
  0x8f   : > { %14505 = vmatprep.subr.bf16.mxu0 %v14504_v54  ;;  %v26519_v54 = vld [vmem:[#allocation40_spill] sm:$0xff]  ;;  %v14524_v10 = vpack.c.bf16 %v17538_v57, %v17526_v53  ;;  %v26539_v44 = vand.u32 4294901760, %v17538_v57  ;;  %v26540_v49 = vand.u32 4294901760, %v17542_v59  ;;  %v26543_v57 = vand.u32 4294901760, %v17560_v28 }
  0x90   : > { %v18181_v50 = vpack.c.bf16 %v26535_v48, %v26534_v13  ;;  %v14534_v13 = vpack.c.bf16 %v26505_v0, %v17590_v11 }
  0x91   : > { %1247 = vmatmul.mubr.f32.gmra.mrb[2].mxu0 %v26513_v7 }
  0x92   : > { %1253 = vmatprep.mubr.f32.mxu0 %v26518_v55  ;;  %14507 = vmatpush1.bf16.msra.mxu0 %v14506_v15  ;;  %v26525_v15 = vld [vmem:[#allocation47_spill] sm:$0xff] }
  0x93   : > { %14509 = vmatprep.subr.bf16.mxu0 %v14508_v22  ;;  %v14514_v22 = vpack.c.bf16 %v17471_v4, %v17458_v62  ;;  %v14520_v62 = vpack.c.bf16 %v17507_v35, %v17505_v34  ;;  %v26529_v4 = vand.u32 4294901760, %v17490_v12  ;;  %v26533_v12 = vand.u32 4294901760, %v17507_v35 }
  0x94   : > { %v14528_v34 = vpack.c.bf16 %v17562_v29, %v17560_v28  ;;  %v26538_v35 = vand.u32 4294901760, %v17526_v53  ;;  %v14532_v53 = vpack.c.bf16 %v17586_v24, %v26502_v43  ;;  %v14536_v28 = vpack.c.bf16 %v17607_v20, %v17605_v56 }
  0x95   : > { %1255 = vmatmul.mubr.f32.gmra.mrb[4].mxu0 %v26519_v54  ;;  %v18163_v39 = vpack.c.bf16 %v26530_v23, %v26529_v4  ;;  %v18175_v46 = vpack.c.bf16 %v26533_v12, %v26532_v41  ;;  %v26542_v4 = vld [vmem:[#allocation59_spill] sm:$0xff]  ;;  %v14530_v23 = vpack.c.bf16 %v26499_v1, %v17574_v47  ;;  %v26547_v12 = vld [vmem:[#allocation66_spill] sm:$0xff]  ;;  %v26618_v54 = vld [vmem:[#allocation13_spill] sm:$0xff] }
  0x96   : > { %1261 = vmatprep.mubr.f32.mxu0 %v26524_v51  ;;  %14511 = vmatpush1.bf16.msra.mxu0 %v14510_v30  ;;  %v18155_v30 = vpack.c.bf16 %v26528_v5, %v26527_v36  ;;  %v18193_v36 = vpack.c.bf16 %v26539_v44, %v26538_v35  ;;  %v26541_v5 = vand.u32 4294901760, %v17544_v63  ;;  %v26552_v35 = vld [vmem:[#allocation67_spill] sm:$0xff]  ;;  %v26610_v51 = vld [vmem:[#allocation81_spill] sm:$0xff] }
  0x97   : > { %14513 = vmatprep.subr.bf16.mxu0 %v14512_v38  ;;  %v26531_v38 = vld [vmem:[#allocation54_spill] sm:$0xff]  ;;  %v26553_v44 = vld [vmem:[#allocation71_spill] sm:$0xff] }
  0x99   : > { %1263 = vmatmul.mubr.f32.gmra.mrb[6].mxu0 %v26525_v15  ;;  %v26605_v15 = vld [vmem:[#allocation72_spill] sm:$0xff] }
  0x9a   : > { %1269 = vmatprep.mubr.f32.mxu0 %v26526_v61  ;;  %14515 = vmatpush1.bf16.msra.mxu0 %v14514_v22  ;;  %v26536_v22 = vld [vmem:[#allocation55_spill] sm:$0xff] }
  0x9b   : > { %14517 = vmatprep.subr.bf16.mxu0 %v14516_v52  ;;  %v26537_v52 = vld [vmem:[#allocation58_spill] sm:$0xff] }
  0x9d   : > { %1271 = vmatmul.mubr.f32.gmra.mrb[8].mxu0 %v17746_v8  ;;  %v26598_v8 = vld [vmem:[#allocation28_spill] sm:$0xff] }
  0x9e   : > { %1277 = vmatprep.mubr.f32.mxu0 %v26531_v38  ;;  %14519 = vmatpush1.bf16.msra.mxu0 %v14518_v9  ;;  %v14526_v9 = vpack.c.bf16 %v17544_v63, %v17542_v59  ;;  %v26544_v59 = vand.u32 4294901760, %v17562_v29  ;;  %v26545_v63 = vand.u32 4294901760, %v17574_v47  ;;  %v26548_v29 = vand.u32 4294901760, %v26502_v43  ;;  %v26595_v38 = vld [vmem:[#allocation65_spill] sm:$0xff] }
  0x9f   : > { %14521 = vmatprep.subr.bf16.mxu0 %v14520_v62  ;;  %v18199_v62 = vpack.c.bf16 %v26541_v5, %v26540_v49  ;;  %v26549_v47 = vand.u32 4294901760, %v17586_v24  ;;  %v14538_v49 = vpack.c.bf16 %v17614_v33, %v17612_v60  ;;  %v26554_v43 = vand.u32 4294901760, %v17605_v56  ;;  %v26562_v56 = vld [vmem:[#allocation78_spill] sm:$0xff] }
  0xa0   : > { %v26555_v24 = vand.u32 4294901760, %v17607_v20  ;;  %v26563_v20 = vld [vmem:[#allocation79_spill] sm:$0xff] }
  0xa1   : > { %1279 = vmatmul.mubr.f32.gmra.mrb[10].mxu0 %v26536_v22  ;;  %v18229_v48 = vpack.c.bf16 %v26549_v47, %v26548_v29  ;;  %v26569_v29 = vld [vmem:[#allocation10_spill] sm:$0xff]  ;;  %v26570_v47 = vld [vmem:[#allocation12_spill] sm:$0xff]  ;;  %v26594_v22 = vld [vmem:[#allocation25_spill] sm:$0xff] }
  0xa2   : > { %1285 = vmatprep.mubr.f32.mxu0 %v26537_v52  ;;  %14523 = vmatpush1.bf16.msra.mxu0 %v14522_v6  ;;  %v18211_v6 = vpack.c.bf16 %v26544_v59, %v26543_v57  ;;  %v18245_v5 = vpack.c.bf16 %v26555_v24, %v26554_v43  ;;  %v26559_v57 = vld [vmem:[#allocation75_spill] sm:$0xff]  ;;  %v26560_v59 = vld [vmem:[#allocation9_spill] sm:$0xff]  ;;  %v26575_v24 = vld [vmem:[#allocation44_spill] sm:$0xff] }
  0xa3   : > { %14525 = vmatprep.subr.bf16.mxu0 %v14524_v10  ;;  %v26546_v10 = vand.u32 4294901760, %v26499_v1  ;;  %v26550_v1 = vand.u32 4294901760, %v17590_v11  ;;  %v26556_v11 = vand.u32 4294901760, %v17612_v60  ;;  %v26565_v60 = vld [vmem:[#allocation82_spill] sm:$0xff]  ;;  %v26574_v43 = vld [vmem:[#allocation15_spill] sm:$0xff]  ;;  %v26593_v52 = vld [vmem:[#allocation24_spill] sm:$0xff] }
  0xa5   : > { %1287 = vmatmul.mubr.f32.gmra.mrb[12].mxu0 %v26542_v4  ;;  %v18217_v41 = vpack.c.bf16 %v26546_v10, %v26545_v63  ;;  %v26561_v63 = vld [vmem:[#allocation74_spill] sm:$0xff]  ;;  %v26564_v10 = vld [vmem:[#allocation27_spill] sm:$0xff]  ;;  %v26592_v4 = vld [vmem:[#allocation64_spill] sm:$0xff] }
  0xa6   : > { %1293 = vmatprep.mubr.f32.mxu0 %v17847_v3  ;;  %14527 = vmatpush1.bf16.msra.mxu0 %v14526_v9  ;;  %v26551_v9 = vand.u32 4294901760, %v26505_v0  ;;  %v26557_v0 = vand.u32 4294901760, %v17614_v33  ;;  %v26566_v33 = vld [vmem:[#allocation41_spill] sm:$0xff] }
  0xa7   : > { %14529 = vmatprep.subr.bf16.mxu0 %v14528_v34  ;;  %v26591_v3 = vld [vmem:[#allocation61_spill] sm:$0xff] }
  0xa8   : > { %v18235_v34 = vpack.c.bf16 %v26551_v9, %v26550_v1  ;;  %v26571_v1 = vld [vmem:[#allocation39_spill] sm:$0xff]  ;;  %v26572_v9 = vld [vmem:[#allocation45_spill] sm:$0xff] }
  0xa9   : > { %1295 = vmatmul.mubr.f32.gmra.mrb[14].mxu0 %v17855_v14  ;;  %v26590_v14 = vld [vmem:[#allocation23_spill] sm:$0xff] }
  0xaa   : > { %1301 = vmatprep.mubr.f32.mxu0 %v26547_v12  ;;  %14531 = vmatpush1.bf16.msra.mxu0 %v14530_v23  ;;  %v18251_v23 = vpack.c.bf16 %v26557_v0, %v26556_v11  ;;  %v26576_v11 = vld [vmem:[#allocation48_spill] sm:$0xff]  ;;  %v26589_v12 = vld [vmem:[#allocation22_spill] sm:$0xff] }
  0xab   : > { %14533 = vmatprep.subr.bf16.mxu0 %v14532_v53  ;;  %v26558_v53 = vld [vmem:[#allocation70_spill] sm:$0xff]  ;;  %v26577_v0 = vld [vmem:[#allocation16_spill] sm:$0xff] }
  0xad   : > { %1303 = vmatmul.mubr.f32.gmra.mrb[16].mxu0 %v26552_v35  ;;  %v26588_v35 = vld [vmem:[#allocation60_spill] sm:$0xff] }
  0xae   : > { %1309 = vmatprep.mubr.f32.mxu0 %v26553_v44  ;;  %14535 = vmatpush1.bf16.msra.mxu0 %v14534_v13  ;;  %v26567_v13 = vld [vmem:[#allocation37_spill] sm:$0xff] }
  0xaf   : > { %14537 = vmatprep.subr.bf16.mxu0 %v14536_v28  ;;  %v26568_v28 = vld [vmem:[#allocation43_spill] sm:$0xff]  ;;  %v26587_v44 = vld [vmem:[#allocation57_spill] sm:$0xff]  ;;  %v26620_v55 = vand.u32 4294901760, %v26567_v13 }
  0xb0   : > { %v26621_v7 = vand.u32 4294901760, %v26568_v28 }
  0xb1   : > { %1311 = vmatmul.mubr.f32.gmra.mrb[18].mxu0 %v26558_v53  ;;  %v26586_v53 = vld [vmem:[#allocation21_spill] sm:$0xff] }
  0xb2   : > { %1317 = vmatprep.mubr.f32.mxu0 %v26559_v57  ;;  %14539 = vmatpush1.bf16.msra.mxu0 %v14538_v49  ;;  %v26573_v49 = vld [vmem:[#allocation14_spill] sm:$0xff]  ;;  %v26585_v57 = vld [vmem:[#allocation20_spill] sm:$0xff] }
  0xb3   : > { %14541 = vmatprep.subr.bf16.mxu0 %v26560_v59 }
  0xb5   : > { %1319 = vmatmul.mubr.f32.gmra.mrb[20].mxu0 %v26561_v63  ;;  %v26584_v63 = vld [vmem:[#allocation56_spill] sm:$0xff] }
  0xb6   : > { %1325 = vmatprep.mubr.f32.mxu0 %v26562_v56  ;;  %v26583_v56 = vld [vmem:[#allocation53_spill] sm:$0xff] }
  0xb9   : > { %1327 = vmatmul.mubr.f32.gmra.mrb[22].mxu0 %v26563_v20  ;;  %v26582_v20 = vld [vmem:[#allocation19_spill] sm:$0xff] }
  0xba   : > { %1333 = vmatprep.mubr.f32.mxu0 %v26564_v10  ;;  %v26581_v10 = vld [vmem:[#allocation18_spill] sm:$0xff] }
  0xbd   : > { %1335 = vmatmul.mubr.f32.gmra.mrb[24].mxu0 %v26565_v60  ;;  %v26580_v60 = vld [vmem:[#allocation51_spill] sm:$0xff] }
  0xbe   : > { %1341 = vmatprep.mubr.f32.mxu0 %v18052_v37  ;;  %v26579_v37 = vld [vmem:[#allocation50_spill] sm:$0xff] }
  0xc1   : > { %1343 = vmatmul.mubr.f32.gmra.mrb[26].mxu0 %v18060_v45  ;;  %v26578_v45 = vld [vmem:[#allocation17_spill] sm:$0xff] }
  0xc2   : > { %1495 = vmatprep.mubr.f32.mxu0 %v26566_v33 }
  0xc5   : > { %1498 = vmatmul.mubr.f32.vlgmr.msra.gmra.mrb[0].mxu0 %v26567_v13  ;;  %v26667_v13 = vld [vmem:[#allocation59_spill] sm:$0xff] }
  0xc6   : > { %1505 = vmatprep.mubr.f32.mxu0 %v26568_v28  ;;  %14543 = vmatpush1.bf16.msra.mxu0 %v26569_v29  ;;  %v26668_v28 = vld [vmem:[#allocation62_spill] sm:$0xff] }
  0xc7   : > { %14545 = vmatprep.subr.bf16.mxu0 %v26570_v47 }
  0xc9   : > { %1508 = vmatmul.mubr.f32.gmra.mrb[2].mxu0 %v26571_v1 }
  0xca   : > { %1515 = vmatprep.mubr.f32.mxu0 %v26572_v9  ;;  %14547 = vmatpush1.bf16.msra.mxu0 %v26573_v49 }
  0xcb   : > { %14549 = vmatprep.subr.bf16.mxu0 %v26574_v43  ;;  %v26619_v43 = vand.u32 4294901760, %v26618_v54  ;;  %v26627_v54 = vand.u32 4294901760, %v26580_v60 }
  0xcd   : > { %1518 = vmatmul.mubr.f32.gmra.mrb[4].mxu0 %v26575_v24 }
  0xce   : > { %1525 = vmatprep.mubr.f32.mxu0 %v26576_v11  ;;  %14551 = vmatpush1.bf16.msra.mxu0 %v26577_v0  ;;  %v26609_v0 = vld [vmem:[#allocation80_spill] sm:$0xff] }
  0xcf   : > { %14553 = vmatprep.subr.bf16.mxu0 %v26578_v45  ;;  %v26606_v45 = vld [vmem:[#allocation77_spill] sm:$0xff] }
  0xd1   : > { %1528 = vmatmul.mubr.f32.gmra.mrb[6].mxu0 %v26579_v37 }
  0xd2   : > { %1535 = vmatprep.mubr.f32.mxu0 %v26580_v60  ;;  %14555 = vmatpush1.bf16.msra.mxu0 %v26581_v10  ;;  %v26602_v10 = vld [vmem:[#allocation34_spill] sm:$0xff]  ;;  %v26666_v60 = vld [vmem:[#allocation23_spill] sm:$0xff] }
  0xd3   : > { %14557 = vmatprep.subr.bf16.mxu0 %v26582_v20  ;;  %v26599_v20 = vld [vmem:[#allocation69_spill] sm:$0xff] }
  0xd5   : > { %1538 = vmatmul.mubr.f32.gmra.mrb[8].mxu0 %v26583_v56 }
  0xd6   : > { %1545 = vmatprep.mubr.f32.mxu0 %v26584_v63  ;;  %14559 = vmatpush1.bf16.msra.mxu0 %v26585_v57  ;;  %v26596_v57 = vld [vmem:[#allocation68_spill] sm:$0xff] }
  0xd7   : > { %14561 = vmatprep.subr.bf16.mxu0 %v26586_v53  ;;  %v26597_v53 = vld [vmem:[#allocation26_spill] sm:$0xff] }
  0xd9   : > { %1548 = vmatmul.mubr.f32.gmra.mrb[10].mxu0 %v26587_v44 }
  0xda   : > { %1555 = vmatprep.mubr.f32.mxu0 %v26588_v35  ;;  %14563 = vmatpush1.bf16.msra.mxu0 %v26589_v12  ;;  %v26600_v12 = vld [vmem:[#allocation73_spill] sm:$0xff] }
  0xdb   : > { %14565 = vmatprep.subr.bf16.mxu0 %v26590_v14  ;;  %v26601_v14 = vld [vmem:[#allocation30_spill] sm:$0xff] }
  0xdd   : > { %1558 = vmatmul.mubr.f32.gmra.mrb[12].mxu0 %v26591_v3 }
  0xde   : > { %1565 = vmatprep.mubr.f32.mxu0 %v26592_v4  ;;  %14567 = vmatpush1.bf16.msra.mxu0 %v26593_v52  ;;  %v26603_v52 = vand.u32 4294901760, %v17368_v16  ;;  %v26613_v16 = vand.u32 4294901760, %v26566_v33  ;;  %v26622_v33 = vand.u32 4294901760, %v26571_v1  ;;  %v26671_v1 = vld [vmem:[#allocation63_spill] sm:$0xff] }
  0xdf   : > { %14569 = vmatprep.subr.bf16.mxu0 %v26594_v22  ;;  %v26604_v22 = vand.u32 4294901760, %v17370_v17  ;;  %v26614_v17 = vand.u32 4294901760, %v17372_v18  ;;  %v26623_v18 = vand.u32 4294901760, %v26572_v9  ;;  %v26672_v9 = vld [vmem:[#allocation66_spill] sm:$0xff] }
  0xe1   : > { %1568 = vmatmul.mubr.f32.gmra.mrb[14].mxu0 %v26595_v38  ;;  %v14580_v61 = vpack.c.bf16 %v26604_v22, %v26603_v52 }
  0xe2   : > { %1575 = vmatprep.mubr.f32.mxu0 %v26596_v57  ;;  %14571 = vmatpush1.bf16.msra.mxu0 %v26597_v53  ;;  %v26607_v53 = vld [vmem:[#allocation35_spill] sm:$0xff] }
  0xe3   : > { %14573 = vmatprep.subr.bf16.mxu0 %v26598_v8  ;;  %v26608_v8 = vld [vmem:[#allocation76_spill] sm:$0xff] }
  0xe5   : > { %1578 = vmatmul.mubr.f32.gmra.mrb[16].mxu0 %v26599_v20 }
  0xe6   : > { %1585 = vmatprep.mubr.f32.mxu0 %v26600_v12  ;;  %14575 = vmatpush1.bf16.msra.mxu0 %v26601_v14  ;;  %v26611_v14 = vld [vmem:[#allocation29_spill] sm:$0xff] }
  0xe7   : > { %14577 = vmatprep.subr.bf16.mxu0 %v26602_v10  ;;  %v26612_v10 = vld [vmem:[#allocation83_spill] sm:$0xff] }
  0xe9   : > { %1588 = vmatmul.mubr.f32.gmra.mrb[18].mxu0 %v26605_v15 }
  0xea   : > { %1595 = vmatprep.mubr.f32.mxu0 %v26606_v45  ;;  %14579 = vmatpush1.bf16.msra.mxu0 %v26607_v53  ;;  %v26617_v53 = vand.u32 4294901760, %v17389_v25  ;;  %v26624_v25 = vand.u32 4294901760, %v26575_v24  ;;  %v26675_v24 = vld [vmem:[#allocation67_spill] sm:$0xff] }
  0xeb   : > { %14581 = vmatprep.subr.bf16.mxu0 %v14580_v61  ;;  %v26615_v61 = vld [vmem:[#allocation11_spill] sm:$0xff] }
  0xec   : > { %v26616_v22 = vand.u32 4294901760, %v26615_v61  ;;  %v14584_v49 = vpack.c.bf16 %v26619_v43, %v26617_v53  ;;  %v26659_v53 = vld [vmem:[#allocation52_spill] sm:$0xff]  ;;  %v26680_v61 = vld [vmem:[#allocation75_spill] sm:$0xff] }
  0xed   : > { %1598 = vmatmul.mubr.f32.gmra.mrb[20].mxu0 %v26608_v8  ;;  %v26674_v43 = vld [vmem:[#allocation28_spill] sm:$0xff] }
  0xee   : > { %1605 = vmatprep.mubr.f32.mxu0 %v26609_v0  ;;  %v14582_v52 = vpack.c.bf16 %v26616_v22, %v26614_v17  ;;  %v26679_v17 = vld [vmem:[#allocation70_spill] sm:$0xff]  ;;  %v26681_v22 = vld [vmem:[#allocation35_spill] sm:$0xff] }
  0xf1   : > { %1608 = vmatmul.mubr.f32.gmra.mrb[22].mxu0 %v26610_v51 }
  0xf2   : > { %1615 = vmatprep.mubr.f32.mxu0 %v26611_v14 }
  0xf5   : > { %1618 = vmatmul.mubr.f32.gmra.mrb[24].mxu0 %v26612_v10 }
  0xf6   : > { %1625 = vmatprep.mubr.f32.mxu0 %v18064_v19 }
  0xf9   : > { %1628 = vmatmul.mubr.f32.gmra.mrb[26].mxu0 %v18067_v42 }
  0xfa   : > { %1741 = vmatprep.mubr.f32.mxu0 %v26613_v16  ;;  %v26678_v16 = vld [vmem:[#allocation34_spill] sm:$0xff] }
  0xfd   : > { %1745 = vmatmul.mubr.f32.vlgmr.msra.gmra.mrb[0].mxu0 %v26620_v55  ;;  %v26625_v55 = vand.u32 4294901760, %v26576_v11  ;;  %v26676_v11 = vld [vmem:[#allocation71_spill] sm:$0xff] }
  0xfe   : > { %1753 = vmatprep.mubr.f32.mxu0 %v26621_v7  ;;  %14583 = vmatpush1.bf16.msra.mxu0 %v14582_v52  ;;  %v26626_v7 = vand.u32 4294901760, %v26579_v37  ;;  %v26630_v37 = vand.u32 4294901760, %v26587_v44  ;;  %v26656_v44 = vld [vmem:[#allocation49_spill] sm:$0xff]  ;;  %v26682_v52 = vld [vmem:[#allocation74_spill] sm:$0xff] }
  0xff   : > { %14585 = vmatprep.subr.bf16.mxu0 %v14584_v49  ;;  %v26673_v49 = vld [vmem:[#allocation26_spill] sm:$0xff] }
 0x101   : > { %1757 = vmatmul.mubr.f32.gmra.mrb[2].mxu0 %v26622_v33  ;;  %v26683_v33 = vld [vmem:[#allocation78_spill] sm:$0xff] }
 0x102   : > { %1765 = vmatprep.mubr.f32.mxu0 %v26623_v18  ;;  %14587 = vmatpush1.bf16.msra.mxu0 %v18109_v58  ;;  %v26628_v58 = vand.u32 4294901760, %v26583_v56  ;;  %v26663_v56 = vld [vmem:[#allocation55_spill] sm:$0xff] }
 0x103   : > { %14589 = vmatprep.subr.bf16.mxu0 %v18118_v31  ;;  %v26629_v31 = vand.u32 4294901760, %v26584_v63  ;;  %v26662_v63 = vld [vmem:[#allocation21_spill] sm:$0xff]  ;;  %v26684_v18 = vld [vmem:[#allocation79_spill] sm:$0xff] }
 0x105   : > { %1769 = vmatmul.mubr.f32.gmra.mrb[4].mxu0 %v26624_v25  ;;  %v26685_v25 = vld [vmem:[#allocation27_spill] sm:$0xff] }
 0x106   : > { %1777 = vmatprep.mubr.f32.mxu0 %v26625_v55  ;;  %14591 = vmatpush1.bf16.msra.mxu0 %v18124_v40  ;;  %v26631_v40 = vand.u32 4294901760, %v26588_v35  ;;  %v26655_v35 = vld [vmem:[#allocation47_spill] sm:$0xff]  ;;  %v26686_v55 = vld [vmem:[#allocation82_spill] sm:$0xff] }
 0x107   : > { %14593 = vmatprep.subr.bf16.mxu0 %v18134_v26  ;;  %v26632_v26 = vand.u32 4294901760, %v26591_v3  ;;  %v26636_v3 = vand.u32 4294901760, %v26599_v20  ;;  %v26664_v20 = vld [vmem:[#allocation58_spill] sm:$0xff] }
 0x109   : > { %1781 = vmatmul.mubr.f32.gmra.mrb[6].mxu0 %v26626_v7  ;;  %v26687_v7 = vld [vmem:[#allocation31_spill] sm:$0xff] }
 0x10a   : > { %1789 = vmatprep.mubr.f32.mxu0 %v26627_v54  ;;  %14595 = vmatpush1.bf16.msra.mxu0 %v18140_v2  ;;  %v26633_v2 = vand.u32 4294901760, %v26592_v4  ;;  %v26642_v4 = vand.u32 4294901760, %v26610_v51  ;;  %v26649_v51 = vld [vmem:[#allocation14_spill] sm:$0xff]  ;;  %v26688_v54 = vld [vmem:[#allocation84_spill] sm:$0xff] }
 0x10b   : > { %14597 = vmatprep.subr.bf16.mxu0 %v18155_v30  ;;  %v26634_v30 = vand.u32 4294901760, %v26595_v38  ;;  %v26638_v38 = vand.u32 4294901760, %v26605_v15  ;;  %v26644_v15 = vand.u32 4294901760, %v26612_v10  ;;  %v26665_v10 = vld [vmem:[#allocation22_spill] sm:$0xff] }
 0x10d   : > { %1793 = vmatmul.mubr.f32.gmra.mrb[8].mxu0 %v26628_v58  ;;  %v588_v58 = vld [vmem:[%s25473_s2] sm:$0x3] }
 0x10e   : > { %1801 = vmatprep.mubr.f32.mxu0 %v26629_v31  ;;  %14599 = vmatpush1.bf16.msra.mxu0 %v18163_v39  ;;  %v26635_v39 = vand.u32 4294901760, %v26596_v57  ;;  %v26660_v57 = vld [vmem:[#allocation54_spill] sm:$0xff] }
 0x10f   : > { %14601 = vmatprep.subr.bf16.mxu0 %v18175_v46  ;;  %v26637_v46 = vand.u32 4294901760, %v26600_v12  ;;  %v26652_v12 = vld [vmem:[#allocation46_spill] sm:$0xff] }
 0x111   : > { %1805 = vmatmul.mubr.f32.gmra.mrb[10].mxu0 %v26630_v37 }
 0x112   : > { %1813 = vmatprep.mubr.f32.mxu0 %v26631_v40  ;;  %14603 = vmatpush1.bf16.msra.mxu0 %v18181_v50  ;;  %v26639_v50 = vand.u32 4294901760, %v26606_v45  ;;  %v26645_v45 = vand.u32 4294901760, %v18064_v19  ;;  %v26650_v19 = vld [vmem:[#allocation15_spill] sm:$0xff] }
 0x113   : > { %14605 = vmatprep.subr.bf16.mxu0 %v18193_v36  ;;  %v26640_v36 = vand.u32 4294901760, %v26608_v8  ;;  %v26647_v8 = vld [vmem:[#allocation33_spill] sm:$0xff] }
 0x115   : > { %1817 = vmatmul.mubr.f32.gmra.mrb[12].mxu0 %v26632_v26 }
 0x116   : > { %1825 = vmatprep.mubr.f32.mxu0 %v26633_v2  ;;  %14607 = vmatpush1.bf16.msra.mxu0 %v18199_v62  ;;  %v26641_v62 = vand.u32 4294901760, %v26609_v0  ;;  %v26677_v0 = vld [vmem:[#allocation30_spill] sm:$0xff] }
 0x117   : > { %14609 = vmatprep.subr.bf16.mxu0 %v18211_v6  ;;  %v26643_v6 = vand.u32 4294901760, %v26611_v14  ;;  %v26648_v14 = vld [vmem:[#allocation42_spill] sm:$0xff] }
 0x119   : > { %1829 = vmatmul.mubr.f32.gmra.mrb[14].mxu0 %v26634_v30 }
 0x11a   : > { %1837 = vmatprep.mubr.f32.mxu0 %v26635_v39  ;;  %14611 = vmatpush1.bf16.msra.mxu0 %v18217_v41  ;;  %v26646_v41 = vand.u32 4294901760, %v18067_v42  ;;  %v26651_v42 = vld [vmem:[#allocation40_spill] sm:$0xff] }
 0x11b   : > { %14613 = vmatprep.subr.bf16.mxu0 %v18229_v48  ;;  %v26653_v48 = vld [vmem:[#allocation16_spill] sm:$0xff] }
 0x11d   : > { %1841 = vmatmul.mubr.f32.gmra.mrb[16].mxu0 %v26636_v3 }
 0x11e   : > { %1849 = vmatprep.mubr.f32.mxu0 %v26637_v46  ;;  %14615 = vmatpush1.bf16.msra.mxu0 %v18235_v34  ;;  %v26654_v34 = vld [vmem:[#allocation17_spill] sm:$0xff] }
 0x11f   : > { %14617 = vmatprep.subr.bf16.mxu0 %v18245_v5  ;;  %v26657_v5 = vld [vmem:[#allocation18_spill] sm:$0xff] }
 0x121   : > { %1853 = vmatmul.mubr.f32.gmra.mrb[18].mxu0 %v26638_v38 }
 0x122   : > { %1861 = vmatprep.mubr.f32.mxu0 %v26639_v50  ;;  %14619 = vmatpush1.bf16.msra.mxu0 %v18251_v23  ;;  %v26658_v23 = vld [vmem:[#allocation19_spill] sm:$0xff] }
 0x123   : > { %14621 = vmatprep.subr.bf16.mxu0 %v26560_v59  ;;  %v26661_v59 = vld [vmem:[#allocation20_spill] sm:$0xff] }
 0x125   : > { %1865 = vmatmul.mubr.f32.gmra.mrb[20].mxu0 %v26640_v36 }
 0x126   : > { %1873 = vmatprep.mubr.f32.mxu0 %v26641_v62 }
 0x129   : > { %1877 = vmatmul.mubr.f32.gmra.mrb[22].mxu0 %v26642_v4 }
 0x12a   : > { %1885 = vmatprep.mubr.f32.mxu0 %v26643_v6 }
 0x12d   : > { %1889 = vmatmul.mubr.f32.gmra.mrb[24].mxu0 %v26644_v15 }
 0x12e   : > { %1897 = vmatprep.mubr.f32.mxu0 %v26645_v45 }
 0x131   : > { %1901 = vmatmul.mubr.f32.gmra.mrb[26].mxu0 %v26646_v41 }
 0x132   : > { %2092 = vmatprep.mubr.f32.mxu0 %v26508_v21 }
 0x135   : > { %2094 = vmatmul.mubr.f32.vlgmr.msra.gmra.mrb[0].mxu0 %v26511_v27 }
 0x136   : > { %2100 = vmatprep.mubr.f32.mxu0 %v26512_v32  ;;  %14623 = vmatpush1.bf16.msra.mxu0 %v26569_v29  ;;  %v26669_v29 = vld [vmem:[#allocation24_spill] sm:$0xff] }
 0x137   : > { %14625 = vmatprep.subr.bf16.mxu0 %v26570_v47  ;;  %v26670_v47 = vld [vmem:[#allocation25_spill] sm:$0xff] }
 0x139   : > { %2102 = vmatmul.mubr.f32.gmra.mrb[2].mxu0 %v26647_v8 }
 0x13a   : > { %2108 = vmatprep.mubr.f32.mxu0 %v26648_v14  ;;  %14627 = vmatpush1.bf16.msra.mxu0 %v26649_v51 }
 0x13b   : > { %14629 = vmatprep.subr.bf16.mxu0 %v26650_v19 }
 0x13d   : > { %2110 = vmatmul.mubr.f32.gmra.mrb[4].mxu0 %v26651_v42 }
 0x13e   : > { %2116 = vmatprep.mubr.f32.mxu0 %v26652_v12  ;;  %14631 = vmatpush1.bf16.msra.mxu0 %v26653_v48 }
 0x13f   : > { %14633 = vmatprep.subr.bf16.mxu0 %v26654_v34 }
 0x141   : > { %2118 = vmatmul.mubr.f32.gmra.mrb[6].mxu0 %v26655_v35 }
 0x142   : > { %2124 = vmatprep.mubr.f32.mxu0 %v26656_v44  ;;  %14635 = vmatpush1.bf16.msra.mxu0 %v26657_v5 }
 0x143   : > { %14637 = vmatprep.subr.bf16.mxu0 %v26658_v23 }
 0x145   : > { %2126 = vmatmul.mubr.f32.gmra.mrb[8].mxu0 %v26659_v53 }
 0x146   : > { %2132 = vmatprep.mubr.f32.mxu0 %v26660_v57  ;;  %14639 = vmatpush1.bf16.msra.mxu0 %v26661_v59 }
 0x147   : > { %14641 = vmatprep.subr.bf16.mxu0 %v26662_v63 }
 0x149   : > { %2134 = vmatmul.mubr.f32.gmra.mrb[10].mxu0 %v26663_v56 }
 0x14a   : > { %2140 = vmatprep.mubr.f32.mxu0 %v26664_v20  ;;  %14643 = vmatpush1.bf16.msra.mxu0 %v26665_v10 }
 0x14b   : > { %14645 = vmatprep.subr.bf16.mxu0 %v26666_v60 }
 0x14d   : > { %2142 = vmatmul.mubr.f32.gmra.mrb[12].mxu0 %v26667_v13 }
 0x14e   : > { %2148 = vmatprep.mubr.f32.mxu0 %v26668_v28  ;;  %14647 = vmatpush1.bf16.msra.mxu0 %v26669_v29 }
 0x14f   : > { %14649 = vmatprep.subr.bf16.mxu0 %v26670_v47 }
 0x151   : > { %2150 = vmatmul.mubr.f32.gmra.mrb[14].mxu0 %v26671_v1 }
 0x152   : > { %2156 = vmatprep.mubr.f32.mxu0 %v26672_v9  ;;  %14651 = vmatpush1.bf16.msra.mxu0 %v26673_v49 }
 0x153   : > { %14653 = vmatprep.subr.bf16.mxu0 %v26674_v43 }
 0x155   : > { %2158 = vmatmul.mubr.f32.gmra.mrb[16].mxu0 %v26675_v24 }
 0x156   : > { %2164 = vmatprep.mubr.f32.mxu0 %v26676_v11  ;;  %14655 = vmatpush1.bf16.msra.mxu0 %v26677_v0 }
 0x157   : > { %14657 = vmatprep.subr.bf16.mxu0 %v26678_v16 }
 0x159   : > { %2166 = vmatmul.mubr.f32.gmra.mrb[18].mxu0 %v26679_v17 }
 0x15a   : > { %2172 = vmatprep.mubr.f32.mxu0 %v26680_v61  ;;  %14659 = vmatpush1.bf16.msra.mxu0 %v26681_v22 }
 0x15d   : > { %2174 = vmatmul.mubr.f32.gmra.mrb[20].mxu0 %v26682_v52 }
 0x15e   : > { %2180 = vmatprep.mubr.f32.mxu0 %v26683_v33 }
 0x161   : > { %2182 = vmatmul.mubr.f32.gmra.mrb[22].mxu0 %v26684_v18 }
 0x162   : > { %2188 = vmatprep.mubr.f32.mxu0 %v26685_v25 }
 0x165   : > { %2190 = vmatmul.mubr.f32.gmra.mrb[24].mxu0 %v26686_v55 }
 0x166   : > { %2196 = vmatprep.mubr.f32.mxu0 %v26687_v7 }
 0x169   : > { %2198 = vmatmul.mubr.f32.gmra.mrb[26].mxu0 %v26688_v54 }
 0x16a   : > { %2309 = vmatprep.mubr.f32.mxu0 %v26508_v21 }
 0x16d   : > { %2311 = vmatmul.mubr.f32.vlgmr.msra.gmra.mrb[0].mxu0 %v26511_v27  ;;  %v590_v27 = vlaneseq }
 0x16e   : > { %2317 = vmatprep.mubr.f32.mxu0 %v26512_v32 }
 0x16f   : > { %v18471_v21 = vshrl.u32 %v590_v27, 7 }
 0x171   : > { %2319 = vmatmul.mubr.f32.gmra.mrb[2].mxu0 %v26647_v8  ;;  %26689 = vst [vmem:[#allocation36_spill] sm:$0xff] %v18471_v21  ;;  %v25705_v32 = vsub.s32 0, %v18471_v21  ;;  %v25704_v31 = vsub.s32 1, %v18471_v21 }
 0x172   : > { %2325 = vmatprep.mubr.f32.mxu0 %v26648_v14 }
 0x173   : > { %v18480_v37 = vrot.slane %v588_v58, %v25705_v32  ;;  %v18484_v26 = vrot.slane %v588_v58, %v25704_v31 }
 0x175   : > { %2327 = vmatmul.mubr.f32.gmra.mrb[4].mxu0 %v26651_v42 }
 0x176   : > { %2333 = vmatprep.mubr.f32.mxu0 %v26652_v12 }
 0x179   : > { %2335 = vmatmul.mubr.f32.gmra.mrb[6].mxu0 %v26655_v35 }
 0x17a   : > { %2341 = vmatprep.mubr.f32.mxu0 %v26656_v44 }
 0x17d   : > { %2343 = vmatmul.mubr.f32.gmra.mrb[8].mxu0 %v26659_v53 }
 0x17e   : > { %2349 = vmatprep.mubr.f32.mxu0 %v26660_v57 }
 0x181   : > { %2351 = vmatmul.mubr.f32.gmra.mrb[10].mxu0 %v26663_v56 }
 0x182   : > { %2357 = vmatprep.mubr.f32.mxu0 %v26664_v20 }
 0x185   : > { %2359 = vmatmul.mubr.f32.gmra.mrb[12].mxu0 %v26667_v13 }
 0x186   : > { %2365 = vmatprep.mubr.f32.mxu0 %v26668_v28 }
 0x189   : > { %2367 = vmatmul.mubr.f32.gmra.mrb[14].mxu0 %v26671_v1 }
 0x18a   : > { %2373 = vmatprep.mubr.f32.mxu0 %v26672_v9 }
 0x18d   : > { %2375 = vmatmul.mubr.f32.gmra.mrb[16].mxu0 %v26675_v24 }
 0x18e   : > { %2381 = vmatprep.mubr.f32.mxu0 %v26676_v11 }
 0x191   : > { %2383 = vmatmul.mubr.f32.gmra.mrb[18].mxu0 %v26679_v17 }
 0x192   : > { %2389 = vmatprep.mubr.f32.mxu0 %v26680_v61 }
 0x195   : > { %2391 = vmatmul.mubr.f32.gmra.mrb[20].mxu0 %v26682_v52 }
 0x196   : > { %2397 = vmatprep.mubr.f32.mxu0 %v26683_v33 }
 0x199   : > { %2399 = vmatmul.mubr.f32.gmra.mrb[22].mxu0 %v26684_v18 }
 0x19a   : > { %2405 = vmatprep.mubr.f32.mxu0 %v26685_v25 }
 0x19d   : > { %2407 = vmatmul.mubr.f32.gmra.mrb[24].mxu0 %v26686_v55 }
 0x19e   : > { %2413 = vmatprep.mubr.f32.mxu0 %v26687_v7 }
 0x1a1   : > { %2415 = vmatmul.mubr.f32.gmra.mrb[26].mxu0 %v26688_v54 }
 0x240   : > { %v2312_v40 = vpop.f32.mrb[0].mxu0 }
 0x241   : > { %v2314_v2 = vpop.f32.mrb[1].mxu0  ;;  %v16472_v30 = vadd.f32 %v2312_v40, %v18480_v37 }
 0x242   : > { %v16473_v39 = vadd.f32 %v2314_v2, %v18484_v26 }
 0x243   : > { %v2450_v36 = vrot.slane %v16472_v30, 1 }
 0x244   : > { %v2320_v3 = vpop.f32.mrb[2].mxu0  ;;  %v2453_v4 = vrot.slane %v16473_v39, 1 }
 0x245   : > { %v16474_v46 = vadd.f32 %v2320_v3, %v18480_v37  ;;  %v2322_v38 = vpop.f32.mrb[3].mxu0 }
 0x246   : > { %v16475_v50 = vadd.f32 %v2322_v38, %v18484_v26 }
 0x247   : > { %v2451_v62 = vrot.slane %v16474_v46, 1 }
 0x248   : > { %v2454_v6 = vrot.slane %v16475_v50, 1  ;;  %v2328_v15 = vpop.f32.mrb[4].mxu0 }
 0x249   : > { %v16476_v45 = vadd.f32 %v2328_v15, %v18480_v37  ;;  %v2330_v41 = vpop.f32.mrb[5].mxu0  ;;  %v2452_v8 = vsel %vm2449_vm1, %v2450_v36, %v2451_v62 }
 0x24a   : > { %v16477_v14 = vadd.f32 %v2330_v41, %v18484_v26  ;;  %v18493_v51 = vmax.f32 %v16472_v30, %v2452_v8  ;;  %v2455_v19 = vsel %vm2449_vm1, %v2453_v4, %v2454_v6 }
 0x24b   : > { %v2456_v42 = vrot.slane %v16476_v45, 1  ;;  %v18496_v12 = vmax.f32 %v16473_v39, %v2455_v19 }
 0x24c   : > { %v2458_v48 = vrot.slane %v16477_v14, 1  ;;  %v2336_v34 = vpop.f32.mrb[6].mxu0  ;;  %2588 = vrot.lane.b32.xlu0 %v18493_v51, %s25813_s20 }
 0x24d   : > { %v16478_v35 = vadd.f32 %v2336_v34, %v18480_v37  ;;  %v2338_v44 = vpop.f32.mrb[7].mxu0  ;;  %v2457_v5 = vsel %vm2449_vm1, %v2451_v62, %v2456_v42 }
 0x24e   : > { %v16479_v23 = vadd.f32 %v2338_v44, %v18484_v26  ;;  %v18503_v53 = vmax.f32 %v16474_v46, %v2457_v5  ;;  %v2459_v57 = vsel %vm2449_vm1, %v2454_v6, %v2458_v48 }
 0x24f   : > { %v2460_v59 = vrot.slane %v16478_v35, 1  ;;  %v18506_v63 = vmax.f32 %v16475_v50, %v2459_v57 }
 0x250   : > { %v2462_v56 = vrot.slane %v16479_v23, 1  ;;  %v2344_v20 = vpop.f32.mrb[8].mxu0  ;;  %2592 = vrot.lane.b32.xlu1 %v18503_v53, %s25813_s20  ;;  %2590 = vrot.lane.b32.xlu0 %v18496_v12, %s25813_s20 }
 0x251   : > { %v16480_v10 = vadd.f32 %v2344_v20, %v18480_v37  ;;  %v2346_v60 = vpop.f32.mrb[9].mxu0  ;;  %v2461_v13 = vsel %vm2449_vm1, %v2456_v42, %v2460_v59 }
 0x252   : > { %v16481_v28 = vadd.f32 %v2346_v60, %v18484_v26  ;;  %v18515_v29 = vmax.f32 %v16476_v45, %v2461_v13  ;;  %v2463_v47 = vsel %vm2449_vm1, %v2458_v48, %v2462_v56 }
 0x253   : > { %v2464_v1 = vrot.slane %v16480_v10, 1  ;;  %v18518_v9 = vmax.f32 %v16477_v14, %v2463_v47 }
 0x254   : > { %v2466_v49 = vrot.slane %v16481_v28, 1  ;;  %v2352_v43 = vpop.f32.mrb[10].mxu0  ;;  %2594 = vrot.lane.b32.xlu1 %v18506_v63, %s25813_s20  ;;  %2596 = vrot.lane.b32.xlu0 %v18515_v29, %s25813_s20 }
 0x255   : > { %v16482_v24 = vadd.f32 %v2352_v43, %v18480_v37  ;;  %v2354_v11 = vpop.f32.mrb[11].mxu0  ;;  %v2465_v0 = vsel %vm2449_vm1, %v2460_v59, %v2464_v1 }
 0x256   : > { %v16483_v16 = vadd.f32 %v2354_v11, %v18484_v26  ;;  %v18527_v17 = vmax.f32 %v16478_v35, %v2465_v0  ;;  %v2467_v61 = vsel %vm2449_vm1, %v2462_v56, %v2466_v49 }
 0x257   : > { %v2468_v22 = vrot.slane %v16482_v24, 1  ;;  %v18530_v52 = vmax.f32 %v16479_v23, %v2467_v61 }
 0x258   : > { %v2470_v33 = vrot.slane %v16483_v16, 1  ;;  %v2360_v18 = vpop.f32.mrb[12].mxu0  ;;  %2598 = vrot.lane.b32.xlu1 %v18518_v9, %s25813_s20  ;;  %2600 = vrot.lane.b32.xlu0 %v18527_v17, %s25813_s20 }
 0x259   : > { %v16484_v25 = vadd.f32 %v2360_v18, %v18480_v37  ;;  %v2362_v55 = vpop.f32.mrb[13].mxu0  ;;  %v2469_v7 = vsel %vm2449_vm1, %v2464_v1, %v2468_v22 }
 0x25a   : > { %v16485_v54 = vadd.f32 %v2362_v55, %v18484_v26  ;;  %v18539_v27 = vmax.f32 %v16480_v10, %v2469_v7  ;;  %v2471_v58 = vsel %vm2449_vm1, %v2466_v49, %v2470_v33 }
 0x25b   : > { %v2472_v40 = vrot.slane %v16484_v25, 1  ;;  %v18542_v2 = vmax.f32 %v16481_v28, %v2471_v58 }
 0x25c   : > { %v2474_v30 = vrot.slane %v16485_v54, 1  ;;  %v2368_v39 = vpop.f32.mrb[14].mxu0  ;;  %2602 = vrot.lane.b32.xlu1 %v18530_v52, %s25813_s20  ;;  %2604 = vrot.lane.b32.xlu0 %v18539_v27, %s25813_s20 }
 0x25d   : > { %v16486_v3 = vadd.f32 %v2368_v39, %v18480_v37  ;;  %v2370_v46 = vpop.f32.mrb[15].mxu0  ;;  %v2473_v38 = vsel %vm2449_vm1, %v2468_v22, %v2472_v40 }
 0x25e   : > { %v16487_v50 = vadd.f32 %v2370_v46, %v18484_v26  ;;  %v18551_v36 = vmax.f32 %v16482_v24, %v2473_v38  ;;  %v2475_v62 = vsel %vm2449_vm1, %v2470_v33, %v2474_v30 }
 0x25f   : > { %v2476_v4 = vrot.slane %v16486_v3, 1  ;;  %v18554_v6 = vmax.f32 %v16483_v16, %v2475_v62 }
 0x260   : > { %v2478_v15 = vrot.slane %v16487_v50, 1  ;;  %v2376_v45 = vpop.f32.mrb[16].mxu0  ;;  %2606 = vrot.lane.b32.xlu1 %v18542_v2, %s25813_s20  ;;  %2608 = vrot.lane.b32.xlu0 %v18551_v36, %s25813_s20 }
 0x261   : > { %v16488_v41 = vadd.f32 %v2376_v45, %v18480_v37  ;;  %v2378_v8 = vpop.f32.mrb[17].mxu0  ;;  %v2477_v14 = vsel %vm2449_vm1, %v2472_v40, %v2476_v4 }
 0x262   : > { %v16489_v19 = vadd.f32 %v2378_v8, %v18484_v26  ;;  %v18563_v42 = vmax.f32 %v16484_v25, %v2477_v14  ;;  %v2479_v48 = vsel %vm2449_vm1, %v2474_v30, %v2478_v15 }
 0x263   : > { %v2480_v34 = vrot.slane %v16488_v41, 1  ;;  %v18566_v35 = vmax.f32 %v16485_v54, %v2479_v48 }
 0x264   : > { %v2482_v44 = vrot.slane %v16489_v19, 1  ;;  %v2384_v5 = vpop.f32.mrb[18].mxu0  ;;  %2610 = vrot.lane.b32.xlu1 %v18554_v6, %s25813_s20  ;;  %2612 = vrot.lane.b32.xlu0 %v18563_v42, %s25813_s20 }
 0x265   : > { %v16490_v23 = vadd.f32 %v2384_v5, %v18480_v37  ;;  %v2386_v57 = vpop.f32.mrb[19].mxu0  ;;  %v2481_v59 = vsel %vm2449_vm1, %v2476_v4, %v2480_v34 }
 0x266   : > { %v16491_v56 = vadd.f32 %v2386_v57, %v18484_v26  ;;  %v18575_v20 = vmax.f32 %v16486_v3, %v2481_v59  ;;  %v2483_v10 = vsel %vm2449_vm1, %v2478_v15, %v2482_v44 }
 0x267   : > { %v2484_v60 = vrot.slane %v16490_v23, 1  ;;  %v18578_v13 = vmax.f32 %v16487_v50, %v2483_v10 }
 0x268   : > { %v2486_v28 = vrot.slane %v16491_v56, 1  ;;  %v2392_v47 = vpop.f32.mrb[20].mxu0  ;;  %2614 = vrot.lane.b32.xlu1 %v18566_v35, %s25813_s20  ;;  %2616 = vrot.lane.b32.xlu0 %v18575_v20, %s25813_s20 }
 0x269   : > { %v16492_v1 = vadd.f32 %v2392_v47, %v18480_v37  ;;  %v2394_v49 = vpop.f32.mrb[21].mxu0  ;;  %v2485_v43 = vsel %vm2449_vm1, %v2480_v34, %v2484_v60 }
 0x26a   : > { %v16493_v24 = vadd.f32 %v2394_v49, %v18484_v26  ;;  %v18587_v11 = vmax.f32 %v16488_v41, %v2485_v43  ;;  %v2487_v0 = vsel %vm2449_vm1, %v2482_v44, %v2486_v28 }
 0x26b   : > { %v2488_v16 = vrot.slane %v16492_v1, 1  ;;  %v18590_v61 = vmax.f32 %v16489_v19, %v2487_v0 }
 0x26c   : > { %v2490_v22 = vrot.slane %v16493_v24, 1  ;;  %v2400_v33 = vpop.f32.mrb[22].mxu0  ;;  %2618 = vrot.lane.b32.xlu1 %v18578_v13, %s25813_s20  ;;  %2620 = vrot.lane.b32.xlu0 %v18587_v11, %s25813_s20 }
 0x26d   : > { %v16494_v18 = vadd.f32 %v2400_v33, %v18480_v37  ;;  %v2402_v25 = vpop.f32.mrb[23].mxu0  ;;  %v2489_v55 = vsel %vm2449_vm1, %v2484_v60, %v2488_v16 }
 0x26e   : > { %v16495_v7 = vadd.f32 %v2402_v25, %v18484_v26  ;;  %v18599_v54 = vmax.f32 %v16490_v23, %v2489_v55  ;;  %v2491_v58 = vsel %vm2449_vm1, %v2486_v28, %v2490_v22 }
 0x26f   : > { %v2492_v40 = vrot.slane %v16494_v18, 1  ;;  %v18602_v30 = vmax.f32 %v16491_v56, %v2491_v58 }
 0x270   : > { %v2494_v39 = vrot.slane %v16495_v7, 1  ;;  %v2408_v3 = vpop.f32.mrb[24].mxu0  ;;  %2622 = vrot.lane.b32.xlu1 %v18590_v61, %s25813_s20  ;;  %2624 = vrot.lane.b32.xlu0 %v18599_v54, %s25813_s20 }
 0x271   : > { %v16496_v46 = vadd.f32 %v2408_v3, %v18480_v37  ;;  %v2410_v38 = vpop.f32.mrb[25].mxu0  ;;  %v2493_v50 = vsel %vm2449_vm1, %v2488_v16, %v2492_v40  ;;  %v2715_v3 = vld [vmem:[%s25474_s3] sm:$0xff] }
 0x272   : > { %v16497_v62 = vadd.f32 %v2410_v38, %v18484_v26  ;;  %v18611_v4 = vmax.f32 %v16492_v1, %v2493_v50  ;;  %v2495_v15 = vsel %vm2449_vm1, %v2490_v22, %v2494_v39  ;;  %v25706_v1 = vmov 0.0   ;;  %v2716_v50 = vld [vmem:[%s25474_s3 + $0x8] sm:$0xff] }
 0x273   : > { %v2496_v45 = vrot.slane %v16496_v46, 1  ;;  %v18614_v41 = vmax.f32 %v16493_v24, %v2495_v15  ;;  %2842 = vmatprep.mubr.f32.mxu1 %v25706_v1  ;;  %v2719_v1 = vld [vmem:[%s25474_s3 + $0x20] sm:$0xff] }
 0x274   : > { %v2498_v8 = vrot.slane %v16497_v62, 1  ;;  %v2416_v14 = vpop.f32.mrb[26].mxu0  ;;  %2626 = vrot.lane.b32.xlu1 %v18602_v30, %s25813_s20  ;;  %2628 = vrot.lane.b32.xlu0 %v18611_v4, %s25813_s20 }
 0x275   : > { %v16498_v19 = vadd.f32 %v2416_v14, %v18480_v37  ;;  %v2418_v48 = vpop.f32.mrb[27].mxu0  ;;  %v2497_v34 = vsel %vm2449_vm1, %v2492_v40, %v2496_v45 }
 0x276   : > { %v16499_v44 = vadd.f32 %v2418_v48, %v18484_v26  ;;  %v18623_v5 = vmax.f32 %v16494_v18, %v2497_v34  ;;  %v2499_v23 = vsel %vm2449_vm1, %v2494_v39, %v2498_v8 }
 0x277   : > { %v2500_v57 = vrot.slane %v16498_v19, 1  ;;  %v18626_v59 = vmax.f32 %v16495_v7, %v2499_v23 }
 0x278   : > { %v2502_v56 = vrot.slane %v16499_v44, 1  ;;  %2630 = vrot.lane.b32.xlu1 %v18614_v41, %s25813_s20  ;;  %2632 = vrot.lane.b32.xlu0 %v18623_v5, %s25813_s20 }
 0x279   : > { %v18632_v37 = vmax.f32 %v16498_v19, %v2500_v57  ;;  %v2501_v10 = vsel %vm2449_vm1, %v2496_v45, %v2500_v57  ;;  %v2724_v19 = vsel %vm2722_vm3, %v2715_v3, 0 }
 0x27a   : > { %v18635_v60 = vmax.f32 %v16496_v46, %v2501_v10  ;;  %v2503_v26 = vsel %vm2449_vm1, %v2498_v8, %v2502_v56  ;;  %v18644_v47 = vmax.f32 %v16499_v44, %v2502_v56  ;;  %v2727_v44 = vsel %vm2722_vm3, %v2716_v50, 0 }
 0x27b   : > { %v18638_v28 = vmax.f32 %v16497_v62, %v2503_v26 }
 0x27c   : > { %2634 = vrot.lane.b32.xlu1 %v18626_v59, %s25813_s20  ;;  %2640 = vrot.lane.b32.xlu0 %v18632_v37, %s25813_s20 }
 0x280   : > { %2642 = vrot.lane.b32.xlu1 %v18644_v47, %s25813_s20  ;;  %2636 = vrot.lane.b32.xlu0 %v18635_v60, %s25813_s20 }
 0x284   : > { %2638 = vrot.lane.b32.xlu1 %v18638_v28, %s25813_s20  ;;  %s17197_s20 = smov 40  }
 0x2be   : > { %v2589_v49 = vpop.permute.xlu0 %2588 }
 0x2c2   : > { %v2593_v43 = vpop.permute.xlu1 %2592  ;;  %v2591_v24 = vpop.permute.xlu0 %2590 }
 0x2c3   : > { %v2645_v0 = vsel %vm2644_vm2, %v2589_v49, %v2591_v24  ;;  %v2688_v16 = vmax.f32 %v18496_v12, %v2591_v24 }
 0x2c4   : > { %v2687_v22 = vmax.f32 %v18493_v51, %v2645_v0 }
 0x2c5   : > { %v2750_v33 = vand.u32 4294901760, %v2688_v16 }
 0x2c6   : > { %v2595_v18 = vpop.permute.xlu1 %2594  ;;  %v2597_v25 = vpop.permute.xlu0 %2596  ;;  %v2752_v55 = vand.u32 4294901760, %v2687_v22 }
 0x2c7   : > { %v2646_v7 = vsel %vm2644_vm2, %v2593_v43, %v2595_v18  ;;  %v2690_v58 = vmax.f32 %v18506_v63, %v2595_v18  ;;  %v18662_v46 = vsub.f32 %v2688_v16, %v2750_v33  ;;  %v2717_v63 = vld [vmem:[%s25474_s3 + $0x10] sm:$0xff]  ;;  %v18703_v16 = vand.u32 4294901760, %v2724_v19 }
 0x2c8   : > { %v2689_v40 = vmax.f32 %v18503_v53, %v2646_v7  ;;  %v18670_v53 = vsub.f32 %v2687_v22, %v2752_v55  ;;  %v2730_v23 = vsel %vm2722_vm3, %v2717_v63, 0 }
 0x2c9   : > { %v2754_v39 = vand.u32 4294901760, %v2690_v58  ;;  %v25720_v49 = vand.u32 4294901760, %v18662_v46  ;;  %26692 = vst [vmem:[#allocation9_spill] sm:$0xff] %v18703_v16  ;;  %v18707_v22 = vand.u32 4294901760, %v2730_v23 }
 0x2ca   : > { %v2756_v12 = vand.u32 4294901760, %v2689_v40  ;;  %v2599_v51 = vpop.permute.xlu1 %2598  ;;  %v2601_v38 = vpop.permute.xlu0 %2600 }
 0x2cb   : > { %v18672_v62 = vsub.f32 %v2690_v58, %v2754_v39  ;;  %v2647_v15 = vsel %vm2644_vm2, %v2597_v25, %v2599_v51  ;;  %v18675_v45 = vpack.c.bf16 %v2754_v39, %v2750_v33  ;;  %v18684_v34 = vmax.f32 %v18518_v9, %v2599_v51  ;;  %26694 = vst [vmem:[#allocation37_spill] sm:$0xff] %v18707_v22 }
 0x2cc   : > { %v18677_v8 = vsub.f32 %v2689_v40, %v2756_v12  ;;  %v18679_v14 = vpack.c.bf16 %v2756_v12, %v2752_v55  ;;  %v18691_v56 = vmax.f32 %v18515_v29, %v2647_v15  ;;  %v2928_v9 = vand.u32 4294901760, %v18670_v53 }
 0x2cd   : > { %26690 = vst [vmem:[#allocation32_spill] sm:$0xff] %v18675_v45  ;;  %v25715_v48 = vand.u32 4294901760, %v18672_v62  ;;  %14661 = vmatprep.subr.bf16.mxu1 %v18675_v45  ;;  %v18705_v29 = vand.u32 4294901760, %v2727_v44  ;;  %v2758_v33 = vand.u32 4294901760, %v18684_v34  ;;  %v18739_v12 = vsub.f32 %v2724_v19, %v18703_v16  ;;  %v2718_v19 = vld [vmem:[%s25474_s3 + $0x18] sm:$0xff] }
 0x2ce   : > { %26691 = vst [vmem:[#allocation38_spill] sm:$0xff] %v18679_v14  ;;  %v25710_v57 = vand.u32 4294901760, %v18677_v8  ;;  %v2603_v10 = vpop.permute.xlu1 %2602  ;;  %14663 = vmatpush1.bf16.msra.mxu1 %v18679_v14  ;;  %v2605_v26 = vpop.permute.xlu0 %2604  ;;  %v18749_v50 = vsub.f32 %v2730_v23, %v18707_v22  ;;  %v2733_v31 = vsel %vm2722_vm3, %v2718_v19, 0 }
 0x2cf   : > { %v2648_v43 = vsel %vm2644_vm2, %v2601_v38, %v2603_v10  ;;  %v18698_v24 = vmax.f32 %v18530_v52, %v2603_v10  ;;  %26693 = vst [vmem:[#allocation41_spill] sm:$0xff] %v18705_v29  ;;  %v18715_v25 = vpack.c.bf16 %v25715_v48, %v25720_v49  ;;  %v25719_v52 = vand.u32 4294901760, %v18691_v56  ;;  %26699 = vst [vmem:[#allocation45_spill] sm:$0xff] %v18739_v12 }
 0x2d0   : > { %v18701_v0 = vmax.f32 %v18527_v17, %v2648_v43  ;;  %v18721_v17 = vpack.c.bf16 %v25710_v57, %v2928_v9  ;;  %v18742_v51 = vsub.f32 %v2727_v44, %v18705_v29  ;;  %26701 = vst [vmem:[#allocation48_spill] sm:$0xff] %v18749_v50  ;;  %v25712_v23 = vand.u32 4294901760, %v18739_v12 }
 0x2d1   : > { %v25718_v18 = vand.u32 4294901760, %v18698_v24  ;;  %26695 = vst [vmem:[#allocation43_spill] sm:$0xff] %v18715_v25  ;;  %v2736_v48 = vsel %vm2722_vm3, %v2719_v1, 0 }
 0x2d2   : > { %26696 = vst [vmem:[#allocation10_spill] sm:$0xff] %v18721_v17  ;;  %v25716_v55 = vand.u32 4294901760, %v18701_v0  ;;  %v2607_v7 = vpop.permute.xlu1 %2606  ;;  %v2609_v58 = vpop.permute.xlu0 %2608  ;;  %26700 = vst [vmem:[#allocation44_spill] sm:$0xff] %v18742_v51 }
 0x2d3   : > { %v2649_v40 = vsel %vm2644_vm2, %v2605_v26, %v2607_v7  ;;  %v18730_v39 = vpack.c.bf16 %v25718_v18, %v2758_v33  ;;  %v18745_v38 = vmax.f32 %v18542_v2, %v2607_v7 }
 0x2d4   : > { %v18736_v3 = vpack.c.bf16 %v25716_v55, %v25719_v52  ;;  %v18752_v63 = vmax.f32 %v18539_v27, %v2649_v40  ;;  %v25714_v27 = vand.u32 4294901760, %v18742_v51  ;;  %v25717_v40 = vand.u32 4294901760, %v18749_v50 }
 0x2d5   : > { %26697 = vst [vmem:[#allocation12_spill] sm:$0xff] %v18730_v39  ;;  %14665 = vmatprep.subr.bf16.mxu1 %v18730_v39  ;;  %v25708_v43 = vand.u32 4294901760, %v18745_v38 }
 0x2d6   : > { %26698 = vst [vmem:[#allocation39_spill] sm:$0xff] %v18736_v3  ;;  %v2611_v15 = vpop.permute.xlu1 %2610  ;;  %14667 = vmatpush1.bf16.msra.mxu1 %v18736_v3  ;;  %v2613_v10 = vpop.permute.xlu0 %2612 }
 0x2d7   : > { %v2650_v44 = vsel %vm2644_vm2, %v2609_v58, %v2611_v15  ;;  %v18760_v2 = vmax.f32 %v18554_v6, %v2611_v15  ;;  %v25713_v58 = vand.u32 4294901760, %v18752_v63 }
 0x2d8   : > { %v18763_v26 = vmax.f32 %v18551_v36, %v2650_v44 }
 0x2d9   : > { %v25709_v7 = vand.u32 4294901760, %v18760_v2 }
 0x2da   : > { %v25711_v6 = vand.u32 4294901760, %v18763_v26  ;;  %v2615_v15 = vpop.permute.xlu1 %2614  ;;  %v2617_v32 = vpop.permute.xlu0 %2616  ;;  %v26723_v3 = vand.u32 4294901760, %v18763_v26 }
 0x2db   : > { %v2651_v36 = vsel %vm2644_vm2, %v2613_v10, %v2615_v15  ;;  %v18778_v44 = vpack.c.bf16 %v25709_v7, %v25708_v43  ;;  %v18792_v10 = vsub.f32 %v18739_v12, %v25712_v23  ;;  %v18797_v43 = vsub.f32 %v18742_v51, %v25714_v27 }
 0x2dc   : > { %v18787_v19 = vpack.c.bf16 %v25711_v6, %v25713_v58  ;;  %v18799_v7 = vand.u32 4294901760, %v2733_v31  ;;  %v18802_v57 = vmax.f32 %v18566_v35, %v2615_v15  ;;  %v18808_v6 = vsub.f32 %v18749_v50, %v25717_v40  ;;  %v2720_v15 = vld [vmem:[%s25474_s3 + $0x28] sm:$0xff] }
 0x2dd   : > { %26702 = vst [vmem:[#allocation50_spill] sm:$0xff] %v18778_v44  ;;  %14669 = vmatprep.subr.bf16.mxu1 %v18778_v44  ;;  %v18811_v23 = vmax.f32 %v18563_v42, %v2651_v36  ;;  %v18843_v52 = vsel %vm2722_vm3, %v2720_v15, 0  ;;  %v26707_v36 = vand.u32 4294901760, %v18662_v46  ;;  %v26708_v15 = vand.u32 4294901760, %v18691_v56 }
 0x2de   : > { %26703 = vst [vmem:[#allocation51_spill] sm:$0xff] %v18787_v19  ;;  %26704 = vst [vmem:[#allocation53_spill] sm:$0xff] %v18799_v7  ;;  %v2619_v58 = vpop.permute.xlu1 %2618  ;;  %14671 = vmatpush1.bf16.msra.mxu1 %v18787_v19  ;;  %v2621_v27 = vpop.permute.xlu0 %2620  ;;  %v18828_v18 = vsub.f32 %v2733_v31, %v18799_v7  ;;  %v25724_v1 = vand.u32 4294901760, %v18802_v57 }
 0x2df   : > { %v2652_v55 = vsel %vm2644_vm2, %v2617_v32, %v2619_v58  ;;  %v18817_v35 = vmax.f32 %v18578_v13, %v2619_v58  ;;  %v18833_v58 = vand.u32 4294901760, %v2736_v48  ;;  %v18848_v13 = vsub.f32 %v18684_v34, %v2758_v33 }
 0x2e0   : > { %v18823_v40 = vmax.f32 %v18575_v20, %v2652_v55  ;;  %v18838_v20 = vsub.f32 %v18670_v53, %v2928_v9  ;;  %v2923_v55 = vsub.f32 %v18662_v46, %v26707_v36  ;;  %v18863_v21 = vsub.f32 %v18691_v56, %v26708_v15 }
 0x2e1   : > { %v25723_v32 = vand.u32 4294901760, %v18817_v35  ;;  %26705 = vst [vmem:[#allocation56_spill] sm:$0xff] %v18833_v58  ;;  %v26709_v34 = vand.u32 4294901760, %v18698_v24  ;;  %v26714_v56 = vand.u32 4294901760, %v18672_v62 }
 0x2e2   : > { %v2623_v42 = vpop.permute.xlu1 %2622  ;;  %v2625_v31 = vpop.permute.xlu0 %2624  ;;  %v26728_v39 = vand.u32 4294901760, %v18863_v21 }
 0x2e3   : > { %v2653_v49 = vsel %vm2644_vm2, %v2621_v27, %v2623_v42  ;;  %v18855_v9 = vpack.c.bf16 %v25723_v32, %v25724_v1  ;;  %v18868_v33 = vsub.f32 %v18698_v24, %v26709_v34  ;;  %v26710_v27 = vand.u32 4294901760, %v18701_v0 }
 0x2e4   : > { %v26711_v32 = vand.u32 4294901760, %v18811_v23  ;;  %v26712_v1 = vand.u32 4294901760, %v18823_v40  ;;  %v18882_v25 = vmax.f32 %v18590_v61, %v2623_v42  ;;  %v2935_v24 = vsub.f32 %v18672_v62, %v26714_v56 }
 0x2e5   : > { %26706 = vst [vmem:[#allocation57_spill] sm:$0xff] %v18855_v9  ;;  %v18873_v17 = vsub.f32 %v18701_v0, %v26710_v27  ;;  %14673 = vmatprep.subr.bf16.mxu1 %v18855_v9  ;;  %v18890_v0 = vsub.f32 %v2736_v48, %v18833_v58  ;;  %v26715_v34 = vand.u32 4294901760, %v18677_v8  ;;  %v18901_v56 = vand.u32 4294901760, %v18843_v52 }
 0x2e6   : > { %v18879_v36 = vpack.c.bf16 %v26712_v1, %v26711_v32  ;;  %v18896_v1 = vmax.f32 %v18587_v11, %v2653_v49  ;;  %v2627_v61 = vpop.permute.xlu1 %2626  ;;  %v2629_v42 = vpop.permute.xlu0 %2628  ;;  %v2930_v32 = vand.u32 4294901760, %v18838_v20  ;;  %v26716_v20 = vand.u32 4294901760, %v18760_v2 }
 0x2e7   : > { %v2941_v27 = vsub.f32 %v18677_v8, %v26715_v34  ;;  %v2654_v48 = vsel %vm2644_vm2, %v2625_v31, %v2627_v61  ;;  %v18906_v9 = vmax.f32 %v18602_v30, %v2627_v61  ;;  %v2924_v34 = vand.u32 4294901760, %v2923_v55 }
 0x2e8   : > { %26713 = vst [vmem:[#allocation60_spill] sm:$0xff] %v18879_v36  ;;  %14675 = vmatpush1.bf16.msra.mxu1 %v18879_v36  ;;  %v18912_v19 = vmax.f32 %v18599_v54, %v2654_v48  ;;  %v18917_v50 = vsub.f32 %v18760_v2, %v26716_v20  ;;  %v2782_v31 = vand.u32 4294901760, %v18882_v25  ;;  %v2936_v61 = vand.u32 4294901760, %v2935_v24  ;;  %v2721_v2 = vld [vmem:[%s25474_s3 + $0x30] sm:$0xff] }
 0x2e9   : > { %v26717_v55 = vand.u32 4294901760, %v18752_v63  ;;  %v2942_v15 = vand.u32 4294901760, %v2941_v27  ;;  %v26718_v20 = vand.u32 4294901760, %v18745_v38  ;;  %v26721_v54 = vand.u32 4294901760, %v18848_v13 }
 0x2ea   : > { %v2631_v48 = vpop.permute.xlu1 %2630  ;;  %v2633_v36 = vpop.permute.xlu0 %2632  ;;  %v26722_v27 = vand.u32 4294901760, %v18873_v17  ;;  %v26727_v51 = vand.u32 4294901760, %v18868_v33  ;;  %v26739_v22 = vand.u32 4294901760, %v18896_v1 }
 0x2eb   : > { %v18924_v11 = vsub.f32 %v18752_v63, %v26717_v55  ;;  %v18934_v24 = vsub.f32 %v18745_v38, %v26718_v20  ;;  %v2655_v30 = vsel %vm2644_vm2, %v2629_v42, %v2631_v48  ;;  %v26719_v63 = vand.u32 4294901760, %v18906_v9 }
 0x2ec   : > { %v2947_v49 = vsub.f32 %v18848_v13, %v26721_v54  ;;  %v18947_v44 = vsub.f32 %v18873_v17, %v26722_v27  ;;  %v18952_v38 = vsub.f32 %v18763_v26, %v26723_v3  ;;  %v26724_v42 = vand.u32 4294901760, %v18896_v1 }
 0x2ed   : > { %v18939_v55 = vpack.c.bf16 %v26719_v63, %v2782_v31  ;;  %v26725_v20 = vand.u32 4294901760, %v18912_v19  ;;  %v2959_v54 = vsub.f32 %v18868_v33, %v26727_v51  ;;  %v18966_v27 = vsub.f32 %v18863_v21, %v26728_v39 }
 0x2ee   : > { %v2708_v3 = vmax.f32 %v18614_v41, %v2631_v48  ;;  %v18972_v26 = vsel %vm2722_vm3, %v2721_v2, 0  ;;  %v2635_v12 = vpop.permute.xlu1 %2634  ;;  %v18977_v51 = vpack.c.bf16 %v2936_v61, %v2924_v34  ;;  %v18979_v39 = vpack.c.bf16 %v2942_v15, %v2930_v32  ;;  %v2641_v45 = vpop.permute.xlu0 %2640 }
 0x2ef   : > { %26720 = vst [vmem:[#allocation61_spill] sm:$0xff] %v18939_v55  ;;  %v18958_v63 = vpack.c.bf16 %v26725_v20, %v26724_v42  ;;  %14677 = vmatprep.subr.bf16.mxu1 %v18939_v55  ;;  %v2707_v20 = vmax.f32 %v18611_v4, %v2655_v30  ;;  %v2656_v41 = vsel %vm2644_vm2, %v2633_v36, %v2635_v12  ;;  %v2948_v55 = vand.u32 4294901760, %v2947_v49 }
 0x2f0   : > { %v2710_v48 = vmax.f32 %v18626_v59, %v2635_v12  ;;  %v2709_v42 = vmax.f32 %v18623_v5, %v2656_v41  ;;  %v2960_v4 = vand.u32 4294901760, %v2959_v54  ;;  %v26729_v34 = vand.u32 4294901760, %v18802_v57 }
 0x2f1   : > { %26726 = vst [vmem:[#allocation64_spill] sm:$0xff] %v18958_v63  ;;  %14679 = vmatpush1.bf16.msra.mxu1 %v18958_v63  ;;  %v2790_v32 = vand.u32 4294901760, %v2708_v3  ;;  %v26730_v36 = vand.u32 4294901760, %v18917_v50  ;;  %v26731_v12 = vand.u32 4294901760, %v18924_v11  ;;  %v26732_v49 = vand.u32 4294901760, %v18811_v23 }
 0x2f2   : > { %v18990_v15 = vsub.f32 %v18802_v57, %v26729_v34  ;;  %v2794_v61 = vand.u32 4294901760, %v2710_v48  ;;  %v2792_v41 = vand.u32 4294901760, %v2707_v20  ;;  %v2796_v57 = vand.u32 4294901760, %v2709_v42  ;;  %v2643_v34 = vpop.permute.xlu1 %2642 }
 0x2f3   : > { %v18995_v59 = vsub.f32 %v18917_v50, %v26730_v36  ;;  %v19000_v5 = vsub.f32 %v18924_v11, %v26731_v12  ;;  %v19005_v54 = vsub.f32 %v18811_v23, %v26732_v49  ;;  %v26733_v30 = vand.u32 4294901760, %v18817_v35 }
 0x2f4   : > { %v2658_v36 = vsel %vm2644_vm2, %v2641_v45, %v2643_v34  ;;  %v2714_v14 = vmax.f32 %v18644_v47, %v2643_v34  ;;  %v19014_v63 = vpack.c.bf16 %v2794_v61, %v2790_v32  ;;  %v19017_v58 = vpack.c.bf16 %v2796_v57, %v2792_v41 }
 0x2f5   : > { %v19010_v2 = vsub.f32 %v18817_v35, %v26733_v30  ;;  %v2713_v12 = vmax.f32 %v18632_v37, %v2658_v36  ;;  %v19019_v23 = vpack.c.bf16 %v2960_v4, %v2948_v55  ;;  %v26736_v49 = vand.u32 4294901760, %v18934_v24 }
 0x2f6   : > { %26734 = vst [vmem:[#allocation65_spill] sm:$0xff] %v19014_v63  ;;  %26735 = vst [vmem:[#allocation68_spill] sm:$0xff] %v19017_v58  ;;  %v26737_v35 = vand.u32 4294901760, %v18952_v38  ;;  %v2748_v45 = vsel %vm2449_vm1, %v2714_v14, 0  ;;  %14681 = vmatprep.subr.bf16.mxu1 %v19014_v63  ;;  %v26738_v4 = vand.u32 4294901760, %v18823_v40  ;;  %v19042_v36 = vsub.f32 %v18882_v25, %v2782_v31  ;;  %v2639_v47 = vpop.permute.xlu1 %2638 }
 0x2f7   : > { %v19024_v7 = vsub.f32 %v18934_v24, %v26736_v49  ;;  %v2745_v49 = vsel %vm2449_vm1, %v2713_v12, 0  ;;  %14683 = vmatpush1.bf16.msra.mxu1 %v19017_v58  ;;  %v3006_v14 = vand.u32 4294901760, %v19010_v2  ;;  %v2802_v63 = vand.u32 4294901760, %v2748_v45 }
 0x2f8   : > { %v19029_v30 = vsub.f32 %v18952_v38, %v26737_v35  ;;  %v19039_v34 = vsub.f32 %v18823_v40, %v26738_v4  ;;  %v2637_v35 = vpop.permute.xlu0 %2636  ;;  %v2712_v55 = vmax.f32 %v18638_v28, %v2639_v47  ;;  %v19052_v40 = vsub.f32 %v18896_v1, %v26739_v22 }
 0x2f9   : > { %v2657_v37 = vsel %vm2644_vm2, %v2637_v35, %v2639_v47  ;;  %v26740_v25 = vand.u32 4294901760, %v18906_v9  ;;  %v2804_v12 = vand.u32 4294901760, %v2745_v49  ;;  %v26741_v58 = vand.u32 4294901760, %v18912_v19 }
 0x2fa   : > { %v2711_v4 = vmax.f32 %v18635_v60, %v2657_v37  ;;  %v19065_v35 = vsub.f32 %v2708_v3, %v2790_v32  ;;  %v19067_v28 = vsub.f32 %v2710_v48, %v2794_v61  ;;  %v2798_v47 = vand.u32 4294901760, %v2712_v55 }
 0x2fb   : > { %v19057_v31 = vsub.f32 %v18906_v9, %v26740_v25  ;;  %v19063_v29 = vsub.f32 %v18912_v19, %v26741_v58  ;;  %v3012_v22 = vand.u32 4294901760, %v19039_v34  ;;  %v3018_v1 = vand.u32 4294901760, %v19042_v36 }
 0x2fc   : > { %v19071_v16 = vsub.f32 %v2709_v42, %v2796_v57  ;;  %v2800_v9 = vand.u32 4294901760, %v2711_v4  ;;  %v19073_v25 = vsub.f32 %v2707_v20, %v2792_v41  ;;  %v19075_v60 = vsub.f32 %v2748_v45, %v2802_v63 }
 0x2fd   : > { %v19077_v37 = vsub.f32 %v2712_v55, %v2798_v47  ;;  %v19079_v19 = vpack.c.bf16 %v2802_v63, %v2798_v47  ;;  %v19082_v3 = vsub.f32 %v2745_v49, %v2804_v12  ;;  %v3030_v42 = vand.u32 4294901760, %v19057_v31 }
 0x2fe   : > { %v19084_v48 = vsub.f32 %v2711_v4, %v2800_v9  ;;  %v19086_v32 = vpack.c.bf16 %v2804_v12, %v2800_v9  ;;  %v3036_v61 = vand.u32 4294901760, %v19063_v29  ;;  %v3054_v41 = vand.u32 4294901760, %v19067_v28 }
 0x2ff   : > { %14685 = vmatprep.subr.bf16.mxu1 %v19079_v19  ;;  %v26742_v55 = vand.u32 4294901760, %v18848_v13  ;;  %v26743_v49 = vand.u32 4294901760, %v18868_v33  ;;  %v26745_v9 = vand.u32 4294901760, %v18863_v21  ;;  %v26746_v57 = vand.u32 4294901760, %v18873_v17 }
 0x300   : > { %14687 = vmatpush1.bf16.msra.mxu1 %v19086_v32  ;;  %v26748_v45 = vand.u32 4294901760, %v18934_v24  ;;  %v26749_v20 = vand.u32 4294901760, %v18917_v50  ;;  %v26753_v47 = vand.u32 4294901760, %v18990_v15  ;;  %vm17204_vm3 = vmmov 0  }
 0x301   : > { %v19101_v12 = vpack.c.bf16 %v26743_v49, %v26742_v55  ;;  %14689 = vmatprep.subr.bf16.mxu1 %v18977_v51  ;;  %v19110_v63 = vpack.c.bf16 %v26746_v57, %v26745_v9  ;;  %v26751_v49 = vand.u32 4294901760, %v18924_v11  ;;  %v26752_v51 = vand.u32 4294901760, %v18952_v38 }
 0x302   : > { %v19116_v58 = vpack.c.bf16 %v26749_v20, %v26748_v45  ;;  %v26754_v57 = vand.u32 4294901760, %v19005_v54  ;;  %v3007_v20 = vsub.f32 %v19010_v2, %v3006_v14  ;;  %v19136_v45 = vpack.c.bf16 %v3030_v42, %v3018_v1 }
 0x303   : > { %26744 = vst [vmem:[#allocation69_spill] sm:$0xff] %v19101_v12  ;;  %26747 = vst [vmem:[#allocation73_spill] sm:$0xff] %v19110_v63  ;;  %v19123_v4 = vpack.c.bf16 %v26752_v51, %v26751_v49  ;;  %v19127_v12 = vpack.c.bf16 %v3006_v14, %v26753_v47  ;;  %v26756_v63 = vand.u32 4294901760, %v18792_v10  ;;  %v26758_v55 = vand.u32 4294901760, %v19052_v40 }
 0x304   : > { %26750 = vst [vmem:[#allocation72_spill] sm:$0xff] %v19116_v58  ;;  %v19131_v9 = vpack.c.bf16 %v3012_v22, %v26754_v57  ;;  %26757 = vst [vmem:[#allocation76_spill] sm:$0xff] %v19136_v45  ;;  %v26760_v49 = vand.u32 4294901760, %v19065_v35  ;;  %v26762_v47 = vmov 0.0   ;;  %v2954_v57 = vand.u32 4294901760, %v18966_v27 }
 0x305   : > { %2848 = vmatmul.mubr.f32.vlgmr.msra.gmra.mrb[0].mxu1 %v26756_v63  ;;  %v19140_v58 = vpack.c.bf16 %v3036_v61, %v26758_v55  ;;  %v26763_v10 = vand.u32 4294901760, %v19073_v25  ;;  %v26764_v14 = vand.u32 4294901760, %v19071_v16  ;;  %v26766_v45 = vand.u32 4294901760, %v19077_v37 }
 0x306   : > { %26755 = vst [vmem:[#allocation77_spill] sm:$0xff] %v19131_v9  ;;  %v19144_v51 = vpack.c.bf16 %v3054_v41, %v26760_v49  ;;  %14691 = vmatpush1.bf16.msra.mxu1 %v18979_v39  ;;  %2853 = vmatprep.mubr.f32.mxu1 %v26762_v47  ;;  %v26767_v55 = vand.u32 4294901760, %v19075_v60  ;;  %v26769_v49 = vand.u32 4294901760, %v19084_v48  ;;  %v26770_v39 = vand.u32 4294901760, %v19082_v3 }
 0x307   : > { %26759 = vst [vmem:[#allocation80_spill] sm:$0xff] %v19140_v58  ;;  %v19153_v63 = vpack.c.bf16 %v26764_v14, %v26763_v10  ;;  %14693 = vmatprep.subr.bf16.mxu1 %v19019_v23  ;;  %v2972_v27 = vand.u32 4294901760, %v19024_v7  ;;  %v26772_v9 = vand.u32 4294901760, %v18990_v15  ;;  %v26773_v14 = vand.u32 4294901760, %v18828_v18 }
 0x308   : > { %26761 = vst [vmem:[#allocation81_spill] sm:$0xff] %v19144_v51  ;;  %v19159_v58 = vpack.c.bf16 %v26767_v55, %v26766_v45  ;;  %v19165_v51 = vpack.c.bf16 %v26770_v39, %v26769_v49  ;;  %v3013_v55 = vsub.f32 %v19039_v34, %v3012_v22  ;;  %v2990_v39 = vand.u32 4294901760, %v19029_v30 }
 0x309   : > { %26765 = vst [vmem:[#allocation29_spill] sm:$0xff] %v19153_v63  ;;  %v2995_v10 = vsub.f32 %v18990_v15, %v26772_v9  ;;  %v2879_v63 = vsub.f32 %v18828_v18, %v26773_v14  ;;  %v19182_v7 = vsub.f32 %v18843_v52, %v18901_v56  ;;  %v26775_v23 = vand.u32 4294901760, %v18797_v43 }
 0x30a   : > { %26768 = vst [vmem:[#allocation83_spill] sm:$0xff] %v19159_v58  ;;  %26771 = vst [vmem:[#allocation11_spill] sm:$0xff] %v19165_v51  ;;  %v26774_v58 = vand.u32 4294901760, %v18947_v44  ;;  %v26776_v9 = vand.u32 4294901760, %v18995_v59  ;;  %v3008_v14 = vand.u32 4294901760, %v3007_v20  ;;  %v3031_v45 = vsub.f32 %v19057_v31, %v3030_v42 }
 0x30b   : > { %2859 = vmatmul.mubr.f32.gmra.mrb[2].mxu1 %v26775_v23  ;;  %v19190_v22 = vand.u32 4294901760, %v18972_v26  ;;  %v26777_v44 = vand.u32 4294901760, %v19005_v54  ;;  %v2978_v52 = vand.u32 4294901760, %v19000_v5  ;;  %v2996_v43 = vand.u32 4294901760, %v2995_v10 }
 0x30c   : > { %v14694_v49 = vpack.c.bf16 %v26774_v58, %v2954_v57  ;;  %v14696_v51 = vpack.c.bf16 %v26776_v9, %v2972_v27  ;;  %2864 = vmatprep.mubr.f32.mxu1 %v26762_v47  ;;  %v2880_v58 = vand.u32 4294901760, %v2879_v63  ;;  %v3019_v59 = vsub.f32 %v19042_v36, %v3018_v1 }
 0x30d   : > { %v3001_v30 = vsub.f32 %v19005_v54, %v26777_v44  ;;  %v26778_v20 = vand.u32 4294901760, %v18890_v0  ;;  %v3037_v57 = vsub.f32 %v19063_v29, %v3036_v61  ;;  %v14698_v27 = vpack.c.bf16 %v2990_v39, %v2978_v52 }
 0x30e   : > { %14695 = vmatpush1.bf16.msra.mxu1 %v14694_v49  ;;  %v3014_v23 = vand.u32 4294901760, %v3013_v55  ;;  %v2900_v9 = vand.u32 4294901760, %v19182_v7  ;;  %v26779_v49 = vand.u32 4294901760, %v18808_v6  ;;  %v14700_v44 = vpack.c.bf16 %v3008_v14, %v2996_v43 }
 0x30f   : > { %14697 = vmatprep.subr.bf16.mxu1 %v14696_v51  ;;  %v2890_v42 = vsub.f32 %v18890_v0, %v26778_v20  ;;  %v3032_v5 = vand.u32 4294901760, %v3031_v45  ;;  %v3055_v51 = vsub.f32 %v19067_v28, %v3054_v41  ;;  %v19208_v1 = vsub.f32 %v18972_v26, %v19190_v22 }
 0x310   : > { %2870 = vmatmul.mubr.f32.gmra.mrb[4].mxu1 %v26779_v49  ;;  %v26780_v63 = vand.u32 4294901760, %v19052_v40  ;;  %v3002_v61 = vand.u32 4294901760, %v3001_v30  ;;  %v3020_v55 = vand.u32 4294901760, %v3019_v59  ;;  %v26781_v39 = vand.u32 4294901760, %v19065_v35 }
 0x311   : > { %2875 = vmatprep.mubr.f32.mxu1 %v26762_v47  ;;  %v2891_v6 = vand.u32 4294901760, %v2890_v42  ;;  %v26782_v41 = vand.u32 4294901760, %v19071_v16  ;;  %v3038_v52 = vand.u32 4294901760, %v3037_v57  ;;  %v2901_v43 = vsub.f32 %v19182_v7, %v2900_v9 }
 0x312   : > { %v3025_v10 = vsub.f32 %v19052_v40, %v26780_v63  ;;  %14699 = vmatpush1.bf16.msra.mxu1 %v14698_v27  ;;  %v3043_v45 = vsub.f32 %v19065_v35, %v26781_v39  ;;  %v14702_v14 = vpack.c.bf16 %v3014_v23, %v3002_v61  ;;  %v14704_v20 = vpack.c.bf16 %v3032_v5, %v3020_v55 }
 0x313   : > { %14701 = vmatprep.subr.bf16.mxu1 %v14700_v44  ;;  %v3061_v26 = vsub.f32 %v19071_v16, %v26782_v41  ;;  %v3056_v30 = vand.u32 4294901760, %v3055_v51  ;;  %v26783_v59 = vand.u32 4294901760, %v19077_v37  ;;  %v2911_v27 = vand.u32 4294901760, %v19208_v1 }
 0x314   : > { %2881 = vmatmul.mubr.f32.gmra.mrb[6].mxu1 %v2880_v58  ;;  %v26784_v49 = vand.u32 4294901760, %v19073_v25  ;;  %v3026_v57 = vand.u32 4294901760, %v3025_v10  ;;  %v3044_v23 = vand.u32 4294901760, %v3043_v45  ;;  %v26785_v58 = vand.u32 4294901760, %v19075_v60 }
 0x315   : > { %v3067_v42 = vsub.f32 %v19077_v37, %v26783_v59  ;;  %2886 = vmatprep.mubr.f32.mxu1 %v26762_v47  ;;  %v26786_v51 = vand.u32 4294901760, %v19084_v48  ;;  %v3062_v55 = vand.u32 4294901760, %v3061_v26  ;;  %v2902_v41 = vand.u32 4294901760, %v2901_v43 }
 0x316   : > { %v3049_v44 = vsub.f32 %v19073_v25, %v26784_v49  ;;  %14703 = vmatpush1.bf16.msra.mxu1 %v14702_v14  ;;  %v3079_v5 = vsub.f32 %v19075_v60, %v26785_v58  ;;  %v14706_v61 = vpack.c.bf16 %v3038_v52, %v3026_v57  ;;  %v14708_v39 = vpack.c.bf16 %v3056_v30, %v3044_v23  ;;  %v26788_v23 = vld [vmem:[#allocation9_spill] sm:$0xff] }
 0x317   : > { %14705 = vmatprep.subr.bf16.mxu1 %v14704_v20  ;;  %v3073_v63 = vsub.f32 %v19084_v48, %v26786_v51  ;;  %v3068_v59 = vand.u32 4294901760, %v3067_v42  ;;  %v2912_v10 = vsub.f32 %v19208_v1, %v2911_v27  ;;  %v26787_v14 = vand.u32 4294901760, %v19082_v3  ;;  %v3852_v51 = vld [vmem:[%s25475_s4 + $0x28] sm:$0xff] }
 0x318   : > { %2892 = vmatmul.mubr.f32.gmra.mrb[8].mxu1 %v2891_v6  ;;  %v3050_v45 = vand.u32 4294901760, %v3049_v44  ;;  %v3080_v49 = vand.u32 4294901760, %v3079_v5  ;;  %v14716_v44 = vpack.c.bf16 %v18672_v62, %v18662_v46  ;;  %v14718_v57 = vpack.c.bf16 %v18677_v8, %v18670_v53  ;;  %v26789_v46 = vld [vmem:[#allocation41_spill] sm:$0xff] }
 0x319   : > { %2897 = vmatprep.mubr.f32.mxu1 %v26762_v47  ;;  %v3085_v20 = vsub.f32 %v19082_v3, %v26787_v14  ;;  %v3074_v26 = vand.u32 4294901760, %v3073_v63  ;;  %v2913_v43 = vand.u32 4294901760, %v2912_v10  ;;  %v14720_v58 = vpack.c.bf16 %v18868_v33, %v18848_v13  ;;  %v26790_v8 = vld [vmem:[#allocation37_spill] sm:$0xff] }
 0x31a   : > { %14707 = vmatpush1.bf16.msra.mxu1 %v14706_v61  ;;  %v14710_v52 = vpack.c.bf16 %v3062_v55, %v3050_v45  ;;  %v14712_v6 = vpack.c.bf16 %v3080_v49, %v3068_v59  ;;  %v14722_v5 = vpack.c.bf16 %v18873_v17, %v18863_v21  ;;  %v14724_v62 = vpack.c.bf16 %v18917_v50, %v18934_v24  ;;  %v3847_v21 = vld [vmem:[%s25475_s4] sm:$0xff]  ;;  %v3848_v17 = vld [vmem:[%s25475_s4 + $0x8] sm:$0xff]  ;;  %v3849_v50 = vld [vmem:[%s25475_s4 + $0x10] sm:$0xff] }
 0x31b   : > { %14709 = vmatprep.subr.bf16.mxu1 %v14708_v39  ;;  %v3086_v30 = vand.u32 4294901760, %v3085_v20  ;;  %v14726_v53 = vpack.c.bf16 %v18952_v38, %v18924_v11  ;;  %v14728_v13 = vpack.c.bf16 %v19010_v2, %v18990_v15  ;;  %v14730_v33 = vpack.c.bf16 %v19039_v34, %v19005_v54  ;;  %v3850_v38 = vld [vmem:[%s25475_s4 + $0x18] sm:$0xff]  ;;  %v3851_v15 = vld [vmem:[%s25475_s4 + $0x20] sm:$0xff]  ;;  %v3853_v39 = vld [vmem:[%s25475_s4 + $0x30] sm:$0xff] }
 0x31c   : > { %2903 = vmatmul.mubr.f32.gmra.mrb[10].mxu1 %v2902_v41  ;;  %v3894_v11 = vand.u32 4294901760, %v3847_v21  ;;  %v3897_v24 = vand.u32 4294901760, %v3848_v17  ;;  %v3900_v2 = vand.u32 4294901760, %v3849_v50  ;;  %v14732_v63 = vpack.c.bf16 %v19057_v31, %v19042_v36  ;;  %v3854_v41 = vld [vmem:[%s25475_s4 + $0x38] sm:$0xff]  ;;  %v26791_v31 = vld [vmem:[#allocation53_spill] sm:$0xff] }
 0x31d   : > { %2908 = vmatprep.mubr.f32.mxu1 %v26762_v47  ;;  %v14714_v42 = vpack.c.bf16 %v3086_v30, %v3074_v26  ;;  %v3903_v54 = vand.u32 4294901760, %v3850_v38  ;;  %v25791_v34 = vmov 0.0|0.0   ;;  %v3906_v61 = vand.u32 4294901760, %v3851_v15 }
 0x31e   : > { %14711 = vmatpush1.bf16.msra.mxu1 %v14710_v52  ;;  %14828 = vmatprep.subr.bf16.mxu0 %v25791_v34  ;;  %v3909_v55 = vand.u32 4294901760, %v3852_v51  ;;  %v19295_v59 = vsub.f32 %v3847_v21, %v3894_v11  ;;  %v19297_v10 = vsub.f32 %v3848_v17, %v3897_v24  ;;  %v19299_v45 = vsub.f32 %v3849_v50, %v3900_v2 }
 0x31f   : > { %14713 = vmatprep.subr.bf16.mxu1 %v14712_v6  ;;  %v19301_v36 = vpack.c.bf16 %v3897_v24, %v3894_v11  ;;  %v19304_v14 = vsub.f32 %v3850_v38, %v3903_v54  ;;  %v19306_v20 = vsub.f32 %v3851_v15, %v3906_v61  ;;  %v3912_v52 = vand.u32 4294901760, %v3853_v39 }
 0x320   : > { %2914 = vmatmul.mubr.f32.gmra.mrb[12].mxu1 %v2913_v43  ;;  %v19308_v49 = vsub.f32 %v3852_v51, %v3909_v55  ;;  %v3915_v26 = vand.u32 4294901760, %v3854_v41  ;;  %v14734_v43 = vpack.c.bf16 %v19063_v29, %v19052_v40  ;;  %v3856_v29 = vld [vmem:[%s25475_s4 + $0x48] sm:$0xff]  ;;  %v3857_v40 = vld [vmem:[%s25475_s4 + $0x50] sm:$0xff]  ;;  %v19354_v50 = vpack.c.bf16 %v3909_v55, %v3906_v61  ;;  %v26793_v51 = vld [vmem:[#allocation32_spill] sm:$0xff] }
 0x321   : > { %3124 = vmatprep.mubr.f32.mxu1 %v26762_v47  ;;  %14830 = vmatpush1.bf16.msra.mxu0 %v19301_v36  ;;  %v19312_v6 = vsub.f32 %v3853_v39, %v3912_v52  ;;  %v3924_v21 = vand.u32 4294901760, %v3857_v40  ;;  %v26797_v55 = vld [vmem:[#allocation44_spill] sm:$0xff]  ;;  %v26798_v39 = vld [vmem:[#allocation39_spill] sm:$0xff] }
 0x322   : > { %14715 = vmatpush1.bf16.msra.mxu1 %v14714_v42  ;;  %14831 = vmatprep.subr.bf16.mxu0 %v25791_v34  ;;  %v19317_v30 = vsub.f32 %v3854_v41, %v3915_v26  ;;  %v26792_v42 = vld [vmem:[#allocation56_spill] sm:$0xff]  ;;  %v26799_v41 = vld [vmem:[#allocation50_spill] sm:$0xff] }
 0x323   : > { %14717 = vmatprep.subr.bf16.mxu1 %v14716_v44  ;;  %v14736_v44 = vpack.c.bf16 %v19067_v28, %v19065_v35  ;;  %v19334_v35 = vpack.c.bf16 %v3903_v54, %v3900_v2  ;;  %v19359_v11 = vsub.f32 %v3857_v40, %v3924_v21  ;;  %v26796_v54 = vld [vmem:[#allocation12_spill] sm:$0xff]  ;;  %v26804_v40 = vld [vmem:[#allocation61_spill] sm:$0xff] }
 0x325   : > { %3126 = vmatmul.mubr.f32.vlgmr.msra.gmra.mrb[0].mxu1 %v26788_v23  ;;  %14833 = vmatpush1.bf16.msra.mxu0 %v19334_v35 }
 0x326   : > { %14719 = vmatpush1.bf16.msra.mxu1 %v14718_v57  ;;  %3131 = vmatprep.mubr.f32.mxu1 %v26762_v47  ;;  %v3855_v57 = vld [vmem:[%s25475_s4 + $0x40] sm:$0xff] }
 0x327   : > { %14721 = vmatprep.subr.bf16.mxu1 %v14720_v58  ;;  %v14738_v58 = vpack.c.bf16 %v19071_v16, %v19073_v25  ;;  %v3918_v28 = vand.u32 4294901760, %v3855_v57  ;;  %v3860_v16 = vld [vmem:[%s25475_s4 + $0x68] sm:$0xff]  ;;  %14834 = vmatprep.subr.bf16.mxu0 %v25791_v34 }
 0x328   : > { %v3933_v24 = vand.u32 4294901760, %v3860_v16 }
 0x329   : > { %3133 = vmatmul.mubr.f32.gmra.mrb[2].mxu1 %v26789_v46  ;;  %v19349_v25 = vsub.f32 %v3855_v57, %v3918_v28  ;;  %14836 = vmatpush1.bf16.msra.mxu0 %v19354_v50 }
 0x32a   : > { %14723 = vmatpush1.bf16.msra.mxu1 %v14722_v5  ;;  %3138 = vmatprep.mubr.f32.mxu1 %v26762_v47  ;;  %v3858_v5 = vld [vmem:[%s25475_s4 + $0x58] sm:$0xff]  ;;  %v19367_v15 = vsub.f32 %v3860_v16, %v3933_v24  ;;  %v26811_v16 = vld [vmem:[#allocation69_spill] sm:$0xff] }
 0x32b   : > { %14725 = vmatprep.subr.bf16.mxu1 %v14724_v62  ;;  %v3859_v62 = vld [vmem:[%s25475_s4 + $0x60] sm:$0xff]  ;;  %14837 = vmatprep.subr.bf16.mxu0 %v25791_v34 }
 0x32d   : > { %3140 = vmatmul.mubr.f32.gmra.mrb[4].mxu1 %v26790_v8 }
 0x32e   : > { %14727 = vmatpush1.bf16.msra.mxu1 %v14726_v53  ;;  %3145 = vmatprep.mubr.f32.mxu1 %v26762_v47  ;;  %v14740_v53 = vpack.c.bf16 %v19075_v60, %v19077_v37  ;;  %v3930_v60 = vand.u32 4294901760, %v3859_v62  ;;  %v14742_v37 = vpack.c.bf16 %v19082_v3, %v19084_v48  ;;  %v19371_v3 = vpack.c.bf16 %v3915_v26, %v3912_v52  ;;  %v26794_v48 = vld [vmem:[#allocation45_spill] sm:$0xff]  ;;  %v26800_v26 = vld [vmem:[#allocation48_spill] sm:$0xff] }
 0x32f   : > { %14729 = vmatprep.subr.bf16.mxu1 %v14728_v13  ;;  %v3921_v13 = vand.u32 4294901760, %v3856_v29 }
 0x330   : > { %v19364_v2 = vsub.f32 %v3859_v62, %v3930_v60  ;;  %14839 = vmatpush1.bf16.msra.mxu0 %v19371_v3  ;;  %v19395_v57 = vpack.c.bf16 %v3933_v24, %v3930_v60  ;;  %v26808_v62 = vld [vmem:[#allocation43_spill] sm:$0xff]  ;;  %v26814_v60 = vld [vmem:[#allocation72_spill] sm:$0xff]  ;;  %v26816_v24 = vand.u32 4294901760, %v18828_v18 }
 0x331   : > { %3147 = vmatmul.mubr.f32.gmra.mrb[6].mxu1 %v26791_v31  ;;  %v19352_v17 = vsub.f32 %v3856_v29, %v3921_v13  ;;  %v19379_v61 = vpack.c.bf16 %v3921_v13, %v3918_v28  ;;  %14840 = vmatprep.subr.bf16.mxu0 %v25791_v34  ;;  %v26803_v29 = vld [vmem:[#allocation60_spill] sm:$0xff]  ;;  %v26806_v28 = vld [vmem:[#allocation65_spill] sm:$0xff]  ;;  %v26810_v13 = vld [vmem:[#allocation10_spill] sm:$0xff] }
 0x332   : > { %14731 = vmatpush1.bf16.msra.mxu1 %v14730_v33  ;;  %3152 = vmatprep.mubr.f32.mxu1 %v26762_v47  ;;  %v3927_v33 = vand.u32 4294901760, %v3858_v5 }
 0x333   : > { %14733 = vmatprep.subr.bf16.mxu1 %v14732_v63  ;;  %v26795_v63 = vld [vmem:[#allocation38_spill] sm:$0xff] }
 0x334   : > { %v19362_v38 = vsub.f32 %v3858_v5, %v3927_v33  ;;  %14842 = vmatpush1.bf16.msra.mxu0 %v19379_v61  ;;  %v19387_v52 = vpack.c.bf16 %v3927_v33, %v3924_v21  ;;  %v26807_v5 = vld [vmem:[#allocation68_spill] sm:$0xff]  ;;  %v26812_v21 = vand.u32 4294901760, %v26797_v55  ;;  %v26813_v33 = vld [vmem:[#allocation73_spill] sm:$0xff] }
 0x335   : > { %3154 = vmatmul.mubr.f32.gmra.mrb[8].mxu1 %v26792_v42  ;;  %14843 = vmatprep.subr.bf16.mxu0 %v25791_v34 }
 0x336   : > { %14735 = vmatpush1.bf16.msra.mxu1 %v14734_v43  ;;  %3159 = vmatprep.mubr.f32.mxu1 %v26762_v47  ;;  %v26801_v43 = vld [vmem:[#allocation51_spill] sm:$0xff] }
 0x337   : > { %14737 = vmatprep.subr.bf16.mxu1 %v14736_v44  ;;  %v26802_v44 = vld [vmem:[#allocation57_spill] sm:$0xff] }
 0x338   : > { %14845 = vmatpush1.bf16.msra.mxu0 %v19387_v52 }
 0x339   : > { %3161 = vmatmul.mubr.f32.gmra.mrb[10].mxu1 %v18901_v56  ;;  %14846 = vmatprep.subr.bf16.mxu0 %v25791_v34 }
 0x33a   : > { %14739 = vmatpush1.bf16.msra.mxu1 %v14738_v58  ;;  %3166 = vmatprep.mubr.f32.mxu1 %v26762_v47  ;;  %v26805_v58 = vld [vmem:[#allocation64_spill] sm:$0xff] }
 0x33b   : > { %14741 = vmatprep.subr.bf16.mxu1 %v14740_v53  ;;  %v26809_v53 = vand.u32 4294901760, %v26794_v48 }
 0x33c   : > { %14848 = vmatpush1.bf16.msra.mxu0 %v19395_v57 }
 0x33d   : > { %3168 = vmatmul.mubr.f32.gmra.mrb[12].mxu1 %v19190_v22  ;;  %14849 = vmatprep.subr.bf16.mxu0 %v25791_v34 }
 0x33e   : > { %14743 = vmatpush1.bf16.msra.mxu1 %v14742_v37  ;;  %3294 = vmatprep.mubr.f32.mxu1 %v26762_v47  ;;  %v26815_v37 = vand.u32 4294901760, %v26800_v26 }
 0x33f   : > { %14745 = vmatprep.subr.bf16.mxu1 %v26793_v51 }
 0x341   : > { %3297 = vmatmul.mubr.f32.vlgmr.msra.gmra.mrb[0].mxu1 %v26794_v48  ;;  %v26817_v48 = vld [vmem:[#allocation77_spill] sm:$0xff] }
 0x342   : > { %14747 = vmatpush1.bf16.msra.mxu1 %v26795_v63  ;;  %3302 = vmatprep.mubr.f32.mxu1 %v26762_v47 }
 0x343   : > { %14749 = vmatprep.subr.bf16.mxu1 %v26796_v54 }
 0x345   : > { %3305 = vmatmul.mubr.f32.gmra.mrb[2].mxu1 %v26797_v55  ;;  %v26818_v55 = vld [vmem:[#allocation76_spill] sm:$0xff] }
 0x346   : > { %14751 = vmatpush1.bf16.msra.mxu1 %v26798_v39  ;;  %3310 = vmatprep.mubr.f32.mxu1 %v26762_v47 }
 0x347   : > { %14753 = vmatprep.subr.bf16.mxu1 %v26799_v41 }
 0x349   : > { %3313 = vmatmul.mubr.f32.gmra.mrb[4].mxu1 %v26800_v26  ;;  %v26820_v26 = vld [vmem:[#allocation80_spill] sm:$0xff] }
 0x34a   : > { %14755 = vmatpush1.bf16.msra.mxu1 %v26801_v43  ;;  %3318 = vmatprep.mubr.f32.mxu1 %v26762_v47 }
 0x34b   : > { %14757 = vmatprep.subr.bf16.mxu1 %v26802_v44 }
 0x34d   : > { %3321 = vmatmul.mubr.f32.gmra.mrb[6].mxu1 %v18828_v18  ;;  %v26822_v18 = vld [vmem:[#allocation29_spill] sm:$0xff] }
 0x34e   : > { %14759 = vmatpush1.bf16.msra.mxu1 %v26803_v29  ;;  %3326 = vmatprep.mubr.f32.mxu1 %v26762_v47 }
 0x34f   : > { %14761 = vmatprep.subr.bf16.mxu1 %v26804_v40 }
 0x351   : > { %3329 = vmatmul.mubr.f32.gmra.mrb[8].mxu1 %v18890_v0 }
 0x352   : > { %14763 = vmatpush1.bf16.msra.mxu1 %v26805_v58  ;;  %3334 = vmatprep.mubr.f32.mxu1 %v26762_v47 }
 0x353   : > { %14765 = vmatprep.subr.bf16.mxu1 %v26806_v28 }
 0x355   : > { %3337 = vmatmul.mubr.f32.gmra.mrb[10].mxu1 %v19182_v7  ;;  %v25787_v7 = vand.u32 4294901760, %v19295_v59 }
 0x356   : > { %14767 = vmatpush1.bf16.msra.mxu1 %v26807_v5  ;;  %3342 = vmatprep.mubr.f32.mxu1 %v26762_v47 }
 0x357   : > { %14769 = vmatprep.subr.bf16.mxu1 %v19079_v19 }
 0x359   : > { %3345 = vmatmul.mubr.f32.gmra.mrb[12].mxu1 %v19208_v1  ;;  %v4088_v1 = vsub.f32 %v19295_v59, %v25787_v7 }
 0x35a   : > { %14771 = vmatpush1.bf16.msra.mxu1 %v19086_v32  ;;  %3443 = vmatprep.mubr.f32.mxu1 %v26762_v47 }
 0x35b   : > { %14773 = vmatprep.subr.bf16.mxu1 %v26808_v62  ;;  %v26819_v62 = vand.u32 4294901760, %v18890_v0  ;;  %v26824_v0 = vld [vmem:[#allocation11_spill] sm:$0xff] }
 0x35d   : > { %3447 = vmatmul.mubr.f32.vlgmr.msra.gmra.mrb[0].mxu1 %v26809_v53 }
 0x35e   : > { %14775 = vmatpush1.bf16.msra.mxu1 %v26810_v13  ;;  %3452 = vmatprep.mubr.f32.mxu1 %v26762_v47 }
 0x35f   : > { %14777 = vmatprep.subr.bf16.mxu1 %v26811_v16 }
 0x361   : > { %3456 = vmatmul.mubr.f32.gmra.mrb[2].mxu1 %v26812_v21 }
 0x362   : > { %14779 = vmatpush1.bf16.msra.mxu1 %v26813_v33  ;;  %3461 = vmatprep.mubr.f32.mxu1 %v26762_v47  ;;  %v25776_v33 = vand.u32 4294901760, %v19352_v17 }
 0x363   : > { %14781 = vmatprep.subr.bf16.mxu1 %v26814_v60 }
 0x365   : > { %3465 = vmatmul.mubr.f32.gmra.mrb[4].mxu1 %v26815_v37 }
 0x366   : > { %14783 = vmatpush1.bf16.msra.mxu1 %v19123_v4  ;;  %3470 = vmatprep.mubr.f32.mxu1 %v26762_v47  ;;  %v26821_v4 = vld [vmem:[#allocation81_spill] sm:$0xff] }
 0x367   : > { %14785 = vmatprep.subr.bf16.mxu1 %v19127_v12  ;;  %v26823_v12 = vld [vmem:[#allocation83_spill] sm:$0xff] }
 0x369   : > { %3474 = vmatmul.mubr.f32.gmra.mrb[6].mxu1 %v26816_v24 }
 0x36a   : > { %14787 = vmatpush1.bf16.msra.mxu1 %v26817_v48  ;;  %3479 = vmatprep.mubr.f32.mxu1 %v26762_v47  ;;  %v19518_v48 = vld [vmem:[%s25475_s4 + $0x70] sm:$0xff] }
 0x36b   : > { %14789 = vmatprep.subr.bf16.mxu1 %v26818_v55  ;;  %v19524_v55 = vld [vmem:[%s25475_s4 + $0x78] sm:$0xff] }
 0x36d   : > { %3483 = vmatmul.mubr.f32.gmra.mrb[8].mxu1 %v26819_v62 }
 0x36e   : > { %14791 = vmatpush1.bf16.msra.mxu1 %v26820_v26  ;;  %3488 = vmatprep.mubr.f32.mxu1 %v26762_v47 }
 0x36f   : > { %14793 = vmatprep.subr.bf16.mxu1 %v26821_v4  ;;  %v4151_v4 = vsub.f32 %v19352_v17, %v25776_v33 }
 0x371   : > { %3492 = vmatmul.mubr.f32.gmra.mrb[10].mxu1 %v2900_v9  ;;  %v25786_v9 = vand.u32 4294901760, %v19297_v10 }
 0x372   : > { %14795 = vmatpush1.bf16.msra.mxu1 %v26822_v18  ;;  %3497 = vmatprep.mubr.f32.mxu1 %v26762_v47  ;;  %v25775_v18 = vand.u32 4294901760, %v19359_v11 }
 0x373   : > { %14797 = vmatprep.subr.bf16.mxu1 %v26823_v12  ;;  %v3936_v12 = vand.u32 4294901760, %v19518_v48 }
 0x375   : > { %3501 = vmatmul.mubr.f32.gmra.mrb[12].mxu1 %v2911_v27  ;;  %v4095_v27 = vsub.f32 %v19297_v10, %v25786_v9 }
 0x376   : > { %14799 = vmatpush1.bf16.msra.mxu1 %v26824_v0  ;;  %3655 = vmatprep.mubr.f32.mxu1 %v26762_v47 }
 0x377   : > { %14801 = vmatprep.subr.bf16.mxu1 %v26793_v51  ;;  %v25783_v51 = vand.u32 4294901760, %v19299_v45 }
 0x379   : > { %3657 = vmatmul.mubr.f32.vlgmr.msra.gmra.mrb[0].mxu1 %v26788_v23 }
 0x37a   : > { %14803 = vmatpush1.bf16.msra.mxu1 %v26795_v63  ;;  %3662 = vmatprep.mubr.f32.mxu1 %v26762_v47  ;;  %v25782_v63 = vand.u32 4294901760, %v19304_v14 }
 0x37b   : > { %14805 = vmatprep.subr.bf16.mxu1 %v26796_v54  ;;  %v25781_v54 = vand.u32 4294901760, %v19306_v20 }
 0x37d   : > { %3664 = vmatmul.mubr.f32.gmra.mrb[2].mxu1 %v26789_v46 }
 0x37e   : > { %14807 = vmatpush1.bf16.msra.mxu1 %v26798_v39  ;;  %3669 = vmatprep.mubr.f32.mxu1 %v26762_v47  ;;  %v25780_v39 = vand.u32 4294901760, %v19308_v49 }
 0x37f   : > { %14809 = vmatprep.subr.bf16.mxu1 %v26799_v41  ;;  %v4089_v41 = vand.u32 4294901760, %v4088_v1  ;;  %v25774_v1 = vand.u32 4294901760, %v19362_v38 }
 0x381   : > { %3671 = vmatmul.mubr.f32.gmra.mrb[4].mxu1 %v26790_v8 }
 0x382   : > { %14811 = vmatpush1.bf16.msra.mxu1 %v26801_v43  ;;  %3676 = vmatprep.mubr.f32.mxu1 %v26762_v47  ;;  %v4096_v43 = vand.u32 4294901760, %v4095_v27  ;;  %v3939_v27 = vand.u32 4294901760, %v19524_v55 }
 0x383   : > { %14813 = vmatprep.subr.bf16.mxu1 %v26802_v44  ;;  %v4102_v44 = vsub.f32 %v19299_v45, %v25783_v51 }
 0x385   : > { %3678 = vmatmul.mubr.f32.gmra.mrb[6].mxu1 %v26791_v31  ;;  %v4103_v53 = vand.u32 4294901760, %v4102_v44 }
 0x386   : > { %14815 = vmatpush1.bf16.msra.mxu1 %v26803_v29  ;;  %3683 = vmatprep.mubr.f32.mxu1 %v26762_v47  ;;  %v4109_v29 = vsub.f32 %v19304_v14, %v25782_v63 }
 0x387   : > { %14817 = vmatprep.subr.bf16.mxu1 %v26804_v40  ;;  %v25779_v40 = vand.u32 4294901760, %v19312_v6 }
 0x388   : > { %v4110_v13 = vand.u32 4294901760, %v4109_v29  ;;  %v25765_v29 = vand.u32 4294901760, %v19364_v2 }
 0x389   : > { %3685 = vmatmul.mubr.f32.gmra.mrb[8].mxu1 %v26792_v42  ;;  %v4130_v16 = vsub.f32 %v19312_v6, %v25779_v40 }
 0x38a   : > { %14819 = vmatpush1.bf16.msra.mxu1 %v26805_v58  ;;  %3690 = vmatprep.mubr.f32.mxu1 %v26762_v47  ;;  %v25778_v58 = vand.u32 4294901760, %v19317_v30  ;;  %v14862_v60 = vpack.c.bf16 %v4110_v13, %v4103_v53  ;;  %v25773_v53 = vand.u32 4294901760, %v19367_v15  ;;  %v19558_v13 = vsub.f32 %v19518_v48, %v3936_v12 }
 0x38b   : > { %14821 = vmatprep.subr.bf16.mxu1 %v26806_v28  ;;  %v4116_v28 = vsub.f32 %v19306_v20, %v25781_v54 }
 0x38c   : > { %v4137_v21 = vsub.f32 %v19317_v30, %v25778_v58  ;;  %v14895_v58 = vpack.c.bf16 %v19308_v49, %v19306_v20 }
 0x38d   : > { %3692 = vmatmul.mubr.f32.gmra.mrb[10].mxu1 %v18901_v56  ;;  %v4117_v37 = vand.u32 4294901760, %v4116_v28  ;;  %v4152_v28 = vand.u32 4294901760, %v4151_v4 }
 0x38e   : > { %14823 = vmatpush1.bf16.msra.mxu1 %v26807_v5  ;;  %3697 = vmatprep.mubr.f32.mxu1 %v26762_v47  ;;  %v14859_v5 = vpack.c.bf16 %v4096_v43, %v4089_v41  ;;  %v4138_v62 = vand.u32 4294901760, %v4137_v21  ;;  %v19547_v41 = vld [vmem:[%s25475_s4 + $0x88] sm:$0xff] }
 0x38f   : > { %14825 = vmatprep.subr.bf16.mxu1 %v19079_v19  ;;  %v4123_v19 = vsub.f32 %v19308_v49, %v25780_v39  ;;  %v3945_v21 = vand.u32 4294901760, %v19547_v41 }
 0x391   : > { %3699 = vmatmul.mubr.f32.gmra.mrb[12].mxu1 %v19190_v22  ;;  %v4124_v24 = vand.u32 4294901760, %v4123_v19  ;;  %v4165_v19 = vsub.f32 %v19362_v38, %v25774_v1 }
 0x392   : > { %14827 = vmatpush1.bf16.msra.mxu1 %v19086_v32  ;;  %3797 = vmatprep.mubr.f32.mxu1 %v26762_v47  ;;  %v25777_v32 = vand.u32 4294901760, %v19349_v25 }
 0x393   : > { %14858 = vmatprep.subr.bf16.mxu1 %v25791_v34  ;;  %v14865_v0 = vpack.c.bf16 %v4124_v24, %v4117_v37 }
 0x394   : > { %v4144_v26 = vsub.f32 %v19349_v25, %v25777_v32 }
 0x395   : > { %3799 = vmatmul.mubr.f32.vlgmr.msra.gmra.mrb[0].mxu1 %v26788_v23  ;;  %v4131_v23 = vand.u32 4294901760, %v4130_v16 }
 0x396   : > { %3804 = vmatprep.mubr.f32.mxu1 %v26762_v47  ;;  %14860 = vmatpush1.bf16.msra.mxu1 %v14859_v5  ;;  %v4145_v44 = vand.u32 4294901760, %v4144_v26  ;;  %v4158_v5 = vsub.f32 %v19359_v11, %v25775_v18  ;;  %v4166_v26 = vand.u32 4294901760, %v4165_v19 }
 0x397   : > { %14861 = vmatprep.subr.bf16.mxu1 %v25791_v34  ;;  %v14868_v43 = vpack.c.bf16 %v4138_v62, %v4131_v23  ;;  %v4179_v23 = vsub.f32 %v19367_v15, %v25773_v53  ;;  %v25772_v62 = vand.u32 4294901760, %v19558_v13 }
 0x398   : > { %v14871_v37 = vpack.c.bf16 %v4152_v28, %v4145_v44  ;;  %v4159_v24 = vand.u32 4294901760, %v4158_v5 }
 0x399   : > { %3806 = vmatmul.mubr.f32.gmra.mrb[2].mxu1 %v26789_v46  ;;  %v19542_v46 = vld [vmem:[%s25475_s4 + $0x80] sm:$0xff]  ;;  %v4180_v44 = vand.u32 4294901760, %v4179_v23  ;;  %v4186_v28 = vsub.f32 %v19558_v13, %v25772_v62 }
 0x39a   : > { %3811 = vmatprep.mubr.f32.mxu1 %v26762_v47  ;;  %14863 = vmatpush1.bf16.msra.mxu1 %v14862_v60  ;;  %v3942_v16 = vand.u32 4294901760, %v19542_v46  ;;  %v4172_v60 = vsub.f32 %v19364_v2, %v25765_v29  ;;  %v19586_v29 = vsub.f32 %v19547_v41, %v3945_v21 }
 0x39b   : > { %14864 = vmatprep.subr.bf16.mxu1 %v25791_v34  ;;  %v4187_v19 = vand.u32 4294901760, %v4186_v28  ;;  %v19623_v28 = vpack.c.bf16 %v3939_v27, %v3936_v12 }
 0x39c   : > { %v25769_v5 = vand.u32 4294901760, %v19586_v29 }
 0x39d   : > { %3813 = vmatmul.mubr.f32.gmra.mrb[4].mxu1 %v26790_v8  ;;  %v19567_v8 = vsub.f32 %v19524_v55, %v3939_v27  ;;  %14851 = vmatpush1.bf16.msra.mxu0 %v19623_v28 }
 0x39e   : > { %3818 = vmatprep.mubr.f32.mxu1 %v26762_v47  ;;  %14866 = vmatpush1.bf16.msra.mxu1 %v14865_v0  ;;  %v19583_v0 = vsub.f32 %v19542_v46, %v3942_v16 }
 0x39f   : > { %14867 = vmatprep.subr.bf16.mxu1 %v25791_v34  ;;  %v25771_v4 = vand.u32 4294901760, %v19567_v8  ;;  %14852 = vmatprep.subr.bf16.mxu0 %v25791_v34 }
 0x3a0   : > { %v25770_v41 = vand.u32 4294901760, %v19583_v0 }
 0x3a1   : > { %3820 = vmatmul.mubr.f32.gmra.mrb[6].mxu1 %v26791_v31  ;;  %v4173_v31 = vand.u32 4294901760, %v4172_v60  ;;  %v4193_v46 = vsub.f32 %v19567_v8, %v25771_v4 }
 0x3a2   : > { %3825 = vmatprep.mubr.f32.mxu1 %v26762_v47  ;;  %14869 = vmatpush1.bf16.msra.mxu1 %v14868_v43  ;;  %v14874_v43 = vpack.c.bf16 %v4166_v26, %v4159_v24  ;;  %v4207_v24 = vsub.f32 %v19586_v29, %v25769_v5 }
 0x3a3   : > { %14870 = vmatprep.subr.bf16.mxu1 %v25791_v34  ;;  %v4194_v60 = vand.u32 4294901760, %v4193_v46 }
 0x3a4   : > { %v4208_v26 = vand.u32 4294901760, %v4207_v24 }
 0x3a5   : > { %3827 = vmatmul.mubr.f32.gmra.mrb[8].mxu1 %v26792_v42  ;;  %v14877_v42 = vpack.c.bf16 %v4180_v44, %v4173_v31  ;;  %v3865_v44 = vld [vmem:[%s25475_s4 + $0x90] sm:$0xff] }
 0x3a6   : > { %3832 = vmatprep.mubr.f32.mxu1 %v26762_v47  ;;  %14872 = vmatpush1.bf16.msra.mxu1 %v14871_v37  ;;  %v4200_v37 = vsub.f32 %v19583_v0, %v25770_v41  ;;  %v3948_v46 = vand.u32 4294901760, %v3865_v44 }
 0x3a7   : > { %14873 = vmatprep.subr.bf16.mxu1 %v25791_v34 }
 0x3a8   : > { %v4201_v23 = vand.u32 4294901760, %v4200_v37  ;;  %v19632_v37 = vpack.c.bf16 %v3945_v21, %v3942_v16  ;;  %v19634_v24 = vsub.f32 %v3865_v44, %v3948_v46 }
 0x3a9   : > { %3834 = vmatmul.mubr.f32.gmra.mrb[10].mxu1 %v18901_v56  ;;  %v14880_v56 = vpack.c.bf16 %v4194_v60, %v4187_v19 }
 0x3aa   : > { %3839 = vmatprep.mubr.f32.mxu1 %v26762_v47  ;;  %14875 = vmatpush1.bf16.msra.mxu1 %v14874_v43  ;;  %v14883_v31 = vpack.c.bf16 %v4208_v26, %v4201_v23  ;;  %v3867_v43 = vld [vmem:[%s25475_s4 + $0xa0] sm:$0x7f]  ;;  %v25768_v12 = vand.u32 4294901760, %v19634_v24 }
 0x3ab   : > { %14876 = vmatprep.subr.bf16.mxu1 %v25791_v34  ;;  %v3891_v19 = vsel %vm2449_vm1, %v3867_v43, 0  ;;  %14854 = vmatpush1.bf16.msra.mxu0 %v19632_v37 }
 0x3ac   : > { %v19630_v60 = vand.u32 4294901760, %v3891_v19  ;;  %v4214_v16 = vsub.f32 %v19634_v24, %v25768_v12  ;;  %14855 = vmatprep.subr.bf16.mxu0 %v25791_v34 }
 0x3ad   : > { %3841 = vmatmul.mubr.f32.gmra.mrb[12].mxu1 %v19190_v22  ;;  %v3866_v22 = vld [vmem:[%s25475_s4 + $0x98] sm:$0xff] }
 0x3ae   : > { %14878 = vmatpush1.bf16.msra.mxu1 %v14877_v42  ;;  %v3951_v42 = vand.u32 4294901760, %v3866_v22  ;;  %v19640_v55 = vsub.f32 %v3891_v19, %v19630_v60  ;;  %v4215_v26 = vand.u32 4294901760, %v4214_v16 }
 0x3af   : > { %14879 = vmatprep.subr.bf16.mxu1 %v25791_v34 }
 0x3b0   : > { %v19636_v48 = vsub.f32 %v3866_v22, %v3951_v42  ;;  %v19646_v23 = vpack.c.bf16 %v3951_v42, %v3948_v46 }
 0x3b2   : > { %14881 = vmatpush1.bf16.msra.mxu1 %v14880_v56  ;;  %v25767_v27 = vand.u32 4294901760, %v19636_v48  ;;  %v25766_v56 = vand.u32 4294901760, %v19640_v55  ;;  %14857 = vmatpush1.bf16.msra.mxu0 %v19646_v23 }
 0x3b3   : > { %14882 = vmatprep.subr.bf16.mxu1 %v25791_v34  ;;  %3953 = vmatprep.subr.mxu0 %v26762_v47 }
 0x3b4   : > { %v4221_v21 = vsub.f32 %v19636_v48, %v25767_v27  ;;  %v4228_v44 = vsub.f32 %v19640_v55, %v25766_v56 }
 0x3b6   : > { %14884 = vmatpush1.bf16.msra.mxu1 %v14883_v31  ;;  %v4222_v31 = vand.u32 4294901760, %v4221_v21  ;;  %v4229_v43 = vand.u32 4294901760, %v4228_v44  ;;  %3955 = vmatpush1.msra.mxu0 %v19630_v60  ;;  %v14889_v44 = vpack.c.bf16 %v19297_v10, %v19295_v59 }
 0x3b7   : > { %14885 = vmatprep.subr.bf16.mxu1 %v25791_v34 }
 0x3b8   : > { %v14886_v22 = vpack.c.bf16 %v4222_v31, %v4215_v26 }
 0x3ba   : > { %14887 = vmatpush1.bf16.msra.mxu1 %v14886_v22 }
 0x3bb   : > { %4224 = vmatprep.subr.mxu1 %v26762_v47 }
 0x3be   : > { %4230 = vmatpush1.msra.mxu1 %v4229_v43 }
 0x3bf   : > { %14888 = vmatprep.subr.bf16.mxu1 %v25791_v34 }
 0x468   : > { %v3800_v42 = vpop.f32.mrb[0].mxu1 }
 0x469   : > { %v19665_v19 = vand.u32 4294901760, %v3800_v42  ;;  %v3802_v16 = vpop.f32.mrb[1].mxu1 }
 0x46a   : > { %v3870_v21 = vsel %vm3868_vm4, %v3802_v16, 0 }
 0x46b   : > { %v19669_v26 = vsub.f32 %v3800_v42, %v19665_v19  ;;  %v19671_v31 = vand.u32 4294901760, %v3870_v21 }
 0x46c   : > { %v3807_v22 = vpop.f32.mrb[2].mxu1 }
 0x46d   : > { %v25785_v43 = vand.u32 4294901760, %v19669_v26  ;;  %v19677_v56 = vsub.f32 %v3870_v21, %v19671_v31  ;;  %v19679_v27 = vand.u32 4294901760, %v3807_v22  ;;  %v3809_v12 = vpop.f32.mrb[3].mxu1  ;;  %4254 = vmatprep.mubr.f32.mxu1 %v19671_v31  ;;  %v14892_v21 = vpack.c.bf16 %v19304_v14, %v19299_v45 }
 0x46e   : > { %v3873_v16 = vsel %vm3868_vm4, %v3809_v12, 0  ;;  %4256 = vmatmul.mubr.f32.vlgmr.msra.gmra.mrb[14].mxu1 %v19665_v19 }
 0x46f   : > { %26825 = vst [vmem:[#allocation13_spill] sm:$0xff] %v19679_v27  ;;  %v25788_v42 = vand.u32 4294901760, %v19677_v56  ;;  %v19686_v5 = vsub.f32 %v3807_v22, %v19679_v27  ;;  %v19688_v41 = vand.u32 4294901760, %v3873_v16  ;;  %14890 = vmatpush1.bf16.msra.mxu1 %v14889_v44  ;;  %v3987_v4 = vsub.f32 %v19669_v26, %v25785_v43 }
 0x470   : > { %v3814_v62 = vpop.f32.mrb[4].mxu1  ;;  %14891 = vmatprep.subr.bf16.mxu1 %v25791_v34 }
 0x471   : > { %26826 = vst [vmem:[#allocation33_spill] sm:$0xff] %v19688_v41  ;;  %v25784_v12 = vand.u32 4294901760, %v19686_v5  ;;  %v19698_v53 = vsub.f32 %v3873_v16, %v19688_v41  ;;  %v19700_v22 = vand.u32 4294901760, %v3814_v62  ;;  %v3816_v1 = vpop.f32.mrb[5].mxu1  ;;  %4261 = vmatprep.mubr.f32.mxu1 %v19688_v41  ;;  %v3981_v18 = vsub.f32 %v19677_v56, %v25788_v42 }
 0x472   : > { %v3876_v44 = vsel %vm3868_vm4, %v3816_v1, 0  ;;  %4263 = vmatmul.mubr.f32.gmra.mrb[16].mxu1 %v19679_v27  ;;  %v3988_v40 = vand.u32 4294901760, %v3987_v4 }
 0x473   : > { %26827 = vst [vmem:[#allocation42_spill] sm:$0xff] %v19700_v22  ;;  %v25789_v33 = vand.u32 4294901760, %v19698_v53  ;;  %v19710_v32 = vsub.f32 %v3814_v62, %v19700_v22  ;;  %v19712_v16 = vand.u32 4294901760, %v3876_v44  ;;  %14893 = vmatpush1.bf16.msra.mxu1 %v14892_v21  ;;  %v3982_v1 = vand.u32 4294901760, %v3981_v18 }
 0x474   : > { %v3821_v39 = vpop.f32.mrb[6].mxu1  ;;  %14894 = vmatprep.subr.bf16.mxu1 %v25791_v34  ;;  %v4002_v54 = vsub.f32 %v19686_v5, %v25784_v12  ;;  %v14898_v12 = vpack.c.bf16 %v19317_v30, %v19312_v6 }
 0x475   : > { %26828 = vst [vmem:[#allocation14_spill] sm:$0xff] %v19712_v16  ;;  %v25790_v63 = vand.u32 4294901760, %v19710_v32  ;;  %v19722_v62 = vsub.f32 %v3876_v44, %v19712_v16  ;;  %v19724_v51 = vand.u32 4294901760, %v3821_v39  ;;  %v3823_v21 = vpop.f32.mrb[7].mxu1  ;;  %4268 = vmatprep.mubr.f32.mxu1 %v19712_v16  ;;  %v3996_v18 = vsub.f32 %v19698_v53, %v25789_v33  ;;  %3983 = vmatprep.mubr.f32.mxu0 %v3982_v1 }
 0x476   : > { %v3879_v4 = vsel %vm3868_vm4, %v3823_v21, 0  ;;  %4270 = vmatmul.mubr.f32.gmra.mrb[18].mxu1 %v19700_v22  ;;  %3989 = vmatmul.mubr.f32.vlgmr.msra.gmra.mrb[28].mxu0 %v3988_v40  ;;  %v4003_v21 = vand.u32 4294901760, %v4002_v54 }
 0x477   : > { %26829 = vst [vmem:[#allocation15_spill] sm:$0xff] %v19724_v51  ;;  %v19736_v43 = vsub.f32 %v3821_v39, %v19724_v51  ;;  %v19738_v9 = vand.u32 4294901760, %v3879_v4  ;;  %14896 = vmatpush1.bf16.msra.mxu1 %v14895_v58  ;;  %v3997_v7 = vand.u32 4294901760, %v3996_v18  ;;  %v4017_v1 = vsub.f32 %v19710_v32, %v25790_v63 }
 0x478   : > { %v3828_v42 = vpop.f32.mrb[8].mxu1  ;;  %14897 = vmatprep.subr.bf16.mxu1 %v25791_v34  ;;  %v26832_v40 = vand.u32 4294901760, %v19722_v62  ;;  %v14901_v18 = vpack.c.bf16 %v19352_v17, %v19349_v25 }
 0x479   : > { %26830 = vst [vmem:[#allocation40_spill] sm:$0xff] %v19738_v9  ;;  %v19746_v46 = vsub.f32 %v3879_v4, %v19738_v9  ;;  %v19748_v39 = vand.u32 4294901760, %v3828_v42  ;;  %v3830_v44 = vpop.f32.mrb[9].mxu1  ;;  %3998 = vmatprep.mubr.f32.mxu0 %v3997_v7  ;;  %4275 = vmatprep.mubr.f32.mxu1 %v19738_v9  ;;  %v26834_v9 = vmov 0.0|0.0  }
 0x47a   : > { %v4011_v58 = vsub.f32 %v19722_v62, %v26832_v40  ;;  %v3882_v54 = vsel %vm3868_vm4, %v3830_v44, 0  ;;  %4277 = vmatmul.mubr.f32.gmra.mrb[20].mxu1 %v19724_v51  ;;  %4004 = vmatmul.mubr.f32.gmra.mrb[30].mxu0 %v4003_v21  ;;  %v4018_v40 = vand.u32 4294901760, %v4017_v1  ;;  %v26835_v44 = vand.u32 4294901760, %v19736_v43 }
 0x47b   : > { %26831 = vst [vmem:[#allocation46_spill] sm:$0xff] %v19748_v39  ;;  %v19760_v63 = vsub.f32 %v3828_v42, %v19748_v39  ;;  %v19762_v33 = vand.u32 4294901760, %v3882_v54  ;;  %14899 = vmatpush1.bf16.msra.mxu1 %v14898_v12  ;;  %v26837_v12 = vand.u32 4294901760, %v19746_v46 }
 0x47c   : > { %v4012_v7 = vand.u32 4294901760, %v4011_v58  ;;  %v3835_v34 = vpop.f32.mrb[10].mxu1  ;;  %14900 = vmatprep.subr.bf16.mxu1 %v26834_v9  ;;  %v4032_v51 = vsub.f32 %v19736_v43, %v26835_v44  ;;  %v14904_v58 = vpack.c.bf16 %v19362_v38, %v19359_v11 }
 0x47d   : > { %26833 = vst [vmem:[#allocation16_spill] sm:$0xff] %v19762_v33  ;;  %v19770_v4 = vsub.f32 %v3882_v54, %v19762_v33  ;;  %v19772_v42 = vand.u32 4294901760, %v3835_v34  ;;  %v3837_v16 = vpop.f32.mrb[11].mxu1  ;;  %4282 = vmatprep.mubr.f32.mxu1 %v19762_v33  ;;  %v4026_v21 = vsub.f32 %v19746_v46, %v26837_v12 }
 0x47e   : > { %4013 = vmatprep.mubr.f32.mxu0 %v4012_v7  ;;  %v3885_v1 = vsel %vm3868_vm4, %v3837_v16, 0  ;;  %4284 = vmatmul.mubr.f32.gmra.mrb[22].mxu1 %v19748_v39  ;;  %v4033_v12 = vand.u32 4294901760, %v4032_v51  ;;  %v26839_v16 = vand.u32 4294901760, %v19760_v63 }
 0x47f   : > { %26836 = vst [vmem:[#allocation17_spill] sm:$0xff] %v19772_v42  ;;  %v19784_v44 = vsub.f32 %v3835_v34, %v19772_v42  ;;  %v19786_v22 = vand.u32 4294901760, %v3885_v1  ;;  %4019 = vmatmul.mubr.f32.gmra.mrb[32].mxu0 %v4018_v40  ;;  %14902 = vmatpush1.bf16.msra.mxu1 %v14901_v18  ;;  %v4027_v7 = vand.u32 4294901760, %v4026_v21  ;;  %v26840_v18 = vand.u32 4294901760, %v19770_v4 }
 0x480   : > { %v3842_v33 = vpop.f32.mrb[12].mxu1  ;;  %14903 = vmatprep.subr.bf16.mxu1 %v26834_v9  ;;  %v4047_v39 = vsub.f32 %v19760_v63, %v26839_v16  ;;  %v14907_v21 = vpack.c.bf16 %v19367_v15, %v19364_v2 }
 0x481   : > { %26838 = vst [vmem:[#allocation47_spill] sm:$0xff] %v19786_v22  ;;  %v19794_v54 = vsub.f32 %v3885_v1, %v19786_v22  ;;  %v19796_v34 = vand.u32 4294901760, %v3842_v33  ;;  %v3844_v41 = vpop.f32.mrb[13].mxu1  ;;  %4028 = vmatprep.mubr.f32.mxu0 %v4027_v7  ;;  %4289 = vmatprep.mubr.f32.mxu1 %v19786_v22  ;;  %v4041_v40 = vsub.f32 %v19770_v4, %v26840_v18  ;;  %v26841_v22 = vand.u32 4294901760, %v19784_v44 }
 0x482   : > { %v3888_v51 = vsel %vm3868_vm4, %v3844_v41, 0  ;;  %4291 = vmatmul.mubr.f32.gmra.mrb[24].mxu1 %v19772_v42  ;;  %v4048_v18 = vand.u32 4294901760, %v4047_v39  ;;  %vm12295_vm4 = vcmask 982016  }
 0x483   : > { %v4055_v1 = vand.u32 4294901760, %v19794_v54  ;;  %v19808_v16 = vsub.f32 %v3842_v33, %v19796_v34  ;;  %v19810_v27 = vand.u32 4294901760, %v3888_v51  ;;  %4034 = vmatmul.mubr.f32.gmra.mrb[34].mxu0 %v4033_v12  ;;  %14905 = vmatpush1.bf16.msra.mxu1 %v14904_v58  ;;  %v4042_v7 = vand.u32 4294901760, %v4041_v40 }
 0x484   : > { %14906 = vmatprep.subr.bf16.mxu1 %v26834_v9  ;;  %v4062_v58 = vsub.f32 %v19784_v44, %v26841_v22  ;;  %v14910_v40 = vpack.c.bf16 %v19567_v8, %v19558_v13 }
 0x485   : > { %v4076_v41 = vand.u32 4294901760, %v19808_v16  ;;  %v19815_v42 = vsub.f32 %v3888_v51, %v19810_v27  ;;  %4043 = vmatprep.mubr.f32.mxu0 %v4042_v7  ;;  %4296 = vmatprep.mubr.f32.mxu1 %v19810_v27  ;;  %v4056_v33 = vsub.f32 %v19794_v54, %v4055_v1 }
 0x486   : > { %4298 = vmatmul.mubr.f32.gmra.mrb[26].mxu1 %v19796_v34  ;;  %v4063_v51 = vand.u32 4294901760, %v4062_v58  ;;  %v26842_v58 = vpack.c.bf16 %v19636_v48, %v19634_v24 }
 0x487   : > { %v4070_v39 = vand.u32 4294901760, %v19815_v42  ;;  %4049 = vmatmul.mubr.f32.gmra.mrb[36].mxu0 %v4048_v18  ;;  %14908 = vmatpush1.bf16.msra.mxu1 %v14907_v21  ;;  %v4057_v12 = vand.u32 4294901760, %v4056_v33  ;;  %v4077_v7 = vsub.f32 %v19808_v16, %v4076_v41  ;;  %v14913_v18 = vpack.c.bf16 %v19586_v29, %v19583_v0 }
 0x488   : > { %4411 = vmatprep.mubr.f32.mxu1 %v19677_v56  ;;  %14909 = vmatprep.subr.bf16.mxu1 %v26834_v9 }
 0x489   : > { %4058 = vmatprep.mubr.f32.mxu0 %v4057_v12  ;;  %v4071_v22 = vsub.f32 %v19815_v42, %v4070_v39  ;;  %v4078_v33 = vand.u32 4294901760, %v4077_v7  ;;  %v26843_v12 = vand.u32 4294901760, %v19677_v56  ;;  %v26847_v7 = vand.u32 4294901760, %v19698_v53 }
 0x48b   : > { %4064 = vmatmul.mubr.f32.gmra.mrb[38].mxu0 %v4063_v51  ;;  %14911 = vmatpush1.bf16.msra.mxu1 %v14910_v40  ;;  %v4072_v21 = vand.u32 4294901760, %v4071_v22  ;;  %v26844_v40 = vand.u32 4294901760, %v19295_v59  ;;  %v26845_v51 = vand.u32 4294901760, %v19297_v10  ;;  %v26846_v22 = vand.u32 4294901760, %v19669_v26 }
 0x48c   : > { %14912 = vmatprep.subr.bf16.mxu1 %v26834_v9  ;;  %v26850_v59 = vand.u32 4294901760, %v19686_v5  ;;  %v26851_v10 = vand.u32 4294901760, %v19722_v62 }
 0x48d   : > { %4073 = vmatprep.mubr.f32.mxu0 %v4072_v21  ;;  %v14949_v56 = vpack.c.bf16 %v26845_v51, %v26844_v40  ;;  %v26848_v21 = vand.u32 4294901760, %v19299_v45  ;;  %v26854_v45 = vand.u32 4294901760, %v19710_v32  ;;  %v26884_v51 = vld [vmem:[#allocation17_spill] sm:$0xff] }
 0x48f   : > { %4079 = vmatmul.mubr.f32.gmra.mrb[40].mxu0 %v4078_v33  ;;  %14914 = vmatpush1.bf16.msra.mxu1 %v14913_v18  ;;  %v26849_v18 = vand.u32 4294901760, %v19304_v14  ;;  %v26855_v14 = vand.u32 4294901760, %v19746_v46 }
 0x490   : > { %14915 = vmatprep.subr.bf16.mxu1 %v26834_v9 }
 0x491   : > { %v14952_v33 = vpack.c.bf16 %v26849_v18, %v26848_v21  ;;  %v5133_v21 = vld [vmem:[%s25476_s5] sm:$0xff] }
 0x493   : > { %14917 = vmatpush1.bf16.msra.mxu1 %v26842_v58 }
 0x494   : > { %4383 = vmatprep.subr.mxu1 %v26762_v47 }
 0x497   : > { %4386 = vmatpush1.msra.mxu1 %v19640_v55 }
 0x498   : > { %4414 = vmatmul.mubr.f32.vlgmr.msra.gmra.mrb[14].mxu1 %v19669_v26  ;;  %14918 = vmatprep.subr.bf16.mxu1 %v26834_v9  ;;  %v26852_v26 = vand.u32 4294901760, %v19306_v20  ;;  %v26858_v20 = vand.u32 4294901760, %v19736_v43 }
 0x499   : > { %4420 = vmatprep.mubr.f32.mxu1 %v19698_v53  ;;  %14920 = vmatpush1.bf16.msra.mxu1 %v19301_v36  ;;  %v26853_v53 = vand.u32 4294901760, %v19308_v49  ;;  %v26859_v49 = vand.u32 4294901760, %v19770_v4 }
 0x49a   : > { %14921 = vmatprep.subr.bf16.mxu1 %v26834_v9 }
 0x49b   : > { %v14955_v58 = vpack.c.bf16 %v26853_v53, %v26852_v26  ;;  %v5138_v26 = vld [vmem:[%s25476_s5 + $0x28] sm:$0xff]  ;;  %v5140_v53 = vld [vmem:[%s25476_s5 + $0x38] sm:$0xff] }
 0x49c   : > { %4423 = vmatmul.mubr.f32.gmra.mrb[16].mxu1 %v19686_v5  ;;  %v26856_v5 = vand.u32 4294901760, %v19312_v6  ;;  %v26862_v6 = vand.u32 4294901760, %v19760_v63 }
 0x49d   : > { %4429 = vmatprep.mubr.f32.mxu1 %v19722_v62  ;;  %14923 = vmatpush1.bf16.msra.mxu1 %v19334_v35  ;;  %v26857_v62 = vand.u32 4294901760, %v19317_v30  ;;  %v26863_v30 = vand.u32 4294901760, %v19359_v11  ;;  %v26868_v11 = vand.u32 4294901760, %v19558_v13  ;;  %v26874_v13 = vand.u32 4294901760, %v19640_v55  ;;  %v26880_v55 = vld [vmem:[#allocation15_spill] sm:$0xff] }
 0x49e   : > { %14924 = vmatprep.subr.bf16.mxu1 %v26834_v9 }
 0x4a0   : > { %4432 = vmatmul.mubr.f32.gmra.mrb[18].mxu1 %v19710_v32  ;;  %v26860_v32 = vand.u32 4294901760, %v19349_v25  ;;  %v26865_v25 = vand.u32 4294901760, %v19784_v44 }
 0x4a1   : > { %4438 = vmatprep.mubr.f32.mxu1 %v19746_v46  ;;  %14926 = vmatpush1.bf16.msra.mxu1 %v19354_v50  ;;  %v26861_v46 = vand.u32 4294901760, %v19352_v17  ;;  %v26866_v17 = vand.u32 4294901760, %v19364_v2  ;;  %v26870_v2 = vand.u32 4294901760, %v19583_v0  ;;  %v26877_v0 = vld [vmem:[#allocation14_spill] sm:$0xff] }
 0x4a2   : > { %14927 = vmatprep.subr.bf16.mxu1 %v26834_v9 }
 0x4a3   : > { %v14961_v40 = vpack.c.bf16 %v26861_v46, %v26860_v32 }
 0x4a4   : > { %4441 = vmatmul.mubr.f32.gmra.mrb[20].mxu1 %v19736_v43  ;;  %v26864_v43 = vand.u32 4294901760, %v19362_v38  ;;  %v26869_v38 = vand.u32 4294901760, %v19567_v8  ;;  %v26876_v8 = vld [vmem:[#allocation13_spill] sm:$0xff] }
 0x4a5   : > { %4447 = vmatprep.mubr.f32.mxu1 %v19770_v4  ;;  %14929 = vmatpush1.bf16.msra.mxu1 %v19371_v3 }
 0x4a6   : > { %14930 = vmatprep.subr.bf16.mxu1 %v26834_v9  ;;  %v14964_v4 = vpack.c.bf16 %v26864_v43, %v26863_v30  ;;  %v5143_v30 = vld [vmem:[%s25476_s5 + $0x50] sm:$0xff] }
 0x4a8   : > { %4450 = vmatmul.mubr.f32.gmra.mrb[22].mxu1 %v19760_v63  ;;  %v26867_v63 = vand.u32 4294901760, %v19367_v15  ;;  %v26871_v15 = vand.u32 4294901760, %v19586_v29  ;;  %v26875_v29 = vld [vmem:[#allocation33_spill] sm:$0xff] }
 0x4a9   : > { %4456 = vmatprep.mubr.f32.mxu1 %v19794_v54  ;;  %14932 = vmatpush1.bf16.msra.mxu1 %v19379_v61 }
 0x4aa   : > { %14933 = vmatprep.subr.bf16.mxu1 %v26834_v9  ;;  %v14967_v54 = vpack.c.bf16 %v26867_v63, %v26866_v17  ;;  %v5146_v63 = vld [vmem:[%s25476_s5 + $0x68] sm:$0xff] }
 0x4ac   : > { %4459 = vmatmul.mubr.f32.gmra.mrb[24].mxu1 %v19784_v44  ;;  %v14973_v44 = vpack.c.bf16 %v26871_v15, %v26870_v2  ;;  %v5148_v2 = vld [vmem:[%s25476_s5 + $0x78] sm:$0xff] }
 0x4ad   : > { %4465 = vmatprep.mubr.f32.mxu1 %v19815_v42  ;;  %14935 = vmatpush1.bf16.msra.mxu1 %v19387_v52  ;;  %v14970_v42 = vpack.c.bf16 %v26869_v38, %v26868_v11 }
 0x4ae   : > { %14936 = vmatprep.subr.bf16.mxu1 %v26834_v9 }
 0x4b0   : > { %4468 = vmatmul.mubr.f32.gmra.mrb[26].mxu1 %v19808_v16  ;;  %v26873_v16 = vand.u32 4294901760, %v19636_v48  ;;  %v26879_v48 = vld [vmem:[#allocation40_spill] sm:$0xff] }
 0x4b1   : > { %14938 = vmatpush1.bf16.msra.mxu1 %v19395_v57  ;;  %4561 = vmatprep.mubr.f32.mxu1 %v26843_v12  ;;  %v14958_v12 = vpack.c.bf16 %v26857_v62, %v26856_v5  ;;  %v5137_v5 = vld [vmem:[%s25476_s5 + $0x20] sm:$0xff]  ;;  %v5139_v62 = vld [vmem:[%s25476_s5 + $0x30] sm:$0xff] }
 0x4b2   : > { %14939 = vmatprep.subr.bf16.mxu1 %v26834_v9  ;;  %v5282_v11 = vand.u32 4294901760, %v5137_v5  ;;  %v5286_v38 = vand.u32 4294901760, %v5139_v62 }
 0x4b5   : > { %14941 = vmatpush1.bf16.msra.mxu1 %v19623_v28 }
 0x4b6   : > { %14942 = vmatprep.subr.bf16.mxu1 %v26834_v9 }
 0x4b9   : > { %14944 = vmatpush1.bf16.msra.mxu1 %v19632_v37 }
 0x4ba   : > { %14945 = vmatprep.subr.bf16.mxu1 %v26834_v9 }
 0x4bd   : > { %14947 = vmatpush1.bf16.msra.mxu1 %v19646_v23 }
 0x4be   : > { %4533 = vmatprep.subr.mxu1 %v26762_v47 }
 0x4c1   : > { %4535 = vmatpush1.msra.mxu1 %v19630_v60 }
 0x4c2   : > { %4565 = vmatmul.mubr.f32.vlgmr.msra.gmra.mrb[14].mxu1 %v26846_v22  ;;  %14948 = vmatprep.subr.bf16.mxu1 %v26834_v9  ;;  %v5134_v22 = vld [vmem:[%s25476_s5 + $0x8] sm:$0xff] }
 0x4c3   : > { %4572 = vmatprep.mubr.f32.mxu1 %v26847_v7  ;;  %14950 = vmatpush1.bf16.msra.mxu1 %v14949_v56  ;;  %v5136_v7 = vld [vmem:[%s25476_s5 + $0x18] sm:$0xff]  ;;  %v5272_v18 = vand.u32 4294901760, %v5134_v22 }
 0x4c4   : > { %14951 = vmatprep.subr.bf16.mxu1 %v26834_v9 }
 0x4c6   : > { %4576 = vmatmul.mubr.f32.gmra.mrb[16].mxu1 %v26850_v59  ;;  %v5135_v59 = vld [vmem:[%s25476_s5 + $0x10] sm:$0xff] }
 0x4c7   : > { %4583 = vmatprep.mubr.f32.mxu1 %v26851_v10  ;;  %14953 = vmatpush1.bf16.msra.mxu1 %v14952_v33  ;;  %v5276_v33 = vand.u32 4294901760, %v5136_v7  ;;  %v5274_v10 = vand.u32 4294901760, %v5133_v21 }
 0x4c8   : > { %14954 = vmatprep.subr.bf16.mxu1 %v26834_v9 }
 0x4c9   : > { %v20057_v32 = vsub.f32 %v5136_v7, %v5276_v33  ;;  %v20059_v46 = vsub.f32 %v5133_v21, %v5274_v10 }
 0x4ca   : > { %4587 = vmatmul.mubr.f32.gmra.mrb[18].mxu1 %v26854_v45  ;;  %v5280_v45 = vand.u32 4294901760, %v5138_v26 }
 0x4cb   : > { %4594 = vmatprep.mubr.f32.mxu1 %v26855_v14  ;;  %14956 = vmatpush1.bf16.msra.mxu1 %v14955_v58  ;;  %v5278_v58 = vand.u32 4294901760, %v5135_v59  ;;  %v5284_v14 = vand.u32 4294901760, %v5140_v53 }
 0x4cc   : > { %14957 = vmatprep.subr.bf16.mxu1 %v26834_v9  ;;  %v20076_v17 = vsub.f32 %v5138_v26, %v5280_v45  ;;  %v5154_v26 = vld [vmem:[%s25476_s5 + $0xa8] sm:$0xff] }
 0x4cd   : > { %v20070_v43 = vpack.c.bf16 %v5278_v58, %v5274_v10 }
 0x4ce   : > { %4598 = vmatmul.mubr.f32.gmra.mrb[20].mxu1 %v26858_v20  ;;  %v20053_v20 = vpack.c.bf16 %v5276_v33, %v5272_v18 }
 0x4cf   : > { %4605 = vmatprep.mubr.f32.mxu1 %v26859_v49  ;;  %14959 = vmatpush1.bf16.msra.mxu1 %v14958_v12  ;;  %v5142_v12 = vld [vmem:[%s25476_s5 + $0x48] sm:$0xff]  ;;  %v20055_v49 = vsub.f32 %v5134_v22, %v5272_v18  ;;  %26887 = vst [vmem:[#allocation19_spill] sm:$0xff] %v20070_v43 }
 0x4d0   : > { %14960 = vmatprep.subr.bf16.mxu1 %v26834_v9  ;;  %26885 = vst [vmem:[#allocation49_spill] sm:$0xff] %v20053_v20  ;;  %15009 = vmatprep.subr.bf16.mxu0 %v20053_v20 }
 0x4d1   : > { %26886 = vst [vmem:[#allocation18_spill] sm:$0xff] %v20055_v49  ;;  %15011 = vmatpush1.bf16.msra.mxu0 %v20070_v43 }
 0x4d2   : > { %4609 = vmatmul.mubr.f32.gmra.mrb[22].mxu1 %v26862_v6  ;;  %v5141_v6 = vld [vmem:[%s25476_s5 + $0x40] sm:$0xff] }
 0x4d3   : > { %4616 = vmatprep.mubr.f32.mxu1 %v4055_v1  ;;  %14962 = vmatpush1.bf16.msra.mxu1 %v14961_v40  ;;  %v26872_v1 = vand.u32 4294901760, %v19634_v24  ;;  %v26878_v24 = vld [vmem:[#allocation42_spill] sm:$0xff]  ;;  %v5144_v40 = vld [vmem:[%s25476_s5 + $0x58] sm:$0xff] }
 0x4d4   : > { %14963 = vmatprep.subr.bf16.mxu1 %v26834_v9  ;;  %v5292_v15 = vand.u32 4294901760, %v5144_v40 }
 0x4d6   : > { %4620 = vmatmul.mubr.f32.gmra.mrb[24].mxu1 %v26865_v25  ;;  %v20074_v25 = vpack.c.bf16 %v5284_v14, %v5280_v45 }
 0x4d7   : > { %4627 = vmatprep.mubr.f32.mxu1 %v4070_v39  ;;  %14965 = vmatpush1.bf16.msra.mxu1 %v14964_v4  ;;  %v26882_v39 = vld [vmem:[#allocation46_spill] sm:$0xff]  ;;  %v20072_v4 = vsub.f32 %v5135_v59, %v5278_v58  ;;  %v5153_v58 = vld [vmem:[%s25476_s5 + $0xa0] sm:$0xff] }
 0x4d8   : > { %14966 = vmatprep.subr.bf16.mxu1 %v26834_v9  ;;  %26888 = vst [vmem:[#allocation52_spill] sm:$0xff] %v20074_v25  ;;  %15013 = vmatprep.subr.bf16.mxu0 %v20074_v25 }
 0x4da   : > { %4631 = vmatmul.mubr.f32.gmra.mrb[26].mxu1 %v4076_v41  ;;  %v14976_v41 = vpack.c.bf16 %v26873_v16, %v26872_v1  ;;  %v5294_v1 = vand.u32 4294901760, %v5143_v30  ;;  %v5296_v16 = vand.u32 4294901760, %v5146_v63 }
 0x4db   : > { %14968 = vmatpush1.bf16.msra.mxu1 %v14967_v54  ;;  %4764 = vmatprep.mubr.f32.mxu1 %v19671_v31  ;;  %v20082_v54 = vsub.f32 %v5140_v53, %v5284_v14  ;;  %v5156_v53 = vld [vmem:[%s25476_s5 + $0xb8] sm:$0xff] }
 0x4dc   : > { %14969 = vmatprep.subr.bf16.mxu1 %v26834_v9 }
 0x4dd   : > { %26889 = vst [vmem:[#allocation54_spill] sm:$0xff] %v20082_v54 }
 0x4df   : > { %14971 = vmatpush1.bf16.msra.mxu1 %v14970_v42  ;;  %v5288_v42 = vand.u32 4294901760, %v5142_v12 }
 0x4e0   : > { %14972 = vmatprep.subr.bf16.mxu1 %v26834_v9 }
 0x4e3   : > { %14974 = vmatpush1.bf16.msra.mxu1 %v14973_v44  ;;  %v5290_v44 = vand.u32 4294901760, %v5141_v6 }
 0x4e4   : > { %14975 = vmatprep.subr.bf16.mxu1 %v26834_v9 }
 0x4e7   : > { %14977 = vmatpush1.bf16.msra.mxu1 %v14976_v41  ;;  %v5145_v41 = vld [vmem:[%s25476_s5 + $0x60] sm:$0xff] }
 0x4e8   : > { %4736 = vmatprep.subr.mxu1 %v26762_v47 }
 0x4eb   : > { %4740 = vmatpush1.msra.mxu1 %v26874_v13  ;;  %v5147_v13 = vld [vmem:[%s25476_s5 + $0x70] sm:$0xff] }
 0x4ec   : > { %4766 = vmatmul.mubr.f32.vlgmr.msra.gmra.mrb[14].mxu1 %v19665_v19  ;;  %14978 = vmatprep.subr.bf16.mxu1 %v26834_v9 }
 0x4ed   : > { %4771 = vmatprep.mubr.f32.mxu1 %v26875_v29  ;;  %14980 = vmatpush1.bf16.msra.mxu1 %v19301_v36  ;;  %v26881_v36 = vld [vmem:[#allocation16_spill] sm:$0xff] }
 0x4ee   : > { %14981 = vmatprep.subr.bf16.mxu1 %v26834_v9 }
 0x4f0   : > { %4773 = vmatmul.mubr.f32.gmra.mrb[16].mxu1 %v26876_v8 }
 0x4f1   : > { %4778 = vmatprep.mubr.f32.mxu1 %v26877_v0  ;;  %14983 = vmatpush1.bf16.msra.mxu1 %v19334_v35  ;;  %v26883_v35 = vld [vmem:[#allocation47_spill] sm:$0xff] }
 0x4f2   : > { %14984 = vmatprep.subr.bf16.mxu1 %v26834_v9 }
 0x4f4   : > { %4780 = vmatmul.mubr.f32.gmra.mrb[18].mxu1 %v26878_v24 }
 0x4f5   : > { %4785 = vmatprep.mubr.f32.mxu1 %v26879_v48  ;;  %14986 = vmatpush1.bf16.msra.mxu1 %v19354_v50 }
 0x4f6   : > { %14987 = vmatprep.subr.bf16.mxu1 %v26834_v9 }
 0x4f8   : > { %4787 = vmatmul.mubr.f32.gmra.mrb[20].mxu1 %v26880_v55 }
 0x4f9   : > { %4792 = vmatprep.mubr.f32.mxu1 %v26881_v36  ;;  %14989 = vmatpush1.bf16.msra.mxu1 %v19371_v3 }
 0x4fa   : > { %14990 = vmatprep.subr.bf16.mxu1 %v26834_v9 }
 0x4fc   : > { %4794 = vmatmul.mubr.f32.gmra.mrb[22].mxu1 %v26882_v39 }
 0x4fd   : > { %4799 = vmatprep.mubr.f32.mxu1 %v26883_v35  ;;  %14992 = vmatpush1.bf16.msra.mxu1 %v19379_v61 }
 0x4fe   : > { %14993 = vmatprep.subr.bf16.mxu1 %v26834_v9 }
 0x500   : > { %4801 = vmatmul.mubr.f32.gmra.mrb[24].mxu1 %v26884_v51 }
 0x501   : > { %4806 = vmatprep.mubr.f32.mxu1 %v19810_v27  ;;  %14995 = vmatpush1.bf16.msra.mxu1 %v19387_v52 }
 0x502   : > { %14996 = vmatprep.subr.bf16.mxu1 %v26834_v9 }
 0x504   : > { %4808 = vmatmul.mubr.f32.gmra.mrb[26].mxu1 %v19796_v34 }
 0x505   : > { %14998 = vmatpush1.bf16.msra.mxu1 %v19395_v57  ;;  %4899 = vmatprep.mubr.f32.mxu1 %v19671_v31 }
 0x506   : > { %14999 = vmatprep.subr.bf16.mxu1 %v26834_v9 }
 0x509   : > { %15001 = vmatpush1.bf16.msra.mxu1 %v19623_v28 }
 0x50a   : > { %15002 = vmatprep.subr.bf16.mxu1 %v26834_v9 }
 0x50d   : > { %15004 = vmatpush1.bf16.msra.mxu1 %v19632_v37 }
 0x50e   : > { %15005 = vmatprep.subr.bf16.mxu1 %v26834_v9  ;;  %v20212_v9 = vld [vmem:[%s25476_s5 + $0x118] sm:$0xff] }
 0x511   : > { %15007 = vmatpush1.bf16.msra.mxu1 %v19646_v23 }
 0x512   : > { %4873 = vmatprep.subr.mxu1 %v26762_v47 }
 0x515   : > { %4875 = vmatpush1.msra.mxu1 %v19630_v60 }
 0x516   : > { %4901 = vmatmul.mubr.f32.vlgmr.msra.gmra.mrb[14].mxu1 %v19665_v19 }
 0x517   : > { %4906 = vmatprep.mubr.f32.mxu1 %v26875_v29  ;;  %v20095_v29 = vpack.c.bf16 %v5286_v38, %v5282_v11 }
 0x519   : > { %26890 = vst [vmem:[#allocation20_spill] sm:$0xff] %v20095_v29  ;;  %15015 = vmatpush1.bf16.msra.mxu0 %v20095_v29 }
 0x51a   : > { %4908 = vmatmul.mubr.f32.gmra.mrb[16].mxu1 %v26876_v8  ;;  %v20097_v8 = vsub.f32 %v5137_v5, %v5282_v11  ;;  %v5155_v5 = vld [vmem:[%s25476_s5 + $0xb0] sm:$0xff] }
 0x51b   : > { %4913 = vmatprep.mubr.f32.mxu1 %v26877_v0  ;;  %v20099_v0 = vsub.f32 %v5139_v62, %v5286_v38  ;;  %v5158_v62 = vld [vmem:[%s25476_s5 + $0xc8] sm:$0xff]  ;;  %v5159_v11 = vld [vmem:[%s25476_s5 + $0xd0] sm:$0xff] }
 0x51c   : > { %26891 = vst [vmem:[#allocation21_spill] sm:$0xff] %v20097_v8 }
 0x51e   : > { %4915 = vmatmul.mubr.f32.gmra.mrb[18].mxu1 %v26878_v24  ;;  %v20101_v24 = vsub.f32 %v5142_v12, %v5288_v42  ;;  %v5160_v12 = vld [vmem:[%s25476_s5 + $0xd8] sm:$0xff] }
 0x51f   : > { %4920 = vmatprep.mubr.f32.mxu1 %v26879_v48  ;;  %v5150_v48 = vld [vmem:[%s25476_s5 + $0x88] sm:$0xff] }
 0x520   : > { %v5304_v22 = vand.u32 4294901760, %v5150_v48 }
 0x522   : > { %4922 = vmatmul.mubr.f32.gmra.mrb[20].mxu1 %v26880_v55  ;;  %v5152_v55 = vld [vmem:[%s25476_s5 + $0x98] sm:$0xff]  ;;  %v20146_v14 = vsub.f32 %v5150_v48, %v5304_v22 }
 0x523   : > { %4927 = vmatprep.mubr.f32.mxu1 %v26881_v36  ;;  %v5149_v36 = vld [vmem:[%s25476_s5 + $0x80] sm:$0xff]  ;;  %v5308_v7 = vand.u32 4294901760, %v5152_v55 }
 0x524   : > { %v5306_v21 = vand.u32 4294901760, %v5149_v36 }
 0x526   : > { %4929 = vmatmul.mubr.f32.gmra.mrb[22].mxu1 %v26882_v39  ;;  %v20112_v39 = vpack.c.bf16 %v5292_v15, %v5288_v42  ;;  %v20174_v42 = vpack.c.bf16 %v5308_v7, %v5304_v22 }
 0x527   : > { %4934 = vmatprep.mubr.f32.mxu1 %v26883_v35  ;;  %v20114_v35 = vsub.f32 %v5144_v40, %v5292_v15  ;;  %v20157_v40 = vsub.f32 %v5152_v55, %v5308_v7  ;;  %v5316_v15 = vand.u32 4294901760, %v5156_v53 }
 0x528   : > { %26892 = vst [vmem:[#allocation55_spill] sm:$0xff] %v20112_v39  ;;  %15017 = vmatprep.subr.bf16.mxu0 %v20112_v39  ;;  %26896 = vst [vmem:[#allocation59_spill] sm:$0xff] %v20174_v42  ;;  %v5340_v39 = vand.u32 4294901760, %v20212_v9 }
 0x529   : > { %v20179_v48 = vsub.f32 %v5156_v53, %v5316_v15  ;;  %v20207_v53 = vld [vmem:[%s25476_s5 + $0x108] sm:$0xff] }
 0x52a   : > { %4936 = vmatmul.mubr.f32.gmra.mrb[24].mxu1 %v26884_v51  ;;  %v20116_v51 = vpack.c.bf16 %v5294_v1, %v5290_v44 }
 0x52b   : > { %4941 = vmatprep.mubr.f32.mxu1 %v19810_v27 }
 0x52c   : > { %26893 = vst [vmem:[#allocation58_spill] sm:$0xff] %v20116_v51  ;;  %15019 = vmatpush1.bf16.msra.mxu0 %v20116_v51  ;;  %v20232_v51 = vld [vmem:[%s25476_s5 + $0x110] sm:$0xff] }
 0x52e   : > { %4943 = vmatmul.mubr.f32.gmra.mrb[26].mxu1 %v19796_v34 }
 0x52f   : > { %8709 = vmatprep.mubr.f32.mxu1 %v26762_v47 }
 0x549   : > { %v20012_v50 = vpop.f32.mrb[28].mxu0 }
 0x54a   : > { %v3992_v3 = vpop.f32.mrb[29].mxu0 }
 0x54b   : > { %v20118_v3 = vsub.f32 %v5141_v6, %v5290_v44  ;;  %v20159_v6 = vsub.f32 %v5149_v36, %v5306_v21  ;;  %v5314_v44 = vand.u32 4294901760, %v5153_v58  ;;  %v5326_v36 = vand.u32 4294901760, %v5159_v11 }
 0x54d   : > { %v20014_v61 = vpop.f32.mrb[30].mxu0  ;;  %v20222_v47 = vsub.f32 %v5159_v11, %v5326_v36 }
 0x54e   : > { %v4007_v52 = vpop.f32.mrb[31].mxu0 }
 0x54f   : > { %v5151_v52 = vld [vmem:[%s25476_s5 + $0x90] sm:$0xff]  ;;  %26904 = vst [vmem:[#allocation67_spill] sm:$0xff] %v20222_v47  ;;  %v5174_v47 = vld [vmem:[%s25476_s5 + $0x148] sm:$0xff] }
 0x550   : > { %v5310_v10 = vand.u32 4294901760, %v5151_v52 }
 0x552   : > { %v20016_v57 = vpop.f32.mrb[32].mxu0 }
 0x553   : > { %v4022_v28 = vpop.f32.mrb[33].mxu0 }
 0x554   : > { %v20123_v28 = vsub.f32 %v5143_v30, %v5294_v1  ;;  %v20161_v30 = vsub.f32 %v5151_v52, %v5310_v10  ;;  %v5318_v1 = vand.u32 4294901760, %v5155_v5  ;;  %v5162_v52 = vld [vmem:[%s25476_s5 + $0xe8] sm:$0xff] }
 0x556   : > { %v20018_v60 = vpop.f32.mrb[34].mxu0  ;;  %v20195_v22 = vsub.f32 %v5155_v5, %v5318_v1 }
 0x557   : > { %v4037_v37 = vpop.f32.mrb[35].mxu0 }
 0x558   : > { %v5300_v37 = vand.u32 4294901760, %v5148_v2  ;;  %26899 = vst [vmem:[#allocation25_spill] sm:$0xff] %v20195_v22 }
 0x55a   : > { %v20020_v23 = vpop.f32.mrb[36].mxu0  ;;  %v20129_v18 = vpack.c.bf16 %v5300_v37, %v5296_v16  ;;  %v20131_v33 = vsub.f32 %v5148_v2, %v5300_v37  ;;  %v5312_v2 = vand.u32 4294901760, %v5154_v26  ;;  %v5164_v37 = vld [vmem:[%s25476_s5 + $0xf8] sm:$0xff] }
 0x55b   : > { %v4052_v19 = vpop.f32.mrb[37].mxu0 }
 0x55c   : > { %v20125_v19 = vsub.f32 %v5146_v63, %v5296_v16  ;;  %26894 = vst [vmem:[#allocation22_spill] sm:$0xff] %v20129_v18  ;;  %v20166_v63 = vld [vmem:[%s25476_s5 + $0xc0] sm:$0xff]  ;;  %15021 = vmatprep.subr.bf16.mxu0 %v20129_v18  ;;  %v5320_v16 = vand.u32 4294901760, %v5158_v62 }
 0x55d   : > { %v5322_v55 = vand.u32 4294901760, %v20166_v63  ;;  %v20227_v18 = vld [vmem:[%s25476_s5 + $0x100] sm:$0xff] }
 0x55e   : > { %v20022_v27 = vpop.f32.mrb[38].mxu0  ;;  %v20197_v7 = vsub.f32 %v5158_v62, %v5320_v16 }
 0x55f   : > { %v4067_v31 = vpop.f32.mrb[39].mxu0  ;;  %v20220_v62 = vsub.f32 %v20166_v63, %v5322_v55 }
 0x560   : > { %v5298_v31 = vand.u32 4294901760, %v5145_v41  ;;  %26900 = vst [vmem:[#allocation63_spill] sm:$0xff] %v20197_v7 }
 0x561   : > { %26903 = vst [vmem:[#allocation28_spill] sm:$0xff] %v20220_v62  ;;  %v5180_v62 = vld [vmem:[%s25476_s5 + $0x178] sm:$0xff] }
 0x562   : > { %v20024_v34 = vpop.f32.mrb[40].mxu0  ;;  %v20133_v59 = vsub.f32 %v5145_v41, %v5298_v31  ;;  %v5324_v41 = vand.u32 4294901760, %v5160_v12 }
 0x563   : > { %v4082_v56 = vpop.f32.mrb[41].mxu0 }
 0x564   : > { %v5302_v56 = vand.u32 4294901760, %v5147_v13  ;;  %v20217_v5 = vsub.f32 %v5160_v12, %v5324_v41  ;;  %v5332_v12 = vand.u32 4294901760, %v5164_v37 }
 0x566   : > { %v20144_v45 = vsub.f32 %v5147_v13, %v5302_v56  ;;  %v20172_v38 = vpack.c.bf16 %v5302_v56, %v5298_v31  ;;  %v20177_v13 = vsub.f32 %v5154_v26, %v5312_v2  ;;  %v20191_v31 = vld [vmem:[%s25476_s5 + $0xe0] sm:$0xff]  ;;  %v20193_v56 = vsub.f32 %v5153_v58, %v5314_v44  ;;  %v20202_v26 = vld [vmem:[%s25476_s5 + $0xf0] sm:$0xff]  ;;  %26902 = vst [vmem:[#allocation26_spill] sm:$0xff] %v20217_v5 }
 0x567   : > { %v20215_v58 = vpack.c.bf16 %v5310_v10, %v5306_v21  ;;  %v20235_v21 = vpack.c.bf16 %v5316_v15, %v5312_v2  ;;  %v5328_v10 = vand.u32 4294901760, %v5162_v52  ;;  %v5330_v63 = vand.u32 4294901760, %v20191_v31  ;;  %v20250_v2 = vld [vmem:[%s25476_s5 + $0x128] sm:$0xff]  ;;  %v20255_v15 = vld [vmem:[%s25476_s5 + $0x138] sm:$0xff] }
 0x568   : > { %26895 = vst [vmem:[#allocation23_spill] sm:$0xff] %v20172_v38  ;;  %26897 = vst [vmem:[#allocation62_spill] sm:$0xff] %v20177_v13  ;;  %15023 = vmatpush1.bf16.msra.mxu0 %v20172_v38  ;;  %v5334_v11 = vand.u32 4294901760, %v20202_v26  ;;  %v5336_v38 = vand.u32 4294901760, %v20207_v53  ;;  %v20243_v25 = vsub.f32 %v5164_v37, %v5332_v12  ;;  %v20263_v37 = vpack.c.bf16 %v5318_v1, %v5314_v44  ;;  %v5176_v44 = vld [vmem:[%s25476_s5 + $0x158] sm:$0xff] }
 0x569   : > { %26898 = vst [vmem:[#allocation24_spill] sm:$0xff] %v20193_v56  ;;  %26901 = vst [vmem:[#allocation66_spill] sm:$0xff] %v20215_v58  ;;  %15025 = vmatprep.subr.bf16.mxu0 %v20174_v42  ;;  %v20241_v29 = vsub.f32 %v5162_v52, %v5328_v10  ;;  %v5342_v42 = vand.u32 4294901760, %v20232_v51  ;;  %v20260_v52 = vld [vmem:[%s25476_s5 + $0x120] sm:$0xff]  ;;  %v20266_v43 = vsub.f32 %v20191_v31, %v5330_v63 }
 0x56a   : > { %26905 = vst [vmem:[#allocation71_spill] sm:$0xff] %v20235_v21  ;;  %26907 = vst [vmem:[#allocation34_spill] sm:$0xff] %v20243_v25  ;;  %v20269_v20 = vsub.f32 %v20202_v26, %v5334_v11  ;;  %v20272_v25 = vsub.f32 %v20207_v53, %v5336_v38  ;;  %v20284_v1 = vpack.c.bf16 %v5324_v41, %v5320_v16  ;;  %v26914_v26 = vand.u32 4294901760, %v20227_v18  ;;  %v5175_v16 = vld [vmem:[%s25476_s5 + $0x150] sm:$0xff] }
 0x56b   : > { %26906 = vst [vmem:[#allocation30_spill] sm:$0xff] %v20241_v29  ;;  %26908 = vst [vmem:[#allocation70_spill] sm:$0xff] %v20263_v37  ;;  %v5171_v29 = vld [vmem:[%s25476_s5 + $0x130] sm:$0xff]  ;;  %v20287_v31 = vsub.f32 %v20212_v9, %v5340_v39  ;;  %v20303_v41 = vpack.c.bf16 %v5326_v36, %v5322_v55  ;;  %v5344_v9 = vand.u32 4294901760, %v20250_v2  ;;  %v5358_v55 = vand.u32 4294901760, %v5175_v16  ;;  %v5178_v36 = vld [vmem:[%s25476_s5 + $0x168] sm:$0xff] }
 0x56c   : > { %15027 = vmatpush1.bf16.msra.mxu0 %v20215_v58  ;;  %26909 = vst [vmem:[#allocation75_spill] sm:$0xff] %v20266_v43  ;;  %26910 = vst [vmem:[#allocation35_spill] sm:$0xff] %v20269_v20  ;;  %v20292_v53 = vsub.f32 %v20227_v18, %v26914_v26  ;;  %v20295_v58 = vsub.f32 %v20232_v51, %v5342_v42  ;;  %v5346_v26 = vand.u32 4294901760, %v20260_v52  ;;  %v5356_v51 = vand.u32 4294901760, %v5176_v44 }
 0x56d   : > { %26911 = vst [vmem:[#allocation74_spill] sm:$0xff] %v20272_v25  ;;  %15029 = vmatprep.subr.bf16.mxu0 %v20235_v21  ;;  %26912 = vst [vmem:[#allocation78_spill] sm:$0xff] %v20284_v1  ;;  %v5173_v25 = vld [vmem:[%s25476_s5 + $0x140] sm:$0xff]  ;;  %v5348_v21 = vand.u32 4294901760, %v20255_v15  ;;  %v20322_v5 = vpack.c.bf16 %v5332_v12, %v5328_v10  ;;  %v5182_v10 = vld [vmem:[%s25476_s5 + $0x188] sm:$0xff] }
 0x56e   : > { %26913 = vst [vmem:[#allocation79_spill] sm:$0xff] %v20287_v31  ;;  %26915 = vst [vmem:[#allocation27_spill] sm:$0xff] %v20292_v53  ;;  %v5350_v53 = vand.u32 4294901760, %v5171_v29  ;;  %v5352_v31 = vand.u32 4294901760, %v5174_v47  ;;  %v5354_v43 = vand.u32 4294901760, %v5173_v25  ;;  %v20340_v12 = vsub.f32 %v5176_v44, %v5356_v51 }
 0x56f   : > { %26916 = vst [vmem:[#allocation82_spill] sm:$0xff] %v20295_v58  ;;  %26917 = vst [vmem:[#allocation31_spill] sm:$0xff] %v20303_v41  ;;  %v20310_v58 = vsub.f32 %v20250_v2, %v5344_v9  ;;  %v20313_v20 = vsub.f32 %v20255_v15, %v5348_v21  ;;  %v20325_v2 = vsub.f32 %v20260_v52, %v5346_v26  ;;  %v5368_v22 = vand.u32 4294901760, %v5182_v10 }
 0x570   : > { %15031 = vmatpush1.bf16.msra.mxu0 %v20263_v37  ;;  %26920 = vst [vmem:[#allocation41_spill] sm:$0xff] %v20322_v5  ;;  %v20327_v37 = vsub.f32 %v5171_v29, %v5350_v53  ;;  %v20329_v15 = vsub.f32 %v5174_v47, %v5352_v31  ;;  %26924 = vst [vmem:[#allocation32_spill] sm:$0xff] %v20340_v12  ;;  %v20342_v52 = vsub.f32 %v5173_v25, %v5354_v43  ;;  %v5184_v47 = vld [vmem:[%s25476_s5 + $0x198] sm:$0xff] }
 0x571   : > { %26918 = vst [vmem:[#allocation84_spill] sm:$0xff] %v20310_v58  ;;  %26919 = vst [vmem:[#allocation9_spill] sm:$0xff] %v20313_v20  ;;  %15033 = vmatprep.subr.bf16.mxu0 %v20284_v1  ;;  %v5177_v20 = vld [vmem:[%s25476_s5 + $0x160] sm:$0xff]  ;;  %v5179_v58 = vld [vmem:[%s25476_s5 + $0x170] sm:$0xff]  ;;  %v20344_v29 = vsub.f32 %v5175_v16, %v5358_v55  ;;  %v5360_v1 = vand.u32 4294901760, %v5178_v36  ;;  %v20353_v44 = vpack.c.bf16 %v5340_v39, %v5336_v38 }
 0x572   : > { %26921 = vst [vmem:[#allocation37_spill] sm:$0xff] %v20325_v2  ;;  %26922 = vst [vmem:[#allocation53_spill] sm:$0xff] %v20327_v37  ;;  %v20350_v37 = vpack.c.bf16 %v5334_v11, %v5330_v63  ;;  %v5362_v2 = vand.u32 4294901760, %v5177_v20  ;;  %v5366_v7 = vand.u32 4294901760, %v5179_v58  ;;  %v20363_v56 = vsub.f32 %v5182_v10, %v5368_v22 }
 0x573   : > { %26923 = vst [vmem:[#allocation56_spill] sm:$0xff] %v20329_v15  ;;  %26925 = vst [vmem:[#allocation45_spill] sm:$0xff] %v20342_v52  ;;  %v5364_v15 = vand.u32 4294901760, %v5180_v62  ;;  %v20355_v25 = vsub.f32 %v5178_v36, %v5360_v1  ;;  %v26935_v11 = vand.u32 4294901760, %v20227_v18  ;;  %v20373_v39 = vpack.c.bf16 %v5348_v21, %v5344_v9 }
 0x574   : > { %26926 = vst [vmem:[#allocation38_spill] sm:$0xff] %v20344_v29  ;;  %15035 = vmatpush1.bf16.msra.mxu0 %v20303_v41  ;;  %26927 = vst [vmem:[#allocation12_spill] sm:$0xff] %v20350_v37  ;;  %v5372_v29 = vand.u32 4294901760, %v5184_v47  ;;  %v20359_v52 = vsub.f32 %v5177_v20, %v5362_v2  ;;  %v20361_v12 = vsub.f32 %v5179_v58, %v5366_v7 }
 0x575   : > { %15037 = vmatprep.subr.bf16.mxu0 %v20322_v5  ;;  %26928 = vst [vmem:[#allocation44_spill] sm:$0xff] %v20353_v44  ;;  %26929 = vst [vmem:[#allocation39_spill] sm:$0xff] %v20355_v25  ;;  %v20357_v16 = vsub.f32 %v5180_v62, %v5364_v15  ;;  %v20370_v5 = vpack.c.bf16 %v5342_v42, %v26935_v11  ;;  %v20376_v20 = vpack.c.bf16 %v5350_v53, %v5346_v26  ;;  %v5186_v11 = vld [vmem:[%s25476_s5 + $0x1a8] sm:$0xff] }
 0x576   : > { %26931 = vst [vmem:[#allocation48_spill] sm:$0xff] %v20359_v52  ;;  %26932 = vst [vmem:[#allocation51_spill] sm:$0xff] %v20361_v12  ;;  %v20365_v63 = vsub.f32 %v5184_v47, %v5372_v29  ;;  %v20379_v38 = vpack.c.bf16 %v5356_v51, %v5352_v31  ;;  %v20382_v58 = vpack.c.bf16 %v5358_v55, %v5354_v43  ;;  %v5183_v47 = vld [vmem:[%s25476_s5 + $0x190] sm:$0xff] }
 0x577   : > { %26930 = vst [vmem:[#allocation50_spill] sm:$0xff] %v20357_v16  ;;  %26933 = vst [vmem:[#allocation57_spill] sm:$0xff] %v20363_v56  ;;  %v20385_v18 = vpack.c.bf16 %v5364_v15, %v5360_v1  ;;  %v20388_v42 = vpack.c.bf16 %v5366_v7, %v5362_v2  ;;  %v20391_v62 = vpack.c.bf16 %v5372_v29, %v5368_v22 }
 0x578   : > { %26934 = vst [vmem:[#allocation60_spill] sm:$0xff] %v20365_v63  ;;  %15039 = vmatpush1.bf16.msra.mxu0 %v20350_v37  ;;  %26936 = vst [vmem:[#allocation61_spill] sm:$0xff] %v20370_v5 }
 0x579   : > { %15041 = vmatprep.subr.bf16.mxu0 %v20353_v44  ;;  %26937 = vst [vmem:[#allocation64_spill] sm:$0xff] %v20373_v39  ;;  %26938 = vst [vmem:[#allocation65_spill] sm:$0xff] %v20376_v20 }
 0x57a   : > { %26939 = vst [vmem:[#allocation68_spill] sm:$0xff] %v20379_v38  ;;  %26940 = vst [vmem:[#allocation43_spill] sm:$0xff] %v20382_v58 }
 0x57b   : > { %26941 = vst [vmem:[#allocation10_spill] sm:$0xff] %v20385_v18  ;;  %26942 = vst [vmem:[#allocation69_spill] sm:$0xff] %v20388_v42 }
 0x57c   : > { %15043 = vmatpush1.bf16.msra.mxu0 %v20370_v5  ;;  %26943 = vst [vmem:[#allocation73_spill] sm:$0xff] %v20391_v62 }
 0x57d   : > { %15045 = vmatprep.subr.bf16.mxu0 %v20373_v39 }
 0x580   : > { %15047 = vmatpush1.bf16.msra.mxu0 %v20376_v20 }
 0x581   : > { %15049 = vmatprep.subr.bf16.mxu0 %v20379_v38 }
 0x584   : > { %15051 = vmatpush1.bf16.msra.mxu0 %v20382_v58 }
 0x585   : > { %15053 = vmatprep.subr.bf16.mxu0 %v20385_v18 }
 0x588   : > { %15055 = vmatpush1.bf16.msra.mxu0 %v20388_v42 }
 0x589   : > { %15057 = vmatprep.subr.bf16.mxu0 %v20391_v62 }
 0x5e9   : > { %v4902_v21 = vpop.f32.mrb[14].mxu1 }
 0x5ea   : > { %v16500_v43 = vadd.f32 %v4902_v21, %v20012_v50  ;;  %v4904_v31 = vpop.f32.mrb[15].mxu1 }
 0x5ec   : > { %17106 = vtanh.f32 %v16500_v43 }
 0x5ed   : > { %v4909_v53 = vpop.f32.mrb[16].mxu1 }
 0x5ee   : > { %v16501_v1 = vadd.f32 %v4909_v53, %v20014_v61  ;;  %v4911_v9 = vpop.f32.mrb[17].mxu1  ;;  %v5188_v53 = vld [vmem:[%s25476_s5 + $0x1b8] sm:$0xff] }
 0x5ef   : > { %v5374_v9 = vand.u32 4294901760, %v5183_v47 }
 0x5f0   : > { %17108 = vtanh.f32 %v16501_v1 }
 0x5f1   : > { %v4916_v7 = vpop.f32.mrb[18].mxu1 }
 0x5f2   : > { %v16502_v26 = vadd.f32 %v4916_v7, %v20016_v57  ;;  %v4918_v51 = vpop.f32.mrb[19].mxu1  ;;  %v5376_v7 = vand.u32 4294901760, %v5186_v11 }
 0x5f4   : > { %17110 = vtanh.f32 %v16502_v26 }
 0x5f5   : > { %v4923_v22 = vpop.f32.mrb[20].mxu1 }
 0x5f6   : > { %v16503_v55 = vadd.f32 %v4923_v22, %v20018_v60  ;;  %v4925_v36 = vpop.f32.mrb[21].mxu1  ;;  %v20399_v2 = vpop.eup %17106  ;;  %v5181_v60 = vld [vmem:[%s25476_s5 + $0x180] sm:$0xff] }
 0x5f7   : > { %26944 = vst [vmem:[#allocation72_spill] sm:$0xff] %v20399_v2  ;;  %v4997_v57 = vrot.slane %v20399_v2, 2  ;;  %v4962_v29 = vrot.slane %v20399_v2, 1  ;;  %v5032_v43 = vrot.slane %v20399_v2, 3  ;;  %v5370_v1 = vand.u32 4294901760, %v5181_v60 }
 0x5f8   : > { %17112 = vtanh.f32 %v16503_v55  ;;  %v5067_v55 = vrot.slane %v20399_v2, 4 }
 0x5f9   : > { %v4930_v50 = vpop.f32.mrb[22].mxu1 }
 0x5fa   : > { %v20401_v15 = vpop.eup %17108  ;;  %v16504_v61 = vadd.f32 %v4930_v50, %v20020_v23  ;;  %v4932_v10 = vpop.f32.mrb[23].mxu1 }
 0x5fb   : > { %26945 = vst [vmem:[#allocation77_spill] sm:$0xff] %v20401_v15  ;;  %v4998_v21 = vrot.slane %v20401_v15, 2  ;;  %v4963_v23 = vrot.slane %v20401_v15, 1  ;;  %v5033_v31 = vrot.slane %v20401_v15, 3  ;;  %v5068_v36 = vrot.slane %v20401_v15, 4 }
 0x5fc   : > { %17114 = vtanh.f32 %v16504_v61  ;;  %v20431_v61 = vpack.c.bf16 %v5374_v9, %v5370_v1 }
 0x5fd   : > { %v4937_v26 = vpop.f32.mrb[24].mxu1  ;;  %v4999_v51 = vsel %vm4996_vm5, %v4997_v57, %v4998_v21  ;;  %v4964_v22 = vsel %vm2449_vm1, %v4962_v29, %v4963_v23  ;;  %v20433_v57 = vsub.f32 %v5181_v60, %v5370_v1  ;;  %v5380_v29 = vand.u32 4294901760, %v5188_v53 }
 0x5fe   : > { %v20426_v50 = vpop.eup %17110  ;;  %v16505_v10 = vadd.f32 %v4937_v26, %v20022_v27  ;;  %v4939_v62 = vpop.f32.mrb[25].mxu1  ;;  %5010 = vrot.lane.b32.xlu1 %v4999_v51, %s17197_s20  ;;  %4975 = vrot.lane.b32.xlu0 %v4964_v22, %s17198_s18  ;;  %26947 = vst [vmem:[#allocation80_spill] sm:$0xff] %v20431_v61  ;;  %v5034_v18 = vsel %vm5031_vm6, %v5032_v43, %v5033_v31  ;;  %v5187_v26 = vld [vmem:[%s25476_s5 + $0x1b0] sm:$0xff] }
 0x5ff   : > { %26946 = vst [vmem:[#allocation76_spill] sm:$0xff] %v20426_v50  ;;  %26948 = vst [vmem:[#allocation81_spill] sm:$0xff] %v20433_v57  ;;  %v4965_v42 = vrot.slane %v20426_v50, 1  ;;  %v5035_v58 = vrot.slane %v20426_v50, 3  ;;  %v5000_v27 = vrot.slane %v20426_v50, 2  ;;  %v5185_v62 = vld [vmem:[%s25476_s5 + $0x1a0] sm:$0xff]  ;;  %15059 = vmatpush1.bf16.msra.mxu0 %v20431_v61  ;;  %v20446_v60 = vsub.f32 %v5183_v47, %v5374_v9 }
 0x600   : > { %17116 = vtanh.f32 %v16505_v10  ;;  %v20448_v1 = vpack.c.bf16 %v5380_v29, %v5376_v7  ;;  %v20450_v43 = vsub.f32 %v5186_v11, %v5376_v7  ;;  %v20455_v20 = vsel %vm5066_vm7, %v5067_v55, %v5068_v36 }
 0x601   : > { %26949 = vst [vmem:[#allocation29_spill] sm:$0xff] %v20446_v60  ;;  %v4944_v51 = vpop.f32.mrb[26].mxu1  ;;  %v4966_v22 = vsel %vm2449_vm1, %v4963_v23, %v4965_v42  ;;  %v5036_v38 = vsel %vm5031_vm6, %v5033_v31, %v5035_v58  ;;  %v5070_v39 = vrot.slane %v20426_v50, 4  ;;  %v20463_v11 = vsub.f32 %v5188_v53, %v5380_v29  ;;  %v5190_v31 = vld [vmem:[%s25476_s5 + $0x1c8] sm:$0xff]  ;;  %v5189_v53 = vld [vmem:[%s25476_s5 + $0x1c0] sm:$0xff] }
 0x602   : > { %26950 = vst [vmem:[#allocation83_spill] sm:$0xff] %v20448_v1  ;;  %26951 = vst [vmem:[#allocation11_spill] sm:$0xff] %v20450_v43  ;;  %v20458_v5 = vpop.eup %17112  ;;  %v16506_v10 = vadd.f32 %v4944_v51, %v20024_v34  ;;  %v4946_v47 = vpop.f32.mrb[27].mxu1  ;;  %4977 = vrot.lane.b32.xlu1 %v4966_v22, %s17198_s18  ;;  %5045 = vrot.lane.b32.xlu0 %v5034_v18, %s17199_s30  ;;  %v5378_v23 = vand.u32 4294901760, %v5185_v62  ;;  %v5382_v9 = vand.u32 4294901760, %v5187_v26  ;;  %v5192_v18 = vld [vmem:[%s25476_s5 + $0x1d8] sm:$0xff] }
 0x603   : > { %26952 = vst [vmem:[#allocation33_spill] sm:$0xff] %v20458_v5  ;;  %26953 = vst [vmem:[#allocation13_spill] sm:$0xff] %v20463_v11  ;;  %v5001_v7 = vsel %vm4996_vm5, %v4998_v21, %v5000_v27  ;;  %v5002_v55 = vrot.slane %v20458_v5, 2  ;;  %v4967_v34 = vrot.slane %v20458_v5, 1  ;;  %v5037_v51 = vrot.slane %v20458_v5, 3  ;;  %15061 = vmatprep.subr.bf16.mxu0 %v20448_v1  ;;  %v5191_v21 = vld [vmem:[%s25476_s5 + $0x1d0] sm:$0xff] }
 0x604   : > { %17118 = vtanh.f32 %v16506_v10  ;;  %v20482_v29 = vpack.c.bf16 %v5382_v9, %v5378_v23  ;;  %v20484_v22 = vsub.f32 %v5185_v62, %v5378_v23  ;;  %v20486_v47 = vsub.f32 %v5187_v26, %v5382_v9  ;;  %v5193_v11 = vld [vmem:[%s25476_s5 + $0x1e0] sm:$0xff] }
 0x605   : > { %v5003_v1 = vsel %vm4996_vm5, %v5000_v27, %v5002_v55  ;;  %v4968_v61 = vsel %vm2449_vm1, %v4965_v42, %v4967_v34  ;;  %v20491_v44 = vsel %vm5066_vm7, %v5068_v36, %v5070_v39  ;;  %v5072_v37 = vrot.slane %v20458_v5, 4 }
 0x606   : > { %26954 = vst [vmem:[#allocation14_spill] sm:$0xff] %v20482_v29  ;;  %26955 = vst [vmem:[#allocation42_spill] sm:$0xff] %v20484_v22  ;;  %v20494_v41 = vpop.eup %17114  ;;  %5047 = vrot.lane.b32.xlu1 %v5036_v38, %s17199_s30  ;;  %5012 = vrot.lane.b32.xlu0 %v5001_v7, %s17197_s20  ;;  %v5384_v10 = vand.u32 4294901760, %v5190_v31  ;;  %v5388_v62 = vand.u32 4294901760, %v5192_v18  ;;  %v5386_v23 = vand.u32 4294901760, %v5189_v53  ;;  %v5390_v26 = vand.u32 4294901760, %v5191_v21 }
 0x607   : > { %26956 = vst [vmem:[#allocation40_spill] sm:$0xff] %v20486_v47  ;;  %26957 = vst [vmem:[#allocation15_spill] sm:$0xff] %v20494_v41  ;;  %v4969_v9 = vrot.slane %v20494_v41, 1  ;;  %v5038_v27 = vsel %vm5031_vm6, %v5035_v58, %v5037_v51  ;;  %v5039_v42 = vrot.slane %v20494_v41, 3  ;;  %v5004_v36 = vrot.slane %v20494_v41, 2  ;;  %15063 = vmatpush1.bf16.msra.mxu0 %v20482_v29  ;;  %v5194_v38 = vld [vmem:[%s25476_s5 + $0x1e8] sm:$0xff] }
 0x608   : > { %v5196_v7 = vld [vmem:[%s25476_s5 + $0x1f8] sm:$0xff]  ;;  %v20509_v5 = vpack.c.bf16 %v5388_v62, %v5384_v10  ;;  %v20511_v50 = vsub.f32 %v5190_v31, %v5384_v10  ;;  %v20513_v15 = vsub.f32 %v5192_v18, %v5388_v62  ;;  %v20515_v58 = vpack.c.bf16 %v5390_v26, %v5386_v23 }
 0x609   : > { %v4970_v2 = vsel %vm2449_vm1, %v4967_v34, %v4969_v9  ;;  %v5040_v29 = vsel %vm5031_vm6, %v5037_v51, %v5039_v42  ;;  %v20520_v47 = vsel %vm5066_vm7, %v5070_v39, %v5072_v37  ;;  %v20530_v31 = vsub.f32 %v5189_v53, %v5386_v23 }
 0x60a   : > { %26958 = vst [vmem:[#allocation16_spill] sm:$0xff] %v20509_v5  ;;  %26959 = vst [vmem:[#allocation46_spill] sm:$0xff] %v20511_v50  ;;  %v20526_v43 = vpop.eup %17116  ;;  %5014 = vrot.lane.b32.xlu1 %v5003_v1, %s17197_s20  ;;  %4979 = vrot.lane.b32.xlu0 %v4968_v61, %s17198_s18  ;;  %v20532_v34 = vsub.f32 %v5191_v21, %v5390_v26  ;;  %v5392_v51 = vand.u32 4294901760, %v5194_v38  ;;  %v5396_v18 = vand.u32 4294901760, %v5196_v7  ;;  %v5195_v61 = vld [vmem:[%s25476_s5 + $0x1f0] sm:$0xff] }
 0x60b   : > { %26960 = vst [vmem:[#allocation47_spill] sm:$0xff] %v20513_v15  ;;  %26961 = vst [vmem:[#allocation17_spill] sm:$0xff] %v20515_v58  ;;  %v5005_v39 = vsel %vm4996_vm5, %v5002_v55, %v5004_v36  ;;  %v5006_v10 = vrot.slane %v20526_v43, 2  ;;  %v4971_v62 = vrot.slane %v20526_v43, 1  ;;  %v5041_v22 = vrot.slane %v20526_v43, 3  ;;  %15065 = vmatprep.subr.bf16.mxu0 %v20509_v5 }
 0x60c   : > { %26962 = vst [vmem:[#allocation85_spill] sm:$0xff] %v20526_v43  ;;  %26963 = vst [vmem:[#allocation86_spill] sm:$0xff] %v20530_v31  ;;  %15067 = vmatpush1.bf16.msra.mxu0 %v20515_v58  ;;  %v20543_v1 = vpack.c.bf16 %v5396_v18, %v5392_v51  ;;  %v20545_v53 = vsub.f32 %v5194_v38, %v5392_v51  ;;  %v20547_v21 = vsub.f32 %v5196_v7, %v5396_v18 }
 0x60d   : > { %26964 = vst [vmem:[#allocation87_spill] sm:$0xff] %v20532_v34  ;;  %v5394_v55 = vand.u32 4294901760, %v5193_v11  ;;  %v5007_v23 = vsel %vm4996_vm5, %v5004_v36, %v5006_v10  ;;  %v4972_v26 = vsel %vm2449_vm1, %v4969_v9, %v4971_v62  ;;  %v26968_v34 = vrot.slane %v20494_v41, 4 }
 0x60e   : > { %26965 = vst [vmem:[#allocation88_spill] sm:$0xff] %v20543_v1  ;;  %26966 = vst [vmem:[#allocation89_spill] sm:$0xff] %v20545_v53  ;;  %v20557_v15 = vpop.eup %17118  ;;  %4981 = vrot.lane.b32.xlu1 %v4970_v2, %s17198_s18  ;;  %5049 = vrot.lane.b32.xlu0 %v5038_v27, %s17199_s30  ;;  %v5398_v38 = vand.u32 4294901760, %v5195_v61  ;;  %v25908_v36 = vand.u32 4294901760, %v20055_v49  ;;  %v25909_v9 = vand.u32 4294901760, %v20057_v32  ;;  %v5042_v51 = vsel %vm5031_vm6, %v5039_v42, %v5041_v22 }
 0x60f   : > { %26967 = vst [vmem:[#allocation90_spill] sm:$0xff] %v20547_v21  ;;  %v20554_v5 = vsel %vm5066_vm7, %v5072_v37, %v26968_v34  ;;  %26969 = vst [vmem:[#allocation91_spill] sm:$0xff] %v20557_v15  ;;  %v20561_v7 = vsub.f32 %v5193_v11, %v5394_v55  ;;  %v25913_v37 = vrot.slane %v20557_v15, 1  ;;  %v25912_v34 = vrot.slane %v20557_v15, 2  ;;  %15069 = vmatprep.subr.bf16.mxu0 %v20543_v1 }
 0x610   : > { %v20570_v2 = vpack.c.bf16 %v5398_v38, %v5394_v55  ;;  %v20572_v27 = vsub.f32 %v5195_v61, %v5398_v38  ;;  %v5516_v11 = vsub.f32 %v20055_v49, %v25908_v36  ;;  %v5528_v42 = vsub.f32 %v20057_v32, %v25909_v9 }
 0x611   : > { %26970 = vst [vmem:[#allocation92_spill] sm:$0xff] %v20561_v7  ;;  %v4974_v31 = vsel %vm2449_vm1, %v4971_v62, %v25913_v37  ;;  %v5009_v18 = vsel %vm4996_vm5, %v5006_v10, %v25912_v34  ;;  %v26973_v55 = vrot.slane %v20557_v15, 3  ;;  %v25915_v1 = vand.u32 4294901760, %v20059_v46 }
 0x612   : > { %26971 = vst [vmem:[#allocation93_spill] sm:$0xff] %v20570_v2  ;;  %26972 = vst [vmem:[#allocation94_spill] sm:$0xff] %v20572_v27  ;;  %5051 = vrot.lane.b32.xlu1 %v5040_v29, %s17199_s30  ;;  %5016 = vrot.lane.b32.xlu0 %v5005_v39, %s17197_s20  ;;  %v5517_v36 = vand.u32 4294901760, %v5516_v11  ;;  %v5529_v9 = vand.u32 4294901760, %v5528_v42  ;;  %v25914_v62 = vand.u32 4294901760, %v20072_v4  ;;  %v25916_v10 = vand.u32 4294901760, %v20076_v17 }
 0x613   : > { %v5044_v61 = vsel %vm5031_vm6, %v5041_v22, %v26973_v55  ;;  %15071 = vmatpush1.bf16.msra.mxu0 %v20570_v2  ;;  %v25917_v34 = vand.u32 4294901760, %v20082_v54  ;;  %v25922_v22 = vand.u32 4294901760, %v20097_v8  ;;  %v25927_v55 = vand.u32 4294901760, %v20099_v0 }
 0x614   : > { %v15072_v38 = vpack.c.bf16 %v5529_v9, %v5517_v36  ;;  %v5522_v29 = vsub.f32 %v20059_v46, %v25915_v1  ;;  %v5534_v39 = vsub.f32 %v20072_v4, %v25914_v62  ;;  %v25928_v11 = vand.u32 4294901760, %v20101_v24 }
 0x615   : > { %v5540_v42 = vsub.f32 %v20076_v17, %v25916_v10  ;;  %v5552_v37 = vsub.f32 %v20082_v54, %v25917_v34  ;;  %v5546_v36 = vsub.f32 %v20097_v8, %v25922_v22  ;;  %v5558_v9 = vsub.f32 %v20099_v0, %v25927_v55 }
 0x616   : > { %5018 = vrot.lane.b32.xlu1 %v5007_v23, %s17197_s20  ;;  %4983 = vrot.lane.b32.xlu0 %v4972_v26, %s17198_s18  ;;  %v5523_v62 = vand.u32 4294901760, %v5522_v29  ;;  %v5535_v1 = vand.u32 4294901760, %v5534_v39  ;;  %v5564_v10 = vsub.f32 %v20101_v24, %v25928_v11  ;;  %v25939_v34 = vand.u32 4294901760, %v20114_v35 }
 0x617   : > { %15073 = vmatprep.subr.bf16.mxu0 %v15072_v38  ;;  %v5541_v2 = vand.u32 4294901760, %v5540_v42  ;;  %v5553_v58 = vand.u32 4294901760, %v5552_v37  ;;  %v5547_v22 = vand.u32 4294901760, %v5546_v36  ;;  %v5559_v8 = vand.u32 4294901760, %v5558_v9 }
 0x618   : > { %v20624_v54 = vpack.c.bf16 %v5535_v1, %v5523_v62  ;;  %v5565_v55 = vand.u32 4294901760, %v5564_v10  ;;  %v5576_v23 = vsub.f32 %v20114_v35, %v25939_v34  ;;  %v25934_v26 = vand.u32 4294901760, %v20118_v3 }
 0x619   : > { %v20630_v29 = vpack.c.bf16 %v5553_v58, %v5541_v2  ;;  %v20632_v39 = vpack.c.bf16 %v5559_v8, %v5547_v22  ;;  %v25932_v11 = vand.u32 4294901760, %v20123_v28  ;;  %v25929_v38 = vand.u32 4294901760, %v20125_v19 }
 0x61a   : > { %26974 = vst [vmem:[#allocation95_spill] sm:$0xff] %v20624_v54  ;;  %5053 = vrot.lane.b32.xlu0 %v5042_v51, %s17199_s30  ;;  %4985 = vrot.lane.b32.xlu1 %v4974_v31, %s17198_s18  ;;  %v5577_v1 = vand.u32 4294901760, %v5576_v23  ;;  %v5570_v37 = vsub.f32 %v20118_v3, %v25934_v26  ;;  %v25930_v62 = vand.u32 4294901760, %v20131_v33  ;;  %v25931_v58 = vand.u32 4294901760, %v20133_v59 }
 0x61b   : > { %26975 = vst [vmem:[#allocation96_spill] sm:$0xff] %v20630_v29  ;;  %26976 = vst [vmem:[#allocation97_spill] sm:$0xff] %v20632_v39  ;;  %v5582_v8 = vsub.f32 %v20123_v28, %v25932_v11  ;;  %v5588_v2 = vsub.f32 %v20125_v19, %v25929_v38  ;;  %v25933_v51 = vand.u32 4294901760, %v20144_v45  ;;  %v25938_v31 = vand.u32 4294901760, %v20146_v14 }
 0x61c   : > { %v20651_v10 = vpack.c.bf16 %v5577_v1, %v5565_v55  ;;  %v5571_v22 = vand.u32 4294901760, %v5570_v37  ;;  %v5600_v42 = vsub.f32 %v20131_v33, %v25930_v62  ;;  %v5594_v36 = vsub.f32 %v20133_v59, %v25931_v58 }
 0x61d   : > { %v5583_v9 = vand.u32 4294901760, %v5582_v8  ;;  %v5589_v23 = vand.u32 4294901760, %v5588_v2  ;;  %v5606_v38 = vsub.f32 %v20144_v45, %v25933_v51  ;;  %v5612_v55 = vsub.f32 %v20146_v14, %v25938_v31 }
 0x61e   : > { %26977 = vst [vmem:[#allocation98_spill] sm:$0xff] %v20651_v10  ;;  %5020 = vrot.lane.b32.xlu0 %v5009_v18, %s17197_s20  ;;  %5055 = vrot.lane.b32.xlu1 %v5044_v61, %s17199_s30  ;;  %v5601_v1 = vand.u32 4294901760, %v5600_v42  ;;  %v5595_v37 = vand.u32 4294901760, %v5594_v36  ;;  %v25936_v62 = vand.u32 4294901760, %v20157_v40  ;;  %v25935_v58 = vand.u32 4294901760, %v20159_v6 }
 0x61f   : > { %v20669_v8 = vpack.c.bf16 %v5583_v9, %v5571_v22  ;;  %v5607_v2 = vand.u32 4294901760, %v5606_v38  ;;  %v5613_v11 = vand.u32 4294901760, %v5612_v55  ;;  %v25937_v51 = vand.u32 4294901760, %v20161_v30  ;;  %v26981_v9 = vld [vmem:[#allocation24_spill] sm:$0xff] }
 0x620   : > { %v20672_v26 = vpack.c.bf16 %v5601_v1, %v5589_v23  ;;  %v5624_v18 = vsub.f32 %v20157_v40, %v25936_v62  ;;  %v5618_v61 = vsub.f32 %v20159_v6, %v25935_v58  ;;  %v25940_v42 = vand.u32 4294901760, %v20177_v13 }
 0x621   : > { %26978 = vst [vmem:[#allocation99_spill] sm:$0xff] %v20669_v8  ;;  %v20681_v36 = vpack.c.bf16 %v5607_v2, %v5595_v37  ;;  %v5630_v38 = vsub.f32 %v20161_v30, %v25937_v51  ;;  %v25941_v22 = vand.u32 4294901760, %v20179_v48  ;;  %v25942_v23 = vand.u32 4294901760, %v26981_v9  ;;  %v26984_v2 = vld [vmem:[#allocation25_spill] sm:$0xff] }
 0x622   : > { %26979 = vst [vmem:[#allocation100_spill] sm:$0xff] %v20672_v26  ;;  %v26982_v55 = vrot.slane %v20557_v15, 1  ;;  %v26983_v1 = vrot.slane %v20557_v15, 2  ;;  %v5625_v58 = vand.u32 4294901760, %v5624_v18  ;;  %v5619_v62 = vand.u32 4294901760, %v5618_v61 }
 0x623   : > { %26980 = vst [vmem:[#allocation101_spill] sm:$0xff] %v20681_v36  ;;  %v5636_v37 = vsub.f32 %v20177_v13, %v25940_v42  ;;  %v25944_v51 = vand.u32 4294901760, %v26984_v2  ;;  %v5631_v31 = vand.u32 4294901760, %v5630_v38  ;;  %v5648_v34 = vsub.f32 %v20179_v48, %v25941_v22  ;;  %v26985_v36 = vld [vmem:[#allocation63_spill] sm:$0xff]  ;;  %v26987_v42 = vld [vmem:[#allocation26_spill] sm:$0xff]  ;;  %v27062_v13 = vld [vmem:[#allocation77_spill] sm:$0xff] }
 0x624   : > { %4987 = vrot.lane.b32.xlu0 %v26982_v55, %s17198_s18  ;;  %5022 = vrot.lane.b32.xlu1 %v26983_v1, %s17197_s20  ;;  %v5642_v55 = vsub.f32 %v26981_v9, %v25942_v23  ;;  %v25943_v26 = vand.u32 4294901760, %v26985_v36  ;;  %v20705_v1 = vpack.c.bf16 %v5625_v58, %v5613_v11  ;;  %v25950_v8 = vand.u32 4294901760, %v26987_v42  ;;  %s26289_s20 = smov 80   ;;  %s17202_s18 = smov 112  }
 0x625   : > { %v5637_v18 = vand.u32 4294901760, %v5636_v37  ;;  %v5654_v61 = vsub.f32 %v26984_v2, %v25944_v51  ;;  %v20711_v38 = vpack.c.bf16 %v5631_v31, %v5619_v62  ;;  %v5649_v10 = vand.u32 4294901760, %v5648_v34  ;;  %v26995_v51 = vld [vmem:[#allocation28_spill] sm:$0xff] }
 0x626   : > { %26986 = vst [vmem:[#allocation25_spill] sm:$0xff] %v20705_v1  ;;  %v5643_v39 = vand.u32 4294901760, %v5642_v55  ;;  %v5660_v22 = vsub.f32 %v26985_v36, %v25943_v26  ;;  %v26989_v23 = vrot.slane %v20557_v15, 3  ;;  %v26990_v11 = vrot.slane %v20526_v43, 4  ;;  %v26996_v1 = vld [vmem:[#allocation67_spill] sm:$0xff]  ;;  %v26999_v43 = vld [vmem:[#allocation34_spill] sm:$0xff] }
 0x627   : > { %26988 = vst [vmem:[#allocation26_spill] sm:$0xff] %v20711_v38  ;;  %v26991_v58 = vrot.slane %v20494_v41, 4  ;;  %v26992_v34 = vrot.slane %v20557_v15, 4  ;;  %v5655_v55 = vand.u32 4294901760, %v5654_v61  ;;  %v20734_v26 = vpack.c.bf16 %v5649_v10, %v5637_v18 }
 0x628   : > { %5057 = vrot.lane.b32.xlu0 %v26989_v23, %s17199_s30  ;;  %5080 = vrot.lane.b32.xlu1 %v20455_v20, %s26289_s20  ;;  %v26993_v31 = vmov %v26990_v11  ;;  %v5672_v23 = vsub.f32 %v26987_v42, %v25950_v8  ;;  %v5661_v20 = vand.u32 4294901760, %v5660_v22  ;;  %v25949_v38 = vand.u32 4294901760, %v26995_v51  ;;  %v27000_v22 = vld [vmem:[#allocation75_spill] sm:$0xff] }
 0x629   : > { %v5077_v62 = vsel %vm5066_vm7, %v26991_v58, %v26990_v11  ;;  %v5079_v37 = vsel %vm5066_vm7, %v26993_v31, %v26992_v34  ;;  %26994 = vst [vmem:[#allocation102_spill] sm:$0xff] %v20734_v26  ;;  %v25948_v41 = vand.u32 4294901760, %v26996_v1  ;;  %v20738_v29 = vpack.c.bf16 %v5655_v55, %v5643_v39  ;;  %v26998_v58 = vld [vmem:[#allocation30_spill] sm:$0xff]  ;;  %v27001_v34 = vld [vmem:[#allocation35_spill] sm:$0xff] }
 0x62a   : > { %v5673_v11 = vand.u32 4294901760, %v5672_v23  ;;  %v25951_v54 = vand.u32 4294901760, %v26998_v58  ;;  %v25952_v36 = vand.u32 4294901760, %v26999_v43  ;;  %v5666_v61 = vsub.f32 %v26995_v51, %v25949_v38 }
 0x62b   : > { %26997 = vst [vmem:[#allocation28_spill] sm:$0xff] %v20738_v29  ;;  %v5678_v10 = vsub.f32 %v26996_v1, %v25948_v41  ;;  %v25956_v18 = vand.u32 4294901760, %v27000_v22  ;;  %v27003_v41 = vld [vmem:[#allocation74_spill] sm:$0xff]  ;;  %v27005_v29 = vld [vmem:[#allocation79_spill] sm:$0xff] }
 0x62c   : > { %5082 = vrot.lane.b32.xlu0 %v20491_v44, %s26289_s20  ;;  %5084 = vrot.lane.b32.xlu1 %v20520_v47, %s26289_s20  ;;  %v20754_v39 = vpack.c.bf16 %v5673_v11, %v5661_v20  ;;  %v5684_v55 = vsub.f32 %v26998_v58, %v25951_v54  ;;  %v5696_v23 = vsub.f32 %v26999_v43, %v25952_v36  ;;  %v25955_v38 = vand.u32 4294901760, %v27003_v41  ;;  %v27007_v43 = vld [vmem:[#allocation27_spill] sm:$0xff] }
 0x62d   : > { %v5667_v8 = vand.u32 4294901760, %v5666_v61  ;;  %v5679_v31 = vand.u32 4294901760, %v5678_v10  ;;  %v5690_v44 = vsub.f32 %v27000_v22, %v25956_v18  ;;  %v27004_v47 = vand.u32 4294901760, %v27001_v34 }
 0x62e   : > { %27002 = vst [vmem:[#allocation67_spill] sm:$0xff] %v20754_v39  ;;  %v5685_v11 = vand.u32 4294901760, %v5684_v55  ;;  %v5697_v39 = vand.u32 4294901760, %v5696_v23  ;;  %v5708_v54 = vsub.f32 %v27003_v41, %v25955_v38  ;;  %v25957_v36 = vand.u32 4294901760, %v27005_v29  ;;  %v27009_v38 = vld [vmem:[#allocation82_spill] sm:$0xff] }
 0x62f   : > { %v5702_v20 = vsub.f32 %v27001_v34, %v27004_v47  ;;  %v20773_v26 = vpack.c.bf16 %v5679_v31, %v5667_v8  ;;  %v5691_v61 = vand.u32 4294901760, %v5690_v44  ;;  %v25959_v58 = vand.u32 4294901760, %v27007_v43  ;;  %v27011_v44 = vld [vmem:[#allocation84_spill] sm:$0xff] }
 0x630   : > { %5086 = vrot.lane.b32.xlu0 %v20554_v5, %s26289_s20  ;;  %5088 = vrot.lane.b32.xlu1 %v5077_v62, %s26289_s20  ;;  %v20779_v47 = vpack.c.bf16 %v5697_v39, %v5685_v11  ;;  %v5709_v55 = vand.u32 4294901760, %v5708_v54  ;;  %v5720_v23 = vsub.f32 %v27005_v29, %v25957_v36  ;;  %v25960_v18 = vand.u32 4294901760, %v27009_v38  ;;  %v27012_v5 = vld [vmem:[#allocation9_spill] sm:$0xff] }
 0x631   : > { %27006 = vst [vmem:[#allocation75_spill] sm:$0xff] %v20773_v26  ;;  %v5703_v10 = vand.u32 4294901760, %v5702_v20  ;;  %v5714_v31 = vsub.f32 %v27007_v43, %v25959_v58  ;;  %v25961_v20 = vand.u32 4294901760, %v27011_v44  ;;  %v25963_v26 = vand.u32 4294901760, %v27012_v5  ;;  %v27013_v39 = vld [vmem:[#allocation37_spill] sm:$0xff]  ;;  %v27015_v58 = vld [vmem:[#allocation56_spill] sm:$0xff] }
 0x632   : > { %27008 = vst [vmem:[#allocation35_spill] sm:$0xff] %v20779_v47  ;;  %v5721_v62 = vand.u32 4294901760, %v5720_v23  ;;  %v5726_v54 = vsub.f32 %v27009_v38, %v25960_v18  ;;  %v25968_v11 = vand.u32 4294901760, %v27013_v39  ;;  %v27014_v36 = vld [vmem:[#allocation53_spill] sm:$0xff]  ;;  %v27016_v23 = vrot.slane %v20557_v15, 4  ;;  %v27019_v38 = vld [vmem:[#allocation32_spill] sm:$0xff] }
 0x633   : > { %v20785_v8 = vpack.c.bf16 %v5703_v10, %v5691_v61  ;;  %v5715_v29 = vand.u32 4294901760, %v5714_v31  ;;  %v5732_v61 = vsub.f32 %v27011_v44, %v25961_v20  ;;  %v5744_v10 = vsub.f32 %v27012_v5, %v25963_v26 }
 0x634   : > { %5090 = vrot.lane.b32.xlu0 %v5079_v37, %s26289_s20  ;;  %5092 = vrot.lane.b32.xlu1 %v27016_v23, %s26289_s20  ;;  %v20808_v18 = vpack.c.bf16 %v5721_v62, %v5709_v55  ;;  %v5727_v47 = vand.u32 4294901760, %v5726_v54  ;;  %v5738_v31 = vsub.f32 %v27013_v39, %v25968_v11  ;;  %v27018_v20 = vand.u32 4294901760, %v27014_v36  ;;  %v27021_v54 = vld [vmem:[#allocation45_spill] sm:$0xff]  ;;  %s17201_s20 = smov 32  }
 0x635   : > { %27010 = vst [vmem:[#allocation103_spill] sm:$0xff] %v20785_v8  ;;  %v25972_v8 = vand.u32 4294901760, %v27015_v58  ;;  %v5733_v26 = vand.u32 4294901760, %v5732_v61  ;;  %v5745_v5 = vand.u32 4294901760, %v5744_v10  ;;  %v25970_v15 = vand.u32 4294901760, %v27019_v38  ;;  %v27023_v61 = vld [vmem:[#allocation38_spill] sm:$0xff] }
 0x636   : > { %27017 = vst [vmem:[#allocation104_spill] sm:$0xff] %v20808_v18  ;;  %v5750_v44 = vsub.f32 %v27014_v36, %v27018_v20  ;;  %v20820_v23 = vpack.c.bf16 %v5727_v47, %v5715_v29  ;;  %v5739_v55 = vand.u32 4294901760, %v5738_v31  ;;  %v25971_v18 = vand.u32 4294901760, %v27021_v54 }
 0x637   : > { %v5756_v37 = vsub.f32 %v27015_v58, %v25972_v8  ;;  %v20823_v43 = vpack.c.bf16 %v5745_v5, %v5733_v26  ;;  %v5768_v20 = vsub.f32 %v27019_v38, %v25970_v15  ;;  %v25973_v10 = vand.u32 4294901760, %v27023_v61 }
 0x638   : > { %27020 = vst [vmem:[#allocation105_spill] sm:$0xff] %v20820_v23  ;;  %v5751_v62 = vand.u32 4294901760, %v5750_v44  ;;  %v5762_v29 = vsub.f32 %v27021_v54, %v25971_v18  ;;  %v25974_v47 = vand.u32 4294901760, %v20355_v25  ;;  %v25975_v44 = vand.u32 4294901760, %v20357_v16 }
 0x639   : > { %27022 = vst [vmem:[#allocation106_spill] sm:$0xff] %v20823_v43  ;;  %v5757_v11 = vand.u32 4294901760, %v5756_v37  ;;  %v5769_v31 = vand.u32 4294901760, %v5768_v20  ;;  %v5774_v26 = vsub.f32 %v27023_v61, %v25973_v10  ;;  %v25976_v5 = vand.u32 4294901760, %v20359_v52  ;;  %v27092_v61 = vld [vmem:[#allocation85_spill] sm:$0xff] }
 0x63a   : > { %v20829_v36 = vpack.c.bf16 %v5751_v62, %v5739_v55  ;;  %v25977_v37 = vand.u32 4294901760, %v20361_v12  ;;  %v5763_v15 = vand.u32 4294901760, %v5762_v29  ;;  %v5780_v55 = vsub.f32 %v20355_v25, %v25974_v47 }
 0x63b   : > { %v5792_v62 = vsub.f32 %v20357_v16, %v25975_v44  ;;  %v25978_v18 = vand.u32 4294901760, %v20363_v56  ;;  %v20848_v20 = vpack.c.bf16 %v5769_v31, %v5757_v11  ;;  %v5775_v8 = vand.u32 4294901760, %v5774_v26 }
 0x63c   : > { %27024 = vst [vmem:[#allocation107_spill] sm:$0xff] %v20829_v36  ;;  %v5786_v10 = vsub.f32 %v20359_v52, %v25976_v5  ;;  %v5798_v29 = vsub.f32 %v20361_v12, %v25977_v37  ;;  %v5781_v36 = vand.u32 4294901760, %v5780_v55  ;;  %v25979_v44 = vand.u32 4294901760, %v20365_v63 }
 0x63d   : > { %27025 = vst [vmem:[#allocation108_spill] sm:$0xff] %v20848_v20  ;;  %v5793_v43 = vand.u32 4294901760, %v5792_v62  ;;  %v5804_v47 = vsub.f32 %v20363_v56, %v25978_v18  ;;  %v20860_v23 = vpack.c.bf16 %v5775_v8, %v5763_v15  ;;  %v25982_v26 = vand.u32 4294901760, %v20433_v57  ;;  %v27029_v8 = vld [vmem:[#allocation11_spill] sm:$0xff] }
 0x63e   : > { %v5787_v11 = vand.u32 4294901760, %v5786_v10  ;;  %v5799_v31 = vand.u32 4294901760, %v5798_v29  ;;  %v5816_v55 = vsub.f32 %v20365_v63, %v25979_v44  ;;  %v25983_v62 = vand.u32 4294901760, %v20446_v60  ;;  %v27030_v29 = vld [vmem:[#allocation13_spill] sm:$0xff]  ;;  %v27032_v44 = vld [vmem:[#allocation40_spill] sm:$0xff] }
 0x63f   : > { %27026 = vst [vmem:[#allocation109_spill] sm:$0xff] %v20860_v23  ;;  %v20863_v20 = vpack.c.bf16 %v5793_v43, %v5781_v36  ;;  %v5805_v5 = vand.u32 4294901760, %v5804_v47  ;;  %v5810_v15 = vsub.f32 %v20433_v57, %v25982_v26  ;;  %v25988_v10 = vand.u32 4294901760, %v27029_v8  ;;  %v27031_v36 = vld [vmem:[#allocation42_spill] sm:$0xff] }
 0x640   : > { %v20869_v37 = vpack.c.bf16 %v5799_v31, %v5787_v11  ;;  %v25989_v18 = vand.u32 4294901760, %v27030_v29  ;;  %v5817_v23 = vand.u32 4294901760, %v5816_v55  ;;  %v5822_v43 = vsub.f32 %v20446_v60, %v25983_v62 }
 0x641   : > { %27027 = vst [vmem:[#allocation110_spill] sm:$0xff] %v20863_v20  ;;  %v25994_v47 = vand.u32 4294901760, %v27031_v36  ;;  %v25995_v20 = vand.u32 4294901760, %v27032_v44  ;;  %v5811_v63 = vand.u32 4294901760, %v5810_v15  ;;  %v5828_v11 = vsub.f32 %v27029_v8, %v25988_v10 }
 0x642   : > { %27028 = vst [vmem:[#allocation111_spill] sm:$0xff] %v20869_v37  ;;  %v5840_v31 = vsub.f32 %v27030_v29, %v25989_v18  ;;  %v25999_v26 = vand.u32 4294901760, %v20511_v50  ;;  %v20888_v55 = vpack.c.bf16 %v5817_v23, %v5805_v5  ;;  %v5823_v37 = vand.u32 4294901760, %v5822_v43  ;;  %v27034_v18 = vld [vmem:[#allocation47_spill] sm:$0xff]  ;;  %v27036_v43 = vld [vmem:[#allocation86_spill] sm:$0xff] }
 0x643   : > { %v5834_v62 = vsub.f32 %v27031_v36, %v25994_v47  ;;  %v5846_v15 = vsub.f32 %v27032_v44, %v25995_v20  ;;  %v5829_v60 = vand.u32 4294901760, %v5828_v11  ;;  %v25997_v29 = vand.u32 4294901760, %v27034_v18 }
 0x644   : > { %27033 = vst [vmem:[#allocation112_spill] sm:$0xff] %v20888_v55  ;;  %v5841_v57 = vand.u32 4294901760, %v5840_v31  ;;  %v5852_v10 = vsub.f32 %v20511_v50, %v25999_v26  ;;  %v20900_v8 = vpack.c.bf16 %v5823_v37, %v5811_v63  ;;  %v25998_v55 = vand.u32 4294901760, %v27036_v43  ;;  %v27038_v31 = vld [vmem:[#allocation87_spill] sm:$0xff] }
 0x645   : > { %v5835_v23 = vand.u32 4294901760, %v5834_v62  ;;  %v5847_v5 = vand.u32 4294901760, %v5846_v15  ;;  %v5864_v11 = vsub.f32 %v27034_v18, %v25997_v29  ;;  %v26000_v20 = vand.u32 4294901760, %v27038_v31  ;;  %v27077_v18 = vld [vmem:[#allocation96_spill] sm:$0xff] }
 0x646   : > { %27035 = vst [vmem:[#allocation113_spill] sm:$0xff] %v20900_v8  ;;  %v20903_v56 = vpack.c.bf16 %v5841_v57, %v5829_v60  ;;  %v5853_v47 = vand.u32 4294901760, %v5852_v10  ;;  %v5858_v63 = vsub.f32 %v27036_v43, %v25998_v55  ;;  %v26001_v37 = vand.u32 4294901760, %v20545_v53  ;;  %v27043_v8 = vld [vmem:[#allocation30_spill] sm:$0xff] }
 0x647   : > { %v20909_v44 = vpack.c.bf16 %v5847_v5, %v5835_v23  ;;  %v26002_v62 = vand.u32 4294901760, %v20547_v21  ;;  %v5865_v15 = vand.u32 4294901760, %v5864_v11  ;;  %v5870_v57 = vsub.f32 %v27038_v31, %v26000_v20 }
 0x648   : > { %27037 = vst [vmem:[#allocation114_spill] sm:$0xff] %v20903_v56  ;;  %v26005_v60 = vand.u32 4294901760, %v20561_v7  ;;  %v26006_v10 = vand.u32 4294901760, %v20572_v27  ;;  %v5859_v29 = vand.u32 4294901760, %v5858_v63  ;;  %v5876_v23 = vsub.f32 %v20545_v53, %v26001_v37 }
 0x649   : > { %27039 = vst [vmem:[#allocation115_spill] sm:$0xff] %v20909_v44  ;;  %v5888_v5 = vsub.f32 %v20547_v21, %v26002_v62  ;;  %v20929_v55 = vpack.c.bf16 %v5865_v15, %v5853_v47  ;;  %v5871_v26 = vand.u32 4294901760, %v5870_v57  ;;  %v27040_v62 = vld [vmem:[#allocation54_spill] sm:$0xff]  ;;  %v27041_v57 = vld [vmem:[#allocation21_spill] sm:$0xff] }
 0x64a   : > { %v5882_v20 = vsub.f32 %v20561_v7, %v26005_v60  ;;  %v5894_v63 = vsub.f32 %v20572_v27, %v26006_v10  ;;  %v5877_v44 = vand.u32 4294901760, %v5876_v23 }
 0x64b   : > { %v5889_v37 = vand.u32 4294901760, %v5888_v5  ;;  %v20941_v11 = vpack.c.bf16 %v5871_v26, %v5859_v29 }
 0x64c   : > { %v5883_v47 = vand.u32 4294901760, %v5882_v20  ;;  %v5895_v15 = vand.u32 4294901760, %v5894_v63  ;;  %v27044_v20 = vld [vmem:[#allocation34_spill] sm:$0xff] }
 0x64d   : > { %v20945_v60 = vpack.c.bf16 %v5889_v37, %v5877_v44  ;;  %v27045_v44 = vld [vmem:[#allocation79_spill] sm:$0xff] }
 0x64e   : > { %v20951_v5 = vpack.c.bf16 %v5895_v15, %v5883_v47  ;;  %v27055_v15 = vld [vmem:[#allocation72_spill] sm:$0xff] }
 0x670   : > { %v5011_v63 = vpop.permute.xlu1 %5010  ;;  %v4976_v39 = vpop.permute.xlu0 %4975 }
 0x671   : > { %v5102_v58 = vsel %vm5101_vm8, %v27055_v15, %v4976_v39  ;;  %v5110_v29 = vsel %vm5109_vm9, %v4976_v39, %v5011_v63 }
 0x672   : > { %v20995_v23 = vand.u32 4294901760, %v5102_v58 }
 0x674   : > { %27056 = vst [vmem:[#allocation54_spill] sm:$0xff] %v20995_v23  ;;  %v21003_v56 = vsub.f32 %v5102_v58, %v20995_v23  ;;  %v4978_v37 = vpop.permute.xlu1 %4977  ;;  %v21005_v9 = vpop.permute.xlu0 %5045 }
 0x675   : > { %27061 = vst [vmem:[#allocation30_spill] sm:$0xff] %v21005_v9  ;;  %v5103_v15 = vsel %vm5101_vm8, %v27062_v13, %v4978_v37  ;;  %v5118_v49 = vsel %vm5117_vm10, %v5110_v29, %v21005_v9 }
 0x676   : > { %27060 = vst [vmem:[#allocation21_spill] sm:$0xff] %v21003_v56  ;;  %v21011_v12 = vand.u32 4294901760, %v5103_v15  ;;  %v21013_v16 = vand.u32 4294901760, %v5118_v49  ;;  %v26026_v39 = vand.u32 4294901760, %v21003_v56 }
 0x678   : > { %27063 = vst [vmem:[#allocation34_spill] sm:$0xff] %v21011_v12  ;;  %v21021_v63 = vsub.f32 %v5118_v49, %v21013_v16  ;;  %v21023_v36 = vpop.permute.xlu1 %5047  ;;  %v5013_v13 = vpop.permute.xlu0 %5012  ;;  %v21026_v29 = vsub.f32 %v5103_v15, %v21011_v12  ;;  %v5409_v58 = vsub.f32 %v21003_v56, %v26026_v39 }
 0x679   : > { %27064 = vst [vmem:[#allocation79_spill] sm:$0xff] %v21023_v36  ;;  %v5111_v9 = vsel %vm5109_vm9, %v4978_v37, %v5013_v13  ;;  %v27068_v13 = vld [vmem:[#allocation76_spill] sm:$0xff] }
 0x67a   : > { %27065 = vst [vmem:[#allocation72_spill] sm:$0xff] %v21026_v29  ;;  %v5119_v10 = vsel %vm5117_vm10, %v5111_v9, %v21023_v36  ;;  %v26036_v52 = vand.u32 4294901760, %v21021_v63  ;;  %v5410_v53 = vand.u32 4294901760, %v5409_v58 }
 0x67b   : > { %v21035_v43 = vand.u32 4294901760, %v5119_v10 }
 0x67c   : > { %v5015_v31 = vpop.permute.xlu1 %5014  ;;  %v4980_v50 = vpop.permute.xlu0 %4979  ;;  %v5403_v9 = vsub.f32 %v21021_v63, %v26036_v52 }
 0x67d   : > { %27066 = vst [vmem:[#allocation77_spill] sm:$0xff] %v21035_v43  ;;  %v21045_v37 = vsub.f32 %v5119_v10, %v21035_v43  ;;  %v5104_v39 = vsel %vm5101_vm8, %v27068_v13, %v4980_v50  ;;  %v5112_v7 = vsel %vm5109_vm9, %v4980_v50, %v5015_v31  ;;  %v27072_v10 = vld [vmem:[#allocation33_spill] sm:$0xff]  ;;  %v27073_v50 = vand.u32 4294901760, %v21026_v29 }
 0x67e   : > { %v21050_v56 = vand.u32 4294901760, %v5104_v39  ;;  %v5404_v49 = vand.u32 4294901760, %v5403_v9 }
 0x67f   : > { %27067 = vst [vmem:[#allocation116_spill] sm:$0xff] %v21045_v37  ;;  %v26041_v15 = vand.u32 4294901760, %v21045_v37  ;;  %v5425_v31 = vsub.f32 %v21026_v29, %v27073_v50 }
 0x680   : > { %27069 = vst [vmem:[#allocation76_spill] sm:$0xff] %v21050_v56  ;;  %v21055_v27 = vsub.f32 %v5104_v39, %v21050_v56  ;;  %v4982_v52 = vpop.permute.xlu1 %4981  ;;  %v21057_v21 = vpop.permute.xlu0 %5049  ;;  %5405 = vmatprep.mubr.f32.mxu0 %v5404_v49  ;;  %v27076_v49 = vld [vmem:[#allocation95_spill] sm:$0xff] }
 0x681   : > { %27071 = vst [vmem:[#allocation118_spill] sm:$0xff] %v21057_v21  ;;  %v5105_v13 = vsel %vm5101_vm8, %v27072_v10, %v4982_v52  ;;  %v5120_v36 = vsel %vm5117_vm10, %v5112_v7, %v21057_v21  ;;  %5411 = vmatmul.mubr.f32.vlgmr.msra.gmra.mrb[42].mxu0 %v5410_v53  ;;  %v5419_v58 = vsub.f32 %v21045_v37, %v26041_v15  ;;  %v5426_v29 = vand.u32 4294901760, %v5425_v31 }
 0x682   : > { %27070 = vst [vmem:[#allocation117_spill] sm:$0xff] %v21055_v27  ;;  %v21069_v39 = vand.u32 4294901760, %v5105_v13  ;;  %v21071_v9 = vand.u32 4294901760, %v5120_v36  ;;  %15075 = vmatpush1.bf16.msra.mxu0 %v27076_v49  ;;  %v27084_v26 = vand.u32 4294901760, %v21055_v27 }
 0x683   : > { %15077 = vmatprep.subr.bf16.mxu0 %v27077_v18  ;;  %v5420_v10 = vand.u32 4294901760, %v5419_v58  ;;  %v27081_v18 = vld [vmem:[#allocation97_spill] sm:$0xff] }
 0x684   : > { %27074 = vst [vmem:[#allocation33_spill] sm:$0xff] %v21069_v39  ;;  %27075 = vst [vmem:[#allocation119_spill] sm:$0xff] %v21071_v9  ;;  %v21077_v53 = vsub.f32 %v5120_v36, %v21071_v9  ;;  %v21079_v21 = vpop.permute.xlu1 %5051  ;;  %v5017_v15 = vpop.permute.xlu0 %5016  ;;  %v21082_v37 = vsub.f32 %v5105_v13, %v21069_v39  ;;  %v27083_v36 = vld [vmem:[#allocation98_spill] sm:$0xff]  ;;  %v5441_v13 = vsub.f32 %v21055_v27, %v27084_v26  ;;  %v27089_v26 = vld [vmem:[#allocation100_spill] sm:$0xff] }
 0x685   : > { %27079 = vst [vmem:[#allocation96_spill] sm:$0xff] %v21079_v21  ;;  %v5113_v50 = vsel %vm5109_vm9, %v4982_v52, %v5017_v15  ;;  %5421 = vmatprep.mubr.f32.mxu0 %v5420_v10  ;;  %v27086_v10 = vld [vmem:[#allocation15_spill] sm:$0xff] }
 0x686   : > { %27078 = vst [vmem:[#allocation95_spill] sm:$0xff] %v21077_v53  ;;  %27080 = vst [vmem:[#allocation120_spill] sm:$0xff] %v21082_v37  ;;  %v5121_v49 = vsel %vm5117_vm10, %v5113_v50, %v21079_v21  ;;  %15079 = vmatpush1.bf16.msra.mxu0 %v27081_v18  ;;  %v26050_v58 = vand.u32 4294901760, %v21077_v53  ;;  %v5442_v27 = vand.u32 4294901760, %v5441_v13 }
 0x687   : > { %v21089_v7 = vand.u32 4294901760, %v5121_v49  ;;  %5427 = vmatmul.mubr.f32.gmra.mrb[44].mxu0 %v5426_v29  ;;  %15081 = vmatprep.subr.bf16.mxu0 %v27083_v36  ;;  %v27088_v36 = vld [vmem:[#allocation99_spill] sm:$0xff] }
 0x688   : > { %v5019_v25 = vpop.permute.xlu1 %5018  ;;  %v4984_v52 = vpop.permute.xlu0 %4983  ;;  %v5435_v15 = vsub.f32 %v21077_v53, %v26050_v58 }
 0x689   : > { %27082 = vst [vmem:[#allocation97_spill] sm:$0xff] %v21089_v7  ;;  %v21099_v31 = vsub.f32 %v5121_v49, %v21089_v7  ;;  %v5106_v50 = vsel %vm5101_vm8, %v27086_v10, %v4984_v52  ;;  %v5114_v58 = vsel %vm5109_vm9, %v4984_v52, %v5019_v25  ;;  %v27093_v25 = vand.u32 4294901760, %v21082_v37 }
 0x68a   : > { %v21104_v18 = vand.u32 4294901760, %v5106_v50  ;;  %15083 = vmatpush1.bf16.msra.mxu0 %v27088_v36  ;;  %v5436_v21 = vand.u32 4294901760, %v5435_v15 }
 0x68b   : > { %27085 = vst [vmem:[#allocation98_spill] sm:$0xff] %v21099_v31  ;;  %15085 = vmatprep.subr.bf16.mxu0 %v27089_v26  ;;  %v26055_v54 = vand.u32 4294901760, %v21099_v31  ;;  %v5457_v52 = vsub.f32 %v21082_v37, %v27093_v25  ;;  %v27097_v26 = vld [vmem:[#allocation25_spill] sm:$0xff] }
 0x68c   : > { %27087 = vst [vmem:[#allocation15_spill] sm:$0xff] %v21104_v18  ;;  %v21111_v49 = vsub.f32 %v5106_v50, %v21104_v18  ;;  %v21113_v53 = vpop.permute.xlu0 %5053  ;;  %5437 = vmatprep.mubr.f32.mxu0 %v5436_v21  ;;  %v4986_v10 = vpop.permute.xlu1 %4985  ;;  %v27096_v21 = vld [vmem:[#allocation101_spill] sm:$0xff] }
 0x68d   : > { %27091 = vst [vmem:[#allocation100_spill] sm:$0xff] %v21113_v53  ;;  %v5122_v29 = vsel %vm5117_vm10, %v5114_v58, %v21113_v53  ;;  %v5107_v15 = vsel %vm5101_vm8, %v27092_v61, %v4986_v10  ;;  %5443 = vmatmul.mubr.f32.gmra.mrb[46].mxu0 %v5442_v27  ;;  %v5451_v13 = vsub.f32 %v21099_v31, %v26055_v54  ;;  %v5458_v37 = vand.u32 4294901760, %v5457_v52  ;;  %v27104_v52 = vld [vmem:[#allocation91_spill] sm:$0xff] }
 0x68e   : > { %27090 = vst [vmem:[#allocation99_spill] sm:$0xff] %v21111_v49  ;;  %v21125_v50 = vand.u32 4294901760, %v5122_v29  ;;  %v21127_v36 = vand.u32 4294901760, %v5107_v15  ;;  %15087 = vmatpush1.bf16.msra.mxu0 %v27096_v21  ;;  %v27103_v38 = vand.u32 4294901760, %v21111_v49 }
 0x68f   : > { %15089 = vmatprep.subr.bf16.mxu0 %v27097_v26  ;;  %v5452_v58 = vand.u32 4294901760, %v5451_v13  ;;  %v27100_v26 = vld [vmem:[#allocation26_spill] sm:$0xff] }
 0x690   : > { %27094 = vst [vmem:[#allocation85_spill] sm:$0xff] %v21125_v50  ;;  %27095 = vst [vmem:[#allocation121_spill] sm:$0xff] %v21127_v36  ;;  %v21133_v27 = vsub.f32 %v5122_v29, %v21125_v50  ;;  %v5021_v53 = vpop.permute.xlu0 %5020  ;;  %v21135_v54 = vpop.permute.xlu1 %5055  ;;  %v21138_v31 = vsub.f32 %v5107_v15, %v21127_v36  ;;  %v27102_v29 = vld [vmem:[#allocation102_spill] sm:$0xff]  ;;  %v5473_v15 = vsub.f32 %v21111_v49, %v27103_v38  ;;  %v27107_v38 = vld [vmem:[#allocation67_spill] sm:$0xff] }
 0x691   : > { %27098 = vst [vmem:[#allocation101_spill] sm:$0xff] %v21135_v54  ;;  %v5115_v25 = vsel %vm5109_vm9, %v4986_v10, %v5021_v53  ;;  %5453 = vmatprep.mubr.f32.mxu0 %v5452_v58 }
 0x692   : > { %27099 = vst [vmem:[#allocation25_spill] sm:$0xff] %v21138_v31  ;;  %v5123_v21 = vsel %vm5117_vm10, %v5115_v25, %v21135_v54  ;;  %15091 = vmatpush1.bf16.msra.mxu0 %v27100_v26  ;;  %v26065_v13 = vand.u32 4294901760, %v21133_v27  ;;  %v27105_v26 = vld [vmem:[#allocation28_spill] sm:$0xff]  ;;  %v5474_v49 = vand.u32 4294901760, %v5473_v15 }
 0x693   : > { %v21145_v61 = vand.u32 4294901760, %v5123_v21  ;;  %5459 = vmatmul.mubr.f32.gmra.mrb[48].mxu0 %v5458_v37  ;;  %15093 = vmatprep.subr.bf16.mxu0 %v27102_v29  ;;  %v26068_v37 = vand.u32 4294901760, %v21138_v31 }
 0x694   : > { %v5467_v53 = vsub.f32 %v21133_v27, %v26065_v13 }
 0x695   : > { %27101 = vst [vmem:[#allocation26_spill] sm:$0xff] %v21145_v61  ;;  %v21155_v10 = vsub.f32 %v5123_v21, %v21145_v61 }
 0x696   : > { %v4988_v47 = vpop.permute.xlu0 %4987  ;;  %v5023_v25 = vpop.permute.xlu1 %5022  ;;  %15095 = vmatpush1.bf16.msra.mxu0 %v27105_v26  ;;  %v5468_v29 = vand.u32 4294901760, %v5467_v53  ;;  %v5489_v26 = vsub.f32 %v21138_v31, %v26068_v37  ;;  %v27114_v31 = vld [vmem:[#allocation105_spill] sm:$0xff] }
 0x697   : > { %v5108_v58 = vsel %vm5101_vm8, %v27104_v52, %v4988_v47  ;;  %15097 = vmatprep.subr.bf16.mxu0 %v27107_v38  ;;  %v26066_v41 = vand.u32 4294901760, %v21155_v10  ;;  %v5116_v13 = vsel %vm5109_vm9, %v4988_v47, %v5023_v25  ;;  %v27110_v38 = vld [vmem:[#allocation75_spill] sm:$0xff] }
 0x698   : > { %v21161_v54 = vand.u32 4294901760, %v5108_v58  ;;  %5469 = vmatprep.mubr.f32.mxu0 %v5468_v29  ;;  %v27111_v25 = vld [vmem:[#allocation35_spill] sm:$0xff] }
 0x699   : > { %5475 = vmatmul.mubr.f32.gmra.mrb[50].mxu0 %v5474_v49  ;;  %v5483_v53 = vsub.f32 %v21155_v10, %v26066_v41  ;;  %v27112_v41 = vld [vmem:[#allocation103_spill] sm:$0xff] }
 0x69a   : > { %27106 = vst [vmem:[#allocation102_spill] sm:$0xff] %v21161_v54  ;;  %v21166_v21 = vpop.permute.xlu0 %5057  ;;  %15099 = vmatpush1.bf16.msra.mxu0 %v27110_v38  ;;  %v21180_v47 = vsub.f32 %v5108_v58, %v21161_v54  ;;  %v27115_v58 = vld [vmem:[#allocation106_spill] sm:$0xff] }
 0x69b   : > { %27108 = vst [vmem:[#allocation91_spill] sm:$0xff] %v21166_v21  ;;  %v5124_v52 = vsel %vm5117_vm10, %v5116_v13, %v21166_v21  ;;  %15101 = vmatprep.subr.bf16.mxu0 %v27111_v25  ;;  %v5484_v29 = vand.u32 4294901760, %v5483_v53  ;;  %v5490_v13 = vand.u32 4294901760, %v5489_v26  ;;  %v27113_v21 = vld [vmem:[#allocation104_spill] sm:$0xff]  ;;  %v27116_v26 = vld [vmem:[#allocation107_spill] sm:$0xff] }
 0x69c   : > { %v21176_v15 = vand.u32 4294901760, %v5124_v52  ;;  %v26072_v38 = vand.u32 4294901760, %v21180_v47  ;;  %v27117_v25 = vld [vmem:[#allocation108_spill] sm:$0xff] }
 0x69d   : > { %5485 = vmatprep.mubr.f32.mxu0 %v5484_v29  ;;  %v27119_v29 = vld [vmem:[#allocation110_spill] sm:$0xff] }
 0x69e   : > { %27109 = vst [vmem:[#allocation28_spill] sm:$0xff] %v21176_v15  ;;  %v21184_v49 = vsub.f32 %v5124_v52, %v21176_v15  ;;  %15103 = vmatpush1.bf16.msra.mxu0 %v27112_v41  ;;  %v5505_v53 = vsub.f32 %v21180_v47, %v26072_v38  ;;  %v27154_v38 = vld [vmem:[#allocation37_spill] sm:$0xff] }
 0x69f   : > { %5491 = vmatmul.mubr.f32.gmra.mrb[52].mxu0 %v5490_v13  ;;  %15105 = vmatprep.subr.bf16.mxu0 %v27113_v21  ;;  %v27120_v13 = vld [vmem:[#allocation111_spill] sm:$0xff] }
 0x6a0   : > { %v26071_v37 = vand.u32 4294901760, %v21184_v49  ;;  %v5506_v21 = vand.u32 4294901760, %v5505_v53  ;;  %v27125_v53 = vld [vmem:[#allocation18_spill] sm:$0xff] }
 0x6a2   : > { %15107 = vmatpush1.bf16.msra.mxu0 %v27114_v31  ;;  %v5499_v52 = vsub.f32 %v21184_v49, %v26071_v37  ;;  %v27118_v31 = vld [vmem:[#allocation109_spill] sm:$0xff] }
 0x6a3   : > { %15109 = vmatprep.subr.bf16.mxu0 %v27115_v58  ;;  %v27121_v58 = vld [vmem:[#allocation112_spill] sm:$0xff]  ;;  %v27122_v37 = vld [vmem:[#allocation113_spill] sm:$0xff] }
 0x6a4   : > { %v5500_v41 = vand.u32 4294901760, %v5499_v52  ;;  %v27123_v52 = vld [vmem:[#allocation114_spill] sm:$0xff] }
 0x6a6   : > { %15111 = vmatpush1.bf16.msra.mxu0 %v27116_v26  ;;  %5501 = vmatprep.mubr.f32.mxu0 %v5500_v41  ;;  %v27124_v26 = vld [vmem:[#allocation115_spill] sm:$0xff]  ;;  %v27126_v41 = vpack.c.bf16 %v20057_v32, %v27125_v53 }
 0x6a7   : > { %15113 = vmatprep.subr.bf16.mxu0 %v27117_v25  ;;  %5507 = vmatmul.mubr.f32.gmra.mrb[54].mxu0 %v5506_v21  ;;  %v27132_v21 = vpack.c.bf16 %v20131_v33, %v20125_v19  ;;  %v27133_v25 = vpack.c.bf16 %v20144_v45, %v20133_v59 }
 0x6a8   : > { %5898 = vmatprep.mubr.f32.mxu0 %v21013_v16 }
 0x6aa   : > { %15115 = vmatpush1.bf16.msra.mxu0 %v27118_v31  ;;  %v27134_v31 = vpack.c.bf16 %v20157_v40, %v20146_v14 }
 0x6ab   : > { %15117 = vmatprep.subr.bf16.mxu0 %v27119_v29  ;;  %v27135_v29 = vpack.c.bf16 %v20161_v30, %v20159_v6 }
 0x6ae   : > { %15119 = vmatpush1.bf16.msra.mxu0 %v27120_v13  ;;  %v27136_v13 = vld [vmem:[#allocation62_spill] sm:$0xff] }
 0x6af   : > { %15121 = vmatprep.subr.bf16.mxu0 %v27121_v58  ;;  %v27137_v58 = vpack.c.bf16 %v20179_v48, %v27136_v13 }
 0x6b2   : > { %15123 = vmatpush1.bf16.msra.mxu0 %v27122_v37  ;;  %v27127_v37 = vpack.c.bf16 %v20072_v4, %v20059_v46 }
 0x6b3   : > { %15125 = vmatprep.subr.bf16.mxu0 %v27123_v52  ;;  %v27138_v52 = vld [vmem:[#allocation24_spill] sm:$0xff] }
 0x6b6   : > { %15127 = vmatpush1.bf16.msra.mxu0 %v27124_v26  ;;  %v27139_v26 = vpack.c.bf16 %v26984_v2, %v27138_v52 }
 0x6b7   : > { %15129 = vmatprep.subr.bf16.mxu0 %v20929_v55  ;;  %v27128_v55 = vpack.c.bf16 %v27040_v62, %v20076_v17 }
 0x6ba   : > { %15131 = vmatpush1.bf16.msra.mxu0 %v20941_v11  ;;  %v27130_v11 = vpack.c.bf16 %v20114_v35, %v20101_v24 }
 0x6bb   : > { %15133 = vmatprep.subr.bf16.mxu0 %v20945_v60  ;;  %v27129_v60 = vpack.c.bf16 %v20099_v0, %v27041_v57 }
 0x6be   : > { %15135 = vmatpush1.bf16.msra.mxu0 %v20951_v5  ;;  %v27131_v5 = vpack.c.bf16 %v20123_v28, %v20118_v3 }
 0x6bf   : > { %15137 = vmatprep.subr.bf16.mxu0 %v27126_v41  ;;  %v27140_v41 = vld [vmem:[#allocation63_spill] sm:$0xff] }
 0x6c1   : > { %5900 = vmatmul.mubr.f32.vlgmr.msra.gmra.mrb[42].mxu0 %v20995_v23 }
 0x6c2   : > { %5906 = vmatprep.mubr.f32.mxu0 %v21035_v43  ;;  %15139 = vmatpush1.bf16.msra.mxu0 %v27127_v37  ;;  %v27141_v37 = vpack.c.bf16 %v26987_v42, %v27140_v41  ;;  %v27172_v43 = vld [vmem:[#allocation81_spill] sm:$0xff] }
 0x6c3   : > { %15141 = vmatprep.subr.bf16.mxu0 %v27128_v55  ;;  %v27142_v55 = vpack.c.bf16 %v26996_v1, %v26995_v51 }
 0x6c5   : > { %5908 = vmatmul.mubr.f32.gmra.mrb[44].mxu0 %v21011_v12 }
 0x6c6   : > { %5914 = vmatprep.mubr.f32.mxu0 %v21071_v9  ;;  %15143 = vmatpush1.bf16.msra.mxu0 %v27129_v60  ;;  %v27143_v60 = vpack.c.bf16 %v27044_v20, %v27043_v8  ;;  %v27169_v9 = vld [vmem:[#allocation57_spill] sm:$0xff] }
 0x6c7   : > { %15145 = vmatprep.subr.bf16.mxu0 %v27130_v11  ;;  %v27144_v11 = vpack.c.bf16 %v27001_v34, %v27000_v22 }
 0x6c9   : > { %5916 = vmatmul.mubr.f32.gmra.mrb[46].mxu0 %v21050_v56 }
 0x6ca   : > { %5922 = vmatprep.mubr.f32.mxu0 %v21089_v7  ;;  %15147 = vmatpush1.bf16.msra.mxu0 %v27131_v5  ;;  %v27145_v5 = vld [vmem:[#allocation74_spill] sm:$0xff]  ;;  %v27166_v7 = vld [vmem:[#allocation48_spill] sm:$0xff] }
 0x6cb   : > { %15149 = vmatprep.subr.bf16.mxu0 %v27132_v21  ;;  %v27146_v21 = vpack.c.bf16 %v27045_v44, %v27145_v5 }
 0x6cd   : > { %5924 = vmatmul.mubr.f32.gmra.mrb[48].mxu0 %v21069_v39 }
 0x6ce   : > { %5930 = vmatprep.mubr.f32.mxu0 %v21125_v50  ;;  %15151 = vmatpush1.bf16.msra.mxu0 %v27133_v25  ;;  %v27147_v25 = vld [vmem:[#allocation82_spill] sm:$0xff]  ;;  %v27163_v50 = vld [vmem:[#allocation39_spill] sm:$0xff] }
 0x6cf   : > { %15153 = vmatprep.subr.bf16.mxu0 %v27134_v31  ;;  %v27148_v31 = vld [vmem:[#allocation27_spill] sm:$0xff] }
 0x6d1   : > { %5932 = vmatmul.mubr.f32.gmra.mrb[50].mxu0 %v21104_v18 }
 0x6d2   : > { %5938 = vmatprep.mubr.f32.mxu0 %v21145_v61  ;;  %15155 = vmatpush1.bf16.msra.mxu0 %v27135_v29  ;;  %v27149_v29 = vpack.c.bf16 %v27147_v25, %v27148_v31  ;;  %v27160_v61 = vld [vmem:[#allocation45_spill] sm:$0xff] }
 0x6d3   : > { %15157 = vmatprep.subr.bf16.mxu0 %v27137_v58  ;;  %v27150_v58 = vld [vmem:[#allocation9_spill] sm:$0xff] }
 0x6d5   : > { %5940 = vmatmul.mubr.f32.gmra.mrb[52].mxu0 %v21127_v36 }
 0x6d6   : > { %5946 = vmatprep.mubr.f32.mxu0 %v21176_v15  ;;  %15159 = vmatpush1.bf16.msra.mxu0 %v27139_v26  ;;  %v27151_v26 = vld [vmem:[#allocation84_spill] sm:$0xff] }
 0x6d7   : > { %15161 = vmatprep.subr.bf16.mxu0 %v27141_v37  ;;  %v27152_v37 = vpack.c.bf16 %v27150_v58, %v27151_v26  ;;  %v27157_v15 = vld [vmem:[#allocation56_spill] sm:$0xff] }
 0x6d9   : > { %5948 = vmatmul.mubr.f32.gmra.mrb[54].mxu0 %v21161_v54 }
 0x6da   : > { %15163 = vmatpush1.bf16.msra.mxu0 %v27142_v55  ;;  %6148 = vmatprep.mubr.f32.mxu0 %v21021_v63  ;;  %v27153_v55 = vld [vmem:[#allocation53_spill] sm:$0xff] }
 0x6db   : > { %15165 = vmatprep.subr.bf16.mxu0 %v27143_v60  ;;  %v27155_v54 = vpack.c.bf16 %v27153_v55, %v27154_v38  ;;  %v27156_v60 = vld [vmem:[#allocation32_spill] sm:$0xff]  ;;  %v27223_v55 = vld [vmem:[#allocation43_spill] sm:$0xff] }
 0x6dc   : > { %v27158_v36 = vpack.c.bf16 %v27156_v60, %v27157_v15  ;;  %v27175_v60 = vld [vmem:[#allocation11_spill] sm:$0xff]  ;;  %v27220_v15 = vld [vmem:[#allocation64_spill] sm:$0xff] }
 0x6de   : > { %15167 = vmatpush1.bf16.msra.mxu0 %v27144_v11  ;;  %v27159_v11 = vld [vmem:[#allocation38_spill] sm:$0xff] }
 0x6df   : > { %15169 = vmatprep.subr.bf16.mxu0 %v27146_v21  ;;  %v27161_v18 = vpack.c.bf16 %v27159_v11, %v27160_v61  ;;  %v27162_v21 = vld [vmem:[#allocation50_spill] sm:$0xff] }
 0x6e0   : > { %v27164_v39 = vpack.c.bf16 %v27162_v21, %v27163_v50  ;;  %v27178_v61 = vld [vmem:[#allocation42_spill] sm:$0xff] }
 0x6e1   : > { %v27181_v50 = vld [vmem:[#allocation46_spill] sm:$0xff] }
 0x6e2   : > { %15171 = vmatpush1.bf16.msra.mxu0 %v27149_v29  ;;  %v27165_v29 = vld [vmem:[#allocation51_spill] sm:$0xff] }
 0x6e3   : > { %15173 = vmatprep.subr.bf16.mxu0 %v27152_v37  ;;  %v27167_v56 = vpack.c.bf16 %v27165_v29, %v27166_v7  ;;  %v27168_v37 = vld [vmem:[#allocation60_spill] sm:$0xff]  ;;  %v27184_v7 = vld [vmem:[#allocation86_spill] sm:$0xff] }
 0x6e4   : > { %v27170_v12 = vpack.c.bf16 %v27168_v37, %v27169_v9  ;;  %v27187_v9 = vld [vmem:[#allocation89_spill] sm:$0xff] }
 0x6e6   : > { %15175 = vmatpush1.bf16.msra.mxu0 %v27155_v54  ;;  %v27171_v54 = vld [vmem:[#allocation29_spill] sm:$0xff] }
 0x6e7   : > { %15177 = vmatprep.subr.bf16.mxu0 %v27158_v36  ;;  %v27173_v23 = vpack.c.bf16 %v27171_v54, %v27172_v43  ;;  %v27174_v36 = vld [vmem:[#allocation13_spill] sm:$0xff]  ;;  %v27190_v43 = vld [vmem:[#allocation92_spill] sm:$0xff] }
 0x6e8   : > { %v27176_v11 = vpack.c.bf16 %v27174_v36, %v27175_v60  ;;  %v27219_v60 = vld [vmem:[#allocation61_spill] sm:$0xff] }
 0x6ea   : > { %15179 = vmatpush1.bf16.msra.mxu0 %v27161_v18  ;;  %v27177_v18 = vld [vmem:[#allocation40_spill] sm:$0xff] }
 0x6eb   : > { %15181 = vmatprep.subr.bf16.mxu0 %v27164_v39  ;;  %v27179_v21 = vpack.c.bf16 %v27177_v18, %v27178_v61  ;;  %v27180_v39 = vld [vmem:[#allocation47_spill] sm:$0xff]  ;;  %v27193_v18 = vld [vmem:[#allocation21_spill] sm:$0xff] }
 0x6ec   : > { %v27182_v29 = vpack.c.bf16 %v27180_v39, %v27181_v50  ;;  %v27195_v39 = vld [vmem:[#allocation19_spill] sm:$0xff]  ;;  %v27211_v50 = vld [vmem:[#allocation25_spill] sm:$0xff] }
 0x6ed   : > { %v27216_v61 = vld [vmem:[#allocation41_spill] sm:$0xff] }
 0x6ee   : > { %15183 = vmatpush1.bf16.msra.mxu0 %v27167_v56  ;;  %v27183_v56 = vld [vmem:[#allocation87_spill] sm:$0xff] }
 0x6ef   : > { %15185 = vmatprep.subr.bf16.mxu0 %v27170_v12  ;;  %v27185_v37 = vpack.c.bf16 %v27183_v56, %v27184_v7  ;;  %v27186_v12 = vld [vmem:[#allocation90_spill] sm:$0xff]  ;;  %v27197_v56 = vld [vmem:[#allocation72_spill] sm:$0xff]  ;;  %v27208_v7 = vld [vmem:[#allocation99_spill] sm:$0xff] }
 0x6f0   : > { %v27188_v54 = vpack.c.bf16 %v27186_v12, %v27187_v9  ;;  %v27199_v12 = vld [vmem:[#allocation20_spill] sm:$0xff] }
 0x6f1   : > { %v27205_v9 = vld [vmem:[#allocation120_spill] sm:$0xff] }
 0x6f2   : > { %15187 = vmatpush1.bf16.msra.mxu0 %v27173_v23  ;;  %v27189_v23 = vld [vmem:[#allocation94_spill] sm:$0xff] }
 0x6f3   : > { %15189 = vmatprep.subr.bf16.mxu0 %v27176_v11  ;;  %v27191_v36 = vpack.c.bf16 %v27189_v23, %v27190_v43  ;;  %v27192_v11 = vld [vmem:[#allocation49_spill] sm:$0xff]  ;;  %v27204_v43 = vld [vmem:[#allocation22_spill] sm:$0xff] }
 0x6f4   : > { %v27201_v23 = vld [vmem:[#allocation117_spill] sm:$0xff] }
 0x6f6   : > { %15191 = vmatpush1.bf16.msra.mxu0 %v27179_v21  ;;  %v27194_v21 = vld [vmem:[#allocation116_spill] sm:$0xff] }
 0x6f7   : > { %15193 = vmatprep.subr.bf16.mxu0 %v27182_v29  ;;  %v27196_v29 = vld [vmem:[#allocation52_spill] sm:$0xff] }
 0x6fa   : > { %15195 = vmatpush1.bf16.msra.mxu0 %v27185_v37  ;;  %v27198_v37 = vld [vmem:[#allocation95_spill] sm:$0xff] }
 0x6fb   : > { %15197 = vmatprep.subr.bf16.mxu0 %v27188_v54  ;;  %v27200_v54 = vld [vmem:[#allocation55_spill] sm:$0xff] }
 0x6fe   : > { %15199 = vmatpush1.bf16.msra.mxu0 %v27191_v36  ;;  %v27202_v36 = vld [vmem:[#allocation98_spill] sm:$0xff] }
 0x6ff   : > { %15201 = vmatprep.subr.bf16.mxu0 %v27192_v11  ;;  %v27203_v11 = vld [vmem:[#allocation58_spill] sm:$0xff] }
 0x701   : > { %6151 = vmatmul.mubr.f32.vlgmr.msra.gmra.mrb[42].mxu0 %v27193_v18 }
 0x702   : > { %6158 = vmatprep.mubr.f32.mxu0 %v27194_v21  ;;  %15203 = vmatpush1.bf16.msra.mxu0 %v27195_v39  ;;  %v27207_v39 = vld [vmem:[#allocation59_spill] sm:$0xff] }
 0x703   : > { %15205 = vmatprep.subr.bf16.mxu0 %v27196_v29  ;;  %v27206_v29 = vld [vmem:[#allocation23_spill] sm:$0xff] }
 0x705   : > { %6161 = vmatmul.mubr.f32.gmra.mrb[44].mxu0 %v27197_v56 }
 0x706   : > { %6168 = vmatprep.mubr.f32.mxu0 %v27198_v37  ;;  %15207 = vmatpush1.bf16.msra.mxu0 %v27199_v12  ;;  %v27210_v12 = vld [vmem:[#allocation71_spill] sm:$0xff] }
 0x707   : > { %15209 = vmatprep.subr.bf16.mxu0 %v27200_v54  ;;  %v27209_v54 = vld [vmem:[#allocation66_spill] sm:$0xff] }
 0x709   : > { %6171 = vmatmul.mubr.f32.gmra.mrb[46].mxu0 %v27201_v23 }
 0x70a   : > { %6178 = vmatprep.mubr.f32.mxu0 %v27202_v36  ;;  %15211 = vmatpush1.bf16.msra.mxu0 %v27203_v11  ;;  %v27213_v11 = vld [vmem:[#allocation78_spill] sm:$0xff] }
 0x70b   : > { %15213 = vmatprep.subr.bf16.mxu0 %v27204_v43  ;;  %v27212_v43 = vld [vmem:[#allocation70_spill] sm:$0xff] }
 0x70d   : > { %6181 = vmatmul.mubr.f32.gmra.mrb[48].mxu0 %v27205_v9 }
 0x70e   : > { %6188 = vmatprep.mubr.f32.mxu0 %v21133_v27  ;;  %15215 = vmatpush1.bf16.msra.mxu0 %v27206_v29  ;;  %v27214_v29 = vld [vmem:[#allocation31_spill] sm:$0xff] }
 0x70f   : > { %15217 = vmatprep.subr.bf16.mxu0 %v27207_v39  ;;  %v27215_v39 = vand.u32 4294901760, %v21021_v63  ;;  %v27225_v63 = vld [vmem:[#allocation69_spill] sm:$0xff] }
 0x711   : > { %6191 = vmatmul.mubr.f32.gmra.mrb[50].mxu0 %v27208_v7 }
 0x712   : > { %6198 = vmatprep.mubr.f32.mxu0 %v21155_v10  ;;  %15219 = vmatpush1.bf16.msra.mxu0 %v27209_v54  ;;  %v27217_v54 = vld [vmem:[#allocation12_spill] sm:$0xff] }
 0x713   : > { %15221 = vmatprep.subr.bf16.mxu0 %v27210_v12  ;;  %v27218_v12 = vld [vmem:[#allocation44_spill] sm:$0xff] }
 0x715   : > { %6201 = vmatmul.mubr.f32.gmra.mrb[52].mxu0 %v27211_v50 }
 0x716   : > { %6208 = vmatprep.mubr.f32.mxu0 %v21184_v49  ;;  %15223 = vmatpush1.bf16.msra.mxu0 %v27212_v43  ;;  %v27221_v43 = vld [vmem:[#allocation65_spill] sm:$0xff] }
 0x717   : > { %15225 = vmatprep.subr.bf16.mxu0 %v27213_v11  ;;  %v27222_v11 = vld [vmem:[#allocation68_spill] sm:$0xff] }
 0x719   : > { %6211 = vmatmul.mubr.f32.gmra.mrb[54].mxu0 %v21180_v47 }
 0x71a   : > { %15227 = vmatpush1.bf16.msra.mxu0 %v27214_v29  ;;  %6348 = vmatprep.mubr.f32.mxu0 %v27215_v39  ;;  %v27224_v29 = vld [vmem:[#allocation10_spill] sm:$0xff]  ;;  %v27226_v39 = vld [vmem:[#allocation73_spill] sm:$0xff] }
 0x71b   : > { %15229 = vmatprep.subr.bf16.mxu0 %v27216_v61  ;;  %v27227_v61 = vld [vmem:[#allocation80_spill] sm:$0xff] }
 0x71e   : > { %15231 = vmatpush1.bf16.msra.mxu0 %v27217_v54  ;;  %v27228_v54 = vld [vmem:[#allocation83_spill] sm:$0xff] }
 0x71f   : > { %15233 = vmatprep.subr.bf16.mxu0 %v27218_v12  ;;  %v27229_v12 = vld [vmem:[#allocation14_spill] sm:$0xff] }
 0x722   : > { %15235 = vmatpush1.bf16.msra.mxu0 %v27219_v60  ;;  %v27230_v60 = vld [vmem:[#allocation16_spill] sm:$0xff] }
 0x723   : > { %15237 = vmatprep.subr.bf16.mxu0 %v27220_v15  ;;  %v27231_v15 = vld [vmem:[#allocation17_spill] sm:$0xff] }
 0x726   : > { %15239 = vmatpush1.bf16.msra.mxu0 %v27221_v43  ;;  %v27232_v43 = vld [vmem:[#allocation88_spill] sm:$0xff] }
 0x727   : > { %15241 = vmatprep.subr.bf16.mxu0 %v27222_v11 }
 0x72a   : > { %15243 = vmatpush1.bf16.msra.mxu0 %v27223_v55  ;;  %v27233_v55 = vand.u32 4294901760, %v27125_v53  ;;  %v27241_v53 = vand.u32 4294901760, %v27194_v21 }
 0x72b   : > { %15245 = vmatprep.subr.bf16.mxu0 %v27224_v29  ;;  %v27234_v29 = vand.u32 4294901760, %v20057_v32  ;;  %v27242_v32 = vand.u32 4294901760, %v27041_v57  ;;  %v27249_v57 = vand.u32 4294901760, %v20123_v28  ;;  %v27256_v28 = vand.u32 4294901760, %v20146_v14 }
 0x72c   : > { %v27263_v14 = vand.u32 4294901760, %v20179_v48  ;;  %v27270_v48 = vand.u32 4294901760, %v27211_v50  ;;  %v27277_v50 = vand.u32 4294901760, %v27000_v22  ;;  %v27284_v22 = vand.u32 4294901760, %v27150_v58  ;;  %v27296_v58 = vld [vmem:[#allocation39_spill] sm:$0xff] }
 0x72d   : > { %v15264_v11 = vpack.c.bf16 %v27234_v29, %v27233_v55  ;;  %v27260_v29 = vand.u32 4294901760, %v20159_v6  ;;  %v27267_v6 = vand.u32 4294901760, %v26984_v2  ;;  %v27274_v2 = vand.u32 4294901760, %v27043_v8 }
 0x72e   : > { %15247 = vmatpush1.bf16.msra.mxu0 %v27225_v63  ;;  %v27235_v63 = vld [vmem:[#allocation93_spill] sm:$0xff] }
 0x72f   : > { %15249 = vmatprep.subr.bf16.mxu0 %v27226_v39  ;;  %v27236_v39 = vand.u32 4294901760, %v20059_v46  ;;  %v27243_v46 = vand.u32 4294901760, %v20099_v0  ;;  %v27250_v0 = vand.u32 4294901760, %v20125_v19  ;;  %v27257_v19 = vand.u32 4294901760, %v20157_v40 }
 0x730   : > { %v27264_v40 = vand.u32 4294901760, %v27208_v7  ;;  %v27271_v7 = vand.u32 4294901760, %v21184_v49  ;;  %v27278_v49 = vand.u32 4294901760, %v27001_v34  ;;  %v27285_v34 = vand.u32 4294901760, %v27154_v38 }
 0x731   : > { %v15270_v55 = vpack.c.bf16 %v27243_v46, %v27242_v32  ;;  %v15280_v21 = vpack.c.bf16 %v27257_v19, %v27256_v28  ;;  %v27280_v46 = vand.u32 4294901760, %v27045_v44  ;;  %v27288_v44 = vld [vmem:[#allocation56_spill] sm:$0xff] }
 0x732   : > { %15251 = vmatpush1.bf16.msra.mxu0 %v27227_v61  ;;  %v27237_v61 = vand.u32 4294901760, %v20072_v4  ;;  %v27244_v4 = vand.u32 4294901760, %v20101_v24  ;;  %v27251_v24 = vand.u32 4294901760, %v20131_v33  ;;  %v27258_v33 = vand.u32 4294901760, %v27205_v9 }
 0x733   : > { %15253 = vmatprep.subr.bf16.mxu0 %v27228_v54  ;;  %v27265_v9 = vand.u32 4294901760, %v21155_v10  ;;  %v27272_v10 = vand.u32 4294901760, %v26995_v51  ;;  %v15294_v51 = vpack.c.bf16 %v27278_v49, %v27277_v50  ;;  %v27326_v49 = vld [vmem:[#allocation87_spill] sm:$0xff] }
 0x734   : > { %v15266_v54 = vpack.c.bf16 %v27237_v61, %v27236_v39 }
 0x736   : > { %15255 = vmatpush1.bf16.msra.mxu0 %v27229_v12  ;;  %v27238_v12 = vand.u32 4294901760, %v20076_v17  ;;  %v27245_v17 = vand.u32 4294901760, %v20114_v35  ;;  %v27252_v35 = vand.u32 4294901760, %v27201_v23  ;;  %v27259_v23 = vand.u32 4294901760, %v21133_v27 }
 0x737   : > { %15257 = vmatprep.subr.bf16.mxu0 %v27230_v60  ;;  %v27239_v60 = vand.u32 4294901760, %v27040_v62  ;;  %v27246_v62 = vand.u32 4294901760, %v27197_v56  ;;  %v27253_v56 = vand.u32 4294901760, %v27202_v36  ;;  %v27266_v27 = vand.u32 4294901760, %v27138_v52 }
 0x738   : > { %v15272_v61 = vpack.c.bf16 %v27245_v17, %v27244_v4  ;;  %v27273_v52 = vand.u32 4294901760, %v26996_v1  ;;  %v27279_v1 = vand.u32 4294901760, %v27145_v5  ;;  %v27283_v4 = vand.u32 4294901760, %v27151_v26 }
 0x739   : > { %v15286_v36 = vpack.c.bf16 %v27267_v6, %v27266_v27  ;;  %v27314_v6 = vld [vmem:[#allocation13_spill] sm:$0xff] }
 0x73a   : > { %15259 = vmatpush1.bf16.msra.mxu0 %v27231_v15  ;;  %v15268_v15 = vpack.c.bf16 %v27239_v60, %v27238_v12  ;;  %v27248_v60 = vand.u32 4294901760, %v20118_v3  ;;  %v27254_v12 = vand.u32 4294901760, %v20133_v59  ;;  %v27255_v3 = vand.u32 4294901760, %v20144_v45 }
 0x73b   : > { %15261 = vmatprep.subr.bf16.mxu0 %v27232_v43  ;;  %v27240_v43 = vand.u32 4294901760, %v27193_v18  ;;  %v27261_v59 = vand.u32 4294901760, %v20161_v30  ;;  %v27262_v45 = vand.u32 4294901760, %v27136_v13  ;;  %v27268_v30 = vand.u32 4294901760, %v27140_v41 }
 0x73c   : > { %v15274_v18 = vpack.c.bf16 %v27249_v57, %v27248_v60  ;;  %v27269_v13 = vand.u32 4294901760, %v26987_v42  ;;  %v27275_v41 = vand.u32 4294901760, %v27044_v20  ;;  %v27276_v42 = vand.u32 4294901760, %v21180_v47  ;;  %v27290_v60 = vld [vmem:[#allocation32_spill] sm:$0xff] }
 0x73d   : > { %v15296_v8 = vpack.c.bf16 %v27280_v46, %v27279_v1  ;;  %v27281_v20 = vand.u32 4294901760, %v27148_v31  ;;  %v27282_v47 = vand.u32 4294901760, %v27147_v25  ;;  %v15300_v17 = vpack.c.bf16 %v27284_v22, %v27283_v4  ;;  %v27292_v25 = vld [vmem:[#allocation45_spill] sm:$0xff]  ;;  %v27332_v4 = vld [vmem:[#allocation92_spill] sm:$0xff] }
 0x73e   : > { %15263 = vmatpush1.bf16.msra.mxu0 %v27235_v63  ;;  %v15288_v39 = vpack.c.bf16 %v27269_v13, %v27268_v30  ;;  %v15292_v32 = vpack.c.bf16 %v27275_v41, %v27274_v2  ;;  %v27291_v31 = vand.u32 4294901760, %v27290_v60  ;;  %v27316_v13 = vld [vmem:[#allocation42_spill] sm:$0xff]  ;;  %v27322_v2 = vld [vmem:[#allocation47_spill] sm:$0xff]  ;;  %v27328_v46 = vld [vmem:[#allocation89_spill] sm:$0xff]  ;;  %v27333_v22 = vand.u32 4294901760, %v27332_v4 }
 0x73f   : > { %15265 = vmatprep.subr.bf16.mxu0 %v15264_v11  ;;  %v15278_v11 = vpack.c.bf16 %v27255_v3, %v27254_v12  ;;  %v27300_v12 = vld [vmem:[#allocation48_spill] sm:$0xff]  ;;  %v27323_v41 = vand.u32 4294901760, %v27322_v2  ;;  %v27383_v4 = vld [vmem:[#allocation83_spill] sm:$0xff] }
 0x740   : > { %v27301_v3 = vand.u32 4294901760, %v27300_v12  ;;  %v27340_v60 = vld [vmem:[#allocation52_spill] sm:$0xff]  ;;  %v27353_v12 = vld [vmem:[#allocation15_spill] sm:$0xff] }
 0x741   : > { %6352 = vmatmul.mubr.f32.vlgmr.msra.gmra.mrb[42].mxu0 %v27240_v43  ;;  %v27247_v43 = vand.u32 4294901760, %v27198_v37  ;;  %v15282_v37 = vpack.c.bf16 %v27261_v59, %v27260_v29 }
 0x742   : > { %6360 = vmatprep.mubr.f32.mxu0 %v27241_v53  ;;  %15267 = vmatpush1.bf16.msra.mxu0 %v15266_v54  ;;  %v15284_v54 = vpack.c.bf16 %v27263_v14, %v27262_v45  ;;  %v15290_v53 = vpack.c.bf16 %v27273_v52, %v27272_v10  ;;  %v27310_v14 = vld [vmem:[#allocation29_spill] sm:$0xff]  ;;  %v27320_v52 = vld [vmem:[#allocation46_spill] sm:$0xff] }
 0x743   : > { %15269 = vmatprep.subr.bf16.mxu0 %v15268_v15  ;;  %v15276_v15 = vpack.c.bf16 %v27251_v24, %v27250_v0  ;;  %v27294_v0 = vld [vmem:[#allocation38_spill] sm:$0xff] }
 0x744   : > { %v27295_v26 = vand.u32 4294901760, %v27294_v0  ;;  %v27345_v0 = vld [vmem:[#allocation76_spill] sm:$0xff] }
 0x745   : > { %6364 = vmatmul.mubr.f32.gmra.mrb[44].mxu0 %v27246_v62 }
 0x746   : > { %6372 = vmatprep.mubr.f32.mxu0 %v27247_v43  ;;  %15271 = vmatpush1.bf16.msra.mxu0 %v15270_v55  ;;  %v15298_v55 = vpack.c.bf16 %v27282_v47, %v27281_v20  ;;  %v27289_v43 = vand.u32 4294901760, %v27288_v44  ;;  %v27330_v20 = vld [vmem:[#allocation90_spill] sm:$0xff]  ;;  %v27338_v44 = vld [vmem:[#allocation77_spill] sm:$0xff] }
 0x747   : > { %15273 = vmatprep.subr.bf16.mxu0 %v15272_v61  ;;  %v27286_v61 = vld [vmem:[#allocation53_spill] sm:$0xff]  ;;  %v27331_v47 = vand.u32 4294901760, %v27330_v20  ;;  %v27380_v20 = vld [vmem:[#allocation80_spill] sm:$0xff] }
 0x748   : > { %v27287_v5 = vand.u32 4294901760, %v27286_v61  ;;  %v15304_v57 = vpack.c.bf16 %v27291_v31, %v27289_v43  ;;  %v27339_v43 = vld [vmem:[#allocation19_spill] sm:$0xff]  ;;  %v27341_v31 = vld [vmem:[#allocation34_spill] sm:$0xff] }
 0x749   : > { %6376 = vmatmul.mubr.f32.gmra.mrb[46].mxu0 %v27252_v35  ;;  %v27298_v35 = vld [vmem:[#allocation50_spill] sm:$0xff] }
 0x74a   : > { %6384 = vmatprep.mubr.f32.mxu0 %v27253_v56  ;;  %15275 = vmatpush1.bf16.msra.mxu0 %v15274_v18  ;;  %v15302_v62 = vpack.c.bf16 %v27287_v5, %v27285_v34  ;;  %v27293_v18 = vand.u32 4294901760, %v27292_v25  ;;  %v27299_v38 = vand.u32 4294901760, %v27298_v35  ;;  %v27336_v5 = vld [vmem:[#allocation49_spill] sm:$0xff]  ;;  %v27343_v25 = vld [vmem:[#allocation20_spill] sm:$0xff] }
 0x74b   : > { %15277 = vmatprep.subr.bf16.mxu0 %v15276_v15  ;;  %v27297_v15 = vand.u32 4294901760, %v27296_v58  ;;  %v27348_v58 = vld [vmem:[#allocation22_spill] sm:$0xff]  ;;  %v27350_v35 = vld [vmem:[#allocation85_spill] sm:$0xff] }
 0x74c   : > { %v15306_v24 = vpack.c.bf16 %v27295_v26, %v27293_v18  ;;  %v27344_v18 = vld [vmem:[#allocation55_spill] sm:$0xff]  ;;  %v27346_v26 = vld [vmem:[#allocation97_spill] sm:$0xff] }
 0x74d   : > { %6388 = vmatmul.mubr.f32.gmra.mrb[48].mxu0 %v27258_v33  ;;  %v15308_v56 = vpack.c.bf16 %v27299_v38, %v27297_v15  ;;  %v27349_v15 = vld [vmem:[#allocation33_spill] sm:$0xff]  ;;  %v27351_v38 = vld [vmem:[#allocation23_spill] sm:$0xff] }
 0x74e   : > { %6396 = vmatprep.mubr.f32.mxu0 %v27259_v23  ;;  %15279 = vmatpush1.bf16.msra.mxu0 %v15278_v11  ;;  %v27302_v11 = vld [vmem:[#allocation51_spill] sm:$0xff]  ;;  %v27306_v23 = vld [vmem:[#allocation60_spill] sm:$0xff] }
 0x74f   : > { %15281 = vmatprep.subr.bf16.mxu0 %v15280_v21  ;;  %v27303_v28 = vand.u32 4294901760, %v27302_v11  ;;  %v27304_v21 = vld [vmem:[#allocation57_spill] sm:$0xff]  ;;  %v27307_v29 = vand.u32 4294901760, %v27306_v23  ;;  %v27355_v11 = vld [vmem:[#allocation66_spill] sm:$0xff] }
 0x750   : > { %v27305_v33 = vand.u32 4294901760, %v27304_v21  ;;  %v27358_v21 = vld [vmem:[#allocation28_spill] sm:$0xff]  ;;  %v27360_v23 = vld [vmem:[#allocation78_spill] sm:$0xff] }
 0x751   : > { %6400 = vmatmul.mubr.f32.gmra.mrb[50].mxu0 %v27264_v40  ;;  %v15310_v19 = vpack.c.bf16 %v27303_v28, %v27301_v3  ;;  %v27354_v3 = vld [vmem:[#allocation26_spill] sm:$0xff]  ;;  %v27356_v28 = vld [vmem:[#allocation71_spill] sm:$0xff] }
 0x752   : > { %6408 = vmatprep.mubr.f32.mxu0 %v27265_v9  ;;  %15283 = vmatpush1.bf16.msra.mxu0 %v15282_v37  ;;  %v15312_v59 = vpack.c.bf16 %v27307_v29, %v27305_v33  ;;  %v27308_v37 = vld [vmem:[#allocation81_spill] sm:$0xff]  ;;  %v27312_v9 = vld [vmem:[#allocation11_spill] sm:$0xff]  ;;  %v27359_v33 = vld [vmem:[#allocation70_spill] sm:$0xff] }
 0x753   : > { %15285 = vmatprep.subr.bf16.mxu0 %v15284_v54  ;;  %v27309_v45 = vand.u32 4294901760, %v27308_v37  ;;  %v27311_v54 = vand.u32 4294901760, %v27310_v14  ;;  %v27313_v27 = vand.u32 4294901760, %v27312_v9  ;;  %v27361_v29 = vld [vmem:[#allocation102_spill] sm:$0xff]  ;;  %v27363_v37 = vld [vmem:[#allocation41_spill] sm:$0xff]  ;;  %v27365_v14 = vld [vmem:[#allocation44_spill] sm:$0xff] }
 0x754   : > { %v27367_v9 = vld [vmem:[#allocation64_spill] sm:$0xff] }
 0x755   : > { %6412 = vmatmul.mubr.f32.gmra.mrb[52].mxu0 %v27270_v48  ;;  %v15314_v40 = vpack.c.bf16 %v27311_v54, %v27309_v45  ;;  %v27318_v48 = vld [vmem:[#allocation40_spill] sm:$0xff]  ;;  %v27366_v54 = vld [vmem:[#allocation61_spill] sm:$0xff] }
 0x756   : > { %6420 = vmatprep.mubr.f32.mxu0 %v27271_v7  ;;  %15287 = vmatpush1.bf16.msra.mxu0 %v15286_v36  ;;  %v27315_v36 = vand.u32 4294901760, %v27314_v6  ;;  %v27319_v7 = vand.u32 4294901760, %v27318_v48  ;;  %v27364_v45 = vld [vmem:[#allocation12_spill] sm:$0xff]  ;;  %v27373_v48 = vld [vmem:[#allocation10_spill] sm:$0xff] }
 0x757   : > { %15289 = vmatprep.subr.bf16.mxu0 %v15288_v39  ;;  %v27317_v39 = vand.u32 4294901760, %v27316_v13  ;;  %v27372_v13 = vld [vmem:[#allocation43_spill] sm:$0xff] }
 0x758   : > { %v15316_v30 = vpack.c.bf16 %v27315_v36, %v27313_v27  ;;  %v27368_v27 = vld [vmem:[#allocation30_spill] sm:$0xff]  ;;  %v27369_v36 = vld [vmem:[#allocation65_spill] sm:$0xff] }
 0x759   : > { %6424 = vmatmul.mubr.f32.gmra.mrb[54].mxu0 %v27276_v42  ;;  %v15318_v10 = vpack.c.bf16 %v27319_v7, %v27317_v39  ;;  %v27324_v42 = vld [vmem:[#allocation86_spill] sm:$0xff]  ;;  %v5083_v39 = vpop.permute.xlu0 %5082 }
 0x75a   : > { %15291 = vmatpush1.bf16.msra.mxu0 %v15290_v53  ;;  %6687 = vmatprep.mubr.f32.mxu0 %v21013_v16  ;;  %v27321_v53 = vand.u32 4294901760, %v27320_v52  ;;  %v27325_v50 = vand.u32 4294901760, %v27324_v42 }
 0x75b   : > { %15293 = vmatprep.subr.bf16.mxu0 %v15292_v32 }
 0x75c   : > { %v15320_v32 = vpack.c.bf16 %v27323_v41, %v27321_v53  ;;  %v27375_v53 = vld [vmem:[#allocation69_spill] sm:$0xff] }
 0x75d   : > { %v27377_v41 = vld [vmem:[#allocation73_spill] sm:$0xff] }
 0x75e   : > { %15295 = vmatpush1.bf16.msra.mxu0 %v15294_v51  ;;  %v27327_v51 = vand.u32 4294901760, %v27326_v49 }
 0x75f   : > { %15297 = vmatprep.subr.bf16.mxu0 %v15296_v8  ;;  %v27329_v8 = vand.u32 4294901760, %v27328_v46  ;;  %v27379_v46 = vld [vmem:[#allocation118_spill] sm:$0xff] }
 0x760   : > { %v15322_v1 = vpack.c.bf16 %v27327_v51, %v27325_v50  ;;  %v27378_v50 = vld [vmem:[#allocation79_spill] sm:$0xff] }
 0x761   : > { %v5127_v49 = vsel %vm5125_vm11, %v27378_v50, %v5083_v39 }
 0x762   : > { %15299 = vmatpush1.bf16.msra.mxu0 %v15298_v55  ;;  %v15324_v55 = vpack.c.bf16 %v27331_v47, %v27329_v8 }
 0x763   : > { %15301 = vmatprep.subr.bf16.mxu0 %v15300_v17  ;;  %v27334_v17 = vld [vmem:[#allocation94_spill] sm:$0xff] }
 0x764   : > { %v27335_v34 = vand.u32 4294901760, %v27334_v17 }
 0x766   : > { %15303 = vmatpush1.bf16.msra.mxu0 %v15302_v62  ;;  %v15326_v61 = vpack.c.bf16 %v27335_v34, %v27333_v22  ;;  %v27337_v62 = vld [vmem:[#allocation54_spill] sm:$0xff]  ;;  %v21587_v22 = vand.u32 4294901760, %v5127_v49 }
 0x767   : > { %15305 = vmatprep.subr.bf16.mxu0 %v15304_v57  ;;  %v27342_v57 = vld [vmem:[#allocation119_spill] sm:$0xff] }
 0x768   : > { %27384 = vst [vmem:[#allocation105_spill] sm:$0xff] %v21587_v22 }
 0x76a   : > { %15307 = vmatpush1.bf16.msra.mxu0 %v15306_v24  ;;  %v27347_v24 = vld [vmem:[#allocation58_spill] sm:$0xff] }
 0x76b   : > { %15309 = vmatprep.subr.bf16.mxu0 %v15308_v56  ;;  %v27352_v56 = vld [vmem:[#allocation59_spill] sm:$0xff] }
 0x76e   : > { %15311 = vmatpush1.bf16.msra.mxu0 %v15310_v19  ;;  %v27357_v19 = vld [vmem:[#allocation121_spill] sm:$0xff] }
 0x76f   : > { %15313 = vmatprep.subr.bf16.mxu0 %v15312_v59  ;;  %v27362_v59 = vld [vmem:[#allocation31_spill] sm:$0xff] }
 0x772   : > { %15315 = vmatpush1.bf16.msra.mxu0 %v15314_v40  ;;  %v5081_v40 = vpop.permute.xlu1 %5080 }
 0x773   : > { %15317 = vmatprep.subr.bf16.mxu0 %v15316_v30  ;;  %v5126_v6 = vsel %vm5125_vm11, %v27368_v27, %v5081_v40  ;;  %v27370_v30 = vld [vmem:[#allocation68_spill] sm:$0xff]  ;;  %v5252_v7 = vsel %vm5251_vm12, %v5081_v40, 0  ;;  %v21640_v40 = vld [vmem:[%s25476_s5 + $0x228] sm:$0xff]  ;;  %v21759_v27 = vld [vmem:[%s25476_s5 + $0x278] sm:$0xff] }
 0x774   : > { %v21570_v2 = vand.u32 4294901760, %v5252_v7 }
 0x776   : > { %15319 = vmatpush1.bf16.msra.mxu0 %v15318_v10  ;;  %v5085_v52 = vpop.permute.xlu1 %5084  ;;  %27376 = vst [vmem:[#allocation35_spill] sm:$0xff] %v21570_v2  ;;  %v21582_v47 = vsub.f32 %v5252_v7, %v21570_v2 }
 0x777   : > { %15321 = vmatprep.subr.bf16.mxu0 %v15320_v32  ;;  %v5254_v32 = vsel %vm5251_vm12, %v5083_v39, 0  ;;  %v5256_v51 = vsel %vm5251_vm12, %v5085_v52, 0  ;;  %v5128_v8 = vsel %vm5125_vm11, %v27379_v46, %v5085_v52  ;;  %v27396_v39 = vld [vmem:[#allocation101_spill] sm:$0xff] }
 0x778   : > { %27381 = vst [vmem:[#allocation103_spill] sm:$0xff] %v21582_v47  ;;  %v21589_v17 = vand.u32 4294901760, %v5256_v51 }
 0x77a   : > { %15323 = vmatpush1.bf16.msra.mxu0 %v15322_v1  ;;  %v5087_v1 = vpop.permute.xlu0 %5086  ;;  %27385 = vst [vmem:[#allocation106_spill] sm:$0xff] %v21589_v17  ;;  %v5089_v34 = vpop.permute.xlu1 %5088 }
 0x77b   : > { %15325 = vmatprep.subr.bf16.mxu0 %v15324_v55  ;;  %v21584_v55 = vand.u32 4294901760, %v5254_v32 }
 0x77d   : > { %27382 = vst [vmem:[#allocation104_spill] sm:$0xff] %v21584_v55 }
 0x77e   : > { %15327 = vmatpush1.bf16.msra.mxu0 %v15326_v61  ;;  %v21594_v61 = vld [vmem:[%s25476_s5 + $0x208] sm:$0xff]  ;;  %v5093_v52 = vpop.permute.xlu1 %5092 }
 0x77f   : > { %15329 = vmatprep.subr.bf16.mxu0 %v27336_v5  ;;  %v21599_v5 = vld [vmem:[%s25476_s5 + $0x218] sm:$0xff] }
 0x781   : > { %6689 = vmatmul.mubr.f32.vlgmr.msra.gmra.mrb[42].mxu0 %v27337_v62 }
 0x782   : > { %6695 = vmatprep.mubr.f32.mxu0 %v27338_v44  ;;  %15331 = vmatpush1.bf16.msra.mxu0 %v27339_v43 }
 0x783   : > { %15333 = vmatprep.subr.bf16.mxu0 %v27340_v60  ;;  %v21606_v60 = vand.u32 4294901760, %v5128_v8 }
 0x785   : > { %6697 = vmatmul.mubr.f32.gmra.mrb[44].mxu0 %v27341_v31  ;;  %27386 = vst [vmem:[#allocation107_spill] sm:$0xff] %v21606_v60 }
 0x786   : > { %6703 = vmatprep.mubr.f32.mxu0 %v27342_v57  ;;  %15335 = vmatpush1.bf16.msra.mxu0 %v27343_v25  ;;  %v5258_v25 = vsel %vm5251_vm12, %v5087_v1, 0 }
 0x787   : > { %15337 = vmatprep.subr.bf16.mxu0 %v27344_v18  ;;  %v27387_v18 = vld [vmem:[#allocation14_spill] sm:$0xff] }
 0x789   : > { %6705 = vmatmul.mubr.f32.gmra.mrb[46].mxu0 %v27345_v0 }
 0x78a   : > { %6711 = vmatprep.mubr.f32.mxu0 %v27346_v26  ;;  %15339 = vmatpush1.bf16.msra.mxu0 %v27347_v24  ;;  %v21611_v24 = vsub.f32 %v5254_v32, %v21584_v55 }
 0x78b   : > { %15341 = vmatprep.subr.bf16.mxu0 %v27348_v58  ;;  %v5091_v58 = vpop.permute.xlu0 %5090 }
 0x78c   : > { %27388 = vst [vmem:[#allocation108_spill] sm:$0xff] %v21611_v24  ;;  %v5262_v7 = vsel %vm5251_vm12, %v5091_v58, 0 }
 0x78d   : > { %6713 = vmatmul.mubr.f32.gmra.mrb[48].mxu0 %v27349_v15 }
 0x78e   : > { %6719 = vmatprep.mubr.f32.mxu0 %v27350_v35  ;;  %15343 = vmatpush1.bf16.msra.mxu0 %v27351_v38  ;;  %v27389_v38 = vld [vmem:[#allocation16_spill] sm:$0xff] }
 0x78f   : > { %15345 = vmatprep.subr.bf16.mxu0 %v27352_v56  ;;  %v26102_v56 = vand.u32 4294901760, %v21594_v61 }
 0x791   : > { %6721 = vmatmul.mubr.f32.gmra.mrb[50].mxu0 %v27353_v12 }
 0x792   : > { %6727 = vmatprep.mubr.f32.mxu0 %v27354_v3  ;;  %15347 = vmatpush1.bf16.msra.mxu0 %v27355_v11  ;;  %v26101_v11 = vand.u32 4294901760, %v21599_v5 }
 0x793   : > { %15349 = vmatprep.subr.bf16.mxu0 %v27356_v28  ;;  %v21619_v28 = vld [vmem:[%s25476_s5 + $0x200] sm:$0xff] }
 0x795   : > { %6729 = vmatmul.mubr.f32.gmra.mrb[52].mxu0 %v27357_v19 }
 0x796   : > { %6735 = vmatprep.mubr.f32.mxu0 %v27358_v21  ;;  %15351 = vmatpush1.bf16.msra.mxu0 %v27359_v33  ;;  %v21624_v33 = vld [vmem:[%s25476_s5 + $0x210] sm:$0xff] }
 0x797   : > { %15353 = vmatprep.subr.bf16.mxu0 %v27360_v23  ;;  %v26100_v23 = vand.u32 4294901760, %v21582_v47  ;;  %v26103_v32 = vand.u32 4294901760, %v21624_v33 }
 0x799   : > { %6737 = vmatmul.mubr.f32.gmra.mrb[54].mxu0 %v27361_v29 }
 0x79a   : > { %15355 = vmatpush1.bf16.msra.mxu0 %v27362_v59  ;;  %6872 = vmatprep.mubr.f32.mxu0 %v21013_v16  ;;  %v21561_v16 = vand.u32 4294901760, %v5126_v6  ;;  %v21628_v59 = vsub.f32 %v5127_v49, %v21587_v22  ;;  %v27399_v49 = vld [vmem:[#allocation88_spill] sm:$0xff] }
 0x79b   : > { %15357 = vmatprep.subr.bf16.mxu0 %v27363_v37  ;;  %v21631_v37 = vsub.f32 %v5256_v51, %v21589_v17  ;;  %v21667_v51 = vpack.c.bf16 %v26101_v11, %v26102_v56  ;;  %v5264_v56 = vsel %vm5251_vm12, %v5093_v52, 0 }
 0x79c   : > { %27371 = vst [vmem:[#allocation67_spill] sm:$0xff] %v21561_v16  ;;  %v21567_v10 = vsub.f32 %v5126_v6, %v21561_v16  ;;  %27390 = vst [vmem:[#allocation109_spill] sm:$0xff] %v21628_v59  ;;  %v21649_v6 = vsub.f32 %v5128_v8, %v21606_v60  ;;  %v21674_v8 = vld [vmem:[%s25476_s5 + $0x220] sm:$0xff] }
 0x79d   : > { %27391 = vst [vmem:[#allocation110_spill] sm:$0xff] %v21631_v37  ;;  %27400 = vst [vmem:[#allocation114_spill] sm:$0xff] %v21667_v51 }
 0x79e   : > { %15359 = vmatpush1.bf16.msra.mxu0 %v27364_v45  ;;  %27374 = vst [vmem:[#allocation75_spill] sm:$0xff] %v21567_v10  ;;  %v26099_v42 = vand.u32 4294901760, %v21567_v10  ;;  %v27392_v45 = vld [vmem:[#allocation96_spill] sm:$0xff]  ;;  %27394 = vst [vmem:[#allocation112_spill] sm:$0xff] %v21649_v6 }
 0x79f   : > { %15361 = vmatprep.subr.bf16.mxu0 %v27365_v14  ;;  %v5129_v14 = vsel %vm5125_vm11, %v27392_v45, %v5087_v1  ;;  %v26106_v1 = vand.u32 4294901760, %v21640_v40  ;;  %v21701_v45 = vsub.f32 %v21582_v47, %v26100_v23 }
 0x7a0   : > { %v21604_v43 = vsub.f32 %v21567_v10, %v26099_v42  ;;  %v21660_v50 = vand.u32 4294901760, %v5129_v14 }
 0x7a2   : > { %15363 = vmatpush1.bf16.msra.mxu0 %v27366_v54  ;;  %v21635_v54 = vand.u32 4294901760, %v5258_v25  ;;  %27398 = vst [vmem:[#allocation113_spill] sm:$0xff] %v21660_v50  ;;  %v21741_v11 = vsub.f32 %v5129_v14, %v21660_v50 }
 0x7a3   : > { %15365 = vmatprep.subr.bf16.mxu0 %v27367_v9  ;;  %v21645_v9 = vld [vmem:[%s25476_s5 + $0x238] sm:$0xff] }
 0x7a4   : > { %27393 = vst [vmem:[#allocation111_spill] sm:$0xff] %v21635_v54  ;;  %v26105_v46 = vand.u32 4294901760, %v21645_v9  ;;  %27409 = vst [vmem:[#allocation27_spill] sm:$0xff] %v21741_v11 }
 0x7a6   : > { %15367 = vmatpush1.bf16.msra.mxu0 %v27369_v36  ;;  %v27395_v36 = vld [vmem:[#allocation100_spill] sm:$0xff] }
 0x7a7   : > { %15369 = vmatprep.subr.bf16.mxu0 %v27370_v30  ;;  %v5130_v30 = vsel %vm5125_vm11, %v27395_v36, %v5089_v34 }
 0x7aa   : > { %15371 = vmatpush1.bf16.msra.mxu0 %v27372_v13  ;;  %v5260_v13 = vsel %vm5251_vm12, %v5089_v34, 0 }
 0x7ab   : > { %15373 = vmatprep.subr.bf16.mxu0 %v27373_v48  ;;  %v5131_v48 = vsel %vm5125_vm11, %v27396_v39, %v5091_v58  ;;  %v21684_v34 = vand.u32 4294901760, %v5260_v13  ;;  %v21691_v58 = vld [vmem:[%s25476_s5 + $0x248] sm:$0xff]  ;;  %v27406_v39 = vld [vmem:[#allocation91_spill] sm:$0xff] }
 0x7ac   : > { %v21705_v36 = vand.u32 4294901760, %v5131_v48 }
 0x7ad   : > { %27402 = vst [vmem:[#allocation18_spill] sm:$0xff] %v21684_v34 }
 0x7ae   : > { %15375 = vmatpush1.bf16.msra.mxu0 %v27375_v53  ;;  %v27397_v53 = vld [vmem:[#allocation17_spill] sm:$0xff]  ;;  %27405 = vst [vmem:[#allocation63_spill] sm:$0xff] %v21705_v36 }
 0x7af   : > { %15377 = vmatprep.subr.bf16.mxu0 %v27377_v41  ;;  %v26104_v41 = vand.u32 4294901760, %v21619_v28 }
 0x7b1   : > { %v21715_v42 = vpack.c.bf16 %v26103_v32, %v26104_v41  ;;  %v21733_v41 = vld [vmem:[%s25476_s5 + $0x240] sm:$0xff] }
 0x7b2   : > { %15379 = vmatpush1.bf16.msra.mxu0 %v27380_v20  ;;  %v21679_v20 = vld [vmem:[%s25476_s5 + $0x230] sm:$0xff]  ;;  %v27482_v16 = vand.u32 4294901760, %v21733_v41 }
 0x7b3   : > { %15381 = vmatprep.subr.bf16.mxu0 %v27383_v4  ;;  %v21682_v4 = vsub.f32 %v5258_v25, %v21635_v54  ;;  %v21703_v25 = vand.u32 4294901760, %v5262_v7  ;;  %27407 = vst [vmem:[#allocation74_spill] sm:$0xff] %v21715_v42 }
 0x7b4   : > { %v22107_v2 = vsub.f32 %v21733_v41, %v27482_v16 }
 0x7b5   : > { %27401 = vst [vmem:[#allocation115_spill] sm:$0xff] %v21682_v4  ;;  %27404 = vst [vmem:[#allocation24_spill] sm:$0xff] %v21703_v25  ;;  %v21762_v14 = vsub.f32 %v5262_v7, %v21703_v25  ;;  %v27416_v7 = vand.u32 4294901760, %v21674_v8 }
 0x7b6   : > { %15383 = vmatpush1.bf16.msra.mxu0 %v27387_v18  ;;  %v21686_v18 = vand.u32 4294901760, %v5130_v30  ;;  %27483 = vst [vmem:[#allocation86_spill] sm:$0xff] %v22107_v2 }
 0x7b7   : > { %15385 = vmatprep.subr.bf16.mxu0 %v27389_v38  ;;  %v21696_v38 = vld [vmem:[%s25476_s5 + $0x258] sm:$0xff]  ;;  %27413 = vst [vmem:[#allocation21_spill] sm:$0xff] %v21762_v14 }
 0x7b8   : > { %27403 = vst [vmem:[#allocation62_spill] sm:$0xff] %v21686_v18 }
 0x7ba   : > { %15387 = vmatpush1.bf16.msra.mxu0 %v27397_v53  ;;  %v5132_v53 = vsel %vm5125_vm11, %v27406_v39, %v5093_v52  ;;  %v21738_v52 = vld [vmem:[%s25476_s5 + $0x250] sm:$0xff]  ;;  %v21754_v39 = vld [vmem:[%s25476_s5 + $0x268] sm:$0xff] }
 0x7bb   : > { %15389 = vmatprep.subr.bf16.mxu0 %v27399_v49  ;;  %v26111_v49 = vand.u32 4294901760, %v21611_v24  ;;  %v21749_v32 = vand.u32 4294901760, %v5132_v53 }
 0x7bd   : > { %27412 = vst [vmem:[#allocation37_spill] sm:$0xff] %v21749_v32  ;;  %v21772_v23 = vsub.f32 %v21611_v24, %v26111_v49  ;;  %v27419_v49 = vand.u32 4294901760, %v21691_v58  ;;  %v27420_v24 = vand.u32 4294901760, %v21696_v38 }
 0x7be   : > { %15391 = vmatpush1.bf16.msra.mxu0 %v27235_v63  ;;  %v21726_v63 = vpack.c.bf16 %v26105_v46, %v26106_v1  ;;  %v21744_v46 = vsub.f32 %v5260_v13, %v21684_v34  ;;  %v21747_v1 = vsub.f32 %v5130_v30, %v21686_v18  ;;  %v21765_v13 = vsub.f32 %v5131_v48, %v21705_v36 }
 0x7bf   : > { %15393 = vmatprep.subr.bf16.mxu0 %v21667_v51  ;;  %v21774_v51 = vand.u32 4294901760, %v5264_v56  ;;  %v27417_v48 = vand.u32 4294901760, %v21679_v20  ;;  %v21791_v47 = vpack.c.bf16 %v27420_v24, %v27419_v49  ;;  %v27422_v30 = vand.u32 4294901760, %v21628_v59  ;;  %v21813_v24 = vld [vmem:[%s25476_s5 + $0x288] sm:$0xff]  ;;  %v21818_v49 = vld [vmem:[%s25476_s5 + $0x298] sm:$0xff] }
 0x7c0   : > { %27408 = vst [vmem:[#allocation82_spill] sm:$0xff] %v21726_v63  ;;  %27410 = vst [vmem:[#allocation9_spill] sm:$0xff] %v21744_v46  ;;  %v27425_v36 = vand.u32 4294901760, %v21733_v41  ;;  %v27428_v18 = vand.u32 4294901760, %v21754_v39  ;;  %v27446_v54 = vand.u32 4294901760, %v21765_v13 }
 0x7c1   : > { %27411 = vst [vmem:[#allocation84_spill] sm:$0xff] %v21747_v1  ;;  %27414 = vst [vmem:[#allocation116_spill] sm:$0xff] %v21765_v13  ;;  %6874 = vmatmul.mubr.f32.vlgmr.msra.gmra.mrb[42].mxu0 %v27337_v62  ;;  %v21782_v10 = vpack.c.bf16 %v27417_v48, %v27416_v7  ;;  %v21798_v7 = vld [vmem:[%s25476_s5 + $0x260] sm:$0xff]  ;;  %v21803_v48 = vld [vmem:[%s25476_s5 + $0x270] sm:$0xff]  ;;  %v21808_v62 = vsub.f32 %v21628_v59, %v27422_v30  ;;  %v21825_v30 = vsub.f32 %v5132_v53, %v21749_v32 }
 0x7c2   : > { %27415 = vst [vmem:[#allocation72_spill] sm:$0xff] %v21774_v51  ;;  %6880 = vmatprep.mubr.f32.mxu0 %v27338_v44  ;;  %15395 = vmatpush1.bf16.msra.mxu0 %v21715_v42  ;;  %27421 = vst [vmem:[#allocation117_spill] sm:$0xff] %v21791_v47  ;;  %v26136_v42 = vand.u32 4294901760, %v21631_v37  ;;  %v21832_v34 = vsub.f32 %v5264_v56, %v21774_v51  ;;  %v27426_v53 = vand.u32 4294901760, %v21738_v52  ;;  %v27429_v56 = vand.u32 4294901760, %v21759_v27 }
 0x7c3   : > { %27418 = vst [vmem:[#allocation95_spill] sm:$0xff] %v21782_v10  ;;  %15397 = vmatprep.subr.bf16.mxu0 %v21726_v63  ;;  %27423 = vst [vmem:[#allocation98_spill] sm:$0xff] %v21825_v30  ;;  %v27432_v59 = vand.u32 4294901760, %v21682_v4  ;;  %v27444_v51 = vand.u32 4294901760, %v21762_v14 }
 0x7c4   : > { %27424 = vst [vmem:[#allocation120_spill] sm:$0xff] %v21832_v34  ;;  %v21840_v63 = vpack.c.bf16 %v27426_v53, %v27425_v36  ;;  %v21849_v25 = vpack.c.bf16 %v27429_v56, %v27428_v18  ;;  %v21856_v36 = vld [vmem:[%s25476_s5 + $0x280] sm:$0xff]  ;;  %v21861_v53 = vld [vmem:[%s25476_s5 + $0x290] sm:$0xff]  ;;  %v21867_v18 = vld [vmem:[%s25476_s5 + $0x2a8] sm:$0xff]  ;;  %v21877_v44 = vsub.f32 %v21631_v37, %v26136_v42  ;;  %v27434_v42 = vand.u32 4294901760, %v21744_v46 }
 0x7c5   : > { %6882 = vmatmul.mubr.f32.gmra.mrb[44].mxu0 %v27341_v31  ;;  %v21872_v56 = vld [vmem:[%s25476_s5 + $0x2b8] sm:$0xff]  ;;  %v21958_v50 = vsub.f32 %v21762_v14, %v27444_v51  ;;  %v21992_v51 = vld [vmem:[%s25476_s5 + $0x2c0] sm:$0xff]  ;;  %v27461_v14 = vand.u32 4294901760, %v21619_v28  ;;  %v27493_v55 = vand.u32 4294901760, %v21856_v36 }
 0x7c6   : > { %6888 = vmatprep.mubr.f32.mxu0 %v27342_v57  ;;  %15399 = vmatpush1.bf16.msra.mxu0 %v21782_v10  ;;  %27427 = vst [vmem:[#allocation99_spill] sm:$0xff] %v21840_v63  ;;  %27430 = vst [vmem:[#allocation25_spill] sm:$0xff] %v21849_v25  ;;  %v27431_v57 = vand.u32 4294901760, %v21649_v6  ;;  %v27433_v10 = vand.u32 4294901760, %v21741_v11  ;;  %v21898_v37 = vsub.f32 %v21744_v46, %v27434_v42  ;;  %v27450_v46 = vand.u32 4294901760, %v21832_v34 }
 0x7c7   : > { %15401 = vmatprep.subr.bf16.mxu0 %v21791_v47  ;;  %v21887_v47 = vsub.f32 %v21682_v4, %v27432_v59  ;;  %v27441_v4 = vand.u32 4294901760, %v21813_v24  ;;  %27445 = vst [vmem:[#allocation45_spill] sm:$0xff] %v21958_v50  ;;  %v22167_v41 = vsub.f32 %v21856_v36, %v27493_v55 }
 0x7c8   : > { %v21882_v31 = vsub.f32 %v21649_v6, %v27431_v57  ;;  %v21892_v32 = vsub.f32 %v21741_v11, %v27433_v10  ;;  %27435 = vst [vmem:[#allocation93_spill] sm:$0xff] %v21898_v37  ;;  %v27436_v57 = vand.u32 4294901760, %v21747_v1  ;;  %v27439_v10 = vand.u32 4294901760, %v21803_v48 }
 0x7c9   : > { %6890 = vmatmul.mubr.f32.gmra.mrb[46].mxu0 %v27345_v0  ;;  %v27438_v0 = vand.u32 4294901760, %v21798_v7 }
 0x7ca   : > { %v21903_v6 = vsub.f32 %v21747_v1, %v27436_v57  ;;  %6896 = vmatprep.mubr.f32.mxu0 %v27346_v26  ;;  %15403 = vmatpush1.bf16.msra.mxu0 %v21840_v63  ;;  %v27442_v26 = vand.u32 4294901760, %v21818_v49  ;;  %v21963_v63 = vsub.f32 %v21765_v13, %v27446_v54  ;;  %v27448_v57 = vand.u32 4294901760, %v21861_v53 }
 0x7cb   : > { %v21913_v11 = vpack.c.bf16 %v27439_v10, %v27438_v0  ;;  %15405 = vmatprep.subr.bf16.mxu0 %v21849_v25  ;;  %v21930_v0 = vld [vmem:[%s25476_s5 + $0x2a0] sm:$0xff]  ;;  %v21935_v10 = vld [vmem:[%s25476_s5 + $0x2b0] sm:$0xff]  ;;  %v21978_v1 = vsub.f32 %v21832_v34, %v27450_v46  ;;  %v27453_v54 = vand.u32 4294901760, %v21872_v56  ;;  %v27455_v25 = vand.u32 4294901760, %v21825_v30 }
 0x7cc   : > { %27437 = vst [vmem:[#allocation53_spill] sm:$0xff] %v21903_v6  ;;  %v21923_v59 = vpack.c.bf16 %v27442_v26, %v27441_v4  ;;  %v21941_v4 = vld [vmem:[%s25476_s5 + $0x2c8] sm:$0xff]  ;;  %v21946_v26 = vld [vmem:[%s25476_s5 + $0x2d8] sm:$0xff]  ;;  %v21997_v46 = vld [vmem:[%s25476_s5 + $0x2d0] sm:$0xff] }
 0x7cd   : > { %27440 = vst [vmem:[#allocation56_spill] sm:$0xff] %v21913_v11  ;;  %6898 = vmatmul.mubr.f32.gmra.mrb[48].mxu0 %v27349_v15  ;;  %v27447_v15 = vand.u32 4294901760, %v21856_v36  ;;  %27451 = vst [vmem:[#allocation39_spill] sm:$0xff] %v21978_v1  ;;  %v22002_v34 = vsub.f32 %v21825_v30, %v27455_v25  ;;  %v27470_v30 = vand.u32 4294901760, %v21679_v20  ;;  %v27497_v36 = vand.u32 4294901760, %v21867_v18 }
 0x7ce   : > { %27443 = vst [vmem:[#allocation32_spill] sm:$0xff] %v21923_v59  ;;  %6904 = vmatprep.mubr.f32.mxu0 %v27350_v35  ;;  %15407 = vmatpush1.bf16.msra.mxu0 %v21913_v11  ;;  %v27452_v35 = vand.u32 4294901760, %v21867_v18  ;;  %v27463_v11 = vand.u32 4294901760, %v21624_v33 }
 0x7cf   : > { %v21971_v42 = vpack.c.bf16 %v27448_v57, %v27447_v15  ;;  %15409 = vmatprep.subr.bf16.mxu0 %v21923_v59  ;;  %27456 = vst [vmem:[#allocation48_spill] sm:$0xff] %v22002_v34  ;;  %v27459_v15 = vand.u32 4294901760, %v21599_v5  ;;  %v22017_v59 = vsub.f32 %v21619_v28, %v27461_v14  ;;  %v27467_v14 = vand.u32 4294901760, %v21645_v9 }
 0x7d0   : > { %v21985_v13 = vpack.c.bf16 %v27453_v54, %v27452_v35  ;;  %v27457_v35 = vand.u32 4294901760, %v21594_v61  ;;  %v22022_v25 = vsub.f32 %v21624_v33, %v27463_v11  ;;  %v27468_v33 = vand.u32 4294901760, %v21674_v8 }
 0x7d1   : > { %27449 = vst [vmem:[#allocation38_spill] sm:$0xff] %v21971_v42  ;;  %v22012_v57 = vsub.f32 %v21599_v5, %v27459_v15  ;;  %27462 = vst [vmem:[#allocation60_spill] sm:$0xff] %v22017_v59  ;;  %v22032_v5 = vld [vmem:[%s25476_s5 + $0x2f8] sm:$0xff]  ;;  %v27465_v15 = vand.u32 4294901760, %v21640_v40  ;;  %v22042_v11 = vsub.f32 %v21645_v9, %v27467_v14  ;;  %v22052_v60 = vsub.f32 %v21679_v20, %v27470_v30 }
 0x7d2   : > { %27454 = vst [vmem:[#allocation50_spill] sm:$0xff] %v21985_v13  ;;  %v22007_v54 = vsub.f32 %v21594_v61, %v27457_v35  ;;  %27464 = vst [vmem:[#allocation81_spill] sm:$0xff] %v22022_v25  ;;  %v22027_v61 = vld [vmem:[%s25476_s5 + $0x2e8] sm:$0xff]  ;;  %v22047_v35 = vsub.f32 %v21674_v8, %v27468_v33  ;;  %6906 = vmatmul.mubr.f32.gmra.mrb[50].mxu0 %v27353_v12  ;;  %v27472_v9 = vand.u32 4294901760, %v21691_v58  ;;  %v27474_v8 = vand.u32 4294901760, %v21930_v0  ;;  %v22078_v33 = vld [vmem:[%s25476_s5 + $0x2f0] sm:$0xff] }
 0x7d3   : > { %27460 = vst [vmem:[#allocation57_spill] sm:$0xff] %v22012_v57  ;;  %v22037_v28 = vsub.f32 %v21640_v40, %v27465_v15  ;;  %27471 = vst [vmem:[#allocation13_spill] sm:$0xff] %v22052_v60  ;;  %v22058_v40 = vld [vmem:[%s25476_s5 + $0x2e0] sm:$0xff]  ;;  %6912 = vmatprep.mubr.f32.mxu0 %v27354_v3  ;;  %15411 = vmatpush1.bf16.msra.mxu0 %v21971_v42  ;;  %v27475_v20 = vand.u32 4294901760, %v21935_v10  ;;  %v6978_v12 = vand.u32 4294901760, %v21992_v51  ;;  %v6982_v14 = vand.u32 4294901760, %v21997_v46 }
 0x7d4   : > { %27458 = vst [vmem:[#allocation51_spill] sm:$0xff] %v22007_v54  ;;  %27469 = vst [vmem:[#allocation11_spill] sm:$0xff] %v22047_v35  ;;  %v22063_v15 = vsub.f32 %v21691_v58, %v27472_v9  ;;  %v22083_v3 = vld [vmem:[%s25476_s5 + $0x308] sm:$0xff]  ;;  %v22088_v58 = vld [vmem:[%s25476_s5 + $0x318] sm:$0xff]  ;;  %v27477_v9 = vand.u32 4294901760, %v21696_v38  ;;  %15413 = vmatprep.subr.bf16.mxu0 %v21985_v13  ;;  %v27480_v42 = vand.u32 4294901760, %v21946_v26 }
 0x7d5   : > { %27466 = vst [vmem:[#allocation29_spill] sm:$0xff] %v22037_v28  ;;  %v22071_v30 = vpack.c.bf16 %v27475_v20, %v27474_v8  ;;  %v27479_v20 = vand.u32 4294901760, %v21941_v4  ;;  %v6984_v22 = vand.u32 4294901760, %v22027_v61  ;;  %v27486_v13 = vand.u32 4294901760, %v21754_v39 }
 0x7d6   : > { %27473 = vst [vmem:[#allocation42_spill] sm:$0xff] %v22063_v15  ;;  %v22093_v8 = vsub.f32 %v21696_v38, %v27477_v9  ;;  %v27484_v38 = vand.u32 4294901760, %v21738_v52  ;;  %6914 = vmatmul.mubr.f32.gmra.mrb[52].mxu0 %v27357_v19  ;;  %v22141_v19 = vpack.c.bf16 %v6982_v14, %v6978_v12  ;;  %v27494_v16 = vand.u32 4294901760, %v22032_v5 }
 0x7d7   : > { %27476 = vst [vmem:[#allocation40_spill] sm:$0xff] %v22071_v30  ;;  %v22100_v17 = vpack.c.bf16 %v27480_v42, %v27479_v20  ;;  %v22117_v34 = vsub.f32 %v21754_v39, %v27486_v13  ;;  %v27487_v42 = vand.u32 4294901760, %v21759_v27  ;;  %v27489_v13 = vand.u32 4294901760, %v21803_v48  ;;  %6920 = vmatprep.mubr.f32.mxu0 %v27358_v21  ;;  %15415 = vmatpush1.bf16.msra.mxu0 %v22071_v30 }
 0x7d8   : > { %27478 = vst [vmem:[#allocation46_spill] sm:$0xff] %v22093_v8  ;;  %v22112_v9 = vsub.f32 %v21738_v52, %v27484_v38  ;;  %v27488_v38 = vand.u32 4294901760, %v21798_v7  ;;  %27490 = vst [vmem:[#allocation89_spill] sm:$0xff] %v22141_v19  ;;  %v27499_v30 = vand.u32 4294901760, %v21930_v0  ;;  %v22260_v50 = vsub.f32 %v21992_v51, %v6978_v12 }
 0x7d9   : > { %27481 = vst [vmem:[#allocation47_spill] sm:$0xff] %v22100_v17  ;;  %v22122_v20 = vsub.f32 %v21759_v27, %v27487_v42  ;;  %v22137_v27 = vsub.f32 %v21803_v48, %v27489_v13  ;;  %v22146_v42 = vld [vmem:[%s25476_s5 + $0x300] sm:$0xff]  ;;  %v27491_v48 = vand.u32 4294901760, %v21813_v24  ;;  %v27492_v13 = vand.u32 4294901760, %v21818_v49  ;;  %15417 = vmatprep.subr.bf16.mxu0 %v22100_v17 }
 0x7da   : > { %27485 = vst [vmem:[#allocation87_spill] sm:$0xff] %v22112_v9  ;;  %v22132_v39 = vsub.f32 %v21798_v7, %v27488_v38  ;;  %v22151_v7 = vld [vmem:[%s25476_s5 + $0x310] sm:$0xff]  ;;  %v22172_v38 = vpack.c.bf16 %v27494_v16, %v6984_v22  ;;  %v22192_v16 = vsub.f32 %v21867_v18, %v27497_v36  ;;  %v22202_v1 = vsub.f32 %v21930_v0, %v27499_v30 }
 0x7db   : > { %v22157_v21 = vsub.f32 %v21813_v24, %v27491_v48  ;;  %v22162_v52 = vsub.f32 %v21818_v49, %v27492_v13  ;;  %v22177_v24 = vld [vmem:[%s25476_s5 + $0x328] sm:$0xff]  ;;  %v22182_v49 = vld [vmem:[%s25476_s5 + $0x338] sm:$0xff]  ;;  %v27496_v48 = vand.u32 4294901760, %v21861_v53  ;;  %v27498_v13 = vand.u32 4294901760, %v21872_v56  ;;  %v22212_v18 = vld [vmem:[%s25476_s5 + $0x330] sm:$0xff]  ;;  %6922 = vmatmul.mubr.f32.gmra.mrb[54].mxu0 %v27361_v29 }
 0x7dc   : > { %27495 = vst [vmem:[#allocation90_spill] sm:$0xff] %v22172_v38  ;;  %v27503_v0 = vand.u32 4294901760, %v22083_v3  ;;  %v27504_v30 = vand.u32 4294901760, %v22088_v58  ;;  %15419 = vmatpush1.bf16.msra.mxu0 %v22141_v19  ;;  %v27506_v29 = vand.u32 4294901760, %v21701_v45  ;;  %v27508_v19 = vand.u32 4294901760, %v21941_v4 }
 0x7dd   : > { %v22187_v55 = vsub.f32 %v21861_v53, %v27496_v48  ;;  %v22197_v17 = vsub.f32 %v21872_v56, %v27498_v13  ;;  %v22207_v53 = vld [vmem:[%s25476_s5 + $0x320] sm:$0xff]  ;;  %v27500_v56 = vand.u32 4294901760, %v22058_v40  ;;  %v27501_v48 = vand.u32 4294901760, %v22078_v33  ;;  %15421 = vmatprep.subr.bf16.mxu0 %v22172_v38 }
 0x7de   : > { %v22225_v13 = vpack.c.bf16 %v27504_v30, %v27503_v0  ;;  %7039 = vmatprep.mubr.f32.mxu0 %v27506_v29  ;;  %v22252_v0 = vsub.f32 %v21941_v4, %v27508_v19  ;;  %v27509_v30 = vand.u32 4294901760, %v21946_v26  ;;  %v22263_v29 = vsub.f32 %v21997_v46, %v6982_v14 }
 0x7df   : > { %v22219_v36 = vpack.c.bf16 %v27501_v48, %v27500_v56  ;;  %v5238_v48 = vld [vmem:[%s25476_s5 + $0x348] sm:$0xf]  ;;  %v27507_v56 = vand.u32 4294901760, %v21935_v10  ;;  %v27511_v51 = vand.u32 4294901760, %v22146_v42  ;;  %v27512_v46 = vand.u32 4294901760, %v22151_v7 }
 0x7e0   : > { %27505 = vst [vmem:[#allocation94_spill] sm:$0xff] %v22225_v13  ;;  %v22257_v6 = vsub.f32 %v21946_v26, %v27509_v30  ;;  %v22266_v45 = vsel %vm5066_vm7, %v5238_v48, 0  ;;  %v22274_v26 = vsub.f32 %v22027_v61, %v6984_v22  ;;  %v27514_v14 = vand.u32 4294901760, %v22007_v54 }
 0x7e1   : > { %27502 = vst [vmem:[#allocation92_spill] sm:$0xff] %v22219_v36  ;;  %v22247_v37 = vsub.f32 %v21935_v10, %v27507_v56  ;;  %27510 = vst [vmem:[#allocation49_spill] sm:$0xff] %v22266_v45  ;;  %v5237_v10 = vld [vmem:[%s25476_s5 + $0x340] sm:$0xf]  ;;  %15423 = vmatpush1.bf16.msra.mxu0 %v22219_v36  ;;  %v22281_v12 = vpack.c.bf16 %v27512_v46, %v27511_v51  ;;  %v27515_v48 = vand.u32 4294901760, %v22012_v57  ;;  %v27516_v22 = vand.u32 4294901760, %v22177_v24 }
 0x7e2   : > { %v7150_v56 = vsub.f32 %v22007_v54, %v27514_v14  ;;  %15425 = vmatprep.subr.bf16.mxu0 %v22225_v13  ;;  %v27517_v61 = vand.u32 4294901760, %v22182_v49  ;;  %v27519_v4 = vand.u32 4294901760, %v22207_v53  ;;  %v27520_v51 = vand.u32 4294901760, %v22212_v18 }
 0x7e3   : > { %27513 = vst [vmem:[#allocation54_spill] sm:$0xff] %v22281_v12  ;;  %v7162_v30 = vsub.f32 %v22012_v57, %v27515_v48  ;;  %v27522_v14 = vand.u32 4294901760, %v22017_v59  ;;  %v27523_v48 = vand.u32 4294901760, %v22022_v25  ;;  %v22309_v38 = vand.u32 4294901760, %v22266_v45 }
 0x7e4   : > { %v22294_v19 = vpack.c.bf16 %v27517_v61, %v27516_v22  ;;  %v22300_v46 = vpack.c.bf16 %v27520_v51, %v27519_v4  ;;  %v22312_v22 = vsel %vm5066_vm7, %v5237_v10, 0  ;;  %v27524_v4 = vand.u32 4294901760, %v22037_v28 }
 0x7e5   : > { %v7156_v36 = vsub.f32 %v22017_v59, %v27522_v14  ;;  %v7168_v13 = vsub.f32 %v22022_v25, %v27523_v48  ;;  %v27525_v14 = vand.u32 4294901760, %v22042_v11  ;;  %15427 = vmatpush1.bf16.msra.mxu0 %v22281_v12  ;;  %v7151_v10 = vand.u32 4294901760, %v7150_v56 }
 0x7e6   : > { %27518 = vst [vmem:[#allocation77_spill] sm:$0xff] %v22294_v19  ;;  %27521 = vst [vmem:[#allocation19_spill] sm:$0xff] %v22300_v46  ;;  %v7174_v51 = vsub.f32 %v22037_v28, %v27524_v4  ;;  %v7163_v54 = vand.u32 4294901760, %v7162_v30  ;;  %15429 = vmatprep.subr.bf16.mxu0 %v22294_v19  ;;  %v27526_v48 = vand.u32 4294901760, %v22032_v5  ;;  %v22336_v56 = vand.u32 4294901760, %v22312_v22 }
 0x7e7   : > { %v7186_v59 = vsub.f32 %v22042_v11, %v27525_v14  ;;  %v7157_v45 = vand.u32 4294901760, %v7156_v36  ;;  %v7169_v4 = vand.u32 4294901760, %v7168_v13  ;;  %v27527_v30 = vand.u32 4294901760, %v22047_v35 }
 0x7e8   : > { %v22333_v25 = vsub.f32 %v22032_v5, %v27526_v48  ;;  %v27528_v61 = vand.u32 4294901760, %v22052_v60  ;;  %v7175_v13 = vand.u32 4294901760, %v7174_v51  ;;  %v27529_v14 = vand.u32 4294901760, %v22063_v15 }
 0x7e9   : > { %v7180_v57 = vsub.f32 %v22047_v35, %v27527_v30  ;;  %v7187_v28 = vand.u32 4294901760, %v7186_v59  ;;  %v27530_v5 = vand.u32 4294901760, %v22093_v8  ;;  %15431 = vmatpush1.bf16.msra.mxu0 %v22300_v46  ;;  %v27531_v12 = vand.u32 4294901760, %v22107_v2 }
 0x7ea   : > { %v7192_v36 = vsub.f32 %v22052_v60, %v27528_v61  ;;  %v7198_v19 = vsub.f32 %v22063_v15, %v27529_v14  ;;  %v27532_v35 = vand.u32 4294901760, %v22112_v9  ;;  %7009 = vmatprep.subr.mxu0 %v22309_v38  ;;  %v15432_v14 = vpack.c.bf16 %v7163_v54, %v7151_v10 }
 0x7eb   : > { %v7210_v48 = vsub.f32 %v22093_v8, %v27530_v5  ;;  %v7204_v30 = vsub.f32 %v22107_v2, %v27531_v12  ;;  %v15434_v15 = vpack.c.bf16 %v7169_v4, %v7157_v45  ;;  %v27533_v5 = vand.u32 4294901760, %v22117_v34 }
 0x7ec   : > { %v7216_v61 = vsub.f32 %v22112_v9, %v27532_v35  ;;  %v27534_v8 = vand.u32 4294901760, %v22122_v20  ;;  %v7181_v2 = vand.u32 4294901760, %v7180_v57  ;;  %v7193_v60 = vand.u32 4294901760, %v7192_v36 }
 0x7ed   : > { %v7222_v46 = vsub.f32 %v22117_v34, %v27533_v5  ;;  %v27535_v51 = vand.u32 4294901760, %v22058_v40  ;;  %v15436_v54 = vpack.c.bf16 %v7187_v28, %v7175_v13  ;;  %v7199_v45 = vand.u32 4294901760, %v7198_v19  ;;  %7011 = vmatpush1.msra.mxu0 %v22336_v56 }
 0x7ee   : > { %v7234_v12 = vsub.f32 %v22122_v20, %v27534_v8  ;;  %v7211_v10 = vand.u32 4294901760, %v7210_v48  ;;  %v7205_v4 = vand.u32 4294901760, %v7204_v30  ;;  %v7217_v5 = vand.u32 4294901760, %v7216_v61  ;;  %15433 = vmatprep.subr.bf16.mxu0 %v15432_v14 }
 0x7ef   : > { %v22371_v9 = vsub.f32 %v22058_v40, %v27535_v51  ;;  %v27536_v8 = vand.u32 4294901760, %v22132_v39  ;;  %v27537_v36 = vand.u32 4294901760, %v22137_v27  ;;  %v27538_v35 = vand.u32 4294901760, %v21604_v43 }
 0x7f0   : > { %v7223_v40 = vand.u32 4294901760, %v7222_v46  ;;  %v7235_v28 = vand.u32 4294901760, %v7234_v12  ;;  %v26234_v19 = vand.u32 4294901760, %v22167_v41  ;;  %v26233_v13 = vand.u32 4294901760, %v22187_v55 }
 0x7f1   : > { %v7228_v57 = vsub.f32 %v22132_v39, %v27536_v8  ;;  %v7240_v59 = vsub.f32 %v22137_v27, %v27537_v36  ;;  %7045 = vmatmul.mubr.f32.vlgmr.msra.gmra.mrb[42].mxu0 %v27538_v35  ;;  %v27539_v48 = vand.u32 4294901760, %v21772_v23  ;;  %v15438_v30 = vpack.c.bf16 %v7193_v60, %v7181_v2 }
 0x7f2   : > { %15435 = vmatpush1.bf16.msra.mxu0 %v15434_v15  ;;  %v27540_v61 = vand.u32 4294901760, %v22157_v21  ;;  %v27541_v8 = vand.u32 4294901760, %v22162_v52  ;;  %v27542_v14 = vand.u32 4294901760, %v22078_v33  ;;  %v15440_v23 = vpack.c.bf16 %v7211_v10, %v7199_v45 }
 0x7f3   : > { %7055 = vmatprep.mubr.f32.mxu0 %v27539_v48  ;;  %15437 = vmatprep.subr.bf16.mxu0 %v15436_v54  ;;  %v26232_v15 = vand.u32 4294901760, %v22192_v16  ;;  %v26231_v2 = vand.u32 4294901760, %v22197_v17  ;;  %v27543_v60 = vand.u32 4294901760, %v22083_v3  ;;  %v27544_v36 = vand.u32 4294901760, %v22088_v58 }
 0x7f4   : > { %v7246_v51 = vsub.f32 %v22157_v21, %v27540_v61  ;;  %v7258_v43 = vsub.f32 %v22162_v52, %v27541_v8  ;;  %v22396_v12 = vsub.f32 %v22078_v33, %v27542_v14  ;;  %v15442_v61 = vpack.c.bf16 %v7217_v5, %v7205_v4 }
 0x7f5   : > { %v22403_v35 = vsub.f32 %v22083_v3, %v27543_v60  ;;  %v22408_v48 = vsub.f32 %v22088_v58, %v27544_v36  ;;  %v7229_v8 = vand.u32 4294901760, %v7228_v57  ;;  %v27545_v33 = vand.u32 4294901760, %v21808_v62 }
 0x7f6   : > { %v15444_v54 = vpack.c.bf16 %v7235_v28, %v7223_v40  ;;  %v7241_v45 = vand.u32 4294901760, %v7240_v59  ;;  %v7252_v10 = vsub.f32 %v22167_v41, %v26234_v19  ;;  %v7264_v3 = vsub.f32 %v22187_v55, %v26233_v13  ;;  %15439 = vmatpush1.bf16.msra.mxu0 %v15438_v30 }
 0x7f7   : > { %7061 = vmatmul.mubr.f32.gmra.mrb[44].mxu0 %v27545_v33  ;;  %v27546_v14 = vand.u32 4294901760, %v21877_v44  ;;  %v7247_v58 = vand.u32 4294901760, %v7246_v51  ;;  %v7259_v4 = vand.u32 4294901760, %v7258_v43  ;;  %v26242_v5 = vand.u32 4294901760, %v22202_v1  ;;  %15441 = vmatprep.subr.bf16.mxu0 %v15440_v23 }
 0x7f8   : > { %v26241_v62 = vand.u32 4294901760, %v22247_v37  ;;  %v7270_v59 = vsub.f32 %v22192_v16, %v26232_v15  ;;  %v7282_v57 = vsub.f32 %v22197_v17, %v26231_v2  ;;  %v26240_v40 = vand.u32 4294901760, %v22252_v0 }
 0x7f9   : > { %7071 = vmatprep.mubr.f32.mxu0 %v27546_v14  ;;  %v26239_v44 = vand.u32 4294901760, %v22257_v6  ;;  %v27547_v28 = vand.u32 4294901760, %v22146_v42  ;;  %v26238_v51 = vand.u32 4294901760, %v22260_v50  ;;  %v26236_v43 = vand.u32 4294901760, %v22263_v29 }
 0x7fa   : > { %v26235_v23 = vand.u32 4294901760, %v22274_v26  ;;  %v27548_v60 = vand.u32 4294901760, %v22151_v7  ;;  %v27549_v33 = vand.u32 4294901760, %v21882_v31  ;;  %v15446_v14 = vpack.c.bf16 %v7241_v45, %v7229_v8  ;;  %15443 = vmatpush1.bf16.msra.mxu0 %v15442_v61 }
 0x7fb   : > { %v22433_v30 = vsub.f32 %v22146_v42, %v27547_v28  ;;  %v7253_v2 = vand.u32 4294901760, %v7252_v10  ;;  %v26237_v15 = vand.u32 4294901760, %v22333_v25  ;;  %v27550_v42 = vand.u32 4294901760, %v21887_v47  ;;  %15445 = vmatprep.subr.bf16.mxu0 %v15444_v54 }
 0x7fc   : > { %v22441_v36 = vsub.f32 %v22151_v7, %v27548_v60  ;;  %7077 = vmatmul.mubr.f32.gmra.mrb[46].mxu0 %v27549_v33  ;;  %v15448_v28 = vpack.c.bf16 %v7259_v4, %v7247_v58  ;;  %v7265_v13 = vand.u32 4294901760, %v7264_v3  ;;  %v7276_v19 = vsub.f32 %v22202_v1, %v26242_v5 }
 0x7fd   : > { %7087 = vmatprep.mubr.f32.mxu0 %v27550_v42  ;;  %v7288_v7 = vsub.f32 %v22247_v37, %v26241_v62  ;;  %v7271_v31 = vand.u32 4294901760, %v7270_v59  ;;  %v7283_v8 = vand.u32 4294901760, %v7282_v57  ;;  %v7294_v45 = vsub.f32 %v22252_v0, %v26240_v40 }
 0x7fe   : > { %v7306_v47 = vsub.f32 %v22257_v6, %v26239_v44  ;;  %v27551_v61 = vand.u32 4294901760, %v22177_v24  ;;  %v7300_v3 = vsub.f32 %v22260_v50, %v26238_v51  ;;  %v7312_v54 = vsub.f32 %v22263_v29, %v26236_v43  ;;  %15447 = vmatpush1.bf16.msra.mxu0 %v15446_v14 }
 0x7ff   : > { %v7318_v58 = vsub.f32 %v22274_v26, %v26235_v23  ;;  %v27552_v4 = vand.u32 4294901760, %v21892_v32  ;;  %v26254_v59 = vand.u32 4294901760, %v22371_v9  ;;  %v26253_v57 = vand.u32 4294901760, %v22396_v12  ;;  %15449 = vmatprep.subr.bf16.mxu0 %v15448_v28  ;;  %v27563_v28 = vld [vmem:[#allocation45_spill] sm:$0xff] }
 0x800   : > { %v22463_v10 = vsub.f32 %v22177_v24, %v27551_v61  ;;  %v7330_v24 = vsub.f32 %v22333_v25, %v26237_v15  ;;  %v26252_v60 = vand.u32 4294901760, %v22403_v35  ;;  %v27553_v33 = vand.u32 4294901760, %v22182_v49  ;;  %v27555_v61 = vld [vmem:[#allocation93_spill] sm:$0xff] }
 0x801   : > { %7093 = vmatmul.mubr.f32.gmra.mrb[48].mxu0 %v27552_v4  ;;  %v27556_v23 = vand.u32 4294901760, %v27555_v61  ;;  %v15450_v32 = vpack.c.bf16 %v7265_v13, %v7253_v2  ;;  %v7277_v4 = vand.u32 4294901760, %v7276_v19  ;;  %v7289_v43 = vand.u32 4294901760, %v7288_v7  ;;  %v27559_v61 = vld [vmem:[#allocation53_spill] sm:$0xff] }
 0x802   : > { %v22485_v42 = vsub.f32 %v22182_v49, %v27553_v33  ;;  %v15452_v15 = vpack.c.bf16 %v7283_v8, %v7271_v31  ;;  %v7295_v51 = vand.u32 4294901760, %v7294_v45  ;;  %v7307_v44 = vand.u32 4294901760, %v7306_v47 }
 0x803   : > { %7103 = vmatprep.mubr.f32.mxu0 %v27556_v23  ;;  %v26251_v40 = vand.u32 4294901760, %v22408_v48  ;;  %v27557_v62 = vand.u32 4294901760, %v22207_v53  ;;  %v7301_v49 = vand.u32 4294901760, %v7300_v3  ;;  %v7313_v33 = vand.u32 4294901760, %v7312_v54  ;;  %15451 = vmatpush1.bf16.msra.mxu0 %v15450_v32 }
 0x804   : > { %27554 = vst [vmem:[#allocation52_spill] sm:$0xff] %v22485_v42  ;;  %v7319_v46 = vand.u32 4294901760, %v7318_v58  ;;  %v27560_v23 = vand.u32 4294901760, %v27559_v61  ;;  %v7331_v13 = vand.u32 4294901760, %v7330_v24  ;;  %v7324_v19 = vsub.f32 %v22371_v9, %v26254_v59  ;;  %15453 = vmatprep.subr.bf16.mxu0 %v15452_v15  ;;  %v27565_v58 = vld [vmem:[#allocation39_spill] sm:$0xff]  ;;  %v27566_v61 = vld [vmem:[#allocation48_spill] sm:$0xff] }
 0x805   : > { %v22493_v5 = vsub.f32 %v22207_v53, %v27557_v62  ;;  %v7336_v2 = vsub.f32 %v22396_v12, %v26253_v57  ;;  %v7342_v53 = vsub.f32 %v22403_v35, %v26252_v60  ;;  %v27561_v62 = vand.u32 4294901760, %v22212_v18  ;;  %v27594_v60 = vld [vmem:[#allocation72_spill] sm:$0xff]  ;;  %v27596_v59 = vld [vmem:[#allocation103_spill] sm:$0xff] }
 0x806   : > { %7109 = vmatmul.mubr.f32.gmra.mrb[50].mxu0 %v27560_v23  ;;  %v27564_v7 = vand.u32 4294901760, %v27563_v28  ;;  %v15454_v31 = vpack.c.bf16 %v7289_v43, %v7277_v4  ;;  %v26250_v8 = vand.u32 4294901760, %v22433_v30  ;;  %v26249_v45 = vand.u32 4294901760, %v22441_v36 }
 0x807   : > { %27558 = vst [vmem:[#allocation34_spill] sm:$0xff] %v22493_v5  ;;  %v22509_v14 = vsub.f32 %v22212_v18, %v27561_v62  ;;  %v15456_v47 = vpack.c.bf16 %v7307_v44, %v7295_v51  ;;  %v7354_v3 = vsub.f32 %v22408_v48, %v26251_v40  ;;  %v26248_v54 = vand.u32 4294901760, %v22463_v10 }
 0x808   : > { %7119 = vmatprep.mubr.f32.mxu0 %v27564_v7  ;;  %v26247_v18 = vand.u32 4294901760, %v22485_v42  ;;  %v7134_v24 = vand.u32 4294901760, %v27565_v58  ;;  %v7140_v23 = vand.u32 4294901760, %v27566_v61  ;;  %v15458_v32 = vpack.c.bf16 %v7313_v33, %v7301_v49  ;;  %15455 = vmatpush1.bf16.msra.mxu0 %v15454_v31  ;;  %v27571_v31 = vld [vmem:[#allocation35_spill] sm:$0xff] }
 0x809   : > { %27562 = vst [vmem:[#allocation119_spill] sm:$0xff] %v22509_v14  ;;  %v27567_v43 = vand.u32 4294901760, %v21963_v63  ;;  %v15460_v4 = vpack.c.bf16 %v7331_v13, %v7319_v46  ;;  %v7325_v62 = vand.u32 4294901760, %v7324_v19  ;;  %v7337_v15 = vand.u32 4294901760, %v7336_v2  ;;  %15457 = vmatprep.subr.bf16.mxu0 %v15456_v47  ;;  %v27568_v13 = vld [vmem:[#allocation49_spill] sm:$0xff] }
 0x80a   : > { %v7343_v44 = vand.u32 4294901760, %v7342_v53  ;;  %v7348_v51 = vsub.f32 %v22433_v30, %v26250_v8  ;;  %v7360_v28 = vsub.f32 %v22441_v36, %v26249_v45  ;;  %v26246_v7 = vand.u32 4294901760, %v22493_v5  ;;  %v27592_v8 = vld [vmem:[#allocation24_spill] sm:$0xff] }
 0x80b   : > { %7125 = vmatmul.mubr.f32.gmra.mrb[52].mxu0 %v27567_v43  ;;  %v26243_v49 = vand.u32 4294901760, %v22509_v14  ;;  %v7355_v63 = vand.u32 4294901760, %v7354_v3  ;;  %v7366_v46 = vsub.f32 %v22463_v10, %v26248_v54  ;;  %v7378_v33 = vsub.f32 %v22485_v42, %v26247_v18  ;;  %v27590_v54 = vld [vmem:[#allocation18_spill] sm:$0xff] }
 0x80c   : > { %7135 = vmatprep.mubr.f32.mxu0 %v7134_v24  ;;  %v22540_v19 = vsub.f32 %v27568_v13, %v22309_v38  ;;  %v22544_v2 = vsub.f32 %v22312_v22, %v22336_v56  ;;  %v15462_v53 = vpack.c.bf16 %v7337_v15, %v7325_v62  ;;  %15459 = vmatpush1.bf16.msra.mxu0 %v15458_v32  ;;  %v7349_v47 = vand.u32 4294901760, %v7348_v51 }
 0x80d   : > { %v7361_v3 = vand.u32 4294901760, %v7360_v28  ;;  %v7372_v58 = vsub.f32 %v22493_v5, %v26246_v7  ;;  %v7384_v24 = vsub.f32 %v22509_v14, %v26243_v49  ;;  %15461 = vmatprep.subr.bf16.mxu0 %v15460_v4  ;;  %v15464_v61 = vpack.c.bf16 %v7355_v63, %v7343_v44  ;;  %v27588_v7 = vld [vmem:[#allocation111_spill] sm:$0xff] }
 0x80e   : > { %27569 = vst [vmem:[#allocation20_spill] sm:$0xff] %v22540_v19  ;;  %27570 = vst [vmem:[#allocation55_spill] sm:$0xff] %v22544_v2  ;;  %v7367_v43 = vand.u32 4294901760, %v7366_v46  ;;  %v7379_v22 = vand.u32 4294901760, %v7378_v33  ;;  %v26244_v51 = vand.u32 4294901760, %v22544_v2  ;;  %v27572_v46 = vld [vmem:[#allocation51_spill] sm:$0xff]  ;;  %v15488_v18 = vpack.c.bf16 %v22162_v52, %v22157_v21 }
 0x80f   : > { %7141 = vmatmul.mubr.f32.gmra.mrb[54].mxu0 %v7140_v23  ;;  %v26245_v23 = vand.u32 4294901760, %v22540_v19  ;;  %v15466_v32 = vpack.c.bf16 %v7361_v3, %v7349_v47  ;;  %v7373_v62 = vand.u32 4294901760, %v7372_v58  ;;  %v7385_v15 = vand.u32 4294901760, %v7384_v24  ;;  %v27573_v33 = vld [vmem:[#allocation57_spill] sm:$0xff]  ;;  %v27574_v47 = vld [vmem:[#allocation60_spill] sm:$0xff] }
 0x810   : > { %7422 = vmatprep.mubr.f32.mxu0 %v27571_v31  ;;  %15463 = vmatpush1.bf16.msra.mxu0 %v15462_v53  ;;  %v15468_v28 = vpack.c.bf16 %v7379_v22, %v7367_v43  ;;  %v7396_v4 = vsub.f32 %v22544_v2, %v26244_v51  ;;  %v15472_v53 = vpack.c.bf16 %v27573_v33, %v27572_v46  ;;  %v27575_v3 = vld [vmem:[#allocation81_spill] sm:$0xff]  ;;  %v27577_v43 = vld [vmem:[#allocation67_spill] sm:$0xff]  ;;  %v27578_v22 = vld [vmem:[#allocation104_spill] sm:$0xff] }
 0x811   : > { %15465 = vmatprep.subr.bf16.mxu0 %v15464_v61  ;;  %v7390_v13 = vsub.f32 %v22540_v19, %v26245_v23  ;;  %v15470_v49 = vpack.c.bf16 %v7385_v15, %v7373_v62  ;;  %v15474_v58 = vpack.c.bf16 %v27575_v3, %v27574_v47  ;;  %v27576_v24 = vld [vmem:[#allocation29_spill] sm:$0xff]  ;;  %v27581_v15 = vld [vmem:[#allocation42_spill] sm:$0xff]  ;;  %v15492_v45 = vpack.c.bf16 %v22197_v17, %v22192_v16 }
 0x812   : > { %v7397_v63 = vand.u32 4294901760, %v7396_v4  ;;  %v15476_v61 = vpack.c.bf16 %v22042_v11, %v27576_v24  ;;  %v27583_v4 = vld [vmem:[#allocation105_spill] sm:$0xff]  ;;  %v27585_v51 = vld [vmem:[#allocation86_spill] sm:$0xff]  ;;  %v15496_v40 = vpack.c.bf16 %v22257_v6, %v22252_v0  ;;  %v15500_v57 = vpack.c.bf16 %v22333_v25, %v22274_v26 }
 0x813   : > { %v7391_v44 = vand.u32 4294901760, %v7390_v13 }
 0x814   : > { %15467 = vmatpush1.bf16.msra.mxu0 %v15466_v32  ;;  %v27579_v32 = vld [vmem:[#allocation11_spill] sm:$0xff] }
 0x815   : > { %15469 = vmatprep.subr.bf16.mxu0 %v15468_v28  ;;  %v27582_v28 = vld [vmem:[#allocation46_spill] sm:$0xff] }
 0x816   : > { %v15480_v13 = vpack.c.bf16 %v27582_v28, %v27581_v15 }
 0x818   : > { %15471 = vmatpush1.bf16.msra.mxu0 %v15470_v49  ;;  %v27580_v49 = vld [vmem:[#allocation13_spill] sm:$0xff] }
 0x819   : > { %7392 = vmatprep.subr.mxu0 %v7391_v44  ;;  %v15478_v62 = vpack.c.bf16 %v27580_v49, %v27579_v32  ;;  %v27584_v44 = vld [vmem:[#allocation106_spill] sm:$0xff] }
 0x81c   : > { %7398 = vmatpush1.msra.mxu0 %v7397_v63  ;;  %v27586_v63 = vld [vmem:[#allocation87_spill] sm:$0xff] }
 0x81d   : > { %7424 = vmatmul.mubr.f32.vlgmr.msra.gmra.mrb[42].mxu0 %v27577_v43  ;;  %15473 = vmatprep.subr.bf16.mxu0 %v15472_v53  ;;  %v15482_v23 = vpack.c.bf16 %v27586_v63, %v27585_v51  ;;  %v15484_v53 = vpack.c.bf16 %v22122_v20, %v22117_v34  ;;  %v27621_v43 = vld [vmem:[#allocation47_spill] sm:$0xff] }
 0x81e   : > { %7430 = vmatprep.mubr.f32.mxu0 %v27578_v22  ;;  %15475 = vmatpush1.bf16.msra.mxu0 %v15474_v58  ;;  %v27587_v58 = vld [vmem:[#allocation107_spill] sm:$0xff]  ;;  %v27617_v22 = vld [vmem:[#allocation50_spill] sm:$0xff] }
 0x81f   : > { %15477 = vmatprep.subr.bf16.mxu0 %v15476_v61  ;;  %v15486_v61 = vpack.c.bf16 %v22137_v27, %v22132_v39 }
 0x821   : > { %7432 = vmatmul.mubr.f32.gmra.mrb[44].mxu0 %v27583_v4  ;;  %v27612_v4 = vld [vmem:[#allocation56_spill] sm:$0xff] }
 0x822   : > { %7438 = vmatprep.mubr.f32.mxu0 %v27584_v44  ;;  %15479 = vmatpush1.bf16.msra.mxu0 %v15478_v62  ;;  %v27589_v62 = vld [vmem:[#allocation113_spill] sm:$0xff] }
 0x823   : > { %15481 = vmatprep.subr.bf16.mxu0 %v15480_v13  ;;  %v15490_v13 = vpack.c.bf16 %v22187_v55, %v22167_v41  ;;  %v27611_v44 = vld [vmem:[#allocation9_spill] sm:$0xff] }
 0x825   : > { %7440 = vmatmul.mubr.f32.gmra.mrb[46].mxu0 %v27587_v58  ;;  %v27610_v58 = vld [vmem:[#allocation27_spill] sm:$0xff] }
 0x826   : > { %7446 = vmatprep.mubr.f32.mxu0 %v27588_v7  ;;  %15483 = vmatpush1.bf16.msra.mxu0 %v15482_v23  ;;  %v27591_v23 = vld [vmem:[#allocation62_spill] sm:$0xff]  ;;  %v27609_v7 = vld [vmem:[#allocation25_spill] sm:$0xff] }
 0x827   : > { %15485 = vmatprep.subr.bf16.mxu0 %v15484_v53  ;;  %v15494_v53 = vpack.c.bf16 %v22247_v37, %v22202_v1 }
 0x829   : > { %7448 = vmatmul.mubr.f32.gmra.mrb[48].mxu0 %v27589_v62  ;;  %v27608_v62 = vld [vmem:[#allocation99_spill] sm:$0xff] }
 0x82a   : > { %7454 = vmatprep.mubr.f32.mxu0 %v27590_v54  ;;  %15487 = vmatpush1.bf16.msra.mxu0 %v15486_v61  ;;  %v27593_v61 = vld [vmem:[#allocation63_spill] sm:$0xff] }
 0x82b   : > { %15489 = vmatprep.subr.bf16.mxu0 %v15488_v18  ;;  %v15498_v18 = vpack.c.bf16 %v22263_v29, %v22260_v50  ;;  %v27607_v54 = vld [vmem:[#allocation115_spill] sm:$0xff] }
 0x82d   : > { %7456 = vmatmul.mubr.f32.gmra.mrb[50].mxu0 %v27591_v23  ;;  %v27606_v23 = vld [vmem:[#allocation112_spill] sm:$0xff] }
 0x82e   : > { %7462 = vmatprep.mubr.f32.mxu0 %v27592_v8  ;;  %15491 = vmatpush1.bf16.msra.mxu0 %v15490_v13  ;;  %v27595_v13 = vld [vmem:[#allocation37_spill] sm:$0xff]  ;;  %v27603_v8 = vld [vmem:[#allocation110_spill] sm:$0xff] }
 0x82f   : > { %15493 = vmatprep.subr.bf16.mxu0 %v15492_v45  ;;  %v15502_v45 = vpack.c.bf16 %v22396_v12, %v22371_v9 }
 0x831   : > { %7464 = vmatmul.mubr.f32.gmra.mrb[52].mxu0 %v27593_v61  ;;  %v27601_v61 = vld [vmem:[#allocation82_spill] sm:$0xff] }
 0x832   : > { %7470 = vmatprep.mubr.f32.mxu0 %v27594_v60  ;;  %15495 = vmatpush1.bf16.msra.mxu0 %v15494_v53  ;;  %v15504_v60 = vpack.c.bf16 %v22408_v48, %v22403_v35  ;;  %v15506_v53 = vpack.c.bf16 %v22441_v36, %v22433_v30 }
 0x833   : > { %15497 = vmatprep.subr.bf16.mxu0 %v15496_v40  ;;  %v15508_v40 = vpack.c.bf16 %v22485_v42, %v22463_v10 }
 0x835   : > { %7472 = vmatmul.mubr.f32.gmra.mrb[54].mxu0 %v27595_v13  ;;  %v27599_v13 = vld [vmem:[#allocation108_spill] sm:$0xff] }
 0x836   : > { %15499 = vmatpush1.bf16.msra.mxu0 %v15498_v18  ;;  %7628 = vmatprep.mubr.f32.mxu0 %v27596_v59  ;;  %v15510_v18 = vpack.c.bf16 %v22509_v14, %v22493_v5  ;;  %v27628_v14 = vld [vmem:[#allocation54_spill] sm:$0xff]  ;;  %v27629_v5 = vld [vmem:[#allocation77_spill] sm:$0xff] }
 0x837   : > { %15501 = vmatprep.subr.bf16.mxu0 %v15500_v57  ;;  %v27597_v57 = vld [vmem:[#allocation75_spill] sm:$0xff] }
 0x83a   : > { %15503 = vmatpush1.bf16.msra.mxu0 %v15502_v45  ;;  %v27598_v45 = vld [vmem:[#allocation114_spill] sm:$0xff] }
 0x83b   : > { %15505 = vmatprep.subr.bf16.mxu0 %v15504_v60  ;;  %v27600_v60 = vld [vmem:[#allocation74_spill] sm:$0xff] }
 0x83e   : > { %15507 = vmatpush1.bf16.msra.mxu0 %v15506_v53  ;;  %v27602_v53 = vld [vmem:[#allocation109_spill] sm:$0xff] }
 0x83f   : > { %15509 = vmatprep.subr.bf16.mxu0 %v15508_v40  ;;  %v27604_v40 = vld [vmem:[#allocation95_spill] sm:$0xff] }
 0x842   : > { %15511 = vmatpush1.bf16.msra.mxu0 %v15510_v18  ;;  %v27605_v18 = vld [vmem:[#allocation117_spill] sm:$0xff] }
 0x843   : > { %7600 = vmatprep.subr.mxu0 %v22540_v19  ;;  %v27625_v19 = vld [vmem:[#allocation90_spill] sm:$0xff] }
 0x846   : > { %7603 = vmatpush1.msra.mxu0 %v22544_v2  ;;  %v27622_v2 = vld [vmem:[#allocation98_spill] sm:$0xff] }
 0x847   : > { %7631 = vmatmul.mubr.f32.vlgmr.msra.gmra.mrb[42].mxu0 %v27597_v57  ;;  %15513 = vmatprep.subr.bf16.mxu0 %v27598_v45  ;;  %v27618_v45 = vld [vmem:[#allocation116_spill] sm:$0xff] }
 0x848   : > { %7638 = vmatprep.mubr.f32.mxu0 %v27599_v13  ;;  %15515 = vmatpush1.bf16.msra.mxu0 %v27600_v60  ;;  %v27614_v60 = vld [vmem:[#allocation84_spill] sm:$0xff] }
 0x849   : > { %15517 = vmatprep.subr.bf16.mxu0 %v27601_v61  ;;  %v27613_v61 = vld [vmem:[#allocation32_spill] sm:$0xff] }
 0x84b   : > { %7641 = vmatmul.mubr.f32.gmra.mrb[44].mxu0 %v27602_v53 }
 0x84c   : > { %7648 = vmatprep.mubr.f32.mxu0 %v27603_v8  ;;  %15519 = vmatpush1.bf16.msra.mxu0 %v27604_v40  ;;  %v27615_v40 = vld [vmem:[#allocation21_spill] sm:$0xff] }
 0x84d   : > { %15521 = vmatprep.subr.bf16.mxu0 %v27605_v18  ;;  %v27616_v18 = vld [vmem:[#allocation38_spill] sm:$0xff] }
 0x84f   : > { %7651 = vmatmul.mubr.f32.gmra.mrb[46].mxu0 %v27606_v23 }
 0x850   : > { %7658 = vmatprep.mubr.f32.mxu0 %v27607_v54  ;;  %15523 = vmatpush1.bf16.msra.mxu0 %v27608_v62  ;;  %v27619_v62 = vld [vmem:[#allocation120_spill] sm:$0xff] }
 0x851   : > { %15525 = vmatprep.subr.bf16.mxu0 %v27609_v7  ;;  %v27620_v7 = vld [vmem:[#allocation40_spill] sm:$0xff] }
 0x853   : > { %7661 = vmatmul.mubr.f32.gmra.mrb[48].mxu0 %v27610_v58 }
 0x854   : > { %7668 = vmatprep.mubr.f32.mxu0 %v27611_v44  ;;  %15527 = vmatpush1.bf16.msra.mxu0 %v27612_v4  ;;  %v27623_v4 = vld [vmem:[#allocation89_spill] sm:$0xff] }
 0x855   : > { %15529 = vmatprep.subr.bf16.mxu0 %v27613_v61  ;;  %v27624_v61 = vand.u32 4294901760, %v27596_v59 }
 0x857   : > { %7671 = vmatmul.mubr.f32.gmra.mrb[50].mxu0 %v27614_v60 }
 0x858   : > { %7678 = vmatprep.mubr.f32.mxu0 %v27615_v40  ;;  %15531 = vmatpush1.bf16.msra.mxu0 %v27616_v18  ;;  %v27626_v18 = vld [vmem:[#allocation92_spill] sm:$0xff] }
 0x859   : > { %15533 = vmatprep.subr.bf16.mxu0 %v27617_v22  ;;  %v27627_v22 = vld [vmem:[#allocation94_spill] sm:$0xff] }
 0x85b   : > { %7681 = vmatmul.mubr.f32.gmra.mrb[52].mxu0 %v27618_v45 }
 0x85c   : > { %7688 = vmatprep.mubr.f32.mxu0 %v27619_v62  ;;  %15535 = vmatpush1.bf16.msra.mxu0 %v27620_v7  ;;  %v27630_v7 = vld [vmem:[#allocation19_spill] sm:$0xff] }
 0x85d   : > { %15537 = vmatprep.subr.bf16.mxu0 %v27621_v43  ;;  %v27631_v43 = vand.u32 4294901760, %v27572_v46  ;;  %v27638_v46 = vand.u32 4294901760, %v27599_v13 }
 0x85f   : > { %7691 = vmatmul.mubr.f32.gmra.mrb[54].mxu0 %v27622_v2 }
 0x860   : > { %15539 = vmatpush1.bf16.msra.mxu0 %v27623_v4  ;;  %7806 = vmatprep.mubr.f32.mxu0 %v27624_v61  ;;  %v27632_v4 = vand.u32 4294901760, %v27573_v33  ;;  %v27633_v61 = vand.u32 4294901760, %v27574_v47  ;;  %v27639_v33 = vand.u32 4294901760, %v27579_v32  ;;  %v27640_v47 = vand.u32 4294901760, %v27580_v49 }
 0x861   : > { %15541 = vmatprep.subr.bf16.mxu0 %v27625_v19  ;;  %v27634_v19 = vand.u32 4294901760, %v27575_v3  ;;  %v27641_v3 = vand.u32 4294901760, %v27581_v15  ;;  %v27648_v49 = vand.u32 4294901760, %v22122_v20  ;;  %v27655_v20 = vand.u32 4294901760, %v27610_v58 }
 0x862   : > { %v15552_v59 = vpack.c.bf16 %v27632_v4, %v27631_v43  ;;  %v27645_v43 = vand.u32 4294901760, %v27585_v51  ;;  %v27650_v4 = vand.u32 4294901760, %v27607_v54  ;;  %v27652_v51 = vand.u32 4294901760, %v22137_v27 }
 0x863   : > { %v27657_v54 = vand.u32 4294901760, %v22167_v41  ;;  %v27659_v27 = vand.u32 4294901760, %v22192_v16  ;;  %v27662_v58 = vand.u32 4294901760, %v27615_v40  ;;  %v27664_v41 = vand.u32 4294901760, %v22247_v37 }
 0x864   : > { %15543 = vmatpush1.bf16.msra.mxu0 %v27626_v18  ;;  %v15554_v18 = vpack.c.bf16 %v27634_v19, %v27633_v61  ;;  %v15558_v19 = vpack.c.bf16 %v27640_v47, %v27639_v33  ;;  %v27666_v16 = vand.u32 4294901760, %v22257_v6  ;;  %v27669_v40 = vand.u32 4294901760, %v22260_v50 }
 0x865   : > { %15545 = vmatprep.subr.bf16.mxu0 %v27627_v22  ;;  %v27635_v22 = vand.u32 4294901760, %v27576_v24  ;;  %v27643_v24 = vand.u32 4294901760, %v27602_v53  ;;  %v27671_v37 = vand.u32 4294901760, %v22274_v26  ;;  %v27673_v6 = vand.u32 4294901760, %v27622_v2 }
 0x866   : > { %v27677_v47 = vand.u32 4294901760, %v22408_v48  ;;  %v27679_v2 = vand.u32 4294901760, %v22441_v36  ;;  %v27687_v48 = vld [vmem:[#allocation20_spill] sm:$0xff] }
 0x868   : > { %15547 = vmatpush1.bf16.msra.mxu0 %v27628_v14  ;;  %v27636_v14 = vand.u32 4294901760, %v22042_v11  ;;  %v27642_v11 = vand.u32 4294901760, %v27582_v28  ;;  %v27649_v28 = vand.u32 4294901760, %v27606_v23  ;;  %v27656_v23 = vand.u32 4294901760, %v27611_v44 }
 0x869   : > { %15549 = vmatprep.subr.bf16.mxu0 %v27629_v5  ;;  %v27663_v44 = vand.u32 4294901760, %v22202_v1  ;;  %v27670_v1 = vand.u32 4294901760, %v22263_v29  ;;  %v27676_v29 = vand.u32 4294901760, %v22403_v35 }
 0x86a   : > { %v15556_v42 = vpack.c.bf16 %v27636_v14, %v27635_v22  ;;  %v15560_v14 = vpack.c.bf16 %v27642_v11, %v27641_v3  ;;  %v27646_v22 = vand.u32 4294901760, %v27586_v63  ;;  %v27653_v63 = vand.u32 4294901760, %v22157_v21  ;;  %v27681_v11 = vld [vmem:[#allocation52_spill] sm:$0xff] }
 0x86b   : > { %v27660_v21 = vand.u32 4294901760, %v22197_v17  ;;  %v27667_v17 = vand.u32 4294901760, %v27618_v45  ;;  %v27675_v45 = vand.u32 4294901760, %v22396_v12  ;;  %v15584_v26 = vpack.c.bf16 %v27677_v47, %v27676_v29  ;;  %v27683_v12 = vld [vmem:[#allocation34_spill] sm:$0xff] }
 0x86c   : > { %15551 = vmatpush1.bf16.msra.mxu0 %v27630_v7  ;;  %v27637_v7 = vand.u32 4294901760, %v27597_v57  ;;  %v15562_v32 = vpack.c.bf16 %v27646_v22, %v27645_v43  ;;  %v27680_v3 = vand.u32 4294901760, %v22463_v10  ;;  %v27688_v22 = vand.u32 4294901760, %v27687_v48  ;;  %v27692_v10 = vld [vmem:[#allocation114_spill] sm:$0xff] }
 0x86d   : > { %7778 = vmatprep.subr.mxu0 %v22309_v38 }
 0x870   : > { %7780 = vmatpush1.msra.mxu0 %v22336_v56 }
 0x871   : > { %7810 = vmatmul.mubr.f32.vlgmr.msra.gmra.mrb[42].mxu0 %v27637_v7  ;;  %15553 = vmatprep.subr.bf16.mxu0 %v15552_v59  ;;  %v27644_v7 = vand.u32 4294901760, %v27603_v8  ;;  %v27651_v8 = vand.u32 4294901760, %v22132_v39  ;;  %v27658_v39 = vand.u32 4294901760, %v22187_v55  ;;  %v15574_v59 = vpack.c.bf16 %v27664_v41, %v27663_v44  ;;  %v27714_v44 = vld [vmem:[#allocation40_spill] sm:$0xff]  ;;  %v27715_v41 = vld [vmem:[#allocation47_spill] sm:$0xff] }
 0x872   : > { %7818 = vmatprep.mubr.f32.mxu0 %v27638_v46  ;;  %15555 = vmatpush1.bf16.msra.mxu0 %v15554_v18  ;;  %v15572_v18 = vpack.c.bf16 %v27660_v21, %v27659_v27  ;;  %v27665_v55 = vand.u32 4294901760, %v22252_v0  ;;  %v15578_v46 = vpack.c.bf16 %v27670_v1, %v27669_v40  ;;  %v27672_v0 = vand.u32 4294901760, %v22333_v25  ;;  %v27709_v27 = vld [vmem:[#allocation24_spill] sm:$0xff]  ;;  %v27710_v21 = vld [vmem:[#allocation38_spill] sm:$0xff]  ;;  %v27722_v40 = vld [vmem:[#allocation19_spill] sm:$0xff] }
 0x873   : > { %15557 = vmatprep.subr.bf16.mxu0 %v15556_v42  ;;  %v27647_v42 = vand.u32 4294901760, %v22117_v34  ;;  %v15566_v13 = vpack.c.bf16 %v27652_v51, %v27651_v8  ;;  %v27654_v34 = vand.u32 4294901760, %v22162_v52  ;;  %v15570_v53 = vpack.c.bf16 %v27658_v39, %v27657_v54  ;;  %v27698_v8 = vld [vmem:[#allocation95_spill] sm:$0xff]  ;;  %v27699_v51 = vld [vmem:[#allocation117_spill] sm:$0xff]  ;;  %v27706_v54 = vld [vmem:[#allocation56_spill] sm:$0xff] }
 0x874   : > { %v27661_v52 = vand.u32 4294901760, %v27614_v60  ;;  %v15576_v61 = vpack.c.bf16 %v27666_v16, %v27665_v55  ;;  %v27668_v60 = vand.u32 4294901760, %v27619_v62  ;;  %v15580_v33 = vpack.c.bf16 %v27672_v0, %v27671_v37  ;;  %v27707_v39 = vld [vmem:[#allocation32_spill] sm:$0xff]  ;;  %v27717_v55 = vld [vmem:[#allocation89_spill] sm:$0xff]  ;;  %v27718_v16 = vld [vmem:[#allocation90_spill] sm:$0xff] }
 0x875   : > { %7822 = vmatmul.mubr.f32.gmra.mrb[44].mxu0 %v27643_v24  ;;  %v15564_v15 = vpack.c.bf16 %v27648_v49, %v27647_v42  ;;  %v15568_v57 = vpack.c.bf16 %v27654_v34, %v27653_v63  ;;  %v27674_v62 = vand.u32 4294901760, %v22371_v9  ;;  %v27678_v25 = vand.u32 4294901760, %v22433_v30  ;;  %v27689_v30 = vld [vmem:[#allocation55_spill] sm:$0xff]  ;;  %v27693_v42 = vld [vmem:[#allocation104_spill] sm:$0xff]  ;;  %v27694_v49 = vld [vmem:[#allocation74_spill] sm:$0xff] }
 0x876   : > { %7830 = vmatprep.mubr.f32.mxu0 %v27644_v7  ;;  %15559 = vmatpush1.bf16.msra.mxu0 %v15558_v19  ;;  %v27682_v9 = vand.u32 4294901760, %v27681_v11  ;;  %v27684_v24 = vand.u32 4294901760, %v27683_v12  ;;  %v27685_v7 = vld [vmem:[#allocation119_spill] sm:$0xff]  ;;  %v27690_v36 = vand.u32 4294901760, %v27689_v30 }
 0x877   : > { %15561 = vmatprep.subr.bf16.mxu0 %v15560_v14  ;;  %v15582_v50 = vpack.c.bf16 %v27675_v45, %v27674_v62  ;;  %v15586_v19 = vpack.c.bf16 %v27679_v2, %v27678_v25  ;;  %v27686_v35 = vand.u32 4294901760, %v27685_v7  ;;  %v27701_v63 = vld [vmem:[#allocation111_spill] sm:$0xff] }
 0x878   : > { %v15588_v14 = vpack.c.bf16 %v27682_v9, %v27680_v3  ;;  %v27702_v34 = vld [vmem:[#allocation99_spill] sm:$0xff] }
 0x879   : > { %7834 = vmatmul.mubr.f32.gmra.mrb[46].mxu0 %v27649_v28  ;;  %v15590_v43 = vpack.c.bf16 %v27686_v35, %v27684_v24  ;;  %v27696_v28 = vld [vmem:[#allocation105_spill] sm:$0xff] }
 0x87a   : > { %7842 = vmatprep.mubr.f32.mxu0 %v27650_v4  ;;  %15563 = vmatpush1.bf16.msra.mxu0 %v15562_v32  ;;  %v27691_v32 = vld [vmem:[#allocation67_spill] sm:$0xff]  ;;  %v27697_v4 = vld [vmem:[#allocation106_spill] sm:$0xff] }
 0x87b   : > { %15565 = vmatprep.subr.bf16.mxu0 %v15564_v15  ;;  %v27695_v15 = vld [vmem:[#allocation82_spill] sm:$0xff] }
 0x87d   : > { %7846 = vmatmul.mubr.f32.gmra.mrb[48].mxu0 %v27655_v20  ;;  %v27704_v20 = vld [vmem:[#allocation113_spill] sm:$0xff] }
 0x87e   : > { %7854 = vmatprep.mubr.f32.mxu0 %v27656_v23  ;;  %15567 = vmatpush1.bf16.msra.mxu0 %v15566_v13  ;;  %v27700_v13 = vld [vmem:[#allocation107_spill] sm:$0xff]  ;;  %v27705_v23 = vld [vmem:[#allocation18_spill] sm:$0xff] }
 0x87f   : > { %15569 = vmatprep.subr.bf16.mxu0 %v15568_v57  ;;  %v27703_v57 = vld [vmem:[#allocation25_spill] sm:$0xff] }
 0x881   : > { %7858 = vmatmul.mubr.f32.gmra.mrb[50].mxu0 %v27661_v52  ;;  %v27712_v52 = vld [vmem:[#allocation63_spill] sm:$0xff] }
 0x882   : > { %7866 = vmatprep.mubr.f32.mxu0 %v27662_v58  ;;  %15571 = vmatpush1.bf16.msra.mxu0 %v15570_v53  ;;  %v27708_v53 = vld [vmem:[#allocation62_spill] sm:$0xff]  ;;  %v27713_v58 = vld [vmem:[#allocation72_spill] sm:$0xff] }
 0x883   : > { %15573 = vmatprep.subr.bf16.mxu0 %v15572_v18  ;;  %v27711_v18 = vld [vmem:[#allocation50_spill] sm:$0xff] }
 0x885   : > { %7870 = vmatmul.mubr.f32.gmra.mrb[52].mxu0 %v27667_v17  ;;  %v27720_v17 = vld [vmem:[#allocation94_spill] sm:$0xff] }
 0x886   : > { %7878 = vmatprep.mubr.f32.mxu0 %v27668_v60  ;;  %15575 = vmatpush1.bf16.msra.mxu0 %v15574_v59  ;;  %v27716_v59 = vld [vmem:[#allocation37_spill] sm:$0xff]  ;;  %v27721_v60 = vld [vmem:[#allocation54_spill] sm:$0xff] }
 0x887   : > { %15577 = vmatprep.subr.bf16.mxu0 %v15576_v61  ;;  %v27719_v61 = vld [vmem:[#allocation92_spill] sm:$0xff] }
 0x889   : > { %7882 = vmatmul.mubr.f32.gmra.mrb[54].mxu0 %v27673_v6 }
 0x88a   : > { %15579 = vmatpush1.bf16.msra.mxu0 %v15578_v46  ;;  %8079 = vmatprep.mubr.f32.mxu0 %v27571_v31 }
 0x88b   : > { %15581 = vmatprep.subr.bf16.mxu0 %v15580_v33 }
 0x88e   : > { %15583 = vmatpush1.bf16.msra.mxu0 %v15582_v50 }
 0x88f   : > { %15585 = vmatprep.subr.bf16.mxu0 %v15584_v26 }
 0x892   : > { %15587 = vmatpush1.bf16.msra.mxu0 %v15586_v19 }
 0x893   : > { %15589 = vmatprep.subr.bf16.mxu0 %v15588_v14 }
 0x896   : > { %15591 = vmatpush1.bf16.msra.mxu0 %v15590_v43 }
 0x897   : > { %8051 = vmatprep.subr.mxu0 %v27688_v22 }
 0x89a   : > { %8055 = vmatpush1.msra.mxu0 %v27690_v36 }
 0x89b   : > { %8081 = vmatmul.mubr.f32.vlgmr.msra.gmra.mrb[42].mxu0 %v27691_v32  ;;  %15593 = vmatprep.subr.bf16.mxu0 %v27692_v10 }
 0x89c   : > { %8087 = vmatprep.mubr.f32.mxu0 %v27693_v42  ;;  %15595 = vmatpush1.bf16.msra.mxu0 %v27694_v49 }
 0x89d   : > { %15597 = vmatprep.subr.bf16.mxu0 %v27695_v15 }
 0x89f   : > { %8089 = vmatmul.mubr.f32.gmra.mrb[44].mxu0 %v27696_v28 }
 0x8a0   : > { %8095 = vmatprep.mubr.f32.mxu0 %v27697_v4  ;;  %15599 = vmatpush1.bf16.msra.mxu0 %v27698_v8 }
 0x8a1   : > { %15601 = vmatprep.subr.bf16.mxu0 %v27699_v51 }
 0x8a3   : > { %8097 = vmatmul.mubr.f32.gmra.mrb[46].mxu0 %v27700_v13 }
 0x8a4   : > { %8103 = vmatprep.mubr.f32.mxu0 %v27701_v63  ;;  %15603 = vmatpush1.bf16.msra.mxu0 %v27702_v34 }
 0x8a5   : > { %15605 = vmatprep.subr.bf16.mxu0 %v27703_v57 }
 0x8a7   : > { %8105 = vmatmul.mubr.f32.gmra.mrb[48].mxu0 %v27704_v20 }
 0x8a8   : > { %8111 = vmatprep.mubr.f32.mxu0 %v27705_v23  ;;  %15607 = vmatpush1.bf16.msra.mxu0 %v27706_v54 }
 0x8a9   : > { %15609 = vmatprep.subr.bf16.mxu0 %v27707_v39 }
 0x8ab   : > { %8113 = vmatmul.mubr.f32.gmra.mrb[50].mxu0 %v27708_v53 }
 0x8ac   : > { %8119 = vmatprep.mubr.f32.mxu0 %v27709_v27  ;;  %15611 = vmatpush1.bf16.msra.mxu0 %v27710_v21 }
 0x8ad   : > { %15613 = vmatprep.subr.bf16.mxu0 %v27711_v18 }
 0x8af   : > { %8121 = vmatmul.mubr.f32.gmra.mrb[52].mxu0 %v27712_v52 }
 0x8b0   : > { %8127 = vmatprep.mubr.f32.mxu0 %v27713_v58  ;;  %15615 = vmatpush1.bf16.msra.mxu0 %v27714_v44 }
 0x8b1   : > { %15617 = vmatprep.subr.bf16.mxu0 %v27715_v41 }
 0x8b3   : > { %8129 = vmatmul.mubr.f32.gmra.mrb[54].mxu0 %v27716_v59 }
 0x8b4   : > { %15619 = vmatpush1.bf16.msra.mxu0 %v27717_v55  ;;  %8242 = vmatprep.mubr.f32.mxu0 %v27571_v31 }
 0x8b5   : > { %15621 = vmatprep.subr.bf16.mxu0 %v27718_v16 }
 0x8b8   : > { %15623 = vmatpush1.bf16.msra.mxu0 %v27719_v61 }
 0x8b9   : > { %15625 = vmatprep.subr.bf16.mxu0 %v27720_v17 }
 0x8bc   : > { %15627 = vmatpush1.bf16.msra.mxu0 %v27721_v60 }
 0x8bd   : > { %15629 = vmatprep.subr.bf16.mxu0 %v27629_v5  ;;  %v27724_v5 = vld [vmem:[#allocation36_spill] sm:$0xff] }
 0x8be   : > { %v27725_v31 = vsub.s32 0, %v27724_v5  ;;  %v27726_v37 = vsub.s32 1, %v27724_v5 }
 0x8c0   : > { %15631 = vmatpush1.bf16.msra.mxu0 %v27722_v40 }
 0x8c1   : > { %8216 = vmatprep.subr.mxu0 %v22309_v38  ;;  %v27723_v38 = vmov 0.0  }
 0x8c4   : > { %8218 = vmatpush1.msra.mxu0 %v22336_v56  ;;  %v5239_v56 = vld [vmem:[%s25477_s6] sm:$0x3] }
 0x8c5   : > { %8244 = vmatmul.mubr.f32.vlgmr.msra.gmra.mrb[42].mxu0 %v27691_v32  ;;  %v5244_v1 = vrot.slane %v5239_v56, %v27725_v31  ;;  %v22822_v0 = vrot.slane %v5239_v56, %v27726_v37 }
 0x8c6   : > { %8250 = vmatprep.mubr.f32.mxu0 %v27693_v42 }
 0x8c9   : > { %8252 = vmatmul.mubr.f32.gmra.mrb[44].mxu0 %v27696_v28 }
 0x8ca   : > { %8258 = vmatprep.mubr.f32.mxu0 %v27697_v4 }
 0x8cd   : > { %8260 = vmatmul.mubr.f32.gmra.mrb[46].mxu0 %v27700_v13 }
 0x8ce   : > { %8266 = vmatprep.mubr.f32.mxu0 %v27701_v63 }
 0x8d1   : > { %8268 = vmatmul.mubr.f32.gmra.mrb[48].mxu0 %v27704_v20 }
 0x8d2   : > { %8274 = vmatprep.mubr.f32.mxu0 %v27705_v23 }
 0x8d5   : > { %8276 = vmatmul.mubr.f32.gmra.mrb[50].mxu0 %v27708_v53 }
 0x8d6   : > { %8282 = vmatprep.mubr.f32.mxu0 %v27709_v27 }
 0x8d9   : > { %8284 = vmatmul.mubr.f32.gmra.mrb[52].mxu0 %v27712_v52 }
 0x8da   : > { %8290 = vmatprep.mubr.f32.mxu0 %v27713_v58 }
 0x8dd   : > { %8292 = vmatmul.mubr.f32.gmra.mrb[54].mxu0 %v27716_v59 }
 0x8de   : > { %8541 = vmatprep.mubr.f32.mxu0 %v27723_v38 }
 0x998   : > { %v8245_v46 = vpop.f32.mrb[42].mxu0 }
 0x999   : > { %v8247_v33 = vpop.f32.mrb[43].mxu0  ;;  %v16507_v6 = vadd.f32 %v8245_v46, %v5244_v1 }
 0x99a   : > { %v16508_v62 = vadd.f32 %v8247_v33, %v22822_v0 }
 0x99b   : > { %v8312_v26 = vrot.slane %v16507_v6, 1 }
 0x99c   : > { %v8253_v45 = vpop.f32.mrb[44].mxu0  ;;  %v8315_v2 = vrot.slane %v16508_v62, 1 }
 0x99d   : > { %v16509_v50 = vadd.f32 %v8253_v45, %v5244_v1  ;;  %v8255_v29 = vpop.f32.mrb[45].mxu0 }
 0x99e   : > { %v16510_v47 = vadd.f32 %v8255_v29, %v22822_v0  ;;  %v22907_v29 = vld [vmem:[%s25479_s8 + $0x8] sm:$0xff] }
 0x99f   : > { %v8313_v25 = vrot.slane %v16509_v50, 1 }
 0x9a0   : > { %v8316_v19 = vrot.slane %v16510_v47, 1  ;;  %v8261_v3 = vpop.f32.mrb[46].mxu0 }
 0x9a1   : > { %v16511_v11 = vadd.f32 %v8261_v3, %v5244_v1  ;;  %v8263_v9 = vpop.f32.mrb[47].mxu0  ;;  %v8314_v14 = vsel %vm2449_vm1, %v8312_v26, %v8313_v25  ;;  %v22925_v3 = vld [vmem:[%s25479_s8 + $0x20] sm:$0xff] }
 0x9a2   : > { %v16512_v12 = vadd.f32 %v8263_v9, %v22822_v0  ;;  %v22828_v24 = vmax.f32 %v16507_v6, %v8314_v14  ;;  %v8317_v7 = vsel %vm2449_vm1, %v8315_v2, %v8316_v19  ;;  %v22919_v2 = vld [vmem:[%s25479_s8 + $0x18] sm:$0xff]  ;;  %v26267_v14 = vand.u32 4294901760, %v22925_v3 }
 0x9a3   : > { %v8318_v35 = vrot.slane %v16511_v11, 1  ;;  %v22831_v43 = vmax.f32 %v16508_v62, %v8317_v7  ;;  %v26268_v9 = vand.u32 4294901760, %v22919_v2  ;;  %v22942_v7 = vld [vmem:[%s25479_s8 + $0x38] sm:$0xff] }
 0x9a4   : > { %v8320_v48 = vrot.slane %v16512_v12, 1  ;;  %v8269_v22 = vpop.f32.mrb[48].mxu0  ;;  %8380 = vrot.lane.b32.xlu0 %v22828_v24, %s27727_s29 }
 0x9a5   : > { %v16513_v30 = vadd.f32 %v8269_v22, %v5244_v1  ;;  %v8271_v36 = vpop.f32.mrb[49].mxu0  ;;  %8382 = vrot.lane.b32.xlu1 %v22831_v43, %s27727_s29  ;;  %v8319_v32 = vsel %vm2449_vm1, %v8313_v25, %v8318_v35  ;;  %v26270_v25 = vand.u32 4294901760, %v22907_v29 }
 0x9a6   : > { %v16514_v10 = vadd.f32 %v8271_v36, %v22822_v0  ;;  %v22839_v42 = vmax.f32 %v16509_v50, %v8319_v32  ;;  %v8321_v49 = vsel %vm2449_vm1, %v8316_v19, %v8320_v48  ;;  %v22902_v50 = vld [vmem:[%s25479_s8] sm:$0xff]  ;;  %v22963_v36 = vsub.f32 %v22919_v2, %v26268_v9 }
 0x9a7   : > { %v8322_v15 = vrot.slane %v16513_v30, 1  ;;  %v22842_v28 = vmax.f32 %v16510_v47, %v8321_v49  ;;  %v22912_v47 = vld [vmem:[%s25479_s8 + $0x10] sm:$0xff]  ;;  %v26271_v26 = vand.u32 4294901760, %v22902_v50  ;;  %v22968_v32 = vsub.f32 %v22925_v3, %v26267_v14 }
 0x9a8   : > { %v8324_v4 = vrot.slane %v16514_v10, 1  ;;  %v8277_v8 = vpop.f32.mrb[50].mxu0  ;;  %8384 = vrot.lane.b32.xlu0 %v22839_v42, %s27727_s29  ;;  %v26269_v19 = vand.u32 4294901760, %v22912_v47 }
 0x9a9   : > { %v16515_v51 = vadd.f32 %v8277_v8, %v5244_v1  ;;  %v8279_v13 = vpop.f32.mrb[51].mxu0  ;;  %8386 = vrot.lane.b32.xlu1 %v22842_v28, %s27727_s29  ;;  %v8323_v63 = vsel %vm2449_vm1, %v8318_v35, %v8322_v15  ;;  %v22947_v35 = vsub.f32 %v22902_v50, %v26271_v26  ;;  %v22985_v8 = vld [vmem:[%s25479_s8 + $0x48] sm:$0xff] }
 0x9aa   : > { %v16516_v34 = vadd.f32 %v8279_v13, %v22822_v0  ;;  %v22850_v57 = vmax.f32 %v16511_v11, %v8323_v63  ;;  %v8325_v20 = vsel %vm2449_vm1, %v8320_v48, %v8324_v4  ;;  %v22930_v11 = vld [vmem:[%s25479_s8 + $0x28] sm:$0xff]  ;;  %v22952_v48 = vsub.f32 %v22907_v29, %v26270_v25 }
 0x9ab   : > { %v8326_v23 = vrot.slane %v16515_v51, 1  ;;  %v22853_v54 = vmax.f32 %v16512_v12, %v8325_v20  ;;  %v22937_v12 = vld [vmem:[%s25479_s8 + $0x30] sm:$0xff]  ;;  %v22957_v22 = vsub.f32 %v22912_v47, %v26269_v19 }
 0x9ac   : > { %v8328_v39 = vrot.slane %v16516_v34, 1  ;;  %v8285_v53 = vpop.f32.mrb[52].mxu0  ;;  %8388 = vrot.lane.b32.xlu0 %v22850_v57, %s27727_s29  ;;  %v26265_v49 = vand.u32 4294901760, %v22937_v12 }
 0x9ad   : > { %v16517_v27 = vadd.f32 %v8285_v53, %v5244_v1  ;;  %v8287_v21 = vpop.f32.mrb[53].mxu0  ;;  %8390 = vrot.lane.b32.xlu1 %v22853_v54, %s27727_s29  ;;  %v8327_v18 = vsel %vm2449_vm1, %v8322_v15, %v8326_v23  ;;  %v26264_v15 = vand.u32 4294901760, %v22942_v7  ;;  %v23017_v53 = vld [vmem:[%s25479_s8 + $0x58] sm:$0xff] }
 0x9ae   : > { %v16518_v52 = vadd.f32 %v8287_v21, %v22822_v0  ;;  %v22861_v58 = vmax.f32 %v16513_v30, %v8327_v18  ;;  %v8329_v44 = vsel %vm2449_vm1, %v8324_v4, %v8328_v39  ;;  %v26266_v30 = vand.u32 4294901760, %v22930_v11  ;;  %v22980_v4 = vld [vmem:[%s25479_s8 + $0x40] sm:$0xff] }
 0x9af   : > { %v8330_v41 = vrot.slane %v16517_v27, 1  ;;  %v22864_v59 = vmax.f32 %v16514_v10, %v8329_v44  ;;  %v22995_v13 = vsub.f32 %v22942_v7, %v26264_v15  ;;  %v26263_v63 = vand.u32 4294901760, %v22980_v4 }
 0x9b0   : > { %v8332_v55 = vrot.slane %v16518_v52, 1  ;;  %v8293_v16 = vpop.f32.mrb[54].mxu0  ;;  %8392 = vrot.lane.b32.xlu0 %v22861_v58, %s27727_s29  ;;  %v22973_v10 = vsub.f32 %v22930_v11, %v26266_v30  ;;  %v26260_v21 = vand.u32 4294901760, %v23017_v53 }
 0x9b1   : > { %v16519_v61 = vadd.f32 %v8293_v16, %v5244_v1  ;;  %v8295_v17 = vpop.f32.mrb[55].mxu0  ;;  %8394 = vrot.lane.b32.xlu1 %v22864_v59, %s27727_s29  ;;  %v8331_v60 = vsel %vm2449_vm1, %v8326_v23, %v8330_v41  ;;  %27730 = vst [vmem:[#allocation58_spill] sm:$0xff] %v22995_v13  ;;  %v23002_v20 = vsub.f32 %v22980_v4, %v26263_v63 }
 0x9b2   : > { %v16520_v40 = vadd.f32 %v8295_v17, %v22822_v0  ;;  %v22872_v56 = vmax.f32 %v16515_v51, %v8331_v60  ;;  %v8333_v5 = vsel %vm2449_vm1, %v8328_v39, %v8332_v55  ;;  %27728 = vst [vmem:[#allocation76_spill] sm:$0xff] %v22973_v10  ;;  %v22990_v51 = vsub.f32 %v22937_v12, %v26265_v49  ;;  %v23012_v39 = vld [vmem:[%s25479_s8 + $0x50] sm:$0xff]  ;;  %v8444_v60 = vld [vmem:[%s25478_s7 + $0x8] sm:$0xff] }
 0x9b3   : > { %v8334_v31 = vrot.slane %v16519_v61, 1  ;;  %v22875_v46 = vmax.f32 %v16516_v34, %v8333_v5  ;;  %v26262_v34 = vand.u32 4294901760, %v22985_v8  ;;  %27731 = vst [vmem:[#allocation22_spill] sm:$0xff] %v23002_v20 }
 0x9b4   : > { %v8336_v37 = vrot.slane %v16520_v40, 1  ;;  %8396 = vrot.lane.b32.xlu0 %v22872_v56, %s27727_s29  ;;  %27729 = vst [vmem:[#allocation97_spill] sm:$0xff] %v22990_v51 }
 0x9b5   : > { %8398 = vrot.lane.b32.xlu1 %v22875_v46, %s27727_s29  ;;  %v8335_v1 = vsel %vm2449_vm1, %v8330_v41, %v8334_v31  ;;  %v22891_v62 = vmax.f32 %v16519_v61, %v8334_v31  ;;  %v23007_v23 = vsub.f32 %v22985_v8, %v26262_v34  ;;  %v8443_v61 = vld [vmem:[%s25478_s7] sm:$0xff] }
 0x9b6   : > { %v22882_v33 = vmax.f32 %v16517_v27, %v8335_v1  ;;  %v8337_v0 = vsel %vm2449_vm1, %v8332_v55, %v8336_v37  ;;  %v22893_v45 = vmax.f32 %v16520_v40, %v8336_v37  ;;  %v26261_v27 = vand.u32 4294901760, %v23012_v39 }
 0x9b7   : > { %v22885_v6 = vmax.f32 %v16518_v52, %v8337_v0  ;;  %27732 = vst [vmem:[#allocation33_spill] sm:$0xff] %v23007_v23  ;;  %v23029_v52 = vsub.f32 %v23017_v53, %v26260_v21  ;;  %v8448_v1 = vsel %vm8446_vm13, %v8443_v61, 0 }
 0x9b8   : > { %8400 = vrot.lane.b32.xlu0 %v22882_v33, %s27727_s29  ;;  %v23024_v18 = vsub.f32 %v23012_v39, %v26261_v27 }
 0x9b9   : > { %8402 = vrot.lane.b32.xlu1 %v22885_v6, %s27727_s29  ;;  %27734 = vst [vmem:[#allocation23_spill] sm:$0xff] %v23029_v52 }
 0x9ba   : > { %27733 = vst [vmem:[#allocation85_spill] sm:$0xff] %v23024_v18 }
 0x9bc   : > { %8404 = vrot.lane.b32.xlu0 %v22891_v62, %s27727_s29 }
 0x9bd   : > { %8406 = vrot.lane.b32.xlu1 %v22893_v45, %s27727_s29 }
 0xa16   : > { %v8381_v44 = vpop.permute.xlu0 %8380 }
 0xa17   : > { %v8383_v41 = vpop.permute.xlu1 %8382 }
 0xa18   : > { %v8408_v55 = vsel %vm2644_vm2, %v8381_v44, %v8383_v41  ;;  %v8430_v16 = vmax.f32 %v22831_v43, %v8383_v41  ;;  %v8451_v41 = vsel %vm8446_vm13, %v8444_v60, 0 }
 0xa19   : > { %v8429_v17 = vmax.f32 %v22828_v24, %v8408_v55  ;;  %v8445_v24 = vld [vmem:[%s25478_s7 + $0x10] sm:$0xf] }
 0xa1a   : > { %v8463_v40 = vand.u32 4294901760, %v8430_v16  ;;  %v8385_v5 = vpop.permute.xlu0 %8384  ;;  %v23059_v60 = vsel %vm8446_vm13, %v8445_v24, 0 }
 0xa1b   : > { %v8465_v31 = vand.u32 4294901760, %v8429_v17  ;;  %v8387_v37 = vpop.permute.xlu1 %8386 }
 0xa1c   : > { %v23041_v0 = vsub.f32 %v8430_v16, %v8463_v40  ;;  %v8409_v43 = vsel %vm2644_vm2, %v8385_v5, %v8387_v37  ;;  %v8432_v44 = vmax.f32 %v22842_v28, %v8387_v37  ;;  %v23053_v16 = vand.u32 4294901760, %v8448_v1 }
 0xa1d   : > { %v23049_v55 = vsub.f32 %v8429_v17, %v8465_v31  ;;  %v8431_v21 = vmax.f32 %v22839_v42, %v8409_v43  ;;  %v23056_v37 = vand.u32 4294901760, %v8451_v41 }
 0xa1e   : > { %v26273_v27 = vand.u32 4294901760, %v23041_v0  ;;  %v8467_v34 = vand.u32 4294901760, %v8432_v44  ;;  %v8389_v61 = vpop.permute.xlu0 %8388  ;;  %v23073_v9 = vsub.f32 %v8448_v1, %v23053_v16 }
 0xa1f   : > { %v26272_v5 = vand.u32 4294901760, %v23049_v55  ;;  %v8469_v63 = vand.u32 4294901760, %v8431_v21  ;;  %v8391_v28 = vpop.permute.xlu1 %8390 }
 0xa20   : > { %v23061_v15 = vsub.f32 %v8432_v44, %v8467_v34  ;;  %v8410_v17 = vsel %vm2644_vm2, %v8389_v61, %v8391_v28  ;;  %v8434_v42 = vmax.f32 %v22853_v54, %v8391_v28  ;;  %v23065_v43 = vpack.c.bf16 %v8467_v34, %v8463_v40 }
 0xa21   : > { %v23067_v49 = vpack.c.bf16 %v8469_v63, %v8465_v31  ;;  %v23069_v30 = vsub.f32 %v8431_v21, %v8469_v63  ;;  %v8433_v14 = vmax.f32 %v22850_v57, %v8410_v17  ;;  %v8584_v44 = vsub.f32 %v23049_v55, %v26272_v5 }
 0xa22   : > { %v26278_v24 = vand.u32 4294901760, %v23061_v15  ;;  %v8471_v61 = vand.u32 4294901760, %v8434_v42  ;;  %15633 = vmatprep.subr.bf16.mxu0 %v23065_v43  ;;  %v8393_v54 = vpop.permute.xlu0 %8392  ;;  %v8578_v63 = vsub.f32 %v23041_v0, %v26273_v27  ;;  %v23086_v40 = vand.u32 4294901760, %v23059_v60 }
 0xa23   : > { %v26277_v34 = vand.u32 4294901760, %v23069_v30  ;;  %v8473_v57 = vand.u32 4294901760, %v8433_v14  ;;  %v8395_v21 = vpop.permute.xlu1 %8394  ;;  %15635 = vmatpush1.bf16.msra.mxu0 %v23067_v49  ;;  %v23089_v31 = vsub.f32 %v8451_v41, %v23056_v37 }
 0xa24   : > { %v23091_v1 = vsub.f32 %v8434_v42, %v8471_v61  ;;  %v8411_v28 = vsel %vm2644_vm2, %v8393_v54, %v8395_v21  ;;  %v8436_v17 = vmax.f32 %v22864_v59, %v8395_v21  ;;  %v8590_v41 = vsub.f32 %v23061_v15, %v26278_v24 }
 0xa25   : > { %v8596_v25 = vsub.f32 %v23069_v30, %v26277_v34  ;;  %v23099_v26 = vsub.f32 %v8433_v14, %v8473_v57  ;;  %v8435_v5 = vmax.f32 %v22861_v58, %v8411_v28  ;;  %v8579_v52 = vand.u32 4294901760, %v8578_v63 }
 0xa26   : > { %v8475_v27 = vand.u32 4294901760, %v8436_v17  ;;  %v8397_v54 = vpop.permute.xlu0 %8396  ;;  %v8585_v59 = vand.u32 4294901760, %v8584_v44  ;;  %v8591_v23 = vand.u32 4294901760, %v8590_v41 }
 0xa27   : > { %v26280_v21 = vand.u32 4294901760, %v23099_v26  ;;  %v8477_v19 = vand.u32 4294901760, %v8435_v5  ;;  %v8399_v18 = vpop.permute.xlu1 %8398  ;;  %v8597_v34 = vand.u32 4294901760, %v8596_v25 }
 0xa28   : > { %v23107_v14 = vsub.f32 %v8436_v17, %v8475_v27  ;;  %v8412_v58 = vsel %vm2644_vm2, %v8397_v54, %v8399_v18  ;;  %v8438_v28 = vmax.f32 %v22875_v46, %v8399_v18  ;;  %v23111_v24 = vpack.c.bf16 %v8475_v27, %v8471_v61 }
 0xa29   : > { %v8608_v63 = vsub.f32 %v23099_v26, %v26280_v21  ;;  %v23116_v44 = vpack.c.bf16 %v8477_v19, %v8473_v57  ;;  %v23118_v42 = vsub.f32 %v8435_v5, %v8477_v19  ;;  %v8437_v41 = vmax.f32 %v22872_v56, %v8412_v58 }
 0xa2a   : > { %v26281_v25 = vand.u32 4294901760, %v23107_v14  ;;  %v8479_v17 = vand.u32 4294901760, %v8438_v28  ;;  %15637 = vmatprep.subr.bf16.mxu0 %v23111_v24  ;;  %v15644_v54 = vpack.c.bf16 %v8591_v23, %v8579_v52  ;;  %v8401_v20 = vpop.permute.xlu0 %8400  ;;  %v15646_v46 = vpack.c.bf16 %v8597_v34, %v8585_v59 }
 0xa2b   : > { %v26284_v27 = vand.u32 4294901760, %v23118_v42  ;;  %v8481_v18 = vand.u32 4294901760, %v8437_v41  ;;  %v8403_v61 = vpop.permute.xlu1 %8402  ;;  %15639 = vmatpush1.bf16.msra.mxu0 %v23116_v44  ;;  %v27735_v57 = vand.u32 4294901760, %v23091_v1  ;;  %v8609_v56 = vand.u32 4294901760, %v8608_v63 }
 0xa2c   : > { %v23129_v5 = vsub.f32 %v8438_v28, %v8479_v17  ;;  %15645 = vmatprep.subr.bf16.mxu1 %v15644_v54  ;;  %v8413_v58 = vsel %vm2644_vm2, %v8401_v20, %v8403_v61  ;;  %v8440_v23 = vmax.f32 %v22885_v6, %v8403_v61  ;;  %v8614_v52 = vsub.f32 %v23107_v14, %v26281_v25 }
 0xa2d   : > { %v8602_v19 = vsub.f32 %v23091_v1, %v27735_v57  ;;  %v8620_v34 = vsub.f32 %v23118_v42, %v26284_v27  ;;  %v23139_v59 = vsub.f32 %v8437_v41, %v8481_v18  ;;  %v8439_v57 = vmax.f32 %v22882_v33, %v8413_v58  ;;  %15647 = vmatpush1.bf16.msra.mxu1 %v15646_v46 }
 0xa2e   : > { %v27736_v28 = vand.u32 4294901760, %v23073_v9  ;;  %v8483_v20 = vand.u32 4294901760, %v8440_v23  ;;  %v8405_v21 = vpop.permute.xlu0 %8404  ;;  %v8615_v61 = vand.u32 4294901760, %v8614_v52  ;;  %v8625_v25 = vand.u32 4294901760, %v23129_v5 }
 0xa2f   : > { %v8603_v6 = vand.u32 4294901760, %v8602_v19  ;;  %v26287_v13 = vand.u32 4294901760, %v23139_v59  ;;  %v8485_v51 = vand.u32 4294901760, %v8439_v57  ;;  %v8407_v27 = vpop.permute.xlu1 %8406  ;;  %v8621_v41 = vand.u32 4294901760, %v8620_v34 }
 0xa30   : > { %v8545_v54 = vsub.f32 %v23073_v9, %v27736_v28  ;;  %v23147_v10 = vsub.f32 %v8440_v23, %v8483_v20  ;;  %v8414_v33 = vsel %vm2644_vm2, %v8405_v21, %v8407_v27  ;;  %v8442_v46 = vmax.f32 %v22893_v45, %v8407_v27 }
 0xa31   : > { %v23151_v58 = vpack.c.bf16 %v8483_v20, %v8479_v17  ;;  %v8632_v19 = vsub.f32 %v23139_v59, %v26287_v13  ;;  %v23156_v63 = vpack.c.bf16 %v8485_v51, %v8481_v18  ;;  %v23158_v52 = vsub.f32 %v8439_v57, %v8485_v51 }
 0xa32   : > { %v8441_v28 = vmax.f32 %v22891_v62, %v8414_v33  ;;  %v26288_v34 = vand.u32 4294901760, %v23147_v10  ;;  %v8461_v23 = vsel %vm8456_vm14, %v8442_v46, 0  ;;  %v15648_v21 = vpack.c.bf16 %v8615_v61, %v8603_v6 }
 0xa33   : > { %15641 = vmatprep.subr.bf16.mxu0 %v23151_v58  ;;  %v15650_v45 = vpack.c.bf16 %v8621_v41, %v8609_v56  ;;  %v26286_v17 = vand.u32 4294901760, %v23158_v52  ;;  %v23166_v20 = vand.u32 4294901760, %v8461_v23  ;;  %v8626_v62 = vsub.f32 %v23129_v5, %v8625_v25 }
 0xa34   : > { %v8458_v27 = vsel %vm8456_vm14, %v8441_v28, 0  ;;  %15643 = vmatpush1.bf16.msra.mxu0 %v23156_v63  ;;  %15649 = vmatprep.subr.bf16.mxu1 %v15648_v21  ;;  %v8638_v18 = vsub.f32 %v23147_v10, %v26288_v34  ;;  %v8546_v56 = vand.u32 4294901760, %v8545_v54  ;;  %v27737_v57 = vand.u32 4294901760, %v23089_v31 }
 0xa35   : > { %v23172_v51 = vand.u32 4294901760, %v8458_v27  ;;  %v8644_v61 = vsub.f32 %v23158_v52, %v26286_v17  ;;  %v23184_v41 = vsub.f32 %v8461_v23, %v23166_v20  ;;  %15651 = vmatpush1.bf16.msra.mxu1 %v15650_v45  ;;  %8488 = vmatprep.subr.mxu0 %v23166_v20  ;;  %v8627_v46 = vand.u32 4294901760, %v8626_v62 }
 0xa36   : > { %v8556_v6 = vsub.f32 %v23089_v31, %v27737_v57  ;;  %v8639_v28 = vand.u32 4294901760, %v8638_v18  ;;  %v23192_v54 = vsub.f32 %v23059_v60, %v23086_v40  ;;  %v8633_v21 = vand.u32 4294901760, %v8632_v19 }
 0xa37   : > { %v23188_v33 = vsub.f32 %v8458_v27, %v23172_v51  ;;  %v8645_v57 = vand.u32 4294901760, %v8644_v61  ;;  %v8649_v17 = vand.u32 4294901760, %v23184_v41  ;;  %v27738_v34 = vmov 0.0|0.0  }
 0xa38   : > { %8490 = vmatpush1.msra.mxu0 %v23172_v51  ;;  %v15652_v23 = vpack.c.bf16 %v8639_v28, %v8627_v46  ;;  %v8566_v13 = vand.u32 4294901760, %v23192_v54  ;;  %v8557_v27 = vand.u32 4294901760, %v8556_v6  ;;  %v15656_v61 = vpack.c.bf16 %v23061_v15, %v23041_v0 }
 0xa39   : > { %v8655_v45 = vand.u32 4294901760, %v23188_v33  ;;  %8547 = vmatmul.mubr.f32.vlgmr.msra.gmra.mrb[56].mxu0 %v8546_v56  ;;  %16241 = vmatprep.subr.bf16.mxu0 %v27738_v34  ;;  %v15654_v62 = vpack.c.bf16 %v8645_v57, %v8633_v21  ;;  %v8650_v60 = vsub.f32 %v23184_v41, %v8649_v17  ;;  %v15658_v28 = vpack.c.bf16 %v23069_v30, %v23049_v55 }
 0xa3a   : > { %8552 = vmatprep.mubr.f32.mxu0 %v27723_v38  ;;  %15653 = vmatprep.subr.bf16.mxu1 %v15652_v23  ;;  %v8567_v18 = vsub.f32 %v23192_v54, %v8566_v13  ;;  %v15660_v21 = vpack.c.bf16 %v23107_v14, %v23091_v1  ;;  %v15662_v57 = vpack.c.bf16 %v23118_v42, %v23099_v26  ;;  %vm10090_vm2 = vcmask 523264  }
 0xa3b   : > { %v8656_v19 = vsub.f32 %v23188_v33, %v8655_v45  ;;  %15655 = vmatpush1.bf16.msra.mxu1 %v15654_v62  ;;  %v8651_v56 = vand.u32 4294901760, %v8650_v60  ;;  %v15664_v23 = vpack.c.bf16 %v23147_v10, %v23129_v5  ;;  %v27739_v62 = vand.u32 4294901760, %v23041_v0 }
 0xa3c   : > { %v8568_v46 = vand.u32 4294901760, %v8567_v18  ;;  %v27740_v60 = vand.u32 4294901760, %v23061_v15  ;;  %v27741_v18 = vand.u32 4294901760, %v23049_v55  ;;  %v27746_v15 = vand.u32 4294901760, %v23099_v26 }
 0xa3d   : > { %v8657_v6 = vand.u32 4294901760, %v8656_v19  ;;  %8558 = vmatmul.mubr.f32.gmra.mrb[58].mxu0 %v8557_v27  ;;  %8652 = vmatprep.subr.mxu1 %v8651_v56  ;;  %v15666_v27 = vpack.c.bf16 %v23158_v52, %v23139_v59  ;;  %v27742_v56 = vand.u32 4294901760, %v23069_v30  ;;  %v27747_v0 = vand.u32 4294901760, %v23118_v42 }
 0xa3e   : > { %8563 = vmatprep.mubr.f32.mxu0 %v27723_v38  ;;  %v15680_v19 = vpack.c.bf16 %v27740_v60, %v27739_v62  ;;  %v27748_v30 = vand.u32 4294901760, %v23147_v10  ;;  %v27752_v10 = vand.u32 4294901760, %v22902_v50  ;;  %v27756_v50 = vand.u32 4294901760, %v22925_v3 }
 0xa3f   : > { %8658 = vmatpush1.msra.mxu1 %v8657_v6  ;;  %v15682_v6 = vpack.c.bf16 %v27742_v56, %v27741_v18  ;;  %v15686_v55 = vpack.c.bf16 %v27747_v0, %v27746_v15  ;;  %v27760_v3 = vand.u32 4294901760, %v22980_v4  ;;  %v9194_v4 = vld [vmem:[%s25479_s8 + $0x60] sm:$0xff] }
 0xa40   : > { %15657 = vmatprep.subr.bf16.mxu1 %v15656_v61  ;;  %8711 = vmatmul.mubr.f32.vlgmr.msra.gmra.mrb[28].mxu1 %v23053_v16  ;;  %v27743_v61 = vand.u32 4294901760, %v23073_v9 }
 0xa41   : > { %15659 = vmatpush1.bf16.msra.mxu1 %v15658_v28  ;;  %8716 = vmatprep.mubr.f32.mxu1 %v27723_v38  ;;  %v27745_v28 = vand.u32 4294901760, %v23107_v14  ;;  %v27751_v14 = vand.u32 4294901760, %v23158_v52 }
 0xa42   : > { %15661 = vmatprep.subr.bf16.mxu1 %v15660_v21  ;;  %8569 = vmatmul.mubr.f32.gmra.mrb[60].mxu0 %v8568_v46  ;;  %v27744_v46 = vand.u32 4294901760, %v23091_v1  ;;  %v27750_v1 = vand.u32 4294901760, %v23139_v59 }
 0xa44   : > { %8718 = vmatmul.mubr.f32.gmra.mrb[30].mxu1 %v23056_v37  ;;  %v15684_v21 = vpack.c.bf16 %v27745_v28, %v27744_v46  ;;  %v15690_v26 = vpack.c.bf16 %v27751_v14, %v27750_v1  ;;  %v26309_v46 = vand.u32 4294901760, %v22952_v48 }
 0xa45   : > { %15663 = vmatpush1.bf16.msra.mxu1 %v15662_v57  ;;  %8723 = vmatprep.mubr.f32.mxu1 %v27723_v38  ;;  %v27749_v57 = vand.u32 4294901760, %v23089_v31 }
 0xa46   : > { %15665 = vmatprep.subr.bf16.mxu1 %v15664_v23  ;;  %v9201_v23 = vld [vmem:[%s25479_s8 + $0x98] sm:$0x7f]  ;;  %v9356_v0 = vsub.f32 %v22952_v48, %v26309_v46 }
 0xa47   : > { %v9213_v62 = vsel %vm2449_vm1, %v9201_v23, 0 }
 0xa48   : > { %8725 = vmatmul.mubr.f32.gmra.mrb[32].mxu1 %v23086_v40  ;;  %v9273_v56 = vand.u32 4294901760, %v9213_v62 }
 0xa49   : > { %15667 = vmatpush1.bf16.msra.mxu1 %v15666_v27  ;;  %8823 = vmatprep.mubr.f32.mxu1 %v27723_v38 }
 0xa4a   : > { %8769 = vmatprep.subr.mxu1 %v23184_v41  ;;  %v23396_v28 = vsub.f32 %v9213_v62, %v9273_v56 }
 0xa4d   : > { %8772 = vmatpush1.msra.mxu1 %v23188_v33 }
 0xa4e   : > { %15669 = vmatprep.subr.bf16.mxu1 %v23065_v43  ;;  %8826 = vmatmul.mubr.f32.vlgmr.msra.gmra.mrb[28].mxu1 %v23073_v9  ;;  %v15688_v9 = vpack.c.bf16 %v27748_v30, %v8625_v25  ;;  %v9197_v25 = vld [vmem:[%s25479_s8 + $0x78] sm:$0xff]  ;;  %v26307_v30 = vand.u32 4294901760, %v22963_v36 }
 0xa4f   : > { %15671 = vmatpush1.bf16.msra.mxu1 %v23067_v49  ;;  %8831 = vmatprep.mubr.f32.mxu1 %v27723_v38  ;;  %v9261_v59 = vand.u32 4294901760, %v9197_v25 }
 0xa50   : > { %15673 = vmatprep.subr.bf16.mxu1 %v23111_v24  ;;  %v9370_v14 = vsub.f32 %v22963_v36, %v26307_v30 }
 0xa51   : > { %v23375_v41 = vsub.f32 %v9197_v25, %v9261_v59 }
 0xa52   : > { %8834 = vmatmul.mubr.f32.gmra.mrb[30].mxu1 %v23089_v31 }
 0xa53   : > { %15675 = vmatpush1.bf16.msra.mxu1 %v23116_v44  ;;  %8839 = vmatprep.mubr.f32.mxu1 %v27723_v38 }
 0xa54   : > { %15677 = vmatprep.subr.bf16.mxu1 %v23151_v58 }
 0xa56   : > { %8842 = vmatmul.mubr.f32.gmra.mrb[32].mxu1 %v23192_v54 }
 0xa57   : > { %15679 = vmatpush1.bf16.msra.mxu1 %v23156_v63  ;;  %8926 = vmatprep.mubr.f32.mxu1 %v27723_v38 }
 0xa58   : > { %8873 = vmatprep.subr.mxu1 %v23166_v20 }
 0xa5b   : > { %8875 = vmatpush1.msra.mxu1 %v23172_v51 }
 0xa5c   : > { %15681 = vmatprep.subr.bf16.mxu1 %v15680_v19  ;;  %8930 = vmatmul.mubr.f32.vlgmr.msra.gmra.mrb[28].mxu1 %v27743_v61  ;;  %v26310_v61 = vand.u32 4294901760, %v22947_v35 }
 0xa5d   : > { %15683 = vmatpush1.bf16.msra.mxu1 %v15682_v6  ;;  %8935 = vmatprep.mubr.f32.mxu1 %v27723_v38 }
 0xa5e   : > { %15685 = vmatprep.subr.bf16.mxu1 %v15684_v21  ;;  %v9349_v15 = vsub.f32 %v22947_v35, %v26310_v61 }
 0xa60   : > { %8939 = vmatmul.mubr.f32.gmra.mrb[30].mxu1 %v27749_v57  ;;  %v9357_v57 = vand.u32 4294901760, %v9356_v0 }
 0xa61   : > { %15687 = vmatpush1.bf16.msra.mxu1 %v15686_v55  ;;  %8944 = vmatprep.mubr.f32.mxu1 %v27723_v38  ;;  %v26308_v55 = vand.u32 4294901760, %v22957_v22 }
 0xa62   : > { %15689 = vmatprep.subr.bf16.mxu1 %v15688_v9  ;;  %v9350_v9 = vand.u32 4294901760, %v9349_v15  ;;  %v27770_v15 = vld [vmem:[#allocation85_spill] sm:$0xff] }
 0xa63   : > { %v9363_v1 = vsub.f32 %v22957_v22, %v26308_v55  ;;  %v26299_v0 = vand.u32 4294901760, %v27770_v15 }
 0xa64   : > { %8948 = vmatmul.mubr.f32.gmra.mrb[32].mxu1 %v8566_v13 }
 0xa65   : > { %15691 = vmatpush1.bf16.msra.mxu1 %v15690_v26  ;;  %9060 = vmatprep.mubr.f32.mxu1 %v27723_v38 }
 0xa66   : > { %9005 = vmatprep.subr.mxu1 %v8649_v17 }
 0xa69   : > { %9009 = vmatpush1.msra.mxu1 %v8655_v45  ;;  %v9200_v45 = vld [vmem:[%s25479_s8 + $0x90] sm:$0xff] }
 0xa6a   : > { %15693 = vmatprep.subr.bf16.mxu1 %v23065_v43  ;;  %9062 = vmatmul.mubr.f32.vlgmr.msra.gmra.mrb[28].mxu1 %v23053_v16  ;;  %v27754_v43 = vand.u32 4294901760, %v22912_v47  ;;  %v27758_v47 = vand.u32 4294901760, %v22937_v12  ;;  %v27762_v12 = vand.u32 4294901760, %v23012_v39  ;;  %v9196_v39 = vld [vmem:[%s25479_s8 + $0x70] sm:$0xff]  ;;  %v9270_v60 = vand.u32 4294901760, %v9200_v45 }
 0xa6b   : > { %15695 = vmatpush1.bf16.msra.mxu1 %v23067_v49  ;;  %9067 = vmatprep.mubr.f32.mxu1 %v27723_v38  ;;  %v27753_v49 = vand.u32 4294901760, %v22907_v29  ;;  %v27757_v29 = vand.u32 4294901760, %v22930_v11  ;;  %v27761_v11 = vand.u32 4294901760, %v22985_v8  ;;  %v9195_v8 = vld [vmem:[%s25479_s8 + $0x68] sm:$0xff]  ;;  %v9258_v5 = vand.u32 4294901760, %v9196_v39 }
 0xa6c   : > { %15697 = vmatprep.subr.bf16.mxu1 %v23111_v24  ;;  %v27755_v24 = vand.u32 4294901760, %v22919_v2  ;;  %v27759_v2 = vand.u32 4294901760, %v22942_v7  ;;  %v27763_v7 = vand.u32 4294901760, %v23017_v53  ;;  %v9252_v53 = vand.u32 4294901760, %v9194_v4 }
 0xa6d   : > { %v23298_v13 = vpack.c.bf16 %v27753_v49, %v27752_v10  ;;  %v23336_v42 = vpack.c.bf16 %v27761_v11, %v27760_v3  ;;  %v23384_v27 = vpack.c.bf16 %v9261_v59, %v9258_v5  ;;  %v23392_v6 = vsub.f32 %v9200_v45, %v9270_v60  ;;  %v27766_v11 = vld [vmem:[#allocation97_spill] sm:$0xff]  ;;  %v27768_v59 = vld [vmem:[#allocation22_spill] sm:$0xff] }
 0xa6e   : > { %9069 = vmatmul.mubr.f32.gmra.mrb[30].mxu1 %v23056_v37  ;;  %v23309_v31 = vpack.c.bf16 %v27755_v24, %v27754_v43  ;;  %v23369_v17 = vsub.f32 %v9194_v4, %v9252_v53  ;;  %v23417_v26 = vpack.c.bf16 %v9273_v56, %v9270_v60  ;;  %v23419_v10 = vpack.c.bf16 %v9357_v57, %v9350_v9  ;;  %v27771_v9 = vld [vmem:[#allocation23_spill] sm:$0xff] }
 0xa6f   : > { %15699 = vmatpush1.bf16.msra.mxu1 %v23116_v44  ;;  %9074 = vmatprep.mubr.f32.mxu1 %v27723_v38  ;;  %v9255_v44 = vand.u32 4294901760, %v9195_v8  ;;  %v9364_v49 = vand.u32 4294901760, %v9363_v1  ;;  %v9371_v43 = vand.u32 4294901760, %v9370_v14  ;;  %v26306_v24 = vand.u32 4294901760, %v22968_v32 }
 0xa70   : > { %15701 = vmatprep.subr.bf16.mxu1 %v23151_v58  ;;  %v9198_v58 = vld [vmem:[%s25479_s8 + $0x80] sm:$0xff]  ;;  %27764 = vst [vmem:[#allocation59_spill] sm:$0xff] %v23417_v26  ;;  %v26296_v57 = vand.u32 4294901760, %v27771_v9  ;;  %v9419_v14 = vsub.f32 %v27770_v15, %v26299_v0 }
 0xa71   : > { %v23367_v52 = vpack.c.bf16 %v9255_v44, %v9252_v53  ;;  %v9264_v33 = vand.u32 4294901760, %v9198_v58 }
 0xa72   : > { %9076 = vmatmul.mubr.f32.gmra.mrb[32].mxu1 %v23086_v40 }
 0xa73   : > { %15703 = vmatpush1.bf16.msra.mxu1 %v23156_v63  ;;  %9160 = vmatprep.mubr.f32.mxu1 %v27723_v38  ;;  %v9199_v63 = vld [vmem:[%s25479_s8 + $0x88] sm:$0xff]  ;;  %v23388_v19 = vsub.f32 %v9198_v58, %v9264_v33  ;;  %v26302_v58 = vand.u32 4294901760, %v27768_v59 }
 0xa74   : > { %9107 = vmatprep.subr.mxu1 %v23166_v20  ;;  %v23371_v20 = vsub.f32 %v9195_v8, %v9255_v44  ;;  %v9267_v54 = vand.u32 4294901760, %v9199_v63 }
 0xa75   : > { %v9405_v45 = vsub.f32 %v27768_v59, %v26302_v58 }
 0xa76   : > { %v23390_v18 = vsub.f32 %v9199_v63, %v9267_v54  ;;  %v23399_v21 = vpack.c.bf16 %v9267_v54, %v9264_v33  ;;  %v27769_v63 = vld [vmem:[#allocation33_spill] sm:$0xff] }
 0xa77   : > { %9109 = vmatpush1.msra.mxu1 %v23172_v51  ;;  %v23373_v51 = vsub.f32 %v9196_v39, %v9258_v5  ;;  %v26301_v33 = vand.u32 4294901760, %v27769_v63  ;;  %v9406_v60 = vand.u32 4294901760, %v9405_v45 }
 0xa78   : > { %9162 = vmatmul.mubr.f32.vlgmr.msra.gmra.mrb[28].mxu1 %v23053_v16  ;;  %15704 = vmatprep.subr.bf16.mxu1 %v27738_v34  ;;  %v23319_v16 = vpack.c.bf16 %v27757_v29, %v27756_v50  ;;  %v27765_v50 = vld [vmem:[#allocation76_spill] sm:$0xff] }
 0xa79   : > { %9167 = vmatprep.mubr.f32.mxu1 %v27723_v38  ;;  %15706 = vmatpush1.bf16.msra.mxu1 %v23298_v13  ;;  %v26305_v29 = vand.u32 4294901760, %v27765_v50  ;;  %v9412_v23 = vsub.f32 %v27769_v63, %v26301_v33  ;;  %v26291_v45 = vand.u32 4294901760, %v23373_v51 }
 0xa7a   : > { %15707 = vmatprep.subr.bf16.mxu1 %v27738_v34 }
 0xa7b   : > { %v9384_v3 = vsub.f32 %v27765_v50, %v26305_v29  ;;  %v9413_v56 = vand.u32 4294901760, %v9412_v23  ;;  %v26293_v23 = vand.u32 4294901760, %v23375_v41 }
 0xa7c   : > { %9169 = vmatmul.mubr.f32.gmra.mrb[30].mxu1 %v23056_v37  ;;  %v23328_v37 = vpack.c.bf16 %v27759_v2, %v27758_v47  ;;  %v23424_v47 = vpack.c.bf16 %v9371_v43, %v9364_v49  ;;  %v9377_v2 = vsub.f32 %v22968_v32, %v26306_v24  ;;  %v9426_v49 = vsub.f32 %v27771_v9, %v26296_v57 }
 0xa7d   : > { %9174 = vmatprep.mubr.f32.mxu1 %v27723_v38  ;;  %15709 = vmatpush1.bf16.msra.mxu1 %v23309_v31  ;;  %v9385_v39 = vand.u32 4294901760, %v9384_v3  ;;  %v23456_v1 = vpack.c.bf16 %v9413_v56, %v9406_v60  ;;  %v9420_v43 = vand.u32 4294901760, %v9419_v14  ;;  %v26295_v3 = vand.u32 4294901760, %v23369_v17 }
 0xa7e   : > { %15710 = vmatprep.subr.bf16.mxu1 %v27738_v34  ;;  %v9378_v8 = vand.u32 4294901760, %v9377_v2  ;;  %v9427_v2 = vand.u32 4294901760, %v9426_v49  ;;  %v9447_v56 = vsub.f32 %v23373_v51, %v26291_v45  ;;  %v9454_v14 = vsub.f32 %v23375_v41, %v26293_v23 }
 0xa7f   : > { %v26298_v23 = vand.u32 4294901760, %v23392_v6 }
 0xa80   : > { %9176 = vmatmul.mubr.f32.gmra.mrb[32].mxu1 %v23086_v40  ;;  %v23344_v40 = vpack.c.bf16 %v27763_v7, %v27762_v12  ;;  %v26304_v12 = vand.u32 4294901760, %v27766_v11  ;;  %v27767_v7 = vld [vmem:[#allocation58_spill] sm:$0xff]  ;;  %v23442_v25 = vpack.c.bf16 %v9385_v39, %v9378_v8  ;;  %v26292_v8 = vand.u32 4294901760, %v23371_v20 }
 0xa81   : > { %15712 = vmatpush1.bf16.msra.mxu1 %v23319_v16  ;;  %v26303_v4 = vand.u32 4294901760, %v27767_v7  ;;  %v23466_v39 = vpack.c.bf16 %v9427_v2, %v9420_v43  ;;  %v9448_v49 = vand.u32 4294901760, %v9447_v56  ;;  %v9455_v43 = vand.u32 4294901760, %v9454_v14 }
 0xa82   : > { %15713 = vmatprep.subr.bf16.mxu1 %v27738_v34  ;;  %v9391_v53 = vsub.f32 %v27766_v11, %v26304_v12  ;;  %v26294_v2 = vand.u32 4294901760, %v23388_v19  ;;  %v26300_v56 = vand.u32 4294901760, %v23396_v28 }
 0xa83   : > { %v9398_v44 = vsub.f32 %v27767_v7, %v26303_v4 }
 0xa84   : > { %v9392_v5 = vand.u32 4294901760, %v9391_v53  ;;  %v9433_v53 = vsub.f32 %v23369_v17, %v26295_v3 }
 0xa85   : > { %15715 = vmatpush1.bf16.msra.mxu1 %v23328_v37  ;;  %v9399_v54 = vand.u32 4294901760, %v9398_v44  ;;  %v9440_v44 = vsub.f32 %v23371_v20, %v26292_v8 }
 0xa86   : > { %15716 = vmatprep.subr.bf16.mxu1 %v27738_v34 }
 0xa87   : > { %v23452_v62 = vpack.c.bf16 %v9399_v54, %v9392_v5  ;;  %v9434_v5 = vand.u32 4294901760, %v9433_v53  ;;  %v9441_v54 = vand.u32 4294901760, %v9440_v44  ;;  %v26297_v53 = vand.u32 4294901760, %v23390_v18 }
 0xa88   : > { %v23486_v44 = vpack.c.bf16 %v9455_v43, %v9448_v49  ;;  %v9475_v49 = vsub.f32 %v23392_v6, %v26298_v23  ;;  %v9482_v43 = vsub.f32 %v23396_v28, %v26300_v56 }
 0xa89   : > { %15718 = vmatpush1.bf16.msra.mxu1 %v23336_v42  ;;  %v23476_v60 = vpack.c.bf16 %v9441_v54, %v9434_v5  ;;  %v9461_v5 = vsub.f32 %v23388_v19, %v26294_v2  ;;  %v9468_v54 = vsub.f32 %v23390_v18, %v26297_v53 }
 0xa8a   : > { %15719 = vmatprep.subr.bf16.mxu1 %v27738_v34  ;;  %v9476_v2 = vand.u32 4294901760, %v9475_v49  ;;  %v9483_v3 = vand.u32 4294901760, %v9482_v43 }
 0xa8b   : > { %v9462_v45 = vand.u32 4294901760, %v9461_v5  ;;  %v9469_v8 = vand.u32 4294901760, %v9468_v54 }
 0xa8c   : > { %v23504_v57 = vpack.c.bf16 %v9483_v3, %v9476_v2 }
 0xa8d   : > { %15721 = vmatpush1.bf16.msra.mxu1 %v23344_v40  ;;  %v23496_v14 = vpack.c.bf16 %v9469_v8, %v9462_v45 }
 0xa8e   : > { %15722 = vmatprep.subr.bf16.mxu1 %v27738_v34 }
 0xa91   : > { %15724 = vmatpush1.bf16.msra.mxu1 %v23367_v52 }
 0xa92   : > { %15725 = vmatprep.subr.bf16.mxu1 %v27738_v34 }
 0xa95   : > { %15727 = vmatpush1.bf16.msra.mxu1 %v23384_v27 }
 0xa96   : > { %15728 = vmatprep.subr.bf16.mxu1 %v27738_v34 }
 0xa99   : > { %15730 = vmatpush1.bf16.msra.mxu1 %v23399_v21 }
 0xa9a   : > { %15731 = vmatprep.subr.bf16.mxu1 %v27738_v34 }
 0xa9d   : > { %15733 = vmatpush1.bf16.msra.mxu1 %v23417_v26 }
 0xa9e   : > { %15734 = vmatprep.subr.bf16.mxu1 %v27738_v34 }
 0xb0c   : > { %v8548_v8 = vpop.f32.mrb[56].mxu0 }
 0xb0d   : > { %v8550_v45 = vpop.f32.mrb[57].mxu0 }
 0xb10   : > { %v8559_v0 = vpop.f32.mrb[58].mxu0 }
 0xb11   : > { %v8561_v56 = vpop.f32.mrb[59].mxu0 }
 0xb15   : > { %v8570_v2 = vpop.f32.mrb[60].mxu0 }
 0xb16   : > { %v8572_v49 = vpop.f32.mrb[61].mxu0 }
 0xb4b   : > { %v9163_v29 = vpop.f32.mrb[28].mxu1 }
 0xb4c   : > { %v16521_v24 = vadd.f32 %v9163_v29, %v8548_v8  ;;  %v9165_v30 = vpop.f32.mrb[29].mxu1 }
 0xb4d   : > { %v16522_v55 = vadd.f32 %v9165_v30, %v8550_v45 }
 0xb4e   : > { %v23526_v46 = vand.u32 4294901760, %v16521_v24 }
 0xb4f   : > { %v9204_v61 = vsel %vm9202_vm15, %v16522_v55, 0  ;;  %v9170_v43 = vpop.f32.mrb[30].mxu1 }
 0xb50   : > { %v23530_v33 = vsub.f32 %v16521_v24, %v23526_v46  ;;  %v23532_v58 = vand.u32 4294901760, %v9204_v61  ;;  %v16523_v3 = vadd.f32 %v9170_v43, %v8559_v0  ;;  %v9172_v4 = vpop.f32.mrb[31].mxu1 }
 0xb51   : > { %v16524_v23 = vadd.f32 %v9172_v4, %v8561_v56 }
 0xb52   : > { %v26311_v12 = vand.u32 4294901760, %v23530_v33  ;;  %v23536_v29 = vsub.f32 %v9204_v61, %v23532_v58  ;;  %v23538_v8 = vand.u32 4294901760, %v16523_v3 }
 0xb53   : > { %v9207_v30 = vsel %vm9202_vm15, %v16524_v23, 0  ;;  %v9177_v45 = vpop.f32.mrb[32].mxu1 }
 0xb54   : > { %v23542_v55 = vsub.f32 %v16523_v3, %v23538_v8  ;;  %v23544_v24 = vand.u32 4294901760, %v9207_v30  ;;  %v16525_v53 = vadd.f32 %v9177_v45, %v8570_v2  ;;  %v9179_v54 = vpop.f32.mrb[33].mxu1  ;;  %v9308_v4 = vsub.f32 %v23530_v33, %v26311_v12 }
 0xb55   : > { %v16526_v0 = vadd.f32 %v9179_v54, %v8572_v49  ;;  %v26312_v61 = vand.u32 4294901760, %v23536_v29 }
 0xb56   : > { %v23551_v56 = vsub.f32 %v9207_v30, %v23544_v24  ;;  %v23553_v43 = vand.u32 4294901760, %v16525_v53  ;;  %v9322_v23 = vand.u32 4294901760, %v23542_v55  ;;  %v9309_v49 = vand.u32 4294901760, %v9308_v4 }
 0xb57   : > { %v9210_v3 = vsel %vm9202_vm15, %v16526_v0, 0  ;;  %v9302_v2 = vsub.f32 %v23536_v29, %v26312_v61 }
 0xb58   : > { %v23561_v45 = vsub.f32 %v16525_v53, %v23553_v43  ;;  %v23563_v12 = vand.u32 4294901760, %v9210_v3  ;;  %v9316_v54 = vand.u32 4294901760, %v23551_v56  ;;  %v9323_v61 = vsub.f32 %v23542_v55, %v9322_v23 }
 0xb59   : > { %v9303_v30 = vand.u32 4294901760, %v9302_v2 }
 0xb5a   : > { %v23567_v5 = vsub.f32 %v9210_v3, %v23563_v12  ;;  %v9317_v0 = vsub.f32 %v23551_v56, %v9316_v54  ;;  %v9337_v53 = vand.u32 4294901760, %v23561_v45  ;;  %v9324_v4 = vand.u32 4294901760, %v9323_v61 }
 0xb5b   : > { %9304 = vmatprep.mubr.f32.mxu1 %v9303_v30  ;;  %v27782_v61 = vand.u32 4294901760, %v23536_v29 }
 0xb5c   : > { %9310 = vmatmul.mubr.f32.vlgmr.msra.gmra.mrb[34].mxu1 %v9309_v49  ;;  %v9318_v38 = vand.u32 4294901760, %v9317_v0  ;;  %v9331_v26 = vand.u32 4294901760, %v23567_v5  ;;  %v9338_v2 = vsub.f32 %v23561_v45, %v9337_v53  ;;  %v27784_v49 = vand.u32 4294901760, %v22947_v35 }
 0xb5d   : > { %15736 = vmatpush1.bf16.msra.mxu1 %v23419_v10  ;;  %v27785_v0 = vand.u32 4294901760, %v22952_v48 }
 0xb5e   : > { %9319 = vmatprep.mubr.f32.mxu1 %v9318_v38  ;;  %15737 = vmatprep.subr.bf16.mxu1 %v27738_v34  ;;  %v9332_v3 = vsub.f32 %v23567_v5, %v9331_v26  ;;  %v9339_v10 = vand.u32 4294901760, %v9338_v2  ;;  %v27772_v38 = vpack.c.bf16 %v22952_v48, %v22947_v35  ;;  %v27787_v2 = vand.u32 4294901760, %v22957_v22 }
 0xb5f   : > { %v27789_v35 = vand.u32 4294901760, %v22968_v32  ;;  %v27790_v48 = vand.u32 4294901760, %v27765_v50 }
 0xb60   : > { %9325 = vmatmul.mubr.f32.gmra.mrb[36].mxu1 %v9324_v4  ;;  %v9333_v30 = vand.u32 4294901760, %v9332_v3  ;;  %v15825_v4 = vpack.c.bf16 %v27785_v0, %v27784_v49  ;;  %v27786_v3 = vand.u32 4294901760, %v23530_v33 }
 0xb61   : > { %15739 = vmatpush1.bf16.msra.mxu1 %v23424_v47  ;;  %v27773_v47 = vpack.c.bf16 %v22963_v36, %v22957_v22  ;;  %v27791_v22 = vand.u32 4294901760, %v27766_v11 }
 0xb62   : > { %9334 = vmatprep.mubr.f32.mxu1 %v9333_v30  ;;  %15740 = vmatprep.subr.bf16.mxu1 %v27738_v34  ;;  %v27788_v30 = vand.u32 4294901760, %v22963_v36  ;;  %v27792_v36 = vand.u32 4294901760, %v27767_v7 }
 0xb64   : > { %9340 = vmatmul.mubr.f32.gmra.mrb[38].mxu1 %v9339_v10  ;;  %v15828_v10 = vpack.c.bf16 %v27788_v30, %v27787_v2  ;;  %v10099_v2 = vld [vmem:[%s25480_s9 + $0x30] sm:$0xff] }
 0xb65   : > { %15742 = vmatpush1.bf16.msra.mxu1 %v23442_v25  ;;  %9510 = vmatprep.mubr.f32.mxu1 %v23532_v58  ;;  %v27774_v25 = vpack.c.bf16 %v27765_v50, %v22968_v32  ;;  %v27793_v32 = vand.u32 4294901760, %v27768_v59 }
 0xb66   : > { %15743 = vmatprep.subr.bf16.mxu1 %v27738_v34 }
 0xb69   : > { %15745 = vmatpush1.bf16.msra.mxu1 %v23452_v62  ;;  %v27775_v62 = vpack.c.bf16 %v27767_v7, %v27766_v11  ;;  %v27797_v11 = vand.u32 4294901760, %v23369_v17  ;;  %v27798_v7 = vand.u32 4294901760, %v23371_v20 }
 0xb6a   : > { %15746 = vmatprep.subr.bf16.mxu1 %v27738_v34 }
 0xb6d   : > { %15748 = vmatpush1.bf16.msra.mxu1 %v23456_v1  ;;  %v27777_v1 = vpack.c.bf16 %v27771_v9, %v27770_v15 }
 0xb6e   : > { %15749 = vmatprep.subr.bf16.mxu1 %v27738_v34 }
 0xb71   : > { %15751 = vmatpush1.bf16.msra.mxu1 %v23466_v39  ;;  %v27778_v39 = vpack.c.bf16 %v23371_v20, %v23369_v17  ;;  %v27803_v17 = vand.u32 4294901760, %v23392_v6  ;;  %v27804_v20 = vand.u32 4294901760, %v23396_v28 }
 0xb72   : > { %15752 = vmatprep.subr.bf16.mxu1 %v27738_v34 }
 0xb75   : > { %15754 = vmatpush1.bf16.msra.mxu1 %v23476_v60  ;;  %v27779_v60 = vpack.c.bf16 %v23375_v41, %v23373_v51 }
 0xb76   : > { %15755 = vmatprep.subr.bf16.mxu1 %v27738_v34 }
 0xb79   : > { %15757 = vmatpush1.bf16.msra.mxu1 %v23486_v44  ;;  %v27780_v44 = vpack.c.bf16 %v23390_v18, %v23388_v19 }
 0xb7a   : > { %15758 = vmatprep.subr.bf16.mxu1 %v27738_v34 }
 0xb7d   : > { %15760 = vmatpush1.bf16.msra.mxu1 %v23496_v14  ;;  %v27781_v14 = vpack.c.bf16 %v23396_v28, %v23392_v6  ;;  %v10095_v6 = vld [vmem:[%s25480_s9 + $0x10] sm:$0xff]  ;;  %v10113_v28 = vld [vmem:[%s25480_s9 + $0xa0] sm:$0xff] }
 0xb7e   : > { %15761 = vmatprep.subr.bf16.mxu1 %v27738_v34 }
 0xb81   : > { %15763 = vmatpush1.bf16.msra.mxu1 %v23504_v57  ;;  %v27776_v57 = vpack.c.bf16 %v27769_v63, %v27768_v59  ;;  %v27799_v59 = vand.u32 4294901760, %v23373_v51  ;;  %v10111_v51 = vld [vmem:[%s25480_s9 + $0x90] sm:$0xff] }
 0xb82   : > { %15764 = vmatprep.subr.bf16.mxu1 %v27738_v34 }
 0xb84   : > { %9512 = vmatmul.mubr.f32.vlgmr.msra.gmra.mrb[34].mxu1 %v23526_v46 }
 0xb85   : > { %9517 = vmatprep.mubr.f32.mxu1 %v23544_v24  ;;  %15766 = vmatpush1.bf16.msra.mxu1 %v27772_v38  ;;  %v15852_v38 = vpack.c.bf16 %v27804_v20, %v27803_v17 }
 0xb86   : > { %15767 = vmatprep.subr.bf16.mxu1 %v27738_v34 }
 0xb88   : > { %9519 = vmatmul.mubr.f32.gmra.mrb[36].mxu1 %v23538_v8 }
 0xb89   : > { %9524 = vmatprep.mubr.f32.mxu1 %v23563_v12  ;;  %15769 = vmatpush1.bf16.msra.mxu1 %v27773_v47  ;;  %v10098_v47 = vld [vmem:[%s25480_s9 + $0x28] sm:$0xff] }
 0xb8a   : > { %15770 = vmatprep.subr.bf16.mxu1 %v27738_v34  ;;  %v10164_v0 = vand.u32 4294901760, %v10098_v47 }
 0xb8c   : > { %9526 = vmatmul.mubr.f32.gmra.mrb[38].mxu1 %v23553_v43 }
 0xb8d   : > { %15772 = vmatpush1.bf16.msra.mxu1 %v27774_v25  ;;  %9637 = vmatprep.mubr.f32.mxu1 %v23536_v29  ;;  %v27783_v29 = vld [vmem:[#allocation59_spill] sm:$0xff] }
 0xb8e   : > { %15773 = vmatprep.subr.bf16.mxu1 %v27738_v34 }
 0xb91   : > { %15775 = vmatpush1.bf16.msra.mxu1 %v27775_v62 }
 0xb92   : > { %15776 = vmatprep.subr.bf16.mxu1 %v27738_v34 }
 0xb95   : > { %15778 = vmatpush1.bf16.msra.mxu1 %v27776_v57 }
 0xb96   : > { %15779 = vmatprep.subr.bf16.mxu1 %v27738_v34 }
 0xb99   : > { %15781 = vmatpush1.bf16.msra.mxu1 %v27777_v1 }
 0xb9a   : > { %15782 = vmatprep.subr.bf16.mxu1 %v27738_v34 }
 0xb9d   : > { %15784 = vmatpush1.bf16.msra.mxu1 %v27778_v39  ;;  %v10115_v39 = vld [vmem:[%s25480_s9 + $0xb0] sm:$0xff] }
 0xb9e   : > { %15785 = vmatprep.subr.bf16.mxu1 %v27738_v34 }
 0xba1   : > { %15787 = vmatpush1.bf16.msra.mxu1 %v27779_v60 }
 0xba2   : > { %15788 = vmatprep.subr.bf16.mxu1 %v27738_v34 }
 0xba5   : > { %15790 = vmatpush1.bf16.msra.mxu1 %v27780_v44  ;;  %v10155_v44 = vand.u32 4294901760, %v10095_v6 }
 0xba6   : > { %15791 = vmatprep.subr.bf16.mxu1 %v27738_v34 }
 0xba9   : > { %15793 = vmatpush1.bf16.msra.mxu1 %v27781_v14 }
 0xbaa   : > { %15794 = vmatprep.subr.bf16.mxu1 %v27738_v34 }
 0xbac   : > { %9640 = vmatmul.mubr.f32.vlgmr.msra.gmra.mrb[34].mxu1 %v23530_v33  ;;  %v15831_v33 = vpack.c.bf16 %v27790_v48, %v27789_v35 }
 0xbad   : > { %9646 = vmatprep.mubr.f32.mxu1 %v23551_v56  ;;  %15796 = vmatpush1.bf16.msra.mxu1 %v23298_v13  ;;  %v27796_v56 = vand.u32 4294901760, %v27771_v9  ;;  %v27802_v9 = vand.u32 4294901760, %v23390_v18 }
 0xbae   : > { %15797 = vmatprep.subr.bf16.mxu1 %v27738_v34 }
 0xbb0   : > { %9649 = vmatmul.mubr.f32.gmra.mrb[36].mxu1 %v23542_v55  ;;  %v27795_v55 = vand.u32 4294901760, %v27770_v15  ;;  %v27801_v15 = vand.u32 4294901760, %v23388_v19  ;;  %v10203_v19 = vand.u32 4294901760, %v10111_v51 }
 0xbb1   : > { %9655 = vmatprep.mubr.f32.mxu1 %v23567_v5  ;;  %15799 = vmatpush1.bf16.msra.mxu1 %v23309_v31  ;;  %v15834_v5 = vpack.c.bf16 %v27792_v36, %v27791_v22  ;;  %v10117_v22 = vld [vmem:[%s25480_s9 + $0xc0] sm:$0xff] }
 0xbb2   : > { %15800 = vmatprep.subr.bf16.mxu1 %v27738_v34  ;;  %v23818_v1 = vsub.f32 %v10111_v51, %v10203_v19 }
 0xbb4   : > { %9658 = vmatmul.mubr.f32.gmra.mrb[38].mxu1 %v23561_v45  ;;  %v15843_v45 = vpack.c.bf16 %v27798_v7, %v27797_v11 }
 0xbb5   : > { %15802 = vmatpush1.bf16.msra.mxu1 %v23319_v16  ;;  %9750 = vmatprep.mubr.f32.mxu1 %v27782_v61  ;;  %v10209_v61 = vand.u32 4294901760, %v10113_v28 }
 0xbb6   : > { %15803 = vmatprep.subr.bf16.mxu1 %v27738_v34 }
 0xbb7   : > { %v23840_v48 = vsub.f32 %v10113_v28, %v10209_v61 }
 0xbb9   : > { %15805 = vmatpush1.bf16.msra.mxu1 %v23328_v37 }
 0xbba   : > { %15806 = vmatprep.subr.bf16.mxu1 %v27738_v34 }
 0xbbd   : > { %15808 = vmatpush1.bf16.msra.mxu1 %v23336_v42 }
 0xbbe   : > { %15809 = vmatprep.subr.bf16.mxu1 %v27738_v34 }
 0xbc1   : > { %15811 = vmatpush1.bf16.msra.mxu1 %v23344_v40 }
 0xbc2   : > { %15812 = vmatprep.subr.bf16.mxu1 %v27738_v34 }
 0xbc5   : > { %15814 = vmatpush1.bf16.msra.mxu1 %v23367_v52 }
 0xbc6   : > { %15815 = vmatprep.subr.bf16.mxu1 %v27738_v34 }
 0xbc9   : > { %15817 = vmatpush1.bf16.msra.mxu1 %v23384_v27 }
 0xbca   : > { %15818 = vmatprep.subr.bf16.mxu1 %v27738_v34 }
 0xbcd   : > { %15820 = vmatpush1.bf16.msra.mxu1 %v23399_v21 }
 0xbce   : > { %15821 = vmatprep.subr.bf16.mxu1 %v27738_v34 }
 0xbd1   : > { %15823 = vmatpush1.bf16.msra.mxu1 %v27783_v29 }
 0xbd2   : > { %15824 = vmatprep.subr.bf16.mxu1 %v27738_v34 }
 0xbd4   : > { %9754 = vmatmul.mubr.f32.vlgmr.msra.gmra.mrb[34].mxu1 %v27786_v3  ;;  %v10215_v3 = vand.u32 4294901760, %v10115_v39 }
 0xbd5   : > { %9761 = vmatprep.mubr.f32.mxu1 %v9316_v54  ;;  %15826 = vmatpush1.bf16.msra.mxu1 %v15825_v4  ;;  %v10116_v4 = vld [vmem:[%s25480_s9 + $0xb8] sm:$0xff] }
 0xbd6   : > { %15827 = vmatprep.subr.bf16.mxu1 %v27738_v34 }
 0xbd8   : > { %9765 = vmatmul.mubr.f32.gmra.mrb[36].mxu1 %v9322_v23  ;;  %v15840_v23 = vpack.c.bf16 %v27796_v56, %v27795_v55  ;;  %v10218_v55 = vand.u32 4294901760, %v10116_v4  ;;  %v23859_v56 = vsub.f32 %v10115_v39, %v10215_v3 }
 0xbd9   : > { %9772 = vmatprep.mubr.f32.mxu1 %v9331_v26  ;;  %15829 = vmatpush1.bf16.msra.mxu1 %v15828_v10  ;;  %v27794_v26 = vand.u32 4294901760, %v27769_v63  ;;  %v27800_v63 = vand.u32 4294901760, %v23375_v41  ;;  %v10112_v41 = vld [vmem:[%s25480_s9 + $0x98] sm:$0xff]  ;;  %v23836_v10 = vsub.f32 %v10095_v6, %v10155_v44 }
 0xbda   : > { %15830 = vmatprep.subr.bf16.mxu1 %v27738_v34  ;;  %v10206_v18 = vand.u32 4294901760, %v10112_v41 }
 0xbdb   : > { %v15837_v50 = vpack.c.bf16 %v27794_v26, %v27793_v32  ;;  %v15846_v54 = vpack.c.bf16 %v27800_v63, %v27799_v59  ;;  %v10118_v26 = vld [vmem:[%s25480_s9 + $0xc8] sm:$0xff]  ;;  %v23865_v59 = vpack.c.bf16 %v10218_v55, %v10215_v3  ;;  %v23867_v63 = vsub.f32 %v10116_v4, %v10218_v55  ;;  %v10104_v4 = vld [vmem:[%s25480_s9 + $0x58] sm:$0xff] }
 0xbdc   : > { %9776 = vmatmul.mubr.f32.gmra.mrb[38].mxu1 %v9337_v53  ;;  %v15849_v53 = vpack.c.bf16 %v27802_v9, %v27801_v15  ;;  %v23816_v57 = vpack.c.bf16 %v10206_v18, %v10203_v19  ;;  %v23824_v60 = vsub.f32 %v10112_v41, %v10206_v18  ;;  %v10224_v15 = vand.u32 4294901760, %v10118_v26  ;;  %v10101_v41 = vld [vmem:[%s25480_s9 + $0x40] sm:$0xff]  ;;  %v10119_v19 = vld [vmem:[%s25480_s9 + $0xd0] sm:$0xff] }
 0xbdd   : > { %15832 = vmatpush1.bf16.msra.mxu1 %v15831_v33  ;;  %9906 = vmatprep.mubr.f32.mxu1 %v23532_v58  ;;  %v10100_v33 = vld [vmem:[%s25480_s9 + $0x38] sm:$0xff]  ;;  %27811 = vst [vmem:[#allocation70_spill] sm:$0xff] %v23865_v59 }
 0xbde   : > { %15833 = vmatprep.subr.bf16.mxu1 %v27738_v34  ;;  %27807 = vst [vmem:[#allocation66_spill] sm:$0xff] %v23816_v57  ;;  %v10170_v7 = vand.u32 4294901760, %v10100_v33  ;;  %v23875_v17 = vsub.f32 %v10118_v26, %v10224_v15 }
 0xbe0   : > { %v23871_v9 = vsub.f32 %v10100_v33, %v10170_v7 }
 0xbe1   : > { %15835 = vmatpush1.bf16.msra.mxu1 %v15834_v5 }
 0xbe2   : > { %15836 = vmatprep.subr.bf16.mxu1 %v27738_v34 }
 0xbe5   : > { %15838 = vmatpush1.bf16.msra.mxu1 %v15837_v50  ;;  %v23857_v50 = vsub.f32 %v10098_v47, %v10164_v0  ;;  %v10173_v47 = vand.u32 4294901760, %v10101_v41 }
 0xbe6   : > { %15839 = vmatprep.subr.bf16.mxu1 %v27738_v34 }
 0xbe7   : > { %v23921_v33 = vsub.f32 %v10101_v41, %v10173_v47  ;;  %v10106_v41 = vld [vmem:[%s25480_s9 + $0x68] sm:$0xff] }
 0xbe9   : > { %15841 = vmatpush1.bf16.msra.mxu1 %v15840_v23  ;;  %v10167_v23 = vand.u32 4294901760, %v10099_v2 }
 0xbea   : > { %15842 = vmatprep.subr.bf16.mxu1 %v27738_v34 }
 0xbeb   : > { %v23878_v20 = vpack.c.bf16 %v10170_v7, %v10167_v23 }
 0xbed   : > { %15844 = vmatpush1.bf16.msra.mxu1 %v15843_v45  ;;  %v10221_v45 = vand.u32 4294901760, %v10117_v22  ;;  %27812 = vst [vmem:[#allocation78_spill] sm:$0xff] %v23878_v20 }
 0xbee   : > { %15845 = vmatprep.subr.bf16.mxu1 %v27738_v34 }
 0xbf1   : > { %15847 = vmatpush1.bf16.msra.mxu1 %v15846_v54  ;;  %v23869_v54 = vsub.f32 %v10099_v2, %v10167_v23 }
 0xbf2   : > { %15848 = vmatprep.subr.bf16.mxu1 %v27738_v34 }
 0xbf5   : > { %15850 = vmatpush1.bf16.msra.mxu1 %v15849_v53  ;;  %v23873_v53 = vsub.f32 %v10117_v22, %v10221_v45 }
 0xbf6   : > { %15851 = vmatprep.subr.bf16.mxu1 %v27738_v34 }
 0xbf9   : > { %15853 = vmatpush1.bf16.msra.mxu1 %v15852_v38  ;;  %v23881_v38 = vpack.c.bf16 %v10224_v15, %v10221_v45  ;;  %v10121_v15 = vld [vmem:[%s25480_s9 + $0xe0] sm:$0xff] }
 0xbfa   : > { %15854 = vmatprep.subr.bf16.mxu1 %v27738_v34 }
 0xbfb   : > { %27813 = vst [vmem:[#allocation102_spill] sm:$0xff] %v23881_v38 }
 0xbfc   : > { %9908 = vmatmul.mubr.f32.vlgmr.msra.gmra.mrb[34].mxu1 %v23526_v46 }
 0xbfd   : > { %9913 = vmatprep.mubr.f32.mxu1 %v23544_v24  ;;  %15856 = vmatpush1.bf16.msra.mxu1 %v23298_v13  ;;  %v10109_v13 = vld [vmem:[%s25480_s9 + $0x80] sm:$0xff] }
 0xbfe   : > { %15857 = vmatprep.subr.bf16.mxu1 %v27738_v34 }
 0xc00   : > { %9915 = vmatmul.mubr.f32.gmra.mrb[36].mxu1 %v23538_v8 }
 0xc01   : > { %9920 = vmatprep.mubr.f32.mxu1 %v23563_v12  ;;  %15859 = vmatpush1.bf16.msra.mxu1 %v23309_v31  ;;  %v10110_v31 = vld [vmem:[%s25480_s9 + $0x88] sm:$0xff] }
 0xc02   : > { %15860 = vmatprep.subr.bf16.mxu1 %v27738_v34 }
 0xc04   : > { %9922 = vmatmul.mubr.f32.gmra.mrb[38].mxu1 %v23553_v43 }
 0xc05   : > { %15862 = vmatpush1.bf16.msra.mxu1 %v23319_v16  ;;  %10012 = vmatprep.mubr.f32.mxu1 %v23532_v58  ;;  %v10093_v16 = vld [vmem:[%s25480_s9] sm:$0xff] }
 0xc06   : > { %15863 = vmatprep.subr.bf16.mxu1 %v27738_v34 }
 0xc09   : > { %15865 = vmatpush1.bf16.msra.mxu1 %v23328_v37  ;;  %v10197_v37 = vand.u32 4294901760, %v10109_v13 }
 0xc0a   : > { %15866 = vmatprep.subr.bf16.mxu1 %v27738_v34 }
 0xc0d   : > { %15868 = vmatpush1.bf16.msra.mxu1 %v23336_v42  ;;  %v10200_v42 = vand.u32 4294901760, %v10110_v31 }
 0xc0e   : > { %15869 = vmatprep.subr.bf16.mxu1 %v27738_v34 }
 0xc0f   : > { %v23799_v58 = vsub.f32 %v10110_v31, %v10200_v42 }
 0xc11   : > { %15871 = vmatpush1.bf16.msra.mxu1 %v23344_v40  ;;  %v10094_v40 = vld [vmem:[%s25480_s9 + $0x8] sm:$0xff] }
 0xc12   : > { %15872 = vmatprep.subr.bf16.mxu1 %v27738_v34 }
 0xc15   : > { %15874 = vmatpush1.bf16.msra.mxu1 %v23367_v52  ;;  %v10149_v52 = vand.u32 4294901760, %v10093_v16 }
 0xc16   : > { %15875 = vmatprep.subr.bf16.mxu1 %v27738_v34 }
 0xc19   : > { %15877 = vmatpush1.bf16.msra.mxu1 %v23384_v27  ;;  %v10152_v27 = vand.u32 4294901760, %v10094_v40 }
 0xc1a   : > { %15878 = vmatprep.subr.bf16.mxu1 %v27738_v34 }
 0xc1b   : > { %v23812_v25 = vpack.c.bf16 %v10152_v27, %v10149_v52  ;;  %v23814_v62 = vsub.f32 %v10094_v40, %v10152_v27  ;;  %v10102_v27 = vld [vmem:[%s25480_s9 + $0x48] sm:$0xff] }
 0xc1c   : > { %v10176_v39 = vand.u32 4294901760, %v10102_v27 }
 0xc1d   : > { %15880 = vmatpush1.bf16.msra.mxu1 %v23399_v21  ;;  %v23795_v21 = vpack.c.bf16 %v10200_v42, %v10197_v37  ;;  %27806 = vst [vmem:[#allocation26_spill] sm:$0xff] %v23812_v25 }
 0xc1e   : > { %15881 = vmatprep.subr.bf16.mxu1 %v27738_v34  ;;  %v23919_v2 = vpack.c.bf16 %v10176_v39, %v10173_v47  ;;  %v23923_v22 = vsub.f32 %v10102_v27, %v10176_v39  ;;  %v10123_v27 = vld [vmem:[%s25480_s9 + $0xf0] sm:$0xff]  ;;  %v10124_v47 = vld [vmem:[%s25480_s9 + $0xf8] sm:$0xff] }
 0xc1f   : > { %27805 = vst [vmem:[#allocation15_spill] sm:$0xff] %v23795_v21 }
 0xc20   : > { %27815 = vst [vmem:[#allocation31_spill] sm:$0xff] %v23919_v2 }
 0xc21   : > { %15883 = vmatpush1.bf16.msra.mxu1 %v27783_v29 }
 0xc22   : > { %15885 = vmatprep.subr.bf16.mxu1 %v23795_v21 }
 0xc24   : > { %10014 = vmatmul.mubr.f32.vlgmr.msra.gmra.mrb[34].mxu1 %v23526_v46  ;;  %v10096_v46 = vld [vmem:[%s25480_s9 + $0x18] sm:$0xff] }
 0xc25   : > { %10019 = vmatprep.mubr.f32.mxu1 %v23544_v24  ;;  %v10114_v24 = vld [vmem:[%s25480_s9 + $0xa8] sm:$0xff]  ;;  %v10158_v14 = vand.u32 4294901760, %v10096_v46  ;;  %15887 = vmatpush3.bf16.msra.mxu1 %v23812_v25 }
 0xc26   : > { %v10212_v29 = vand.u32 4294901760, %v10114_v24  ;;  %15889 = vmatprep.subr.bf16.mxu1 %v23816_v57 }
 0xc27   : > { %v23834_v30 = vpack.c.bf16 %v10158_v14, %v10155_v44  ;;  %v23838_v35 = vsub.f32 %v10096_v46, %v10158_v14  ;;  %v10227_v44 = vand.u32 4294901760, %v10119_v19 }
 0xc28   : > { %10021 = vmatmul.mubr.f32.gmra.mrb[36].mxu1 %v23538_v8  ;;  %v23801_v8 = vsub.f32 %v10093_v16, %v10149_v52  ;;  %v23848_v36 = vpack.c.bf16 %v10212_v29, %v10209_v61  ;;  %v23850_v5 = vsub.f32 %v10114_v24, %v10212_v29  ;;  %v10120_v24 = vld [vmem:[%s25480_s9 + $0xd8] sm:$0xff] }
 0xc29   : > { %10026 = vmatprep.mubr.f32.mxu1 %v23563_v12  ;;  %v23797_v12 = vsub.f32 %v10109_v13, %v10197_v37  ;;  %27808 = vst [vmem:[#allocation71_spill] sm:$0xff] %v23834_v30  ;;  %15891 = vmatpush3.bf16.msra.mxu1 %v23834_v30  ;;  %v10230_v14 = vand.u32 4294901760, %v10120_v24 }
 0xc2a   : > { %27809 = vst [vmem:[#allocation121_spill] sm:$0xff] %v23848_v36  ;;  %15893 = vmatprep.subr.bf16.mxu1 %v23848_v36 }
 0xc2c   : > { %10028 = vmatmul.mubr.f32.gmra.mrb[38].mxu1 %v23553_v43  ;;  %v10097_v43 = vld [vmem:[%s25480_s9 + $0x20] sm:$0xff] }
 0xc2d   : > { %v10161_v49 = vand.u32 4294901760, %v10097_v43 }
 0xc2f   : > { %v23852_v32 = vsub.f32 %v10097_v43, %v10161_v49  ;;  %v23862_v11 = vpack.c.bf16 %v10164_v0, %v10161_v49  ;;  %v10103_v43 = vld [vmem:[%s25480_s9 + $0x50] sm:$0xff] }
 0xc30   : > { %v10179_v26 = vand.u32 4294901760, %v10103_v43 }
 0xc31   : > { %27810 = vst [vmem:[#allocation28_spill] sm:$0xff] %v23862_v11  ;;  %15895 = vmatpush3.bf16.msra.mxu1 %v23862_v11 }
 0xc32   : > { %15897 = vmatprep.subr.bf16.mxu1 %v23865_v59 }
 0xc35   : > { %15899 = vmatpush3.bf16.msra.mxu1 %v23878_v20 }
 0xc36   : > { %15901 = vmatprep.subr.bf16.mxu1 %v23881_v38 }
 0xc39   : > { %15903 = vmatpush3.bf16.msra.mxu1 %v23919_v2 }
 0xcf7   : > { %v10015_v13 = vpop.f32.mrb[34].mxu1 }
 0xcf8   : > { %v10017_v31 = vpop.f32.mrb[35].mxu1  ;;  %17120 = vtanh.f32 %v10015_v13  ;;  %v10122_v13 = vld [vmem:[%s25480_s9 + $0xe8] sm:$0xff] }
 0xcf9   : > { %v23936_v31 = vpack.c.bf16 %v10230_v14, %v10227_v44 }
 0xcfb   : > { %v10022_v16 = vpop.f32.mrb[36].mxu1  ;;  %27816 = vst [vmem:[#allocation41_spill] sm:$0xff] %v23936_v31  ;;  %15905 = vmatprep.subr.bf16.mxu1 %v23936_v31 }
 0xcfc   : > { %17122 = vtanh.f32 %v10022_v16  ;;  %v10024_v37 = vpop.f32.mrb[37].mxu1  ;;  %v23938_v16 = vsub.f32 %v10119_v19, %v10227_v44  ;;  %v23961_v44 = vsub.f32 %v10103_v43, %v10179_v26 }
 0xcfd   : > { %v23940_v37 = vsub.f32 %v10120_v24, %v10230_v14 }
 0xcff   : > { %v10029_v42 = vpop.f32.mrb[38].mxu1 }
 0xd00   : > { %17124 = vtanh.f32 %v10029_v42  ;;  %v10031_v40 = vpop.f32.mrb[39].mxu1  ;;  %v10182_v42 = vand.u32 4294901760, %v10104_v4 }
 0xd01   : > { %v10105_v40 = vld [vmem:[%s25480_s9 + $0x60] sm:$0xff] }
 0xd02   : > { %v23885_v52 = vpop.eup %17120  ;;  %v23959_v39 = vpack.c.bf16 %v10182_v42, %v10179_v26  ;;  %v23963_v14 = vsub.f32 %v10104_v4, %v10182_v42 }
 0xd03   : > { %v10050_v18 = vrot.slane %v23885_v52, 2  ;;  %v10039_v46 = vrot.slane %v23885_v52, 1  ;;  %v10061_v49 = vrot.slane %v23885_v52, 3  ;;  %v10072_v45 = vrot.slane %v23885_v52, 4 }
 0xd04   : > { %27817 = vst [vmem:[#allocation12_spill] sm:$0xff] %v23959_v39  ;;  %15907 = vmatpush3.bf16.msra.mxu1 %v23959_v39 }
 0xd06   : > { %v23887_v51 = vpop.eup %17122 }
 0xd07   : > { %v10051_v6 = vrot.slane %v23887_v51, 2  ;;  %v10040_v28 = vrot.slane %v23887_v51, 1  ;;  %v10062_v0 = vrot.slane %v23887_v51, 3 }
 0xd09   : > { %v10052_v61 = vsel %vm4996_vm5, %v10050_v18, %v10051_v6  ;;  %v10041_v29 = vsel %vm2449_vm1, %v10039_v46, %v10040_v28  ;;  %v10063_v18 = vsel %vm5031_vm6, %v10061_v49, %v10062_v0  ;;  %v10073_v46 = vrot.slane %v23887_v51, 4 }
 0xd0a   : > { %v23915_v3 = vpop.eup %17124  ;;  %10055 = vrot.lane.b32.xlu1 %v10052_v61, %s17201_s20  ;;  %10044 = vrot.lane.b32.xlu0 %v10041_v29, %s27814_s28  ;;  %v10233_v61 = vand.u32 4294901760, %v10121_v15  ;;  %v10185_v29 = vand.u32 4294901760, %v10105_v40  ;;  %v10188_v49 = vand.u32 4294901760, %v10106_v41 }
 0xd0b   : > { %v10042_v55 = vrot.slane %v23915_v3, 1  ;;  %v10053_v23 = vrot.slane %v23915_v3, 2  ;;  %v10064_v7 = vrot.slane %v23915_v3, 3  ;;  %v10075_v24 = vrot.slane %v23915_v3, 4 }
 0xd0c   : > { %v10239_v3 = vand.u32 4294901760, %v10123_v27  ;;  %v23975_v26 = vpack.c.bf16 %v10188_v49, %v10185_v29  ;;  %v23977_v42 = vsub.f32 %v10105_v40, %v10185_v29  ;;  %v23980_v31 = vsub.f32 %v10106_v41, %v10188_v49 }
 0xd0d   : > { %v10043_v19 = vsel %vm2449_vm1, %v10040_v28, %v10042_v55  ;;  %v10236_v28 = vand.u32 4294901760, %v10122_v13  ;;  %v10054_v55 = vsel %vm4996_vm5, %v10051_v6, %v10053_v23  ;;  %v10065_v34 = vsel %vm5031_vm6, %v10062_v0, %v10064_v7  ;;  %v10107_v23 = vld [vmem:[%s25480_s9 + $0x70] sm:$0xff]  ;;  %v10108_v7 = vld [vmem:[%s25480_s9 + $0x78] sm:$0xff] }
 0xd0e   : > { %10066 = vrot.lane.b32.xlu0 %v10063_v18, %s17202_s18  ;;  %10046 = vrot.lane.b32.xlu1 %v10043_v19, %s27814_s28  ;;  %v23969_v18 = vsub.f32 %v10121_v15, %v10233_v61  ;;  %v10242_v19 = vand.u32 4294901760, %v10124_v47  ;;  %27819 = vst [vmem:[#allocation61_spill] sm:$0xff] %v23975_v26  ;;  %v23984_v0 = vsub.f32 %v10123_v27, %v10239_v3  ;;  %v10194_v40 = vand.u32 4294901760, %v10108_v7 }
 0xd0f   : > { %v23971_v43 = vpack.c.bf16 %v10236_v28, %v10233_v61  ;;  %v23973_v4 = vsub.f32 %v10122_v13, %v10236_v28  ;;  %v10074_v15 = vsel %vm5066_vm7, %v10072_v45, %v10073_v46  ;;  %v26322_v41 = vand.u32 4294901760, %v23797_v12 }
 0xd10   : > { %v23982_v6 = vpack.c.bf16 %v10242_v19, %v10239_v3  ;;  %v23994_v13 = vsub.f32 %v10124_v47, %v10242_v19  ;;  %v26320_v27 = vand.u32 4294901760, %v23799_v58  ;;  %v26319_v61 = vand.u32 4294901760, %v23801_v8 }
 0xd11   : > { %27818 = vst [vmem:[#allocation44_spill] sm:$0xff] %v23971_v43  ;;  %15909 = vmatprep.subr.bf16.mxu1 %v23971_v43  ;;  %v26321_v28 = vand.u32 4294901760, %v23814_v62  ;;  %v10076_v29 = vsel %vm5066_vm7, %v10073_v46, %v10075_v24  ;;  %v24007_v49 = vsub.f32 %v10108_v7, %v10194_v40  ;;  %v10391_v3 = vsub.f32 %v23797_v12, %v26322_v41 }
 0xd12   : > { %10057 = vrot.lane.b32.xlu0 %v10054_v55, %s17201_s20  ;;  %10068 = vrot.lane.b32.xlu1 %v10065_v34, %s17202_s18  ;;  %27820 = vst [vmem:[#allocation64_spill] sm:$0xff] %v23982_v6  ;;  %v10191_v34 = vand.u32 4294901760, %v10107_v23  ;;  %s17203_s20 = smov 64   ;;  %v10398_v55 = vsub.f32 %v23799_v58, %v26320_v27  ;;  %v10279_v46 = vsub.f32 %v23801_v8, %v26319_v61  ;;  %v26327_v24 = vand.u32 4294901760, %v23818_v1  ;;  %s512_s18 = sand.u32 1, %s17184_s22  }
 0xd13   : > { %15911 = vmatpush3.bf16.msra.mxu1 %v23975_v26  ;;  %27823 = vst [vmem:[#allocation68_spill] sm:$0xff] %v24007_v49  ;;  %v10286_v19 = vsub.f32 %v23814_v62, %v26321_v28  ;;  %v26332_v7 = vand.u32 4294901760, %v23836_v10  ;;  %vm10087_vm1 = vcmask 916480   ;;  %s13607_s28 = sshll.u32 %s512_s18, 2  ;;  %vm13528_vm5 = vcmask 76800   ;;  %s13531_s30 = scalar_lea.sflag [#allocation3], %s512_s18 }
 0xd14   : > { %15913 = vmatprep.subr.bf16.mxu1 %v23982_v6  ;;  %v24003_v45 = vpack.c.bf16 %v10194_v40, %v10191_v34  ;;  %v24005_v47 = vsub.f32 %v10107_v23, %v10191_v34  ;;  %v26337_v23 = vand.u32 4294901760, %v23824_v60  ;;  %v10392_v34 = vand.u32 4294901760, %v10391_v3 }
 0xd15   : > { %v10399_v40 = vand.u32 4294901760, %v10398_v55  ;;  %v10405_v61 = vsub.f32 %v23818_v1, %v26327_v24  ;;  %v10287_v27 = vand.u32 4294901760, %v10286_v19  ;;  %v10293_v41 = vsub.f32 %v23836_v10, %v26332_v7 }
 0xd16   : > { %27821 = vst [vmem:[#allocation30_spill] sm:$0xff] %v24003_v45  ;;  %27822 = vst [vmem:[#allocation65_spill] sm:$0xff] %v24005_v47  ;;  %10077 = vrot.lane.b32.xlu0 %v10074_v15, %s17203_s20  ;;  %10079 = vrot.lane.b32.xlu1 %v10076_v29, %s17203_s20  ;;  %v26333_v15 = vand.u32 4294901760, %v23838_v35  ;;  %v10280_v29 = vand.u32 4294901760, %v10279_v46  ;;  %v10412_v28 = vsub.f32 %v23824_v60, %v26337_v23  ;;  %v26336_v46 = vand.u32 4294901760, %v23840_v48  ;;  %s514_s20 = scalar_lea.vmem [#allocation2], %s13607_s28 }
 0xd17   : > { %15915 = vmatpush3.bf16.msra.mxu1 %v24003_v45  ;;  %v15916_v3 = vpack.c.bf16 %v10399_v40, %v10392_v34  ;;  %v10406_v55 = vand.u32 4294901760, %v10405_v61  ;;  %v26334_v6 = vand.u32 4294901760, %v23850_v5  ;;  %v10294_v26 = vand.u32 4294901760, %v10293_v41  ;;  %s13544_s29 = sshll.u32 %s514_s20, 4  ;;  %s17134_s28 = sshll.u32 %s17205_s25, 4  ;;  %s25431_s29 = int_to_ptr.vmem [resolvable:$true] %s13544_s29  ;;  %s17135_s28 = int_to_ptr.vmem [resolvable:$false] %s17134_s28 }
 0xd18   : > { %v10300_v45 = vsub.f32 %v23838_v35, %v26333_v15  ;;  %v24040_v24 = vpack.c.bf16 %v10287_v27, %v10280_v29  ;;  %v10413_v19 = vand.u32 4294901760, %v10412_v28  ;;  %v10419_v7 = vsub.f32 %v23840_v48, %v26336_v46  ;;  %s17130_s26 = scalar_lea.vmem %s25431_s29, 64  ;;  %s17136_s1 = scalar_lea.vmem %s17135_s28, 128 }
 0xd19   : > { %15917 = vmatprep.subr.bf16.mxu1 %v15916_v3  ;;  %v10426_v15 = vsub.f32 %v23850_v5, %v26334_v6  ;;  %v26335_v61 = vand.u32 4294901760, %v23852_v32  ;;  %v26338_v34 = vand.u32 4294901760, %v23857_v50  ;;  %v26339_v41 = vand.u32 4294901760, %v23859_v56  ;;  %p17131_p11 = scmp.ne.s32.totalorder %s25431_s29, %s17130_s26  ;;  %p17137_p0 = scmp.lt.s32.totalorder %s25431_s29, %s17135_s28 }
 0xd1a   : > { %v10301_v43 = vand.u32 4294901760, %v10300_v45  ;;  %v24050_v40 = vpack.c.bf16 %v10413_v19, %v10406_v55  ;;  %v26340_v28 = vand.u32 4294901760, %v23867_v63  ;;  %v10420_v45 = vand.u32 4294901760, %v10419_v7  ;;  %p17138_p1 = scmp.lt.s32.totalorder %s17136_s1, %s17130_s26 }
 0xd1b   : > { %v10427_v29 = vand.u32 4294901760, %v10426_v15  ;;  %v10307_v3 = vsub.f32 %v23852_v32, %v26335_v61  ;;  %v10314_v6 = vsub.f32 %v23857_v50, %v26338_v34  ;;  %v10433_v55 = vsub.f32 %v23859_v56, %v26339_v41  ;;  %p17132_p12 = pnand %p17131_p11, %p17329_p5 }
 0xd1c   : > { %v24052_v27 = vpack.c.bf16 %v10301_v43, %v10294_v26  ;;  %v10440_v43 = vsub.f32 %v23867_v63, %v26340_v28  ;;  %v26343_v26 = vand.u32 4294901760, %v23869_v54  ;;  %v26347_v7 = vand.u32 4294901760, %v23871_v9  ;;  %p17139_p2 = por %p17138_p1, %p17137_p0 }
 0xd1d   : > { %v24070_v15 = vpack.c.bf16 %v10427_v29, %v10420_v45  ;;  %v10308_v19 = vand.u32 4294901760, %v10307_v3  ;;  %v10315_v61 = vand.u32 4294901760, %v10314_v6  ;;  %v26346_v46 = vand.u32 4294901760, %v23873_v53  ;;  %p17133_p13 = pneg %p17132_p12 }
 0xd1e   : > { %v10434_v23 = vand.u32 4294901760, %v10433_v55  ;;  %v10441_v34 = vand.u32 4294901760, %v10440_v43  ;;  %v10321_v41 = vsub.f32 %v23869_v54, %v26343_v26  ;;  %v10328_v28 = vsub.f32 %v23871_v9, %v26347_v7 }
 0xd1f   : > { %v24079_v39 = vpack.c.bf16 %v10315_v61, %v10308_v19  ;;  %v10447_v45 = vsub.f32 %v23873_v53, %v26346_v46  ;;  %v26348_v6 = vand.u32 4294901760, %v23875_v17  ;;  %v26349_v29 = vand.u32 4294901760, %v23921_v33  ;;  %p17140_p3 = pnand %p17139_p2, %p17133_p13 }
 0xd20   : > { %v24086_v3 = vpack.c.bf16 %v10441_v34, %v10434_v23  ;;  %v10322_v55 = vand.u32 4294901760, %v10321_v41  ;;  %v10329_v43 = vand.u32 4294901760, %v10328_v28  ;;  %v26352_v26 = vand.u32 4294901760, %v23923_v22 }
 0xd21   : > { %v10448_v2 = vand.u32 4294901760, %v10447_v45  ;;  %v10454_v61 = vsub.f32 %v23875_v17, %v26348_v6  ;;  %v10335_v19 = vsub.f32 %v23921_v33, %v26349_v29  ;;  %v26355_v46 = vand.u32 4294901760, %v23938_v16 }
 0xd22   : > { %v24096_v7 = vpack.c.bf16 %v10329_v43, %v10322_v55  ;;  %v10342_v23 = vsub.f32 %v23923_v22, %v26352_v26  ;;  %v26360_v34 = vand.u32 4294901760, %v23940_v37  ;;  %v26361_v41 = vand.u32 4294901760, %v23961_v44 }
 0xd23   : > { %v10455_v28 = vand.u32 4294901760, %v10454_v61  ;;  %v10336_v45 = vand.u32 4294901760, %v10335_v19  ;;  %v10461_v6 = vsub.f32 %v23938_v16, %v26355_v46  ;;  %v26362_v29 = vand.u32 4294901760, %v23963_v14 }
 0xd24   : > { %v10343_v38 = vand.u32 4294901760, %v10342_v23  ;;  %v10468_v55 = vsub.f32 %v23940_v37, %v26360_v34  ;;  %v10349_v43 = vsub.f32 %v23961_v44, %v26361_v41  ;;  %v26367_v26 = vand.u32 4294901760, %v23969_v18 }
 0xd25   : > { %v24114_v20 = vpack.c.bf16 %v10455_v28, %v10448_v2  ;;  %v10462_v61 = vand.u32 4294901760, %v10461_v6  ;;  %v10356_v19 = vsub.f32 %v23963_v14, %v26362_v29  ;;  %v26365_v46 = vand.u32 4294901760, %v23973_v4 }
 0xd26   : > { %v24120_v23 = vpack.c.bf16 %v10343_v38, %v10336_v45  ;;  %v10469_v59 = vand.u32 4294901760, %v10468_v55  ;;  %v10350_v11 = vand.u32 4294901760, %v10349_v43  ;;  %v10475_v34 = vsub.f32 %v23969_v18, %v26367_v26 }
 0xd27   : > { %v10357_v41 = vand.u32 4294901760, %v10356_v19  ;;  %v10482_v2 = vsub.f32 %v23973_v4, %v26365_v46  ;;  %v26366_v6 = vand.u32 4294901760, %v23977_v42  ;;  %v26368_v28 = vand.u32 4294901760, %v23980_v31 }
 0xd28   : > { %v24130_v29 = vpack.c.bf16 %v10469_v59, %v10462_v61  ;;  %v10476_v36 = vand.u32 4294901760, %v10475_v34  ;;  %v26371_v38 = vand.u32 4294901760, %v23984_v0  ;;  %v26372_v45 = vand.u32 4294901760, %v23994_v13 }
 0xd29   : > { %v24134_v55 = vpack.c.bf16 %v10357_v41, %v10350_v11  ;;  %v10483_v43 = vand.u32 4294901760, %v10482_v2  ;;  %v10363_v19 = vsub.f32 %v23977_v42, %v26366_v6  ;;  %v10370_v46 = vsub.f32 %v23980_v31, %v26368_v28 }
 0xd2a   : > { %v10489_v59 = vsub.f32 %v23984_v0, %v26371_v38  ;;  %v10496_v34 = vsub.f32 %v23994_v13, %v26372_v45  ;;  %v26375_v11 = vand.u32 4294901760, %v24005_v47  ;;  %v26376_v41 = vand.u32 4294901760, %v24007_v49 }
 0xd2b   : > { %v24150_v61 = vpack.c.bf16 %v10483_v43, %v10476_v36  ;;  %v10364_v2 = vand.u32 4294901760, %v10363_v19  ;;  %v10371_v6 = vand.u32 4294901760, %v10370_v46 }
 0xd2c   : > { %v10490_v28 = vand.u32 4294901760, %v10489_v59  ;;  %v10497_v30 = vand.u32 4294901760, %v10496_v34  ;;  %v10377_v38 = vsub.f32 %v24005_v47, %v26375_v11  ;;  %v10384_v45 = vsub.f32 %v24007_v49, %v26376_v41 }
 0xd2d   : > { %v24160_v57 = vpack.c.bf16 %v10371_v6, %v10364_v2 }
 0xd2e   : > { %v24164_v43 = vpack.c.bf16 %v10497_v30, %v10490_v28  ;;  %v10378_v46 = vand.u32 4294901760, %v10377_v38  ;;  %v10385_v19 = vand.u32 4294901760, %v10384_v45 }
 0xd30   : > { %v24170_v11 = vpack.c.bf16 %v10385_v19, %v10378_v46 }
 0xd7c   : > { %v10056_v6 = vpop.permute.xlu1 %10055  ;;  %v10045_v45 = vpop.permute.xlu0 %10044 }
 0xd7d   : > { %v10083_v2 = vsel %vm5125_vm11, %v23885_v52, %v10045_v45  ;;  %v10085_v46 = vsel %vm600_vm0, %v10045_v45, %v10056_v6 }
 0xd7e   : > { %v24198_v41 = vand.u32 4294901760, %v10083_v2 }
 0xd80   : > { %v24202_v19 = vsub.f32 %v10083_v2, %v24198_v41  ;;  %v24204_v30 = vpop.permute.xlu0 %10066  ;;  %v10047_v34 = vpop.permute.xlu1 %10046 }
 0xd81   : > { %27824 = vst [vmem:[#allocation43_spill] sm:$0xff] %v24204_v30  ;;  %v10088_v28 = vsel %vm10087_vm1, %v10085_v46, %v24204_v30  ;;  %v10084_v38 = vsel %vm5125_vm11, %v23887_v51, %v10047_v34 }
 0xd82   : > { %v24209_v59 = vand.u32 4294901760, %v10088_v28  ;;  %v24211_v36 = vand.u32 4294901760, %v10084_v38  ;;  %v26386_v52 = vand.u32 4294901760, %v24202_v19 }
 0xd84   : > { %v24215_v26 = vsub.f32 %v10088_v28, %v24209_v59  ;;  %v24218_v6 = vsub.f32 %v10084_v38, %v24211_v36  ;;  %v10058_v45 = vpop.permute.xlu0 %10057  ;;  %v24220_v2 = vpop.permute.xlu1 %10068  ;;  %v10253_v21 = vsub.f32 %v24202_v19, %v26386_v52 }
 0xd85   : > { %27825 = vst [vmem:[#allocation10_spill] sm:$0xff] %v24220_v2  ;;  %v10086_v46 = vsel %vm600_vm0, %v10047_v34, %v10058_v45  ;;  %vm10143_vm0 = vcmask 130048  }
 0xd86   : > { %v10089_v30 = vsel %vm10087_vm1, %v10086_v46, %v24220_v2  ;;  %v10246_v51 = vand.u32 4294901760, %v24215_v26  ;;  %v26388_v38 = vand.u32 4294901760, %v24218_v6  ;;  %v10254_v45 = vand.u32 4294901760, %v10253_v21 }
 0xd87   : > { %v24225_v25 = vand.u32 4294901760, %v10089_v30  ;;  %v27826_v21 = vpack.c.bf16 %v23799_v58, %v23797_v12 }
 0xd88   : > { %v10247_v28 = vsub.f32 %v24215_v26, %v10246_v51  ;;  %v10268_v46 = vsub.f32 %v24218_v6, %v26388_v38  ;;  %v27865_v38 = vand.u32 4294901760, %v23824_v60 }
 0xd89   : > { %v24233_v47 = vsub.f32 %v10089_v30, %v24225_v25 }
 0xd8a   : > { %v10248_v49 = vand.u32 4294901760, %v10247_v28  ;;  %v10269_v30 = vand.u32 4294901760, %v10268_v46  ;;  %v27846_v28 = vld [vmem:[#allocation66_spill] sm:$0xff]  ;;  %v27848_v46 = vld [vmem:[#allocation121_spill] sm:$0xff] }
 0xd8b   : > { %v26389_v34 = vand.u32 4294901760, %v24233_v47 }
 0xd8c   : > { %10249 = vmatprep.mubr.f32.mxu1 %v10248_v49  ;;  %v27830_v49 = vpack.c.bf16 %v23850_v5, %v23840_v48 }
 0xd8d   : > { %v10262_v52 = vsub.f32 %v24233_v47, %v26389_v34  ;;  %10255 = vmatmul.mubr.f32.vlgmr.msra.gmra.mrb[40].mxu1 %v10254_v45  ;;  %v27847_v45 = vld [vmem:[#allocation71_spill] sm:$0xff] }
 0xd8e   : > { %15919 = vmatpush3.bf16.msra.mxu1 %v24040_v24  ;;  %v27831_v24 = vpack.c.bf16 %v23857_v50, %v23852_v32 }
 0xd8f   : > { %v10263_v2 = vand.u32 4294901760, %v10262_v52  ;;  %15921 = vmatprep.subr.bf16.mxu1 %v24050_v40  ;;  %v27832_v40 = vpack.c.bf16 %v23867_v63, %v23859_v56  ;;  %v27844_v52 = vld [vmem:[#allocation15_spill] sm:$0xff] }
 0xd91   : > { %10264 = vmatprep.mubr.f32.mxu1 %v10263_v2  ;;  %v27845_v2 = vld [vmem:[#allocation26_spill] sm:$0xff] }
 0xd92   : > { %10270 = vmatmul.mubr.f32.gmra.mrb[42].mxu1 %v10269_v30  ;;  %v27849_v30 = vld [vmem:[#allocation28_spill] sm:$0xff] }
 0xd93   : > { %15923 = vmatpush3.bf16.msra.mxu1 %v24052_v27  ;;  %10500 = vmatprep.mubr.f32.mxu1 %v24209_v59  ;;  %v27833_v27 = vpack.c.bf16 %v23871_v9, %v23869_v54 }
 0xd94   : > { %15925 = vmatprep.subr.bf16.mxu1 %v24070_v15  ;;  %v27836_v15 = vpack.c.bf16 %v23940_v37, %v23938_v16 }
 0xd97   : > { %15927 = vmatpush3.bf16.msra.mxu1 %v24079_v39  ;;  %v27828_v39 = vpack.c.bf16 %v23824_v60, %v23818_v1  ;;  %v27872_v60 = vand.u32 4294901760, %v24218_v6 }
 0xd98   : > { %15929 = vmatprep.subr.bf16.mxu1 %v24086_v3  ;;  %v27838_v3 = vpack.c.bf16 %v23973_v4, %v23969_v18 }
 0xd9b   : > { %15931 = vmatpush3.bf16.msra.mxu1 %v24096_v7  ;;  %v27834_v7 = vpack.c.bf16 %v23875_v17, %v23873_v53 }
 0xd9c   : > { %15933 = vmatprep.subr.bf16.mxu1 %v24114_v20  ;;  %v27827_v20 = vpack.c.bf16 %v23814_v62, %v23801_v8 }
 0xd9f   : > { %15935 = vmatpush3.bf16.msra.mxu1 %v24120_v23  ;;  %v27839_v23 = vpack.c.bf16 %v23980_v31, %v23977_v42 }
 0xda0   : > { %15937 = vmatprep.subr.bf16.mxu1 %v24130_v29  ;;  %v27837_v29 = vpack.c.bf16 %v23963_v14, %v23961_v44 }
 0xda3   : > { %15939 = vmatpush3.bf16.msra.mxu1 %v24134_v55  ;;  %v27840_v55 = vpack.c.bf16 %v23994_v13, %v23984_v0 }
 0xda4   : > { %15941 = vmatprep.subr.bf16.mxu1 %v24150_v61  ;;  %v27842_v61 = vld [vmem:[#allocation65_spill] sm:$0xff] }
 0xda7   : > { %15943 = vmatpush3.bf16.msra.mxu1 %v24160_v57  ;;  %v27829_v57 = vpack.c.bf16 %v23838_v35, %v23836_v10 }
 0xda8   : > { %15945 = vmatprep.subr.bf16.mxu1 %v24164_v43 }
 0xdab   : > { %15947 = vmatpush3.bf16.msra.mxu1 %v24170_v11  ;;  %v27841_v11 = vld [vmem:[#allocation68_spill] sm:$0xff] }
 0xdac   : > { %15949 = vmatprep.subr.bf16.mxu1 %v27826_v21  ;;  %v27843_v43 = vpack.c.bf16 %v27841_v11, %v27842_v61  ;;  %v27850_v21 = vld [vmem:[#allocation70_spill] sm:$0xff] }
 0xdae   : > { %10502 = vmatmul.mubr.f32.vlgmr.msra.gmra.mrb[44].mxu1 %v24198_v41 }
 0xdaf   : > { %10507 = vmatprep.mubr.f32.mxu1 %v24225_v25  ;;  %15951 = vmatpush3.bf16.msra.mxu1 %v27827_v20  ;;  %v27851_v20 = vld [vmem:[#allocation78_spill] sm:$0xff] }
 0xdb0   : > { %15953 = vmatprep.subr.bf16.mxu1 %v27828_v39  ;;  %v27852_v39 = vld [vmem:[#allocation102_spill] sm:$0xff] }
 0xdb2   : > { %10509 = vmatmul.mubr.f32.gmra.mrb[46].mxu1 %v24211_v36 }
 0xdb3   : > { %15955 = vmatpush3.bf16.msra.mxu1 %v27829_v57  ;;  %10644 = vmatprep.mubr.f32.mxu1 %v24215_v26  ;;  %v27835_v26 = vpack.c.bf16 %v23923_v22, %v23921_v33  ;;  %v27853_v57 = vld [vmem:[#allocation31_spill] sm:$0xff] }
 0xdb4   : > { %15957 = vmatprep.subr.bf16.mxu1 %v27830_v49  ;;  %v27854_v49 = vld [vmem:[#allocation41_spill] sm:$0xff] }
 0xdb7   : > { %15959 = vmatpush3.bf16.msra.mxu1 %v27831_v24  ;;  %v27855_v24 = vld [vmem:[#allocation12_spill] sm:$0xff] }
 0xdb8   : > { %15961 = vmatprep.subr.bf16.mxu1 %v27832_v40  ;;  %v27856_v40 = vld [vmem:[#allocation44_spill] sm:$0xff] }
 0xdbb   : > { %15963 = vmatpush3.bf16.msra.mxu1 %v27833_v27  ;;  %v27857_v27 = vld [vmem:[#allocation61_spill] sm:$0xff] }
 0xdbc   : > { %15965 = vmatprep.subr.bf16.mxu1 %v27834_v7  ;;  %v27859_v7 = vand.u32 4294901760, %v23797_v12  ;;  %v27867_v12 = vand.u32 4294901760, %v24233_v47 }
 0xdbf   : > { %15967 = vmatpush3.bf16.msra.mxu1 %v27835_v26  ;;  %v27860_v26 = vand.u32 4294901760, %v23799_v58  ;;  %v27868_v58 = vand.u32 4294901760, %v23836_v10 }
 0xdc0   : > { %15969 = vmatprep.subr.bf16.mxu1 %v27836_v15 }
 0xdc1   : > { %v16012_v15 = vpack.c.bf16 %v27860_v26, %v27859_v7 }
 0xdc3   : > { %15971 = vmatpush3.bf16.msra.mxu1 %v27837_v29  ;;  %v27861_v29 = vld [vmem:[#allocation30_spill] sm:$0xff] }
 0xdc4   : > { %15973 = vmatprep.subr.bf16.mxu1 %v27838_v3  ;;  %v27862_v3 = vand.u32 4294901760, %v23801_v8  ;;  %v27869_v8 = vand.u32 4294901760, %v23838_v35  ;;  %v27875_v35 = vand.u32 4294901760, %v23859_v56  ;;  %v27882_v56 = vand.u32 4294901760, %v23923_v22 }
 0xdc5   : > { %v27889_v22 = vand.u32 4294901760, %v23977_v42 }
 0xdc6   : > { %v16018_v7 = vpack.c.bf16 %v27869_v8, %v27868_v58 }
 0xdc7   : > { %15975 = vmatpush3.bf16.msra.mxu1 %v27839_v23  ;;  %v27863_v23 = vand.u32 4294901760, %v23814_v62  ;;  %v27870_v62 = vand.u32 4294901760, %v23840_v48 }
 0xdc8   : > { %15977 = vmatprep.subr.bf16.mxu1 %v27840_v55 }
 0xdc9   : > { %v16014_v55 = vpack.c.bf16 %v27863_v23, %v27862_v3 }
 0xdcb   : > { %15979 = vmatpush3.bf16.msra.mxu1 %v27843_v43  ;;  %v27864_v43 = vand.u32 4294901760, %v23818_v1  ;;  %v27871_v1 = vand.u32 4294901760, %v23850_v5  ;;  %v27877_v5 = vand.u32 4294901760, %v23869_v54  ;;  %v27884_v54 = vand.u32 4294901760, %v23940_v37 }
 0xdcc   : > { %15981 = vmatprep.subr.bf16.mxu1 %v27844_v52  ;;  %v27891_v37 = vand.u32 4294901760, %v23984_v0  ;;  %v10125_v0 = vld [vmem:[%s25480_s9 + $0x100] sm:$0xff] }
 0xdcd   : > { %v16016_v34 = vpack.c.bf16 %v27865_v38, %v27864_v43  ;;  %v16020_v26 = vpack.c.bf16 %v27871_v1, %v27870_v62  ;;  %v27876_v38 = vand.u32 4294901760, %v23867_v63  ;;  %v27883_v63 = vand.u32 4294901760, %v23938_v16 }
 0xdce   : > { %10647 = vmatmul.mubr.f32.vlgmr.msra.gmra.mrb[48].mxu1 %v24202_v19  ;;  %v27890_v16 = vand.u32 4294901760, %v23980_v31  ;;  %v24411_v31 = vpop.permute.xlu0 %10077 }
 0xdcf   : > { %10653 = vmatprep.mubr.f32.mxu1 %v24233_v47  ;;  %15983 = vmatpush3.bf16.msra.mxu1 %v27845_v2  ;;  %v27873_v47 = vand.u32 4294901760, %v23852_v32  ;;  %v16024_v48 = vpack.c.bf16 %v27876_v38, %v27875_v35  ;;  %v27880_v32 = vand.u32 4294901760, %v23875_v17  ;;  %v16032_v23 = vpack.c.bf16 %v27884_v54, %v27883_v63  ;;  %v24511_v35 = vld [vmem:[%s25480_s9 + $0x158] sm:$0xff]  ;;  %v10080_v38 = vpop.permute.xlu1 %10079 }
 0xdd0   : > { %15985 = vmatprep.subr.bf16.mxu1 %v27846_v28  ;;  %v27887_v17 = vand.u32 4294901760, %v23969_v18  ;;  %v27894_v18 = vand.u32 4294901760, %v27841_v11  ;;  %v11067_v11 = vand.u32 4294901760, %v10125_v0 }
 0xdd2   : > { %10656 = vmatmul.mubr.f32.gmra.mrb[50].mxu1 %v24218_v6  ;;  %v27878_v6 = vand.u32 4294901760, %v23871_v9  ;;  %v27885_v9 = vand.u32 4294901760, %v23961_v44  ;;  %v27892_v44 = vand.u32 4294901760, %v23994_v13  ;;  %v10126_v13 = vld [vmem:[%s25480_s9 + $0x108] sm:$0xff] }
 0xdd3   : > { %15987 = vmatpush3.bf16.msra.mxu1 %v27847_v45  ;;  %10760 = vmatprep.mubr.f32.mxu1 %v10246_v51  ;;  %v27858_v51 = vld [vmem:[#allocation64_spill] sm:$0xff] }
 0xdd4   : > { %15989 = vmatprep.subr.bf16.mxu1 %v27848_v46  ;;  %v16040_v58 = vpack.c.bf16 %v27892_v44, %v27891_v37 }
 0xdd7   : > { %15991 = vmatpush3.bf16.msra.mxu1 %v27849_v30 }
 0xdd8   : > { %15993 = vmatprep.subr.bf16.mxu1 %v27850_v21 }
 0xddb   : > { %15995 = vmatpush3.bf16.msra.mxu1 %v27851_v20 }
 0xddc   : > { %15997 = vmatprep.subr.bf16.mxu1 %v27852_v39 }
 0xddf   : > { %15999 = vmatpush3.bf16.msra.mxu1 %v27853_v57 }
 0xde0   : > { %16001 = vmatprep.subr.bf16.mxu1 %v27854_v49 }
 0xde3   : > { %16003 = vmatpush3.bf16.msra.mxu1 %v27855_v24 }
 0xde4   : > { %16005 = vmatprep.subr.bf16.mxu1 %v27856_v40 }
 0xde7   : > { %16007 = vmatpush3.bf16.msra.mxu1 %v27857_v27 }
 0xde8   : > { %16009 = vmatprep.subr.bf16.mxu1 %v27858_v51  ;;  %v27866_v51 = vand.u32 4294901760, %v24202_v19  ;;  %v27874_v19 = vand.u32 4294901760, %v23857_v50  ;;  %v27881_v50 = vand.u32 4294901760, %v23921_v33  ;;  %v27888_v33 = vand.u32 4294901760, %v23973_v4 }
 0xde9   : > { %v10144_v4 = vsel %vm10143_vm0, %v24411_v31, 0 }
 0xdea   : > { %v16022_v10 = vpack.c.bf16 %v27874_v19, %v27873_v47  ;;  %v16030_v3 = vpack.c.bf16 %v27882_v56, %v27881_v50  ;;  %v16036_v43 = vpack.c.bf16 %v27888_v33, %v27887_v17  ;;  %v24419_v42 = vand.u32 4294901760, %v10144_v4  ;;  %v27898_v17 = vld [vmem:[#allocation10_spill] sm:$0xff] }
 0xdeb   : > { %16011 = vmatpush3.bf16.msra.mxu1 %v27861_v29  ;;  %v10146_v50 = vsel %vm10143_vm0, %v10080_v38, 0  ;;  %v24537_v56 = vsub.f32 %v10125_v0, %v11067_v11  ;;  %v10092_v33 = vsel %vm10090_vm2, %v27898_v17, %v10080_v38 }
 0xdec   : > { %16013 = vmatprep.subr.bf16.mxu1 %v16012_v15 }
 0xdee   : > { %10764 = vmatmul.mubr.f32.vlgmr.msra.gmra.mrb[52].mxu1 %v27866_v51  ;;  %v27879_v51 = vand.u32 4294901760, %v23873_v53  ;;  %v27886_v53 = vand.u32 4294901760, %v23963_v14  ;;  %v27893_v14 = vand.u32 4294901760, %v27842_v61  ;;  %v11070_v61 = vand.u32 4294901760, %v10126_v13 }
 0xdef   : > { %10771 = vmatprep.mubr.f32.mxu1 %v27867_v12  ;;  %16015 = vmatpush3.bf16.msra.mxu1 %v16014_v55  ;;  %v16038_v12 = vpack.c.bf16 %v27890_v16, %v27889_v22 }
 0xdf0   : > { %16017 = vmatprep.subr.bf16.mxu1 %v16016_v34  ;;  %v16026_v34 = vpack.c.bf16 %v27878_v6, %v27877_v5  ;;  %v16028_v15 = vpack.c.bf16 %v27880_v32, %v27879_v51  ;;  %v16034_v55 = vpack.c.bf16 %v27886_v53, %v27885_v9  ;;  %v16042_v8 = vpack.c.bf16 %v27894_v18, %v27893_v14  ;;  %v24531_v51 = vld [vmem:[%s25480_s9 + $0x168] sm:$0xff]  ;;  %v27897_v32 = vld [vmem:[#allocation43_spill] sm:$0xff]  ;;  %v24553_v9 = vld [vmem:[%s25480_s9 + $0x170] sm:$0xff] }
 0xdf1   : > { %v11100_v6 = vand.u32 4294901760, %v24511_v35  ;;  %v24558_v53 = vld [vmem:[%s25480_s9 + $0x178] sm:$0xff] }
 0xdf2   : > { %10775 = vmatmul.mubr.f32.gmra.mrb[54].mxu1 %v27872_v60  ;;  %v11112_v37 = vand.u32 4294901760, %v24558_v53 }
 0xdf3   : > { %16019 = vmatpush3.bf16.msra.mxu1 %v16018_v7  ;;  %10941 = vmatprep.mubr.f32.mxu1 %v24209_v59 }
 0xdf4   : > { %16021 = vmatprep.subr.bf16.mxu1 %v16020_v26  ;;  %v24486_v26 = vld [vmem:[%s25480_s9 + $0x140] sm:$0xff] }
 0xdf5   : > { %v11091_v47 = vand.u32 4294901760, %v24486_v26 }
 0xdf7   : > { %16023 = vmatpush3.bf16.msra.mxu1 %v16022_v10  ;;  %v24506_v10 = vld [vmem:[%s25480_s9 + $0x150] sm:$0xff] }
 0xdf8   : > { %16025 = vmatprep.subr.bf16.mxu1 %v16024_v48  ;;  %v11097_v5 = vand.u32 4294901760, %v24506_v10 }
 0xdfa   : > { %v24546_v63 = vpack.c.bf16 %v11100_v6, %v11097_v5 }
 0xdfb   : > { %16027 = vmatpush3.bf16.msra.mxu1 %v16026_v34  ;;  %v24526_v34 = vld [vmem:[%s25480_s9 + $0x160] sm:$0xff] }
 0xdfc   : > { %16029 = vmatprep.subr.bf16.mxu1 %v16028_v15  ;;  %v10091_v15 = vsel %vm10090_vm2, %v27897_v32, %v24411_v31  ;;  %v11103_v54 = vand.u32 4294901760, %v24526_v34  ;;  %v24591_v31 = vld [vmem:[%s25480_s9 + $0x180] sm:$0xff] }
 0xdff   : > { %16031 = vmatpush3.bf16.msra.mxu1 %v16030_v3  ;;  %v24539_v3 = vsub.f32 %v10126_v13, %v11070_v61 }
 0xe00   : > { %16033 = vmatprep.subr.bf16.mxu1 %v16032_v23  ;;  %v11106_v23 = vand.u32 4294901760, %v24531_v51 }
 0xe01   : > { %v26393_v14 = vand.u32 4294901760, %v24539_v3 }
 0xe02   : > { %v24578_v44 = vpack.c.bf16 %v11106_v23, %v11103_v54 }
 0xe03   : > { %16035 = vmatpush3.bf16.msra.mxu1 %v16034_v55  ;;  %v24560_v55 = vand.u32 4294901760, %v10091_v15 }
 0xe04   : > { %16037 = vmatprep.subr.bf16.mxu1 %v16036_v43  ;;  %v24565_v43 = vand.u32 4294901760, %v10146_v50 }
 0xe05   : > { %v24583_v18 = vsub.f32 %v10091_v15, %v24560_v55 }
 0xe06   : > { %v24599_v0 = vsub.f32 %v10146_v50, %v24565_v43 }
 0xe07   : > { %16039 = vmatpush3.bf16.msra.mxu1 %v16038_v12  ;;  %v11109_v12 = vand.u32 4294901760, %v24553_v9 }
 0xe08   : > { %16041 = vmatprep.subr.bf16.mxu1 %v16040_v58  ;;  %v11182_v58 = vand.u32 4294901760, %v24537_v56 }
 0xe0b   : > { %16043 = vmatpush3.bf16.msra.mxu1 %v16042_v8  ;;  %v24585_v8 = vand.u32 4294901760, %v10092_v33 }
 0xe0c   : > { %16045 = vmatprep.subr.bf16.mxu1 %v27844_v52  ;;  %v27895_v52 = vld [vmem:[#allocation64_spill] sm:$0xff] }
 0xe0e   : > { %10943 = vmatmul.mubr.f32.vlgmr.msra.gmra.mrb[56].mxu1 %v24198_v41 }
 0xe0f   : > { %10948 = vmatprep.mubr.f32.mxu1 %v24225_v25  ;;  %16047 = vmatpush3.bf16.msra.mxu1 %v27845_v2  ;;  %v10127_v2 = vld [vmem:[%s25480_s9 + $0x110] sm:$0xff] }
 0xe10   : > { %16049 = vmatprep.subr.bf16.mxu1 %v27846_v28  ;;  %v10128_v28 = vld [vmem:[%s25480_s9 + $0x118] sm:$0xff] }
 0xe12   : > { %10950 = vmatmul.mubr.f32.gmra.mrb[58].mxu1 %v24211_v36 }
 0xe13   : > { %16051 = vmatpush3.bf16.msra.mxu1 %v27847_v45  ;;  %11052 = vmatprep.mubr.f32.mxu1 %v24209_v59  ;;  %v24430_v59 = vsub.f32 %v10144_v4, %v24419_v42  ;;  %v24596_v4 = vld [vmem:[%s25480_s9 + $0x188] sm:$0xff] }
 0xe14   : > { %16053 = vmatprep.subr.bf16.mxu1 %v27848_v46  ;;  %v24442_v46 = vpack.c.bf16 %v11070_v61, %v11067_v11  ;;  %v24611_v61 = vpack.c.bf16 %v11112_v37, %v11109_v12 }
 0xe15   : > { %v11150_v45 = vand.u32 4294901760, %v24430_v59 }
 0xe17   : > { %16055 = vmatpush3.bf16.msra.mxu1 %v27849_v30  ;;  %v11073_v30 = vand.u32 4294901760, %v10127_v2 }
 0xe18   : > { %16057 = vmatprep.subr.bf16.mxu1 %v27850_v21  ;;  %v11076_v21 = vand.u32 4294901760, %v10128_v28 }
 0xe19   : > { %v24567_v22 = vsub.f32 %v10127_v2, %v11073_v30 }
 0xe1a   : > { %v24569_v16 = vsub.f32 %v10128_v28, %v11076_v21  ;;  %v11115_v28 = vand.u32 4294901760, %v24591_v31 }
 0xe1b   : > { %16059 = vmatpush3.bf16.msra.mxu1 %v27851_v20  ;;  %v27896_v20 = vmov 0.0|0.0  }
 0xe1c   : > { %16061 = vmatprep.subr.bf16.mxu1 %v27852_v39  ;;  %v24448_v39 = vld [vmem:[%s25480_s9 + $0x120] sm:$0xff]  ;;  %v26390_v2 = vand.u32 4294901760, %v24569_v16 }
 0xe1e   : > { %v11204_v38 = vsub.f32 %v24569_v16, %v26390_v2 }
 0xe1f   : > { %16063 = vmatpush3.bf16.msra.mxu1 %v27853_v57  ;;  %v24453_v57 = vld [vmem:[%s25480_s9 + $0x128] sm:$0xff] }
 0xe20   : > { %16065 = vmatprep.subr.bf16.mxu1 %v27854_v49  ;;  %v11151_v49 = vsub.f32 %v24430_v59, %v11150_v45 }
 0xe23   : > { %16067 = vmatpush3.bf16.msra.mxu1 %v27855_v24  ;;  %v24461_v24 = vpack.c.bf16 %v11076_v21, %v11073_v30  ;;  %v11118_v30 = vand.u32 4294901760, %v24596_v4  ;;  %v11183_v21 = vsub.f32 %v24537_v56, %v11182_v58 }
 0xe24   : > { %16069 = vmatprep.subr.bf16.mxu1 %v27856_v40  ;;  %v11079_v40 = vand.u32 4294901760, %v24448_v39 }
 0xe26   : > { %v24602_v13 = vsub.f32 %v24448_v39, %v11079_v40  ;;  %v11190_v39 = vsub.f32 %v24539_v3, %v26393_v14 }
 0xe27   : > { %16071 = vmatpush3.bf16.msra.mxu1 %v27857_v27  ;;  %v11082_v27 = vand.u32 4294901760, %v24453_v57 }
 0xe28   : > { %16073 = vmatprep.subr.bf16.mxu1 %v27895_v52  ;;  %v26391_v52 = vand.u32 4294901760, %v24567_v22  ;;  %v26394_v32 = vand.u32 4294901760, %v24602_v13  ;;  %v11191_v17 = vand.u32 4294901760, %v11190_v39 }
 0xe29   : > { %v24478_v7 = vpack.c.bf16 %v11082_v27, %v11079_v40  ;;  %v24605_v11 = vsub.f32 %v24453_v57, %v11082_v27  ;;  %v26392_v57 = vand.u32 4294901760, %v24583_v18  ;;  %v11165_v40 = vand.u32 4294901760, %v24599_v0 }
 0xe2a   : > { %v11211_v39 = vsub.f32 %v24602_v13, %v26394_v32 }
 0xe2b   : > { %16075 = vmatpush3.bf16.msra.mxu1 %v27861_v29  ;;  %v24469_v29 = vld [vmem:[%s25480_s9 + $0x130] sm:$0xff]  ;;  %v26395_v15 = vand.u32 4294901760, %v24605_v11 }
 0xe2c   : > { %16076 = vmatprep.subr.bf16.mxu1 %v27896_v20  ;;  %v11085_v62 = vand.u32 4294901760, %v24469_v29 }
 0xe2e   : > { %11054 = vmatmul.mubr.f32.vlgmr.msra.gmra.mrb[60].mxu1 %v24198_v41  ;;  %v24474_v41 = vld [vmem:[%s25480_s9 + $0x138] sm:$0xff]  ;;  %v24633_v27 = vsub.f32 %v24469_v29, %v11085_v62  ;;  %v24653_v29 = vpack.c.bf16 %v11118_v30, %v11115_v28 }
 0xe2f   : > { %11059 = vmatprep.mubr.f32.mxu1 %v24225_v25  ;;  %16078 = vmatpush1.bf16.msra.mxu1 %v24442_v46  ;;  %v11152_v25 = vand.u32 4294901760, %v11151_v49  ;;  %v11088_v1 = vand.u32 4294901760, %v24474_v41  ;;  %v24626_v49 = vsub.f32 %v10092_v33, %v24585_v8  ;;  %v11157_v33 = vsub.f32 %v24583_v18, %v26392_v57 }
 0xe30   : > { %16079 = vmatprep.subr.bf16.mxu1 %v27896_v20  ;;  %v11218_v57 = vsub.f32 %v24605_v11, %v26395_v15  ;;  %v24689_v15 = vsub.f32 %v24506_v10, %v11097_v5 }
 0xe31   : > { %v24498_v60 = vpack.c.bf16 %v11088_v1, %v11085_v62  ;;  %v24646_v50 = vsub.f32 %v24474_v41, %v11088_v1  ;;  %v11184_v62 = vand.u32 4294901760, %v11183_v21  ;;  %v26396_v2 = vand.u32 4294901760, %v24626_v49 }
 0xe32   : > { %11061 = vmatmul.mubr.f32.gmra.mrb[62].mxu1 %v24211_v36  ;;  %v24491_v36 = vld [vmem:[%s25480_s9 + $0x148] sm:$0xff]  ;;  %v24663_v41 = vsub.f32 %v24486_v26, %v11091_v47  ;;  %v11166_v1 = vsub.f32 %v24599_v0, %v11165_v40  ;;  %v11205_v21 = vand.u32 4294901760, %v11204_v38  ;;  %v11158_v38 = vand.u32 4294901760, %v11157_v33 }
 0xe33   : > { %16081 = vmatpush1.bf16.msra.mxu1 %v24461_v24  ;;  %11153 = vmatprep.mubr.f32.mxu1 %v11152_v25  ;;  %v11094_v19 = vand.u32 4294901760, %v24491_v36  ;;  %v11197_v25 = vsub.f32 %v24567_v22, %v26391_v52  ;;  %v16104_v26 = vpack.c.bf16 %v11191_v17, %v11184_v62  ;;  %v11172_v32 = vsub.f32 %v24626_v49, %v26396_v2 }
 0xe34   : > { %16082 = vmatprep.subr.bf16.mxu1 %v27896_v20  ;;  %v11212_v17 = vand.u32 4294901760, %v11211_v39  ;;  %v11219_v33 = vand.u32 4294901760, %v11218_v57  ;;  %v11238_v5 = vand.u32 4294901760, %v24663_v41  ;;  %v24714_v57 = vsub.f32 %v24531_v51, %v11106_v23 }
 0xe35   : > { %v24518_v48 = vpack.c.bf16 %v11094_v19, %v11091_v47  ;;  %v11198_v52 = vand.u32 4294901760, %v11197_v25  ;;  %v24677_v14 = vsub.f32 %v24491_v36, %v11094_v19  ;;  %v11224_v47 = vand.u32 4294901760, %v24633_v27 }
 0xe36   : > { %v11231_v25 = vand.u32 4294901760, %v24646_v50  ;;  %v11167_v36 = vand.u32 4294901760, %v11166_v1  ;;  %v24694_v19 = vsub.f32 %v24511_v35, %v11100_v6  ;;  %v11173_v35 = vand.u32 4294901760, %v11172_v32 }
 0xe37   : > { %16084 = vmatpush1.bf16.msra.mxu1 %v24478_v7  ;;  %v16107_v62 = vpack.c.bf16 %v11205_v21, %v11198_v52  ;;  %v11225_v2 = vsub.f32 %v24633_v27, %v11224_v47  ;;  %v11245_v1 = vand.u32 4294901760, %v24677_v14  ;;  %v26398_v6 = vand.u32 4294901760, %v24689_v15 }
 0xe38   : > { %16085 = vmatprep.subr.bf16.mxu1 %v27896_v20  ;;  %v11232_v10 = vsub.f32 %v24646_v50, %v11231_v25  ;;  %v24709_v52 = vsub.f32 %v24526_v34, %v11103_v54  ;;  %v16110_v21 = vpack.c.bf16 %v11219_v33, %v11212_v17  ;;  %v26397_v39 = vand.u32 4294901760, %v24694_v19 }
 0xe39   : > { %v11226_v32 = vand.u32 4294901760, %v11225_v2  ;;  %v11246_v34 = vsub.f32 %v24677_v14, %v11245_v1  ;;  %v11253_v51 = vsub.f32 %v24689_v15, %v26398_v6  ;;  %v24731_v54 = vsub.f32 %v24553_v9, %v11109_v12 }
 0xe3a   : > { %v11260_v23 = vsub.f32 %v24694_v19, %v26397_v39  ;;  %v11266_v2 = vand.u32 4294901760, %v24709_v52 }
 0xe3b   : > { %16087 = vmatpush1.bf16.msra.mxu1 %v24498_v60  ;;  %v11254_v9 = vand.u32 4294901760, %v11253_v51  ;;  %v26400_v6 = vand.u32 4294901760, %v24731_v54 }
 0xe3c   : > { %16088 = vmatprep.subr.bf16.mxu1 %v27896_v20  ;;  %v11261_v12 = vand.u32 4294901760, %v11260_v23 }
 0xe3f   : > { %16090 = vmatpush1.bf16.msra.mxu1 %v24518_v48 }
 0xe40   : > { %16091 = vmatprep.subr.bf16.mxu1 %v27896_v20 }
 0xe43   : > { %16093 = vmatpush1.bf16.msra.mxu1 %v24546_v63 }
 0xe44   : > { %16094 = vmatprep.subr.bf16.mxu1 %v27896_v20 }
 0xe47   : > { %16096 = vmatpush1.bf16.msra.mxu1 %v24578_v44 }
 0xe48   : > { %16097 = vmatprep.subr.bf16.mxu1 %v27896_v20 }
 0xe4b   : > { %16099 = vmatpush1.bf16.msra.mxu1 %v24611_v61 }
 0xe4c   : > { %16100 = vmatprep.subr.bf16.mxu1 %v27896_v20 }
 0xe4f   : > { %16102 = vmatpush1.bf16.msra.mxu1 %v24653_v29 }
 0xe50   : > { %16103 = vmatprep.subr.bf16.mxu1 %v27896_v20 }
 0xe52   : > { %11159 = vmatmul.mubr.f32.vlgmr.msra.gmra.mrb[64].mxu1 %v11158_v38  ;;  %v11239_v38 = vsub.f32 %v24663_v41, %v11238_v5 }
 0xe53   : > { %11168 = vmatprep.mubr.f32.mxu1 %v11167_v36  ;;  %16105 = vmatpush1.bf16.msra.mxu1 %v16104_v26  ;;  %v11233_v26 = vand.u32 4294901760, %v11232_v10  ;;  %v11273_v36 = vand.u32 4294901760, %v24714_v57  ;;  %v11247_v10 = vand.u32 4294901760, %v11246_v34  ;;  %v16119_v34 = vpack.c.bf16 %v11261_v12, %v11254_v9 }
 0xe54   : > { %16106 = vmatprep.subr.bf16.mxu1 %v27896_v20  ;;  %v11240_v33 = vand.u32 4294901760, %v11239_v38 }
 0xe55   : > { %v16113_v17 = vpack.c.bf16 %v11233_v26, %v11226_v32  ;;  %v11274_v39 = vsub.f32 %v24714_v57, %v11273_v36 }
 0xe56   : > { %11174 = vmatmul.mubr.f32.gmra.mrb[66].mxu1 %v11173_v35  ;;  %v11267_v35 = vsub.f32 %v24709_v52, %v11266_v2 }
 0xe57   : > { %16108 = vmatpush1.bf16.msra.mxu1 %v16107_v62  ;;  %11334 = vmatprep.mubr.f32.mxu1 %v24419_v42  ;;  %v24741_v62 = vsub.f32 %v24558_v53, %v11112_v37  ;;  %v24754_v53 = vsub.f32 %v24591_v31, %v11115_v28  ;;  %v24759_v37 = vsub.f32 %v24596_v4, %v11118_v30  ;;  %v11275_v23 = vand.u32 4294901760, %v11274_v39 }
 0xe58   : > { %16109 = vmatprep.subr.bf16.mxu1 %v27896_v20  ;;  %v11268_v51 = vand.u32 4294901760, %v11267_v35  ;;  %v11281_v31 = vsub.f32 %v24731_v54, %v26400_v6 }
 0xe59   : > { %v26399_v32 = vand.u32 4294901760, %v24741_v62  ;;  %v11294_v30 = vand.u32 4294901760, %v24754_v53 }
 0xe5a   : > { %v16122_v9 = vpack.c.bf16 %v11275_v23, %v11268_v51  ;;  %v11282_v39 = vand.u32 4294901760, %v11281_v31  ;;  %v16131_v51 = vpack.c.bf16 %v24539_v3, %v24537_v56  ;;  %v16134_v23 = vpack.c.bf16 %v24569_v16, %v24567_v22 }
 0xe5b   : > { %16111 = vmatpush1.bf16.msra.mxu1 %v16110_v21  ;;  %v16116_v21 = vpack.c.bf16 %v11247_v10, %v11240_v33  ;;  %v11288_v4 = vsub.f32 %v24741_v62, %v26399_v32 }
 0xe5c   : > { %16112 = vmatprep.subr.bf16.mxu1 %v27896_v20 }
 0xe5d   : > { %v11289_v35 = vand.u32 4294901760, %v11288_v4 }
 0xe5f   : > { %16114 = vmatpush1.bf16.msra.mxu1 %v16113_v17  ;;  %v11301_v17 = vand.u32 4294901760, %v24759_v37 }
 0xe60   : > { %16115 = vmatprep.subr.bf16.mxu1 %v27896_v20  ;;  %v13648_v26 = vpop.f32.mrb[40].mxu1 }
 0xe61   : > { %v13649_v38 = vpop.f32.mrb[41].mxu1 }
 0xe62   : > { %v13650_v28 = vadd.f32 %v13649_v38, %v13648_v26  ;;  %v11302_v26 = vsub.f32 %v24759_v37, %v11301_v17  ;;  %v16125_v38 = vpack.c.bf16 %v11289_v35, %v11282_v39 }
 0xe63   : > { %16117 = vmatpush1.bf16.msra.mxu1 %v16116_v21  ;;  %v11295_v21 = vsub.f32 %v24754_v53, %v11294_v30 }
 0xe64   : > { %16118 = vmatprep.subr.bf16.mxu1 %v27896_v20  ;;  %v11303_v6 = vand.u32 4294901760, %v11302_v26  ;;  %v16146_v26 = vpack.c.bf16 %v24694_v19, %v24689_v15 }
 0xe65   : > { %v13651_v33 = vpop.f32.mrb[42].mxu1  ;;  %v11296_v32 = vand.u32 4294901760, %v11295_v21 }
 0xe66   : > { %v13652_v10 = vpop.f32.mrb[43].mxu1 }
 0xe67   : > { %16120 = vmatpush1.bf16.msra.mxu1 %v16119_v34  ;;  %v13653_v12 = vadd.f32 %v13652_v10, %v13651_v33  ;;  %v16128_v34 = vpack.c.bf16 %v11303_v6, %v11296_v32  ;;  %v16137_v6 = vpack.c.bf16 %v24605_v11, %v24602_v13  ;;  %v16140_v32 = vpack.c.bf16 %v24646_v50, %v24633_v27 }
 0xe68   : > { %16121 = vmatprep.subr.bf16.mxu1 %v27896_v20  ;;  %v16143_v10 = vpack.c.bf16 %v24677_v14, %v24663_v41  ;;  %v16203_v50 = vpack.c.bf16 %v11273_v36, %v11266_v2  ;;  %v27908_v14 = vand.u32 4294901760, %v24731_v54  ;;  %v27909_v41 = vand.u32 4294901760, %v24741_v62 }
 0xe6b   : > { %16123 = vmatpush1.bf16.msra.mxu1 %v16122_v9 }
 0xe6c   : > { %16124 = vmatprep.subr.bf16.mxu1 %v27896_v20 }
 0xe6f   : > { %16126 = vmatpush1.bf16.msra.mxu1 %v16125_v38 }
 0xe70   : > { %16127 = vmatprep.subr.bf16.mxu1 %v27896_v20 }
 0xe73   : > { %16129 = vmatpush1.bf16.msra.mxu1 %v16128_v34  ;;  %v16149_v34 = vpack.c.bf16 %v24714_v57, %v24709_v52 }
 0xe74   : > { %16130 = vmatprep.subr.bf16.mxu1 %v27896_v20 }
 0xe76   : > { %11336 = vmatmul.mubr.f32.vlgmr.msra.gmra.mrb[64].mxu1 %v24560_v55 }
 0xe77   : > { %11341 = vmatprep.mubr.f32.mxu1 %v24565_v43  ;;  %16132 = vmatpush1.bf16.msra.mxu1 %v16131_v51  ;;  %v16155_v51 = vpack.c.bf16 %v24759_v37, %v24754_v53  ;;  %v11802_v53 = vld [vmem:[%s25481_s10] sm:$0xf] }
 0xe78   : > { %16133 = vmatprep.subr.bf16.mxu1 %v27896_v20  ;;  %v11811_v37 = vsel %vm10143_vm0, %v11802_v53, 0 }
 0xe7a   : > { %11343 = vmatmul.mubr.f32.gmra.mrb[66].mxu1 %v24585_v8 }
 0xe7b   : > { %16135 = vmatpush1.bf16.msra.mxu1 %v16134_v23  ;;  %11450 = vmatprep.mubr.f32.mxu1 %v24430_v59  ;;  %v27899_v59 = vand.u32 4294901760, %v24539_v3  ;;  %v27903_v3 = vand.u32 4294901760, %v24626_v49 }
 0xe7c   : > { %16136 = vmatprep.subr.bf16.mxu1 %v27896_v20 }
 0xe7f   : > { %16138 = vmatpush1.bf16.msra.mxu1 %v16137_v6 }
 0xe80   : > { %16139 = vmatprep.subr.bf16.mxu1 %v27896_v20 }
 0xe81   : > { %v13686_v31 = vpop.f32.mrb[44].mxu1 }
 0xe82   : > { %v13687_v4 = vpop.f32.mrb[45].mxu1 }
 0xe83   : > { %v13688_v33 = vadd.f32 %v13687_v4, %v13686_v31  ;;  %16141 = vmatpush1.bf16.msra.mxu1 %v16140_v32 }
 0xe84   : > { %16142 = vmatprep.subr.bf16.mxu1 %v27896_v20 }
 0xe85   : > { %v10504_v9 = vadd.f32 %v13688_v33, %v13650_v28  ;;  %v13689_v39 = vpop.f32.mrb[46].mxu1  ;;  %v16152_v28 = vpack.c.bf16 %v24741_v62, %v24731_v54 }
 0xe86   : > { %v13690_v35 = vpop.f32.mrb[47].mxu1 }
 0xe87   : > { %v13691_v21 = vadd.f32 %v13690_v35, %v13689_v39  ;;  %16144 = vmatpush1.bf16.msra.mxu1 %v16143_v10  ;;  %v27901_v39 = vand.u32 4294901760, %v24567_v22  ;;  %v27902_v35 = vand.u32 4294901760, %v24569_v16 }
 0xe88   : > { %16145 = vmatprep.subr.bf16.mxu1 %v27896_v20 }
 0xe89   : > { %v10511_v38 = vadd.f32 %v13691_v21, %v13653_v12  ;;  %v16188_v21 = vpack.c.bf16 %v27902_v35, %v27901_v39 }
 0xe8b   : > { %16147 = vmatpush1.bf16.msra.mxu1 %v16146_v26 }
 0xe8c   : > { %16148 = vmatprep.subr.bf16.mxu1 %v27896_v20 }
 0xe8f   : > { %16150 = vmatpush1.bf16.msra.mxu1 %v16149_v34 }
 0xe90   : > { %16151 = vmatprep.subr.bf16.mxu1 %v27896_v20 }
 0xe93   : > { %16153 = vmatpush1.bf16.msra.mxu1 %v16152_v28 }
 0xe94   : > { %16154 = vmatprep.subr.bf16.mxu1 %v27896_v20 }
 0xe97   : > { %16156 = vmatpush1.bf16.msra.mxu1 %v16155_v51  ;;  %v27907_v51 = vand.u32 4294901760, %v24694_v19 }
 0xe98   : > { %16157 = vmatprep.subr.bf16.mxu1 %v27896_v20 }
 0xe9a   : > { %11453 = vmatmul.mubr.f32.vlgmr.msra.gmra.mrb[64].mxu1 %v24583_v18 }
 0xe9b   : > { %11459 = vmatprep.mubr.f32.mxu1 %v24599_v0  ;;  %16159 = vmatpush1.bf16.msra.mxu1 %v24442_v46  ;;  %v27905_v0 = vand.u32 4294901760, %v24605_v11  ;;  %v27906_v11 = vand.u32 4294901760, %v24689_v15  ;;  %v16209_v15 = vpack.c.bf16 %v11301_v17, %v11294_v30  ;;  %v11880_v30 = vand.u32 4294901760, %v11811_v37 }
 0xe9c   : > { %16160 = vmatprep.subr.bf16.mxu1 %v27896_v20 }
 0xe9d   : > { %v16200_v27 = vpack.c.bf16 %v27907_v51, %v27906_v11 }
 0xe9e   : > { %11462 = vmatmul.mubr.f32.gmra.mrb[66].mxu1 %v24626_v49  ;;  %v16194_v49 = vpack.c.bf16 %v11231_v25, %v11224_v47  ;;  %v16206_v47 = vpack.c.bf16 %v27909_v41, %v27908_v14  ;;  %v12278_v14 = vld [vmem:[%s25483_s12 + $0x28] sm:$0xff]  ;;  %v12279_v41 = vld [vmem:[%s25483_s12 + $0x30] sm:$0xff] }
 0xe9f   : > { %16162 = vmatpush1.bf16.msra.mxu1 %v24461_v24  ;;  %11552 = vmatprep.mubr.f32.mxu1 %v11150_v45  ;;  %v16185_v45 = vpack.c.bf16 %v27899_v59, %v11182_v58 }
 0xea0   : > { %16163 = vmatprep.subr.bf16.mxu1 %v27896_v20 }
 0xea1   : > { %v13724_v12 = vpop.f32.mrb[48].mxu1 }
 0xea2   : > { %v13725_v23 = vpop.f32.mrb[49].mxu1 }
 0xea3   : > { %v13726_v6 = vadd.f32 %v13725_v23, %v13724_v12  ;;  %16165 = vmatpush1.bf16.msra.mxu1 %v24478_v7 }
 0xea4   : > { %16166 = vmatprep.subr.bf16.mxu1 %v27896_v20 }
 0xea5   : > { %v10649_v32 = vadd.f32 %v13726_v6, %v10504_v9  ;;  %v13727_v31 = vpop.f32.mrb[50].mxu1  ;;  %v27900_v9 = vand.u32 4294901760, %v24583_v18  ;;  %v27904_v18 = vand.u32 4294901760, %v24602_v13  ;;  %v16197_v13 = vpack.c.bf16 %v11245_v1, %v11238_v5 }
 0xea6   : > { %v13728_v4 = vpop.f32.mrb[51].mxu1  ;;  %v11881_v6 = vsub.f32 %v11811_v37, %v11880_v30 }
 0xea7   : > { %v13729_v33 = vadd.f32 %v13728_v4, %v13727_v31  ;;  %16168 = vmatpush1.bf16.msra.mxu1 %v24498_v60 }
 0xea8   : > { %16169 = vmatprep.subr.bf16.mxu1 %v27896_v20  ;;  %v11882_v4 = vand.u32 4294901760, %v11881_v6 }
 0xea9   : > { %v10658_v10 = vadd.f32 %v13729_v33, %v10511_v38 }
 0xeab   : > { %16171 = vmatpush1.bf16.msra.mxu1 %v24518_v48 }
 0xeac   : > { %16172 = vmatprep.subr.bf16.mxu1 %v27896_v20 }
 0xeaf   : > { %16174 = vmatpush1.bf16.msra.mxu1 %v24546_v63 }
 0xeb0   : > { %16175 = vmatprep.subr.bf16.mxu1 %v27896_v20 }
 0xeb3   : > { %16177 = vmatpush1.bf16.msra.mxu1 %v24578_v44 }
 0xeb4   : > { %16178 = vmatprep.subr.bf16.mxu1 %v27896_v20 }
 0xeb7   : > { %16180 = vmatpush1.bf16.msra.mxu1 %v24611_v61 }
 0xeb8   : > { %16181 = vmatprep.subr.bf16.mxu1 %v27896_v20 }
 0xebb   : > { %16183 = vmatpush1.bf16.msra.mxu1 %v24653_v29 }
 0xebc   : > { %16184 = vmatprep.subr.bf16.mxu1 %v27896_v20 }
 0xebe   : > { %11556 = vmatmul.mubr.f32.vlgmr.msra.gmra.mrb[64].mxu1 %v27900_v9 }
 0xebf   : > { %11563 = vmatprep.mubr.f32.mxu1 %v11165_v40  ;;  %16186 = vmatpush1.bf16.msra.mxu1 %v16185_v45  ;;  %v16191_v40 = vpack.c.bf16 %v27905_v0, %v27904_v18  ;;  %v11883_v45 = vsub.f32 %v11881_v6, %v11882_v4 }
 0xec0   : > { %16187 = vmatprep.subr.bf16.mxu1 %v27896_v20 }
 0xec1   : > { %v13762_v56 = vpop.f32.mrb[52].mxu1 }
 0xec2   : > { %v13763_v26 = vpop.f32.mrb[53].mxu1  ;;  %11567 = vmatmul.mubr.f32.gmra.mrb[66].mxu1 %v27903_v3 }
 0xec3   : > { %v13764_v58 = vadd.f32 %v13763_v26, %v13762_v56  ;;  %16189 = vmatpush1.bf16.msra.mxu1 %v16188_v21  ;;  %11691 = vmatprep.mubr.f32.mxu1 %v24419_v42  ;;  %v11884_v56 = vand.u32 4294901760, %v11883_v45 }
 0xec4   : > { %16190 = vmatprep.subr.bf16.mxu1 %v27896_v20 }
 0xec5   : > { %v10766_v22 = vadd.f32 %v13764_v58, %v10649_v32  ;;  %v13765_v16 = vpop.f32.mrb[54].mxu1 }
 0xec6   : > { %v13766_v38 = vpop.f32.mrb[55].mxu1 }
 0xec7   : > { %v13767_v34 = vadd.f32 %v13766_v38, %v13765_v16  ;;  %16192 = vmatpush1.bf16.msra.mxu1 %v16191_v40 }
 0xec8   : > { %16193 = vmatprep.subr.bf16.mxu1 %v27896_v20 }
 0xec9   : > { %v10777_v28 = vadd.f32 %v13767_v34, %v10658_v10  ;;  %v12275_v34 = vld [vmem:[%s25483_s12 + $0x10] sm:$0xff] }
 0xecb   : > { %16195 = vmatpush1.bf16.msra.mxu1 %v16194_v49  ;;  %v12276_v49 = vld [vmem:[%s25483_s12 + $0x18] sm:$0xff] }
 0xecc   : > { %16196 = vmatprep.subr.bf16.mxu1 %v27896_v20 }
 0xecf   : > { %16198 = vmatpush1.bf16.msra.mxu1 %v16197_v13  ;;  %v12309_v13 = vand.u32 4294901760, %v12276_v49 }
 0xed0   : > { %16199 = vmatprep.subr.bf16.mxu1 %v27896_v20 }
 0xed3   : > { %16201 = vmatpush1.bf16.msra.mxu1 %v16200_v27  ;;  %v24963_v27 = vsub.f32 %v12276_v49, %v12309_v13 }
 0xed4   : > { %16202 = vmatprep.subr.bf16.mxu1 %v27896_v20 }
 0xed5   : > { %v12413_v45 = vand.u32 4294901760, %v24963_v27 }
 0xed7   : > { %16204 = vmatpush1.bf16.msra.mxu1 %v16203_v50  ;;  %v12277_v50 = vld [vmem:[%s25483_s12 + $0x20] sm:$0xff] }
 0xed8   : > { %16205 = vmatprep.subr.bf16.mxu1 %v27896_v20 }
 0xedb   : > { %16207 = vmatpush1.bf16.msra.mxu1 %v16206_v47  ;;  %v12312_v47 = vand.u32 4294901760, %v12277_v50 }
 0xedc   : > { %16208 = vmatprep.subr.bf16.mxu1 %v27896_v20 }
 0xedf   : > { %16210 = vmatpush1.bf16.msra.mxu1 %v16209_v15  ;;  %v12315_v15 = vand.u32 4294901760, %v12278_v14 }
 0xee0   : > { %16211 = vmatprep.subr.bf16.mxu1 %v27896_v20 }
 0xee1   : > { %v13800_v25 = vpop.f32.mrb[56].mxu1 }
 0xee2   : > { %v13801_v19 = vpop.f32.mrb[57].mxu1  ;;  %11693 = vmatmul.mubr.f32.vlgmr.msra.gmra.mrb[64].mxu1 %v24560_v55 }
 0xee3   : > { %v13802_v5 = vadd.f32 %v13801_v19, %v13800_v25  ;;  %11698 = vmatprep.mubr.f32.mxu1 %v24565_v43  ;;  %16213 = vmatpush1.bf16.msra.mxu1 %v24442_v46  ;;  %v12280_v25 = vld [vmem:[%s25483_s12 + $0x38] sm:$0xff]  ;;  %v12318_v19 = vand.u32 4294901760, %v12279_v41 }
 0xee4   : > { %16214 = vmatprep.subr.bf16.mxu1 %v27896_v20 }
 0xee5   : > { %v10945_v1 = vadd.f32 %v13802_v5, %v10766_v22  ;;  %v13803_v52 = vpop.f32.mrb[58].mxu1  ;;  %v12281_v5 = vld [vmem:[%s25483_s12 + $0x40] sm:$0xff] }
 0xee6   : > { %v13804_v57 = vpop.f32.mrb[59].mxu1  ;;  %11700 = vmatmul.mubr.f32.gmra.mrb[66].mxu1 %v24585_v8 }
 0xee7   : > { %v13805_v54 = vadd.f32 %v13804_v57, %v13803_v52  ;;  %16216 = vmatpush1.bf16.msra.mxu1 %v24461_v24  ;;  %11788 = vmatprep.mubr.f32.mxu1 %v24419_v42  ;;  %v12321_v52 = vand.u32 4294901760, %v12280_v25  ;;  %v12324_v57 = vand.u32 4294901760, %v12281_v5 }
 0xee8   : > { %16217 = vmatprep.subr.bf16.mxu1 %v27896_v20 }
 0xee9   : > { %v10952_v2 = vadd.f32 %v13805_v54, %v10777_v28  ;;  %v12306_v28 = vand.u32 4294901760, %v12275_v34 }
 0xeeb   : > { %16219 = vmatpush1.bf16.msra.mxu1 %v24478_v7  ;;  %v24959_v11 = vpack.c.bf16 %v12309_v13, %v12306_v28  ;;  %v24961_v51 = vsub.f32 %v12275_v34, %v12306_v28 }
 0xeec   : > { %16220 = vmatprep.subr.bf16.mxu1 %v27896_v20 }
 0xeef   : > { %16222 = vmatpush1.bf16.msra.mxu1 %v24498_v60 }
 0xef0   : > { %16223 = vmatprep.subr.bf16.mxu1 %v27896_v20 }
 0xef3   : > { %16225 = vmatpush1.bf16.msra.mxu1 %v24518_v48 }
 0xef4   : > { %16226 = vmatprep.subr.bf16.mxu1 %v27896_v20 }
 0xef7   : > { %16228 = vmatpush1.bf16.msra.mxu1 %v24546_v63 }
 0xef8   : > { %16229 = vmatprep.subr.bf16.mxu1 %v27896_v20 }
 0xefb   : > { %16231 = vmatpush1.bf16.msra.mxu1 %v24578_v44 }
 0xefc   : > { %16232 = vmatprep.subr.bf16.mxu1 %v27896_v20 }
 0xeff   : > { %16234 = vmatpush1.bf16.msra.mxu1 %v24611_v61  ;;  %v27910_v61 = vmov 0.0  }
 0xf00   : > { %16235 = vmatprep.subr.bf16.mxu1 %v27896_v20  ;;  %14041 = vmatprep.mubr.msk.f32.mxu0 %vm17204_vm3, %v27910_v61 }
 0xf01   : > { %v13838_v42 = vpop.f32.mrb[60].mxu1 }
 0xf02   : > { %v13839_v46 = vpop.f32.mrb[61].mxu1 }
 0xf03   : > { %v13840_v24 = vadd.f32 %v13839_v46, %v13838_v42  ;;  %16237 = vmatpush1.bf16.msra.mxu1 %v24653_v29  ;;  %v12273_v29 = vld [vmem:[%s25483_s12] sm:$0xff]  ;;  %v12284_v42 = vld [vmem:[%s25483_s12 + $0x58] sm:$0xff] }
 0xf04   : > { %16238 = vmatprep.subr.bf16.mxu1 %v27896_v20  ;;  %v12300_v36 = vand.u32 4294901760, %v12273_v29  ;;  %v12285_v46 = vld [vmem:[%s25483_s12 + $0x60] sm:$0xff]  ;;  %v12333_v53 = vand.u32 4294901760, %v12284_v42 }
 0xf05   : > { %v13841_v7 = vpop.f32.mrb[62].mxu1  ;;  %v11056_v60 = vadd.f32 %v13840_v24, %v10945_v1  ;;  %v12282_v1 = vld [vmem:[%s25483_s12 + $0x48] sm:$0xff]  ;;  %v24994_v24 = vpack.c.bf16 %v12315_v15, %v12312_v47  ;;  %v12336_v37 = vand.u32 4294901760, %v12285_v46 }
 0xf06   : > { %v13842_v48 = vpop.f32.mrb[63].mxu1  ;;  %11790 = vmatmul.mubr.f32.vlgmr.msra.gmra.mrb[64].mxu1 %v24560_v55  ;;  %v12274_v55 = vld [vmem:[%s25483_s12 + $0x8] sm:$0xff]  ;;  %v24923_v62 = vsub.f32 %v12273_v29, %v12300_v36  ;;  %v12327_v54 = vand.u32 4294901760, %v12282_v1  ;;  %v25007_v29 = vsub.f32 %v12280_v25, %v12321_v52 }
 0xf07   : > { %v13843_v63 = vadd.f32 %v13842_v48, %v13841_v7  ;;  %11795 = vmatprep.mubr.f32.mxu1 %v24565_v43  ;;  %v12303_v43 = vand.u32 4294901760, %v12274_v55  ;;  %v24996_v7 = vsub.f32 %v12277_v50, %v12312_v47  ;;  %v25000_v48 = vsub.f32 %v12279_v41, %v12318_v19 }
 0xf08   : > { %v12441_v50 = vand.u32 4294901760, %v25007_v29 }
 0xf09   : > { %v11063_v44 = vadd.f32 %v13843_v63, %v10952_v2  ;;  %v24947_v38 = vpack.c.bf16 %v12303_v43, %v12300_v36  ;;  %v12283_v2 = vld [vmem:[%s25483_s12 + $0x50] sm:$0xff]  ;;  %v12286_v63 = vld [vmem:[%s25483_s12 + $0x68] sm:$0xff]  ;;  %v25012_v36 = vsub.f32 %v12282_v1, %v12327_v54  ;;  %v12434_v13 = vand.u32 4294901760, %v25000_v48 }
 0xf0a   : > { %11797 = vmatmul.mubr.f32.gmra.mrb[66].mxu1 %v24585_v8  ;;  %v24925_v8 = vsub.f32 %v12274_v55, %v12303_v43  ;;  %v25009_v55 = vsub.f32 %v12281_v5, %v12324_v57  ;;  %v12330_v43 = vand.u32 4294901760, %v12283_v2 }
 0xf0b   : > { %14034 = vmatprep.mubr.msk.f32.mxu1 %vm17204_vm3, %v27910_v61  ;;  %v12435_v47 = vsub.f32 %v25000_v48, %v12434_v13 }
 0xf0c   : > { %v12448_v1 = vand.u32 4294901760, %v25009_v55 }
 0xfd9   : > { %v11791_v17 = vpop.f32.mrb[64].mxu1 }
 0xfda   : > { %v16527_v12 = vadd.f32 %v11791_v17, %v11056_v60  ;;  %v11793_v23 = vpop.f32.mrb[65].mxu1  ;;  %v24998_v60 = vsub.f32 %v12278_v14, %v12315_v15  ;;  %v25015_v17 = vsub.f32 %v12283_v2, %v12330_v43  ;;  %v12442_v15 = vsub.f32 %v25007_v29, %v12441_v50 }
 0xfdb   : > { %v25019_v23 = vsub.f32 %v12285_v46, %v12336_v37 }
 0xfdc   : > { %v11814_v32 = vand.u32 4294901760, %v16527_v12  ;;  %v12443_v5 = vand.u32 4294901760, %v12442_v15  ;;  %v16308_v15 = vpack.c.bf16 %v25007_v29, %v25000_v48 }
 0xfdd   : > { %v11798_v31 = vpop.f32.mrb[66].mxu1 }
 0xfde   : > { %v11892_v33 = vsub.f32 %v16527_v12, %v11814_v32  ;;  %v16528_v10 = vadd.f32 %v11798_v31, %v11063_v44  ;;  %v11800_v59 = vpop.f32.mrb[67].mxu1  ;;  %v25005_v44 = vpack.c.bf16 %v12321_v52, %v12318_v19  ;;  %v25017_v12 = vsub.f32 %v12284_v42, %v12333_v53 }
 0xfdf   : > { %v12392_v31 = vand.u32 4294901760, %v24923_v62  ;;  %v12406_v59 = vand.u32 4294901760, %v24961_v51  ;;  %v12436_v19 = vand.u32 4294901760, %v12435_v47  ;;  %v12455_v52 = vand.u32 4294901760, %v25012_v36 }
 0xfe0   : > { %v11893_v9 = vand.u32 4294901760, %v11892_v33  ;;  %v11817_v39 = vand.u32 4294901760, %v16528_v10  ;;  %v16305_v47 = vpack.c.bf16 %v24998_v60, %v24996_v7 }
 0xfe1   : > { %v12456_v2 = vsub.f32 %v25012_v36, %v12455_v52 }
 0xfe2   : > { %v16239_v35 = vpack.c.bf16 %v11817_v39, %v11814_v32  ;;  %v11899_v21 = vsub.f32 %v16528_v10, %v11817_v39  ;;  %v11894_v26 = vsub.f32 %v11892_v33, %v11893_v9  ;;  %v25024_v32 = vpack.c.bf16 %v12327_v54, %v12324_v57 }
 0xfe3   : > { %v16287_v57 = vpack.c.bf16 %v12443_v5, %v12436_v19  ;;  %v12449_v54 = vsub.f32 %v25009_v55, %v12448_v1  ;;  %v12457_v46 = vand.u32 4294901760, %v12456_v2  ;;  %v16311_v19 = vpack.c.bf16 %v25012_v36, %v25009_v55  ;;  %v12931_v36 = vld [vmem:[%s25485_s14 + $0x18] sm:$0xff] }
 0xfe4   : > { %v11900_v3 = vand.u32 4294901760, %v11899_v21  ;;  %v16245_v58 = vpack.c.bf16 %v11899_v21, %v11892_v33  ;;  %16240 = vmatpush3.bf16.msra.mxu1 %v16239_v35  ;;  %v11895_v40 = vand.u32 4294901760, %v11894_v26  ;;  %v12393_v33 = vsub.f32 %v24923_v62, %v12392_v31 }
 0xfe5   : > { %16382 = vmatprep.subr.bf16.mxu1 %v27896_v20  ;;  %v12450_v42 = vand.u32 4294901760, %v12449_v54  ;;  %v16314_v5 = vpack.c.bf16 %v25017_v12, %v25015_v17 }
 0xfe6   : > { %v11901_v18 = vsub.f32 %v11899_v21, %v11900_v3  ;;  %v16251_v0 = vpack.c.bf16 %v11900_v3, %v11893_v9  ;;  %v25038_v9 = vpack.c.bf16 %v12333_v53, %v12330_v43  ;;  %v12394_v39 = vand.u32 4294901760, %v12393_v33 }
 0xfe7   : > { %14035 = vmatmul.mubr.f32.vlgmr.msra.gmra.mrb[68].mxu1 %v11884_v56  ;;  %v12407_v21 = vsub.f32 %v24961_v51, %v12406_v59  ;;  %v12414_v56 = vsub.f32 %v24963_v27, %v12413_v45  ;;  %v26403_v43 = vand.u32 4294901760, %v25017_v12  ;;  %v16290_v53 = vpack.c.bf16 %v12457_v46, %v12450_v42  ;;  %v13609_v46 = vld [vmem:[%s25482_s11] ss:$0 sm:$0xff] }
 0xfe8   : > { %v11902_v22 = vand.u32 4294901760, %v11901_v18  ;;  %14292 = vmatprep.mubr.msk.f32.mxu1 %vm17204_vm3, %v27910_v61  ;;  %v12420_v18 = vand.u32 4294901760, %v24996_v7 }
 0xfe9   : > { %v12408_v3 = vand.u32 4294901760, %v12407_v21 }
 0xfea   : > { %v16242_v16 = vpack.c.bf16 %v11902_v22, %v11895_v40  ;;  %v12427_v40 = vand.u32 4294901760, %v24998_v60  ;;  %v25058_v22 = vld [vmem:[%s25483_s12 + $0x70] sm:$0xff]  ;;  %v12421_v34 = vsub.f32 %v24996_v7, %v12420_v18 }
 0xfeb   : > { %v25072_v14 = vand.u32 4294901760, %v25058_v22 }
 0xfec   : > { %16243 = vmatpush3.bf16.msra.mxu0 %v16242_v16  ;;  %v12428_v49 = vsub.f32 %v24998_v60, %v12427_v40  ;;  %v12422_v28 = vand.u32 4294901760, %v12421_v34  ;;  %v27912_v60 = vand.u32 4294901760, %v25019_v23 }
 0xfed   : > { %16244 = vmatprep.subr.bf16.mxu0 %v27896_v20 }
 0xfee   : > { %v12429_v41 = vand.u32 4294901760, %v12428_v49 }
 0xfef   : > { %14042 = vmatmul.mubr.f32.vlgmr.msra.gmra.mrb[62].mxu0 %v11880_v30 }
 0xff0   : > { %16246 = vmatpush3.bf16.msra.mxu0 %v16245_v58  ;;  %14048 = vmatprep.mubr.msk.f32.mxu0 %vm17204_vm3, %v27910_v61  ;;  %v12415_v58 = vand.u32 4294901760, %v12414_v56  ;;  %v16284_v25 = vpack.c.bf16 %v12429_v41, %v12422_v28  ;;  %v16299_v28 = vpack.c.bf16 %v24925_v8, %v24923_v62  ;;  %v16302_v41 = vpack.c.bf16 %v24963_v27, %v24961_v51 }
 0xff1   : > { %16247 = vmatprep.subr.bf16.mxu0 %v27896_v20  ;;  %v16347_v62 = vpack.c.bf16 %v12427_v40, %v12420_v18  ;;  %v16353_v51 = vpack.c.bf16 %v12455_v52, %v12448_v1  ;;  %v27911_v27 = vand.u32 4294901760, %v25017_v12 }
 0xff2   : > { %v25060_v16 = vpack.c.bf16 %v12415_v58, %v12408_v3 }
 0xff7   : > { %14049 = vmatmul.mubr.f32.vlgmr.msra.gmra.mrb[62].mxu0 %v11881_v6 }
 0xff8   : > { %16249 = vmatpush3.bf16.msra.mxu0 %v16239_v35  ;;  %14055 = vmatprep.mubr.msk.f32.mxu0 %vm17204_vm3, %v27910_v61 }
 0xff9   : > { %16250 = vmatprep.subr.bf16.mxu0 %v27896_v20 }
 0xfff   : > { %14056 = vmatmul.mubr.f32.vlgmr.msra.gmra.mrb[62].mxu0 %v11882_v4  ;;  %v12399_v4 = vand.u32 4294901760, %v24925_v8 }
0x1000   : > { %16252 = vmatpush3.bf16.msra.mxu0 %v16251_v0  ;;  %14062 = vmatprep.mubr.msk.f32.mxu0 %vm17204_vm3, %v27910_v61 }
0x1001   : > { %16253 = vmatprep.subr.bf16.mxu0 %v27896_v20  ;;  %v12400_v10 = vsub.f32 %v24925_v8, %v12399_v4  ;;  %v16350_v8 = vpack.c.bf16 %v12441_v50, %v12434_v13  ;;  %v12937_v13 = vld [vmem:[%s25485_s14 + $0x48] sm:$0xff] }
0x1007   : > { %14063 = vmatmul.mubr.f32.vlgmr.msra.gmra.mrb[62].mxu0 %v11880_v30 }
0x1008   : > { %16255 = vmatpush3.bf16.msra.mxu0 %v16239_v35  ;;  %14069 = vmatprep.mubr.msk.f32.mxu0 %vm17204_vm3, %v27910_v61  ;;  %v12401_v35 = vand.u32 4294901760, %v12400_v10 }
0x1009   : > { %16256 = vmatprep.subr.bf16.mxu0 %v27896_v20 }
0x100a   : > { %v25047_v26 = vpack.c.bf16 %v12401_v35, %v12394_v39  ;;  %v26402_v39 = vand.u32 4294901760, %v25019_v23 }
0x100c   : > { %v12477_v56 = vsub.f32 %v25019_v23, %v26402_v39 }
0x100e   : > { %v12478_v58 = vand.u32 4294901760, %v12477_v56 }
0x100f   : > { %14070 = vmatmul.mubr.f32.vlgmr.msra.gmra.mrb[62].mxu0 %v11880_v30  ;;  %v12339_v30 = vand.u32 4294901760, %v12286_v63 }
0x1010   : > { %16258 = vmatpush3.bf16.msra.mxu0 %v24947_v38  ;;  %14102 = vmatprep.mubr.msk.f32.mxu0 %vm17204_vm3, %v27910_v61 }
0x1011   : > { %16259 = vmatprep.subr.bf16.mxu0 %v27896_v20  ;;  %v25021_v6 = vsub.f32 %v12286_v63, %v12339_v30  ;;  %v25051_v0 = vpack.c.bf16 %v12339_v30, %v12336_v37  ;;  %v12462_v63 = vand.u32 4294901760, %v25015_v17  ;;  %v12470_v30 = vsub.f32 %v25017_v12, %v26403_v43  ;;  %v12932_v12 = vld [vmem:[%s25485_s14 + $0x20] sm:$0xff] }
0x1013   : > { %v12463_v37 = vsub.f32 %v25015_v17, %v12462_v63  ;;  %v12471_v10 = vand.u32 4294901760, %v12470_v30  ;;  %v26401_v35 = vand.u32 4294901760, %v25021_v6  ;;  %v16317_v54 = vpack.c.bf16 %v25021_v6, %v25019_v23  ;;  %v12933_v23 = vld [vmem:[%s25485_s14 + $0x28] sm:$0xff] }
0x1014   : > { %16261 = vmatpush3.bf16.msra.mxu0 %v24959_v11  ;;  %v16356_v7 = vpack.c.bf16 %v27911_v27, %v12462_v63  ;;  %v27913_v48 = vand.u32 4294901760, %v25021_v6 }
0x1015   : > { %16262 = vmatprep.subr.bf16.mxu0 %v27896_v20  ;;  %v12464_v33 = vand.u32 4294901760, %v12463_v37  ;;  %v12484_v3 = vsub.f32 %v25021_v6, %v26401_v35  ;;  %v12962_v6 = vand.u32 4294901760, %v12931_v36 }
0x1016   : > { %v16359_v29 = vpack.c.bf16 %v27913_v48, %v27912_v60 }
0x1017   : > { %v16293_v21 = vpack.c.bf16 %v12471_v10, %v12464_v33  ;;  %v12485_v34 = vand.u32 4294901760, %v12484_v3 }
0x1018   : > { %16264 = vmatpush3.bf16.msra.mxu0 %v24994_v24 }
0x1019   : > { %16265 = vmatprep.subr.bf16.mxu0 %v27896_v20  ;;  %v16296_v49 = vpack.c.bf16 %v12485_v34, %v12478_v58 }
0x101c   : > { %16267 = vmatpush3.bf16.msra.mxu0 %v25005_v44 }
0x101d   : > { %16268 = vmatprep.subr.bf16.mxu0 %v27896_v20 }
0x1020   : > { %16270 = vmatpush3.bf16.msra.mxu0 %v25024_v32 }
0x1021   : > { %16271 = vmatprep.subr.bf16.mxu0 %v27896_v20 }
0x1024   : > { %16273 = vmatpush3.bf16.msra.mxu0 %v25038_v9 }
0x1025   : > { %16274 = vmatprep.subr.bf16.mxu0 %v27896_v20 }
0x1028   : > { %16276 = vmatpush3.bf16.msra.mxu0 %v25051_v0 }
0x1029   : > { %14100 = vmatprep.subr.mxu0 %v27910_v61 }
0x102c   : > { %14101 = vmatpush3.msra.mxu0 %v25072_v14 }
0x102d   : > { %16277 = vmatprep.subr.bf16.mxu0 %v27896_v20 }
0x10ba   : > { %v11886_v2 = vpop.f32.mrb[68].mxu1 }
0x10bb   : > { %v14036_v42 = vpop.f32.mrb[69].mxu1  ;;  %v11887_v37 = vadd.f32 %v13609_v46, %v11886_v2  ;;  %v25136_v2 = vsub.f32 %v25058_v22, %v25072_v14  ;;  %v16341_v22 = vpack.c.bf16 %v12399_v4, %v12392_v31  ;;  %v12968_v31 = vand.u32 4294901760, %v12933_v23  ;;  %v12934_v4 = vld [vmem:[%s25485_s14 + $0x30] sm:$0xff] }
0x10bc   : > { %v12971_v63 = vand.u32 4294901760, %v12934_v4 }
0x10bd   : > { %v25281_v52 = vsub.f32 %v12933_v23, %v12968_v31 }
0x10e2   : > { %v12268_v30 = vpop.f32.mrb[62].mxu0 }
0x10e3   : > { %v16530_v33 = vadd.f32 %v12268_v30, %v11887_v37  ;;  %v14071_v10 = vpop.f32.mrb[63].mxu0 }
0x10e5   : > { %17126 = vtanh.f32 %v16530_v33 }
0x10ef   : > { %v17127_v56 = vpop.eup %17126 }
0x10f0   : > { %v12297_v3 = vsel %vm12295_vm4, %v17127_v56, 0  ;;  %v12938_v56 = vld [vmem:[%s25485_s14 + $0x50] sm:$0xf] }
0x10f1   : > { %v25124_v58 = vand.u32 4294901760, %v12297_v3 }
0x10f3   : > { %v12380_v34 = vsub.f32 %v12297_v3, %v25124_v58 }
0x10f5   : > { %v12381_v35 = vand.u32 4294901760, %v12380_v34 }
0x10f7   : > { %v12382_v39 = vsub.f32 %v12380_v34, %v12381_v35 }
0x10f9   : > { %v12383_v43 = vand.u32 4294901760, %v12382_v39  ;;  %v12980_v39 = vand.u32 4294901760, %v12937_v13 }
0x10fb   : > { %14103 = vmatmul.mubr.f32.vlgmr.msra.gmra.mrb[64].mxu0 %v12383_v43 }
0x10fc   : > { %16279 = vmatpush3.bf16.msra.mxu0 %v25047_v26  ;;  %14135 = vmatprep.mubr.msk.f32.mxu0 %vm17204_vm3, %v27910_v61  ;;  %v12490_v26 = vand.u32 4294901760, %v25136_v2 }
0x10fd   : > { %16280 = vmatprep.subr.bf16.mxu0 %v27896_v20 }
0x1100   : > { %16282 = vmatpush3.bf16.msra.mxu0 %v25060_v16  ;;  %v12491_v16 = vsub.f32 %v25136_v2, %v12490_v26 }
0x1101   : > { %16283 = vmatprep.subr.bf16.mxu0 %v27896_v20 }
0x1104   : > { %16285 = vmatpush3.bf16.msra.mxu0 %v16284_v25  ;;  %v12492_v25 = vand.u32 4294901760, %v12491_v16  ;;  %v13076_v16 = vand.u32 4294901760, %v25281_v52 }
0x1105   : > { %16286 = vmatprep.subr.bf16.mxu0 %v27896_v20 }
0x1108   : > { %16288 = vmatpush3.bf16.msra.mxu0 %v16287_v57  ;;  %v16344_v57 = vpack.c.bf16 %v12413_v45, %v12406_v59  ;;  %v12935_v59 = vld [vmem:[%s25485_s14 + $0x38] sm:$0xff]  ;;  %v12936_v45 = vld [vmem:[%s25485_s14 + $0x40] sm:$0xff] }
0x1109   : > { %16289 = vmatprep.subr.bf16.mxu0 %v27896_v20  ;;  %v12974_v43 = vand.u32 4294901760, %v12935_v59 }
0x110b   : > { %v25303_v46 = vpack.c.bf16 %v12974_v43, %v12971_v63 }
0x110c   : > { %16291 = vmatpush3.bf16.msra.mxu0 %v16290_v53  ;;  %v12977_v53 = vand.u32 4294901760, %v12936_v45 }
0x110d   : > { %16292 = vmatprep.subr.bf16.mxu0 %v27896_v20 }
0x1110   : > { %16294 = vmatpush3.bf16.msra.mxu0 %v16293_v21  ;;  %v25286_v21 = vsub.f32 %v12935_v59, %v12974_v43 }
0x1111   : > { %16295 = vmatprep.subr.bf16.mxu0 %v27896_v20 }
0x1112   : > { %v13090_v27 = vand.u32 4294901760, %v25286_v21 }
0x1114   : > { %16297 = vmatpush3.bf16.msra.mxu0 %v16296_v49  ;;  %v25288_v49 = vsub.f32 %v12936_v45, %v12977_v53 }
0x1115   : > { %14133 = vmatprep.subr.mxu0 %v27910_v61 }
0x1118   : > { %14134 = vmatpush3.msra.mxu0 %v12492_v25  ;;  %v12950_v25 = vsel %vm5066_vm7, %v12938_v56, 0 }
0x1119   : > { %14136 = vmatmul.mubr.f32.vlgmr.msra.gmra.mrb[64].mxu0 %v25124_v58  ;;  %16298 = vmatprep.subr.bf16.mxu0 %v27896_v20 }
0x111a   : > { %16300 = vmatpush3.bf16.msra.mxu0 %v16299_v28  ;;  %14168 = vmatprep.mubr.msk.f32.mxu0 %vm17204_vm3, %v27910_v61  ;;  %v25290_v28 = vsub.f32 %v12937_v13, %v12980_v39 }
0x111b   : > { %16301 = vmatprep.subr.bf16.mxu0 %v27896_v20 }
0x111c   : > { %v16425_v13 = vpack.c.bf16 %v25290_v28, %v25288_v49 }
0x111e   : > { %16303 = vmatpush3.bf16.msra.mxu0 %v16302_v41 }
0x111f   : > { %16304 = vmatprep.subr.bf16.mxu0 %v27896_v20 }
0x1122   : > { %16306 = vmatpush3.bf16.msra.mxu0 %v16305_v47 }
0x1123   : > { %16307 = vmatprep.subr.bf16.mxu0 %v27896_v20 }
0x1126   : > { %16309 = vmatpush3.bf16.msra.mxu0 %v16308_v15 }
0x1127   : > { %16310 = vmatprep.subr.bf16.mxu0 %v27896_v20 }
0x112a   : > { %16312 = vmatpush3.bf16.msra.mxu0 %v16311_v19 }
0x112b   : > { %16313 = vmatprep.subr.bf16.mxu0 %v27896_v20 }
0x112e   : > { %16315 = vmatpush3.bf16.msra.mxu0 %v16314_v5 }
0x112f   : > { %16316 = vmatprep.subr.bf16.mxu0 %v27896_v20 }
0x1132   : > { %16318 = vmatpush3.bf16.msra.mxu0 %v16317_v54 }
0x1133   : > { %14166 = vmatprep.subr.mxu0 %v27910_v61 }
0x1136   : > { %14167 = vmatpush3.msra.mxu0 %v25136_v2 }
0x1137   : > { %14169 = vmatmul.mubr.f32.vlgmr.msra.gmra.mrb[64].mxu0 %v12380_v34  ;;  %16319 = vmatprep.subr.bf16.mxu0 %v27896_v20 }
0x1138   : > { %16321 = vmatpush3.bf16.msra.mxu0 %v24947_v38  ;;  %14201 = vmatprep.mubr.msk.f32.mxu0 %vm17204_vm3, %v27910_v61 }
0x1139   : > { %16322 = vmatprep.subr.bf16.mxu0 %v27896_v20 }
0x113c   : > { %16324 = vmatpush3.bf16.msra.mxu0 %v24959_v11 }
0x113d   : > { %16325 = vmatprep.subr.bf16.mxu0 %v27896_v20 }
0x1140   : > { %16327 = vmatpush3.bf16.msra.mxu0 %v24994_v24 }
0x1141   : > { %16328 = vmatprep.subr.bf16.mxu0 %v27896_v20 }
0x1144   : > { %16330 = vmatpush3.bf16.msra.mxu0 %v25005_v44 }
0x1145   : > { %16331 = vmatprep.subr.bf16.mxu0 %v27896_v20 }
0x1148   : > { %16333 = vmatpush3.bf16.msra.mxu0 %v25024_v32 }
0x1149   : > { %16334 = vmatprep.subr.bf16.mxu0 %v27896_v20 }
0x114c   : > { %16336 = vmatpush3.bf16.msra.mxu0 %v25038_v9 }
0x114d   : > { %16337 = vmatprep.subr.bf16.mxu0 %v27896_v20 }
0x1150   : > { %16339 = vmatpush3.bf16.msra.mxu0 %v25051_v0 }
0x1151   : > { %14199 = vmatprep.subr.mxu0 %v27910_v61 }
0x1154   : > { %14200 = vmatpush3.msra.mxu0 %v25072_v14 }
0x1155   : > { %14202 = vmatmul.mubr.f32.vlgmr.msra.gmra.mrb[64].mxu0 %v12381_v35  ;;  %16340 = vmatprep.subr.bf16.mxu0 %v27896_v20  ;;  %v25284_v35 = vsub.f32 %v12934_v4, %v12971_v63 }
0x1156   : > { %16342 = vmatpush3.bf16.msra.mxu0 %v16341_v22  ;;  %14234 = vmatprep.mubr.msk.f32.mxu0 %vm17204_vm3, %v27910_v61 }
0x1157   : > { %16343 = vmatprep.subr.bf16.mxu0 %v27896_v20  ;;  %v16422_v45 = vpack.c.bf16 %v25286_v21, %v25284_v35 }
0x115a   : > { %16345 = vmatpush3.bf16.msra.mxu0 %v16344_v57 }
0x115b   : > { %16346 = vmatprep.subr.bf16.mxu0 %v27896_v20 }
0x115e   : > { %16348 = vmatpush3.bf16.msra.mxu0 %v16347_v62  ;;  %v13077_v62 = vsub.f32 %v25281_v52, %v13076_v16 }
0x115f   : > { %16349 = vmatprep.subr.bf16.mxu0 %v27896_v20 }
0x1160   : > { %v13078_v60 = vand.u32 4294901760, %v13077_v62 }
0x1162   : > { %16351 = vmatpush3.bf16.msra.mxu0 %v16350_v8 }
0x1163   : > { %16352 = vmatprep.subr.bf16.mxu0 %v27896_v20 }
0x1166   : > { %16354 = vmatpush3.bf16.msra.mxu0 %v16353_v51  ;;  %v13083_v51 = vand.u32 4294901760, %v25284_v35 }
0x1167   : > { %16355 = vmatprep.subr.bf16.mxu0 %v27896_v20 }
0x1168   : > { %v13084_v48 = vsub.f32 %v25284_v35, %v13083_v51 }
0x116a   : > { %16357 = vmatpush3.bf16.msra.mxu0 %v16356_v7  ;;  %v25323_v7 = vand.u32 4294901760, %v12950_v25 }
0x116b   : > { %16358 = vmatprep.subr.bf16.mxu0 %v27896_v20 }
0x116e   : > { %16360 = vmatpush3.bf16.msra.mxu0 %v16359_v29  ;;  %v13091_v29 = vsub.f32 %v25286_v21, %v13090_v27 }
0x116f   : > { %14232 = vmatprep.subr.mxu0 %v27910_v61 }
0x1172   : > { %14233 = vmatpush3.msra.mxu0 %v12490_v26  ;;  %v25313_v26 = vpack.c.bf16 %v12980_v39, %v12977_v53  ;;  %v25350_v39 = vpack.c.bf16 %v13090_v27, %v13083_v51 }
0x1173   : > { %14235 = vmatmul.mubr.f32.vlgmr.msra.gmra.mrb[64].mxu0 %v25124_v58  ;;  %16361 = vmatprep.subr.bf16.mxu0 %v27896_v20 }
0x1174   : > { %16363 = vmatpush3.bf16.msra.mxu0 %v24947_v38  ;;  %14267 = vmatprep.mubr.msk.f32.mxu0 %vm17204_vm3, %v27910_v61  ;;  %v12928_v38 = vld [vmem:[%s25485_s14] sm:$0xff] }
0x1175   : > { %16364 = vmatprep.subr.bf16.mxu0 %v27896_v20 }
0x1178   : > { %16366 = vmatpush3.bf16.msra.mxu0 %v24959_v11  ;;  %v12929_v11 = vld [vmem:[%s25485_s14 + $0x8] sm:$0xff] }
0x1179   : > { %16367 = vmatprep.subr.bf16.mxu0 %v27896_v20  ;;  %v12956_v55 = vand.u32 4294901760, %v12929_v11 }
0x117c   : > { %16369 = vmatpush3.bf16.msra.mxu0 %v24994_v24  ;;  %v12930_v24 = vld [vmem:[%s25485_s14 + $0x10] sm:$0xff] }
0x117d   : > { %16370 = vmatprep.subr.bf16.mxu0 %v27896_v20  ;;  %v12959_v17 = vand.u32 4294901760, %v12930_v24 }
0x117f   : > { %v25269_v40 = vsub.f32 %v12930_v24, %v12959_v17  ;;  %v25274_v50 = vpack.c.bf16 %v12962_v6, %v12959_v17  ;;  %v13092_v24 = vand.u32 4294901760, %v13091_v29 }
0x1180   : > { %16372 = vmatpush3.bf16.msra.mxu0 %v25005_v44  ;;  %v12953_v44 = vand.u32 4294901760, %v12928_v38 }
0x1181   : > { %16373 = vmatprep.subr.bf16.mxu0 %v27896_v20  ;;  %v13055_v54 = vand.u32 4294901760, %v25269_v40 }
0x1182   : > { %v25265_v18 = vsub.f32 %v12928_v38, %v12953_v44 }
0x1183   : > { %v13056_v33 = vsub.f32 %v25269_v40, %v13055_v54 }
0x1184   : > { %16375 = vmatpush3.bf16.msra.mxu0 %v25024_v32  ;;  %v12965_v32 = vand.u32 4294901760, %v12932_v12  ;;  %v13041_v47 = vand.u32 4294901760, %v25265_v18 }
0x1185   : > { %16376 = vmatprep.subr.bf16.mxu0 %v27896_v20 }
0x1186   : > { %v25278_v1 = vsub.f32 %v12932_v12, %v12965_v32  ;;  %v25293_v41 = vpack.c.bf16 %v12968_v31, %v12965_v32  ;;  %v13042_v19 = vsub.f32 %v25265_v18, %v13041_v47 }
0x1188   : > { %16378 = vmatpush3.bf16.msra.mxu0 %v25038_v9  ;;  %v25263_v9 = vpack.c.bf16 %v12956_v55, %v12953_v44  ;;  %v13043_v37 = vand.u32 4294901760, %v13042_v19  ;;  %v13069_v2 = vand.u32 4294901760, %v25278_v1  ;;  %v13097_v44 = vand.u32 4294901760, %v25288_v49 }
0x1189   : > { %16379 = vmatprep.subr.bf16.mxu0 %v27896_v20  ;;  %v16419_v59 = vpack.c.bf16 %v25281_v52, %v25278_v1  ;;  %v13110_v19 = vsub.f32 %v12950_v25, %v25323_v7 }
0x118a   : > { %16384 = vmatpush3.bf16.msra.mxu1 %v25263_v9  ;;  %v13070_v57 = vsub.f32 %v25278_v1, %v13069_v2  ;;  %v13098_v17 = vsub.f32 %v25288_v49, %v13097_v44  ;;  %v25348_v53 = vpack.c.bf16 %v13076_v16, %v13069_v2 }
0x118b   : > { %16385 = vmatprep.subr.bf16.mxu1 %v27896_v20 }
0x118c   : > { %16381 = vmatpush3.bf16.msra.mxu0 %v25051_v0  ;;  %v25267_v0 = vsub.f32 %v12929_v11, %v12956_v55  ;;  %v13071_v8 = vand.u32 4294901760, %v13070_v57  ;;  %v13085_v11 = vand.u32 4294901760, %v13084_v48  ;;  %v13104_v55 = vand.u32 4294901760, %v25290_v28 }
0x118d   : > { %14265 = vmatprep.subr.mxu0 %v27910_v61  ;;  %v13099_v23 = vand.u32 4294901760, %v13098_v17 }
0x118e   : > { %16387 = vmatpush3.bf16.msra.mxu1 %v25274_v50  ;;  %v13048_v15 = vand.u32 4294901760, %v25267_v0  ;;  %v16404_v38 = vpack.c.bf16 %v13078_v60, %v13071_v8  ;;  %v13105_v12 = vsub.f32 %v25290_v28, %v13104_v55  ;;  %v16413_v31 = vpack.c.bf16 %v25267_v0, %v25265_v18 }
0x118f   : > { %16388 = vmatprep.subr.bf16.mxu1 %v27896_v20  ;;  %v25352_v18 = vpack.c.bf16 %v13104_v55, %v13097_v44 }
0x1190   : > { %14266 = vmatpush3.msra.mxu0 %v25072_v14  ;;  %v25276_v14 = vsub.f32 %v12931_v36, %v12962_v6  ;;  %v13049_v5 = vsub.f32 %v25267_v0, %v13048_v15  ;;  %v16407_v36 = vpack.c.bf16 %v13092_v24, %v13085_v11  ;;  %v13106_v6 = vand.u32 4294901760, %v13105_v12  ;;  %v13610_v0 = vld [vmem:[%s25484_s13] ss:$0 sm:$0xff] }
0x1191   : > { %14268 = vmatmul.mubr.f32.vlgmr.msra.gmra.mrb[64].mxu0 %v25124_v58  ;;  %v13057_v58 = vand.u32 4294901760, %v13056_v33  ;;  %v25344_v63 = vpack.c.bf16 %v13048_v15, %v13041_v47 }
0x1192   : > { %v13062_v42 = vand.u32 4294901760, %v25276_v14  ;;  %16390 = vmatpush3.bf16.msra.mxu1 %v25293_v41  ;;  %v13050_v30 = vand.u32 4294901760, %v13049_v5  ;;  %v16410_v32 = vpack.c.bf16 %v13106_v6, %v13099_v23  ;;  %v16416_v4 = vpack.c.bf16 %v25276_v14, %v25269_v40 }
0x1193   : > { %16391 = vmatprep.subr.bf16.mxu1 %v27896_v20  ;;  %v13111_v5 = vand.u32 4294901760, %v13110_v19 }
0x1194   : > { %v13063_v10 = vsub.f32 %v25276_v14, %v13062_v42  ;;  %v16398_v3 = vpack.c.bf16 %v13050_v30, %v13043_v37  ;;  %v25346_v43 = vpack.c.bf16 %v13062_v42, %v13055_v54 }
0x1195   : > { %v13112_v54 = vsub.f32 %v13110_v19, %v13111_v5 }
0x1196   : > { %v13064_v34 = vand.u32 4294901760, %v13063_v10  ;;  %16393 = vmatpush3.bf16.msra.mxu1 %v25303_v46 }
0x1197   : > { %16394 = vmatprep.subr.bf16.mxu1 %v27896_v20  ;;  %v13113_v42 = vand.u32 4294901760, %v13112_v54 }
0x1198   : > { %v16401_v22 = vpack.c.bf16 %v13064_v34, %v13057_v58 }
0x119a   : > { %16396 = vmatpush3.bf16.msra.mxu1 %v25313_v26 }
0x119b   : > { %14290 = vmatprep.subr.mxu1 %v27910_v61 }
0x119e   : > { %14291 = vmatpush3.msra.mxu1 %v25323_v7 }
0x119f   : > { %16397 = vmatprep.subr.bf16.mxu1 %v27896_v20 }
0x1264   : > { %v12923_v40 = vpop.f32.mrb[64].mxu0 }
0x1265   : > { %v16531_v14 = vadd.f32 %v13610_v0, %v12923_v40  ;;  %v14269_v1 = vpop.f32.mrb[65].mxu0 }
0x1267   : > { %17128 = vtanh.f32 %v16531_v14 }
0x1271   : > { %v17129_v52 = vpop.eup %17128 }
0x1272   : > { %v12947_v35 = vsel %vm5101_vm8, %v17129_v52, 0 }
0x1273   : > { %v25358_v21 = vand.u32 4294901760, %v12947_v35 }
0x1275   : > { %v13029_v49 = vsub.f32 %v12947_v35, %v25358_v21 }
0x1277   : > { %v13030_v28 = vand.u32 4294901760, %v13029_v49 }
0x1279   : > { %v13031_v47 = vsub.f32 %v13029_v49, %v13030_v28 }
0x127b   : > { %v13032_v15 = vand.u32 4294901760, %v13031_v47 }
0x127d   : > { %14293 = vmatmul.mubr.f32.vlgmr.msra.gmra.mrb[70].mxu1 %v13032_v15 }
0x127e   : > { %16399 = vmatpush3.bf16.msra.mxu1 %v16398_v3  ;;  %14317 = vmatprep.mubr.msk.f32.mxu1 %vm17204_vm3, %v27910_v61 }
0x127f   : > { %16400 = vmatprep.subr.bf16.mxu1 %v27896_v20 }
0x1282   : > { %16402 = vmatpush3.bf16.msra.mxu1 %v16401_v22 }
0x1283   : > { %16403 = vmatprep.subr.bf16.mxu1 %v27896_v20 }
0x1286   : > { %16405 = vmatpush3.bf16.msra.mxu1 %v16404_v38 }
0x1287   : > { %16406 = vmatprep.subr.bf16.mxu1 %v27896_v20 }
0x128a   : > { %16408 = vmatpush3.bf16.msra.mxu1 %v16407_v36 }
0x128b   : > { %16409 = vmatprep.subr.bf16.mxu1 %v27896_v20 }
0x128e   : > { %16411 = vmatpush3.bf16.msra.mxu1 %v16410_v32 }
0x128f   : > { %14315 = vmatprep.subr.mxu1 %v27910_v61 }
0x1292   : > { %14316 = vmatpush3.msra.mxu1 %v13113_v42 }
0x1293   : > { %14318 = vmatmul.mubr.f32.vlgmr.msra.gmra.mrb[70].mxu1 %v25358_v21  ;;  %16412 = vmatprep.subr.bf16.mxu1 %v27896_v20 }
0x1294   : > { %16414 = vmatpush3.bf16.msra.mxu1 %v16413_v31  ;;  %14342 = vmatprep.mubr.msk.f32.mxu1 %vm17204_vm3, %v27910_v61 }
0x1295   : > { %16415 = vmatprep.subr.bf16.mxu1 %v27896_v20 }
0x1298   : > { %16417 = vmatpush3.bf16.msra.mxu1 %v16416_v4 }
0x1299   : > { %16418 = vmatprep.subr.bf16.mxu1 %v27896_v20 }
0x129c   : > { %16420 = vmatpush3.bf16.msra.mxu1 %v16419_v59 }
0x129d   : > { %16421 = vmatprep.subr.bf16.mxu1 %v27896_v20 }
0x12a0   : > { %16423 = vmatpush3.bf16.msra.mxu1 %v16422_v45 }
0x12a1   : > { %16424 = vmatprep.subr.bf16.mxu1 %v27896_v20 }
0x12a4   : > { %16426 = vmatpush3.bf16.msra.mxu1 %v16425_v13 }
0x12a5   : > { %14340 = vmatprep.subr.mxu1 %v27910_v61 }
0x12a8   : > { %14341 = vmatpush3.msra.mxu1 %v13110_v19 }
0x12a9   : > { %14343 = vmatmul.mubr.f32.vlgmr.msra.gmra.mrb[70].mxu1 %v13029_v49  ;;  %16427 = vmatprep.subr.bf16.mxu1 %v27896_v20 }
0x12aa   : > { %16429 = vmatpush3.bf16.msra.mxu1 %v25263_v9  ;;  %14367 = vmatprep.mubr.msk.f32.mxu1 %vm17204_vm3, %v27910_v61 }
0x12ab   : > { %16430 = vmatprep.subr.bf16.mxu1 %v27896_v20 }
0x12ae   : > { %16432 = vmatpush3.bf16.msra.mxu1 %v25274_v50 }
0x12af   : > { %16433 = vmatprep.subr.bf16.mxu1 %v27896_v20 }
0x12b2   : > { %16435 = vmatpush3.bf16.msra.mxu1 %v25293_v41 }
0x12b3   : > { %16436 = vmatprep.subr.bf16.mxu1 %v27896_v20 }
0x12b6   : > { %16438 = vmatpush3.bf16.msra.mxu1 %v25303_v46 }
0x12b7   : > { %16439 = vmatprep.subr.bf16.mxu1 %v27896_v20 }
0x12ba   : > { %16441 = vmatpush3.bf16.msra.mxu1 %v25313_v26 }
0x12bb   : > { %14365 = vmatprep.subr.mxu1 %v27910_v61 }
0x12be   : > { %14366 = vmatpush3.msra.mxu1 %v25323_v7 }
0x12bf   : > { %14368 = vmatmul.mubr.f32.vlgmr.msra.gmra.mrb[70].mxu1 %v13030_v28  ;;  %16442 = vmatprep.subr.bf16.mxu1 %v27896_v20 }
0x12c0   : > { %16444 = vmatpush3.bf16.msra.mxu1 %v25344_v63  ;;  %14392 = vmatprep.mubr.msk.f32.mxu1 %vm17204_vm3, %v27910_v61 }
0x12c1   : > { %16445 = vmatprep.subr.bf16.mxu1 %v27896_v20 }
0x12c4   : > { %16447 = vmatpush3.bf16.msra.mxu1 %v25346_v43 }
0x12c5   : > { %16448 = vmatprep.subr.bf16.mxu1 %v27896_v20 }
0x12c8   : > { %16450 = vmatpush3.bf16.msra.mxu1 %v25348_v53 }
0x12c9   : > { %16451 = vmatprep.subr.bf16.mxu1 %v27896_v20 }
0x12cc   : > { %16453 = vmatpush3.bf16.msra.mxu1 %v25350_v39 }
0x12cd   : > { %16454 = vmatprep.subr.bf16.mxu1 %v27896_v20 }
0x12d0   : > { %16456 = vmatpush3.bf16.msra.mxu1 %v25352_v18 }
0x12d1   : > { %14390 = vmatprep.subr.mxu1 %v27910_v61 }
0x12d4   : > { %14391 = vmatpush3.msra.mxu1 %v13111_v5 }
0x12d5   : > { %14393 = vmatmul.mubr.f32.vlgmr.msra.gmra.mrb[70].mxu1 %v25358_v21  ;;  %16457 = vmatprep.subr.bf16.mxu1 %v27896_v20 }
0x12d6   : > { %16459 = vmatpush3.bf16.msra.mxu1 %v25263_v9  ;;  %14417 = vmatprep.mubr.msk.f32.mxu1 %vm17204_vm3, %v27910_v61  ;;  %v13611_v9 = vld [vmem:[%s25486_s15] ss:$0 sm:$0xff] }
0x12d7   : > { %16460 = vmatprep.subr.bf16.mxu1 %v27896_v20 }
0x12da   : > { %16462 = vmatpush3.bf16.msra.mxu1 %v25274_v50 }
0x12db   : > { %16463 = vmatprep.subr.bf16.mxu1 %v27896_v20 }
0x12de   : > { %16465 = vmatpush3.bf16.msra.mxu1 %v25293_v41 }
0x12df   : > { %16466 = vmatprep.subr.bf16.mxu1 %v27896_v20 }
0x12e2   : > { %16468 = vmatpush3.bf16.msra.mxu1 %v25303_v46 }
0x12e3   : > { %16469 = vmatprep.subr.bf16.mxu1 %v27896_v20 }
0x12e6   : > { %16471 = vmatpush3.bf16.msra.mxu1 %v25313_v26 }
0x12e7   : > { %14415 = vmatprep.subr.mxu1 %v27910_v61 }
0x12ea   : > { %14416 = vmatpush3.msra.mxu1 %v25323_v7 }
0x12eb   : > { %14418 = vmatmul.mubr.f32.vlgmr.msra.gmra.mrb[70].mxu1 %v25358_v21 }
0x13be   : > { %v13524_v50 = vpop.f32.mrb[70].mxu1 }
0x13bf   : > { %v16532_v20 = vadd.f32 %v13611_v9, %v13524_v50  ;;  %v14419_v41 = vpop.f32.mrb[71].mxu1 }
0x13c1   : > { %13529 = vst.msk [vmem:[%s514_s20] sm:$0xf] %vm13528_vm5, %v16532_v20 }
0x13c2   : > { %17143 = shalt.err (!%p17140_p3)
}
0x13c3   : > { %s17144_s18 = scalar_lea.hbm %s25429_s19, 64  ;;  %s17148_s23 = scalar_lea.hbm %s25487_s16, 128 }
0x13c4   : > { %p17145_p4 = scmp.ne.s32.totalorder %s25429_s19, %s17144_s18  ;;  %p17149_p9 = scmp.lt.u32.totalorder %s25429_s19, %s25487_s16 }
0x13c5   : > { %p17150_p10 = scmp.lt.u32.totalorder %s17148_s23, %s17144_s18  ;;  %p17152_p12 = scmp.lt.u32.totalorder %s17144_s18, %s25429_s19 }
0x13c6   : > { %p17146_p7 = pnand %p17145_p4, %p17329_p5 }
0x13c7   : > { %p17151_p11 = por %p17150_p10, %p17149_p9 }
0x13c8   : > { %p17147_p8 = pneg %p17146_p7 }
0x13c9   : > { %p17153_p13 = por %p17152_p12, %p17151_p11 }
0x13cb   : > { %p17154_p0 = pnand %p17153_p13, %p17147_p8 }
0x13cd   : > { %17157 = shalt.err (!%p17154_p0)
}
0x13ce   : > { %17056 = dma.vmem_to_hbm [thread:$0]  (%p17329_p5), %s25431_s29, 64, %s25429_s19, %s13531_s30  }
0x13cf PF: > { %p17062_p1 = scmp.ge.s32.totalorder %s17192_s24, 2  ;;  %s13556_s26 = sand.u32 1, %s17180_s21  }
0x13d0   : > { %s13557_s28 = scalar_lea.sflag [#allocation3], %s13556_s26 }
0x13d1   : > { %p17059_p2 = pnand %p17062_p1, %p17333_p6 }
0x13d3   : > { %17175 = dma.done.wait (!%p17059_p2), %s13557_s28, 64  }
0x13d4   : > { %17177 = vsyncadd (!%p17059_p2), %s13557_s28, 4294967232  ;;  %s27915_s24 = sld [smem:[#allocation6_spill]]  ;;  %s27916_s18 = sld [smem:[#allocation5_spill]] }
0x13d5   : > { %s27917_s23 = sld [smem:[#allocation7_spill]]  ;;  %s27918_s21 = smov %s17184_s22 }
0x13da   : > { %p26_p3 = scmp.ge.s32.totalorder %s27915_s24, 4   ;;  %s27919_s22 = smov %s27916_s18 }
0x13dc   :  { %28 = sbr.rel (!%p26_p3) target bundleno = 6 (0x6), region = 119 }
0x13e3   :  { %13562 = vsyncpa [#allocation3], 1 }
0x13e4   :  { %13564 = vsyncpa [#allocation3 + $0x1], 1 }

</bundles_post_ra>
